<compile_context>
chip_gen: v6e
topology: v6e:2x2x1
jax: 0.10.0
libtpu: 0.0.40
codegen_flags: <defaults>
</compile_context>

<pallas_src>
import functools
import math

import jax
import jax.numpy as jnp
import numpy as np
from jax.experimental import pallas as pl
from jax.experimental.pallas import tpu as pltpu

EPS = 1e-5
_HIGHEST = jax.lax.Precision.HIGHEST


# ----------------------------------------------------------------------------
# Pallas kernels
# ----------------------------------------------------------------------------
def _double_layernorm(y, g1, b1, g2, b2):
    """PatchEmbed LayerNorm followed by all_patch_norm LayerNorm (both over E)."""
    m = jnp.mean(y, axis=-1, keepdims=True)
    v = jnp.mean((y - m) ** 2, axis=-1, keepdims=True)
    y = (y - m) * jax.lax.rsqrt(v + EPS) * g1 + b1
    m = jnp.mean(y, axis=-1, keepdims=True)
    v = jnp.mean((y - m) ** 2, axis=-1, keepdims=True)
    return (y - m) * jax.lax.rsqrt(v + EPS) * g2 + b2


def _embed_rows(x_ref, w_ref, c_ref):
    """Patch projection + bias + fused double LayerNorm for one row tile."""
    c = c_ref[...]                                  # (8, E) packed constants
    bias, g1, b1 = c[0:1, :], c[1:2, :], c[2:3, :]  # proj bias, PatchEmbed LN
    g2, b2 = c[3:4, :], c[4:5, :]                   # all_patch_norm LN
    y = jnp.dot(x_ref[...], w_ref[...],
                preferred_element_type=jnp.float32, precision=_HIGHEST)
    return _double_layernorm(y + bias, g1, b1, g2, b2)


def dense_pe_kernel(x_ref, w_ref, c_ref, *refs):
    """Vehicle / flow branch: write one full row tile of final tokens.

    refs = (alias_ref?, o_ref).  An aliased output-slab ref (if present) is
    never read -- aliasing only keeps the already-written rows alive.
    """
    o_ref = refs[-1]
    o_ref[...] = _embed_rows(x_ref, w_ref, c_ref).astype(o_ref.dtype)


def map_pe_kernel(x_ref, w_ref, c_ref, alias_ref, o_ref, *, pad, grid_g, padded):
    """Map branch: one padded-map row (`padded` tokens) per grid step.

    Real rows compute `grid_g` tokens and fill the 2*pad pad columns with
    all_beta; pure pad rows are filled entirely with all_beta (exact
    all_patch_norm output of an all-zero token).
    """
    del alias_ref  # aliased output slab (pl.ANY); never read
    r = pl.program_id(1)
    c = c_ref[...]
    beta2 = c[4:5, :]                               # all_patch_norm beta
    e = o_ref.shape[-1]
    is_real = jnp.logical_and(r >= pad, r < pad + grid_g)

    @pl.when(is_real)
    def _():
        y = _embed_rows(x_ref, w_ref, c_ref).astype(o_ref.dtype)   # (grid_g, E)
        fill = jnp.broadcast_to(beta2, (pad, e)).astype(o_ref.dtype)
        o_ref[0:pad, :] = fill
        o_ref[pad:pad + grid_g, :] = y
        o_ref[pad + grid_g:padded, :] = fill

    @pl.when(jnp.logical_not(is_real))
    def _():
        o_ref[...] = jnp.broadcast_to(beta2, (padded, e)).astype(o_ref.dtype)


# ----------------------------------------------------------------------------
# Wrappers
# ----------------------------------------------------------------------------
def _row_tile(n, cap=4096):
    """Largest tile (<= cap, multiple of 8) dividing n."""
    for t in (4096, 2048, 1024, 512, 256, 128, 64, 32, 16, 8):
        if t <= cap and t <= n and n % t == 0:
            return t
    return n


def _patchify(x_nhwc, patch):
    """Non-overlapping patch extraction -> (B*ph*pw, patch*patch*C).

    # TODO(synk): this pre-pass (and the vehicle T-slice feeding it) is a
    # single fused XLA copy; doing the 4x4 flatten in-kernel from the raw NHWC
    # tensor would save one HBM round trip of the image inputs.
    """
    B, H, W, C = x_nhwc.shape
    ph, pw = H // patch, W // patch
    return (
        x_nhwc.reshape(B, ph, patch, pw, patch, C)
        .transpose(0, 1, 3, 2, 4, 5)
        .reshape(B * ph * pw, patch * patch * C)
    )


def _pack_consts(pe, all_gamma, all_beta, embed_dim):
    """Pack proj bias, PatchEmbed gamma/beta, all_patch_norm gamma/beta -> (8, E)."""
    rows = jnp.stack(
        [pe["b"], pe["gamma"], pe["beta"], all_gamma, all_beta], axis=0
    ).astype(jnp.float32)
    return jnp.concatenate([rows, jnp.zeros((3, embed_dim), jnp.float32)], axis=0)


def occ_flow_input_patcher(params, x, map_img, flow, *, patch=4):
    embed_dim = params["veh"]["w"].shape[1]
    dtype = x.dtype

    B, H, W = x.shape[:3]
    Hm = map_img.shape[1]
    P = H // patch                  # padded map grid == image patch grid (orig 128)
    g = Hm // patch                 # real map grid                       (orig 64)
    pad = (P - g) // 2              # pad                                 (orig 32)
    assert W // patch == P and g + 2 * pad == P
    assert g % 8 == 0 and P % 8 == 0, "map / padded grids must be sublane aligned"

    Sv = P * P                      # vehicle tokens per batch
    Sp = P * P                      # padded map tokens per batch
    Sf = Sv                         # flow tokens per batch
    S_total = Sv + Sp + Sf
    Ntot = B * S_total

    tm = _row_tile(Sv)              # divides Sv, Sv+Sp and S_total (all = k*Sv)

    cparams = pltpu.CompilerParams(
        dimension_semantics=("parallel", "parallel"),
        vmem_limit_bytes=32 * 1024 * 1024,
    )

    consts_v = _pack_consts(params["veh"], params["all_gamma"], params["all_beta"], embed_dim)
    consts_m = _pack_consts(params["map"], params["all_gamma"], params["all_beta"], embed_dim)
    consts_f = _pack_consts(params["flow"], params["all_gamma"], params["all_beta"], embed_dim)

    # ---- vehicle branch: creates the (Ntot, E) slab and fills rows
    #      [b*S_total, b*S_total + Sv). Remaining rows are written by the map /
    #      flow calls below, which alias this buffer (P8 pattern).
    xp_v = _patchify(x[..., 0], patch)
    Kv = xp_v.shape[1]
    out = pl.pallas_call(
        dense_pe_kernel,
        out_shape=jax.ShapeDtypeStruct((Ntot, embed_dim), dtype),
        grid_spec=pltpu.PrefetchScalarGridSpec(
            num_scalar_prefetch=0,
            grid=(B, Sv // tm),
            in_specs=[
                pl.BlockSpec((tm, Kv), lambda b, i: (b * (Sv // tm) + i, 0)),
                pl.BlockSpec((Kv, embed_dim), lambda b, i: (0, 0)),
                pl.BlockSpec((8, embed_dim), lambda b, i: (0, 0)),
            ],
            out_specs=pl.BlockSpec(
                (tm, embed_dim), lambda b, i: (b * (S_total // tm) + i, 0)
            ),
        ),
        compiler_params=cparams,
    )(xp_v, params["veh"]["w"], consts_v)

    # ---- map branch: one padded-map row per grid step, written into rows
    #      [b*S_total + Sv, b*S_total + Sv + Sp). Pad rows/cols get all_beta.
    xp_m = _patchify(map_img, patch)
    Km = xp_m.shape[1]
    map_kernel = functools.partial(map_pe_kernel, pad=pad, grid_g=g, padded=P)
    out = pl.pallas_call(
        map_kernel,
        out_shape=jax.ShapeDtypeStruct((Ntot, embed_dim), dtype),
        grid_spec=pltpu.PrefetchScalarGridSpec(
            num_scalar_prefetch=0,
            grid=(B, P),
            in_specs=[
                pl.BlockSpec(
                    (g, Km),
                    lambda b, r: (b * g + jnp.clip(r - pad, 0, g - 1), 0),
                ),
                pl.BlockSpec((Km, embed_dim), lambda b, r: (0, 0)),
                pl.BlockSpec((8, embed_dim), lambda b, r: (0, 0)),
                pl.BlockSpec(memory_space=pl.ANY),   # aliased slab, never read
            ],
            out_specs=pl.BlockSpec(
                (P, embed_dim),
                lambda b, r: (b * (S_total // P) + (Sv // P) + r, 0),
            ),
        ),
        input_output_aliases={3: 0},
        compiler_params=cparams,
    )(xp_m, params["map"]["w"], consts_m, out)

    # ---- flow branch: rows [b*S_total + Sv + Sp, (b+1)*S_total).
    xp_f = _patchify(flow, patch)
    Kf = xp_f.shape[1]
    off = (Sv + Sp) // tm
    out = pl.pallas_call(
        dense_pe_kernel,
        out_shape=jax.ShapeDtypeStruct((Ntot, embed_dim), dtype),
        grid_spec=pltpu.PrefetchScalarGridSpec(
            num_scalar_prefetch=0,
            grid=(B, Sf // tm),
            in_specs=[
                pl.BlockSpec((tm, Kf), lambda b, i: (b * (Sf // tm) + i, 0)),
                pl.BlockSpec((Kf, embed_dim), lambda b, i: (0, 0)),
                pl.BlockSpec((8, embed_dim), lambda b, i: (0, 0)),
                pl.BlockSpec(memory_space=pl.ANY),   # aliased slab, never read
            ],
            out_specs=pl.BlockSpec(
                (tm, embed_dim), lambda b, i: (b * (S_total // tm) + off + i, 0)
            ),
        ),
        input_output_aliases={3: 0},
        compiler_params=cparams,
    )(xp_f, params["flow"]["w"], consts_f, out)

    return out.reshape(B, S_total, embed_dim)


# ----------------------------------------------------------------------------
# Pure-JAX reference (for correctness check)
# ----------------------------------------------------------------------------
def _ref_ln(y, g, b):
    m = y.mean(-1, keepdims=True)
    v = ((y - m) ** 2).mean(-1, keepdims=True)
    return (y - m) / jnp.sqrt(v + EPS) * g + b


def _ref_patch_embed(xn, w, b, gamma, beta, patch=4):
    B, H, W, C = xn.shape
    ph, pw = H // patch, W // patch
    xp = (
        xn.reshape(B, ph, patch, pw, patch, C)
        .transpose(0, 1, 3, 2, 4, 5)
        .reshape(B, ph * pw, patch * patch * C)
    )
    return _ref_ln(jnp.dot(xp, w, precision=_HIGHEST) + b, gamma, beta)


def _ref_forward(params, x, map_img, flow, patch=4):
    E = params["veh"]["w"].shape[1]
    B, H = x.shape[0], x.shape[1]
    g = map_img.shape[1] // patch
    P = H // patch
    pad = (P - g) // 2
    vec = x[..., 0]
    xt = _ref_patch_embed(vec, **params["veh"], patch=patch)
    mp = _ref_patch_embed(map_img, **params["map"], patch=patch)
    mp = mp.reshape(B, g, g, E)
    mp = jnp.pad(mp, ((0, 0), (pad, pad), (pad, pad), (0, 0)))
    mp = mp.reshape(B, P * P, E)
    xt = jnp.concatenate([xt, mp], axis=1)
    fl = _ref_patch_embed(flow, **params["flow"], patch=patch)
    xt = jnp.concatenate([xt, fl], axis=1)
    return _ref_ln(xt, params["all_gamma"], params["all_beta"])


# ----------------------------------------------------------------------------
# main
# ----------------------------------------------------------------------------
if __name__ == "__main__":
    key = jax.random.PRNGKey(0)
    patch = 4
    embed_dim = 32

    # Scaled shapes keeping the module geometry: image 64x64, map 32x32
    # -> map grid 8, pad 4, padded grid 16 (orig: 512x512 / 256x256 -> 64/32/128)
    B, H, W, T = 2, 64, 64, 2
    Hm = Wm = 32

    keys = jax.random.split(key, 16)

    def make_pe_params(kw, kb, kg, kbe, in_chans):
        K = patch * patch * in_chans
        return {
            "w": jax.random.normal(kw, (K, embed_dim), jnp.float32) / math.sqrt(K),
            "b": jax.random.normal(kb, (embed_dim,), jnp.float32) * 0.02,
            "gamma": 1.0 + jax.random.normal(kg, (embed_dim,), jnp.float32) * 0.05,
            "beta": jax.random.normal(kbe, (embed_dim,), jnp.float32) * 0.02,
        }

    params = {
        "veh": make_pe_params(keys[0], keys[1], keys[2], keys[3], 11),
        "map": make_pe_params(keys[4], keys[5], keys[6], keys[7], 3),
        "flow": make_pe_params(keys[8], keys[9], keys[10], keys[11], 2),
        "all_gamma": 1.0 + jax.random.normal(keys[12], (embed_dim,), jnp.float32) * 0.05,
        "all_beta": jax.random.normal(keys[13], (embed_dim,), jnp.float32) * 0.02,
    }

    x = jax.random.normal(keys[14], (B, H, W, 11, T), jnp.float32)
    kk = jax.random.split(keys[15], 2)
    map_img = jax.random.normal(kk[0], (B, Hm, Wm, 3), jnp.float32)
    flow = jax.random.normal(kk[1], (B, H, W, 2), jnp.float32)

    fwd = jax.jit(lambda p, a, m, f: occ_flow_input_patcher(p, a, m, f, patch=patch))
    out = jax.block_until_ready(fwd(params, x, map_img, flow))

    ref = _ref_forward(params, x, map_img, flow, patch=patch)
    np.testing.assert_allclose(np.asarray(out), np.asarray(ref), rtol=1e-4, atol=1e-4)

    Sv = (H // patch) * (W // patch)
    assert out.shape == (B, 3 * Sv, embed_dim)

    print("KERNEL_OK")
</pallas_src>

<mosaic_0001>
module attributes {stable_mosaic.version = 11 : i64} {
  func.func @dense_pe_kernel(%arg0: i32, %arg1: i32, %arg2: memref<256x176xf32, #tpu.memory_space<vmem>>, %arg3: memref<176x32xf32, #tpu.memory_space<vmem>>, %arg4: memref<8x32xf32, #tpu.memory_space<vmem>>, %arg5: memref<256x32xf32, #tpu.memory_space<vmem>>) attributes {dimension_semantics = [#tpu.dimension_semantics<parallel>, #tpu.dimension_semantics<parallel>], iteration_bounds = array<i64: 2, 1>, scalar_prefetch = 0 : i64, scratch_operands = 0 : i64, tpu.core_type = #tpu.core_type<tc>, window_params = [{transform_indices = @transform_0, window_bounds = array<i64: 256, 176>}, {pipeline_mode = #tpu.pipeline_mode<synchronous>, transform_indices = @transform_1, window_bounds = array<i64: 176, 32>}, {pipeline_mode = #tpu.pipeline_mode<synchronous>, transform_indices = @transform_2, window_bounds = array<i64: 8, 32>}, {transform_indices = @transform_3, window_bounds = array<i64: 256, 32>}]} {
    %c0 = arith.constant 0 : index
    %c0_0 = arith.constant 0 : index
    %0 = vector.load %arg4[%c0, %c0_0] : memref<8x32xf32, #tpu.memory_space<vmem>>, vector<8x32xf32>
    %1 = vector.extract_strided_slice %0 {offsets = [0, 0], sizes = [1, 32], strides = [1, 1]} : vector<8x32xf32> to vector<1x32xf32>
    %2 = vector.extract_strided_slice %0 {offsets = [1, 0], sizes = [1, 32], strides = [1, 1]} : vector<8x32xf32> to vector<1x32xf32>
    %3 = vector.extract_strided_slice %0 {offsets = [2, 0], sizes = [1, 32], strides = [1, 1]} : vector<8x32xf32> to vector<1x32xf32>
    %4 = vector.extract_strided_slice %0 {offsets = [3, 0], sizes = [1, 32], strides = [1, 1]} : vector<8x32xf32> to vector<1x32xf32>
    %5 = vector.extract_strided_slice %0 {offsets = [4, 0], sizes = [1, 32], strides = [1, 1]} : vector<8x32xf32> to vector<1x32xf32>
    %c0_1 = arith.constant 0 : index
    %c0_2 = arith.constant 0 : index
    %6 = vector.load %arg2[%c0_1, %c0_2] : memref<256x176xf32, #tpu.memory_space<vmem>>, vector<256x176xf32>
    %c0_3 = arith.constant 0 : index
    %c0_4 = arith.constant 0 : index
    %7 = vector.load %arg3[%c0_3, %c0_4] : memref<176x32xf32, #tpu.memory_space<vmem>>, vector<176x32xf32>
    %cst = arith.constant dense<0.000000e+00> : vector<256x32xf32>
    %8 = tpu.matmul %6, %7, %cst {dimension_numbers = #tpu.dot_dimension_numbers<[1], [0], [0], [1], [0, 0, 1, 1], [], []>, precision = #tpu.contract_precision<fp32>} : vector<256x176xf32>, vector<176x32xf32>, vector<256x32xf32> -> vector<256x32xf32>
    %9 = vector.broadcast %1 : vector<1x32xf32> to vector<256x32xf32>
    %10 = arith.addf %8, %9 : vector<256x32xf32>
    %cst_5 = arith.constant dense<0.000000e+00> : vector<256xf32>
    %11 = vector.multi_reduction <add>, %10, %cst_5 [1] : vector<256x32xf32> to vector<256xf32>
    %12 = vector.shape_cast %11 : vector<256xf32> to vector<256x1xf32>
    %cst_6 = arith.constant 3.200000e+01 : f32
    %13 = vector.broadcast %cst_6 : f32 to vector<256x1xf32>
    %14 = arith.divf %12, %13 : vector<256x1xf32>
    %15 = vector.broadcast %14 : vector<256x1xf32> to vector<256x32xf32>
    %16 = arith.subf %10, %15 : vector<256x32xf32>
    %17 = arith.mulf %16, %16 : vector<256x32xf32>
    %cst_7 = arith.constant dense<0.000000e+00> : vector<256xf32>
    %18 = vector.multi_reduction <add>, %17, %cst_7 [1] : vector<256x32xf32> to vector<256xf32>
    %19 = vector.shape_cast %18 : vector<256xf32> to vector<256x1xf32>
    %cst_8 = arith.constant 3.200000e+01 : f32
    %20 = vector.broadcast %cst_8 : f32 to vector<256x1xf32>
    %21 = arith.divf %19, %20 : vector<256x1xf32>
    %22 = vector.broadcast %14 : vector<256x1xf32> to vector<256x32xf32>
    %23 = arith.subf %10, %22 : vector<256x32xf32>
    %cst_9 = arith.constant 9.99999974E-6 : f32
    %24 = vector.broadcast %cst_9 : f32 to vector<256x1xf32>
    %25 = arith.addf %21, %24 : vector<256x1xf32>
    %26 = math.rsqrt %25 : vector<256x1xf32>
    %27 = vector.broadcast %26 : vector<256x1xf32> to vector<256x32xf32>
    %28 = arith.mulf %23, %27 : vector<256x32xf32>
    %29 = vector.broadcast %2 : vector<1x32xf32> to vector<256x32xf32>
    %30 = arith.mulf %28, %29 : vector<256x32xf32>
    %31 = vector.broadcast %3 : vector<1x32xf32> to vector<256x32xf32>
    %32 = arith.addf %30, %31 : vector<256x32xf32>
    %cst_10 = arith.constant dense<0.000000e+00> : vector<256xf32>
    %33 = vector.multi_reduction <add>, %32, %cst_10 [1] : vector<256x32xf32> to vector<256xf32>
    %34 = vector.shape_cast %33 : vector<256xf32> to vector<256x1xf32>
    %cst_11 = arith.constant 3.200000e+01 : f32
    %35 = vector.broadcast %cst_11 : f32 to vector<256x1xf32>
    %36 = arith.divf %34, %35 : vector<256x1xf32>
    %37 = vector.broadcast %36 : vector<256x1xf32> to vector<256x32xf32>
    %38 = arith.subf %32, %37 : vector<256x32xf32>
    %39 = arith.mulf %38, %38 : vector<256x32xf32>
    %cst_12 = arith.constant dense<0.000000e+00> : vector<256xf32>
    %40 = vector.multi_reduction <add>, %39, %cst_12 [1] : vector<256x32xf32> to vector<256xf32>
    %41 = vector.shape_cast %40 : vector<256xf32> to vector<256x1xf32>
    %cst_13 = arith.constant 3.200000e+01 : f32
    %42 = vector.broadcast %cst_13 : f32 to vector<256x1xf32>
    %43 = arith.divf %41, %42 : vector<256x1xf32>
    %44 = vector.broadcast %36 : vector<256x1xf32> to vector<256x32xf32>
    %45 = arith.subf %32, %44 : vector<256x32xf32>
    %cst_14 = arith.constant 9.99999974E-6 : f32
    %46 = vector.broadcast %cst_14 : f32 to vector<256x1xf32>
    %47 = arith.addf %43, %46 : vector<256x1xf32>
    %48 = math.rsqrt %47 : vector<256x1xf32>
    %49 = vector.broadcast %48 : vector<256x1xf32> to vector<256x32xf32>
    %50 = arith.mulf %45, %49 : vector<256x32xf32>
    %51 = vector.broadcast %4 : vector<1x32xf32> to vector<256x32xf32>
    %52 = arith.mulf %50, %51 : vector<256x32xf32>
    %53 = vector.broadcast %5 : vector<1x32xf32> to vector<256x32xf32>
    %54 = arith.addf %52, %53 : vector<256x32xf32>
    %c0_15 = arith.constant 0 : index
    %c0_16 = arith.constant 0 : index
    %55 = vector.load %arg5[%c0_15, %c0_16] : memref<256x32xf32, #tpu.memory_space<vmem>>, vector<256x32xf32>
    tpu.vector_store %arg5[%c0_15, %c0_16], %54 {strides = array<i32>} : memref<256x32xf32, #tpu.memory_space<vmem>>, vector<256x32xf32>,
    return
  }
  func.func @transform_0(%arg0: i32, %arg1: i32) -> (i32, i32) {
    %c1_i32 = arith.constant 1 : i32
    %0 = arith.muli %arg0, %c1_i32 : i32
    %1 = arith.addi %0, %arg1 : i32
    %c0_i32 = arith.constant 0 : i32
    %c0_i32_0 = arith.constant 0 : i32
    return %1, %c0_i32 : i32, i32
  }
  func.func @transform_1(%arg0: i32, %arg1: i32) -> (i32, i32) {
    %c0_i32 = arith.constant 0 : i32
    %c0_i32_0 = arith.constant 0 : i32
    %c0_i32_1 = arith.constant 0 : i32
    return %c0_i32, %c0_i32_0 : i32, i32
  }
  func.func @transform_2(%arg0: i32, %arg1: i32) -> (i32, i32) {
    %c0_i32 = arith.constant 0 : i32
    %c0_i32_0 = arith.constant 0 : i32
    %c0_i32_1 = arith.constant 0 : i32
    return %c0_i32, %c0_i32_0 : i32, i32
  }
  func.func @transform_3(%arg0: i32, %arg1: i32) -> (i32, i32) {
    %c3_i32 = arith.constant 3 : i32
    %0 = arith.muli %arg0, %c3_i32 : i32
    %1 = arith.addi %0, %arg1 : i32
    %c0_i32 = arith.constant 0 : i32
    %c0_i32_0 = arith.constant 0 : i32
    return %1, %c0_i32 : i32, i32
  }
}

module attributes {stable_mosaic.version = 11 : i64} {
  func.func @map_pe_kernel(%arg0: i32, %arg1: i32, %arg2: memref<8x48xf32, #tpu.memory_space<vmem>>, %arg3: memref<48x32xf32, #tpu.memory_space<vmem>>, %arg4: memref<8x32xf32, #tpu.memory_space<vmem>>, %arg5: memref<1536x32xf32, #tpu.memory_space<any>>, %arg6: memref<16x32xf32, #tpu.memory_space<vmem>>) attributes {dimension_semantics = [#tpu.dimension_semantics<parallel>, #tpu.dimension_semantics<parallel>], iteration_bounds = array<i64: 2, 16>, scalar_prefetch = 0 : i64, scratch_operands = 0 : i64, tpu.core_type = #tpu.core_type<tc>, window_params = [{transform_indices = @transform_0, window_bounds = array<i64: 8, 48>}, {pipeline_mode = #tpu.pipeline_mode<synchronous>, transform_indices = @transform_1, window_bounds = array<i64: 48, 32>}, {pipeline_mode = #tpu.pipeline_mode<synchronous>, transform_indices = @transform_2, window_bounds = array<i64: 8, 32>}, {}, {transform_indices = @transform_4, window_bounds = array<i64: 16, 32>}]} {
    %c0 = arith.constant 0 : index
    %c0_0 = arith.constant 0 : index
    %0 = vector.load %arg4[%c0, %c0_0] : memref<8x32xf32, #tpu.memory_space<vmem>>, vector<8x32xf32>
    %1 = vector.extract_strided_slice %0 {offsets = [4, 0], sizes = [1, 32], strides = [1, 1]} : vector<8x32xf32> to vector<1x32xf32>
    %c4_i32 = arith.constant 4 : i32
    %2 = arith.cmpi sge, %arg1, %c4_i32 : i32
    %c12_i32 = arith.constant 12 : i32
    %3 = arith.cmpi slt, %arg1, %c12_i32 : i32
    %4 = arith.andi %2, %3 : i1
    %5 = arith.extui %4 : i1 to i32
    %c0_i32 = arith.constant 0 : i32
    %6 = arith.cmpi ne, %5, %c0_i32 : i32
    scf.if %6 {
      %c0_2 = arith.constant 0 : index
      %c0_3 = arith.constant 0 : index
      %10 = vector.load %arg4[%c0_2, %c0_3] : memref<8x32xf32, #tpu.memory_space<vmem>>, vector<8x32xf32>
      %11 = vector.extract_strided_slice %10 {offsets = [0, 0], sizes = [1, 32], strides = [1, 1]} : vector<8x32xf32> to vector<1x32xf32>
      %12 = vector.extract_strided_slice %10 {offsets = [1, 0], sizes = [1, 32], strides = [1, 1]} : vector<8x32xf32> to vector<1x32xf32>
      %13 = vector.extract_strided_slice %10 {offsets = [2, 0], sizes = [1, 32], strides = [1, 1]} : vector<8x32xf32> to vector<1x32xf32>
      %14 = vector.extract_strided_slice %10 {offsets = [3, 0], sizes = [1, 32], strides = [1, 1]} : vector<8x32xf32> to vector<1x32xf32>
      %15 = vector.extract_strided_slice %10 {offsets = [4, 0], sizes = [1, 32], strides = [1, 1]} : vector<8x32xf32> to vector<1x32xf32>
      %c0_4 = arith.constant 0 : index
      %c0_5 = arith.constant 0 : index
      %16 = vector.load %arg2[%c0_4, %c0_5] : memref<8x48xf32, #tpu.memory_space<vmem>>, vector<8x48xf32>
      %c0_6 = arith.constant 0 : index
      %c0_7 = arith.constant 0 : index
      %17 = vector.load %arg3[%c0_6, %c0_7] : memref<48x32xf32, #tpu.memory_space<vmem>>, vector<48x32xf32>
      %cst = arith.constant dense<0.000000e+00> : vector<8x32xf32>
      %18 = tpu.matmul %16, %17, %cst {dimension_numbers = #tpu.dot_dimension_numbers<[1], [0], [0], [1], [0, 0, 1, 1], [], []>, precision = #tpu.contract_precision<fp32>} : vector<8x48xf32>, vector<48x32xf32>, vector<8x32xf32> -> vector<8x32xf32>
      %19 = vector.broadcast %11 : vector<1x32xf32> to vector<8x32xf32>
      %20 = arith.addf %18, %19 : vector<8x32xf32>
      %cst_8 = arith.constant dense<0.000000e+00> : vector<8xf32>
      %21 = vector.multi_reduction <add>, %20, %cst_8 [1] : vector<8x32xf32> to vector<8xf32>
      %22 = vector.shape_cast %21 : vector<8xf32> to vector<8x1xf32>
      %cst_9 = arith.constant 3.200000e+01 : f32
      %23 = vector.broadcast %cst_9 : f32 to vector<8x1xf32>
      %24 = arith.divf %22, %23 : vector<8x1xf32>
      %25 = vector.broadcast %24 : vector<8x1xf32> to vector<8x32xf32>
      %26 = arith.subf %20, %25 : vector<8x32xf32>
      %27 = arith.mulf %26, %26 : vector<8x32xf32>
      %cst_10 = arith.constant dense<0.000000e+00> : vector<8xf32>
      %28 = vector.multi_reduction <add>, %27, %cst_10 [1] : vector<8x32xf32> to vector<8xf32>
      %29 = vector.shape_cast %28 : vector<8xf32> to vector<8x1xf32>
      %cst_11 = arith.constant 3.200000e+01 : f32
      %30 = vector.broadcast %cst_11 : f32 to vector<8x1xf32>
      %31 = arith.divf %29, %30 : vector<8x1xf32>
      %32 = vector.broadcast %24 : vector<8x1xf32> to vector<8x32xf32>
      %33 = arith.subf %20, %32 : vector<8x32xf32>
      %cst_12 = arith.constant 9.99999974E-6 : f32
      %34 = vector.broadcast %cst_12 : f32 to vector<8x1xf32>
      %35 = arith.addf %31, %34 : vector<8x1xf32>
      %36 = math.rsqrt %35 : vector<8x1xf32>
      %37 = vector.broadcast %36 : vector<8x1xf32> to vector<8x32xf32>
      %38 = arith.mulf %33, %37 : vector<8x32xf32>
      %39 = vector.broadcast %12 : vector<1x32xf32> to vector<8x32xf32>
      %40 = arith.mulf %38, %39 : vector<8x32xf32>
      %41 = vector.broadcast %13 : vector<1x32xf32> to vector<8x32xf32>
      %42 = arith.addf %40, %41 : vector<8x32xf32>
      %cst_13 = arith.constant dense<0.000000e+00> : vector<8xf32>
      %43 = vector.multi_reduction <add>, %42, %cst_13 [1] : vector<8x32xf32> to vector<8xf32>
      %44 = vector.shape_cast %43 : vector<8xf32> to vector<8x1xf32>
      %cst_14 = arith.constant 3.200000e+01 : f32
      %45 = vector.broadcast %cst_14 : f32 to vector<8x1xf32>
      %46 = arith.divf %44, %45 : vector<8x1xf32>
      %47 = vector.broadcast %46 : vector<8x1xf32> to vector<8x32xf32>
      %48 = arith.subf %42, %47 : vector<8x32xf32>
      %49 = arith.mulf %48, %48 : vector<8x32xf32>
      %cst_15 = arith.constant dense<0.000000e+00> : vector<8xf32>
      %50 = vector.multi_reduction <add>, %49, %cst_15 [1] : vector<8x32xf32> to vector<8xf32>
      %51 = vector.shape_cast %50 : vector<8xf32> to vector<8x1xf32>
      %cst_16 = arith.constant 3.200000e+01 : f32
      %52 = vector.broadcast %cst_16 : f32 to vector<8x1xf32>
      %53 = arith.divf %51, %52 : vector<8x1xf32>
      %54 = vector.broadcast %46 : vector<8x1xf32> to vector<8x32xf32>
      %55 = arith.subf %42, %54 : vector<8x32xf32>
      %cst_17 = arith.constant 9.99999974E-6 : f32
      %56 = vector.broadcast %cst_17 : f32 to vector<8x1xf32>
      %57 = arith.addf %53, %56 : vector<8x1xf32>
      %58 = math.rsqrt %57 : vector<8x1xf32>
      %59 = vector.broadcast %58 : vector<8x1xf32> to vector<8x32xf32>
      %60 = arith.mulf %55, %59 : vector<8x32xf32>
      %61 = vector.broadcast %14 : vector<1x32xf32> to vector<8x32xf32>
      %62 = arith.mulf %60, %61 : vector<8x32xf32>
      %63 = vector.broadcast %15 : vector<1x32xf32> to vector<8x32xf32>
      %64 = arith.addf %62, %63 : vector<8x32xf32>
      %65 = vector.shape_cast %1 : vector<1x32xf32> to vector<1x32xf32>
      %66 = vector.broadcast %65 : vector<1x32xf32> to vector<4x32xf32>
      %c0_18 = arith.constant 0 : index
      %c0_19 = arith.constant 0 : index
      %67 = vector.load %arg6[%c0_18, %c0_19] : memref<16x32xf32, #tpu.memory_space<vmem>>, vector<4x32xf32>
      tpu.vector_store %arg6[%c0_18, %c0_19], %66 {strides = array<i32>} : memref<16x32xf32, #tpu.memory_space<vmem>>, vector<4x32xf32>,
      %c4 = arith.constant 4 : index
      %c0_20 = arith.constant 0 : index
      %68 = vector.load %arg6[%c4, %c0_20] : memref<16x32xf32, #tpu.memory_space<vmem>>, vector<8x32xf32>
      tpu.vector_store %arg6[%c4, %c0_20], %64 {strides = array<i32>} : memref<16x32xf32, #tpu.memory_space<vmem>>, vector<8x32xf32>,
      %c12 = arith.constant 12 : index
      %c0_21 = arith.constant 0 : index
      %69 = vector.load %arg6[%c12, %c0_21] : memref<16x32xf32, #tpu.memory_space<vmem>>, vector<4x32xf32>
      tpu.vector_store %arg6[%c12, %c0_21], %66 {strides = array<i32>} : memref<16x32xf32, #tpu.memory_space<vmem>>, vector<4x32xf32>,
    } else {
    }
    %true = arith.constant true
    %7 = arith.xori %4, %true : i1
    %8 = arith.extui %7 : i1 to i32
    %c0_i32_1 = arith.constant 0 : i32
    %9 = arith.cmpi ne, %8, %c0_i32_1 : i32
    scf.if %9 {
      %10 = vector.shape_cast %1 : vector<1x32xf32> to vector<1x32xf32>
      %11 = vector.broadcast %10 : vector<1x32xf32> to vector<16x32xf32>
      %c0_2 = arith.constant 0 : index
      %c0_3 = arith.constant 0 : index
      %12 = vector.load %arg6[%c0_2, %c0_3] : memref<16x32xf32, #tpu.memory_space<vmem>>, vector<16x32xf32>
      tpu.vector_store %arg6[%c0_2, %c0_3], %11 {strides = array<i32>} : memref<16x32xf32, #tpu.memory_space<vmem>>, vector<16x32xf32>,
    } else {
    }
    return
  }
  func.func @transform_0(%arg0: i32, %arg1: i32) -> (i32, i32) {
    %c8_i32 = arith.constant 8 : i32
    %0 = arith.muli %arg0, %c8_i32 : i32
    %c4_i32 = arith.constant 4 : i32
    %1 = arith.subi %arg1, %c4_i32 : i32
    %c0_i32 = arith.constant 0 : i32
    %c7_i32 = arith.constant 7 : i32
    %2 = arith.maxsi %c0_i32, %1 : i32
    %3 = arith.minsi %c7_i32, %2 : i32
    %4 = arith.addi %0, %3 : i32
    %c0_i32_0 = arith.constant 0 : i32
    %c0_i32_1 = arith.constant 0 : i32
    return %4, %c0_i32_0 : i32, i32
  }
  func.func @transform_1(%arg0: i32, %arg1: i32) -> (i32, i32) {
    %c0_i32 = arith.constant 0 : i32
    %c0_i32_0 = arith.constant 0 : i32
    %c0_i32_1 = arith.constant 0 : i32
    return %c0_i32, %c0_i32_0 : i32, i32
  }
  func.func @transform_2(%arg0: i32, %arg1: i32) -> (i32, i32) {
    %c0_i32 = arith.constant 0 : i32
    %c0_i32_0 = arith.constant 0 : i32
    %c0_i32_1 = arith.constant 0 : i32
    return %c0_i32, %c0_i32_0 : i32, i32
  }
  func.func @transform_4(%arg0: i32, %arg1: i32) -> (i32, i32) {
    %c48_i32 = arith.constant 48 : i32
    %0 = arith.muli %arg0, %c48_i32 : i32
    %c16_i32 = arith.constant 16 : i32
    %1 = arith.addi %0, %c16_i32 : i32
    %2 = arith.addi %1, %arg1 : i32
    %c0_i32 = arith.constant 0 : i32
    %c0_i32_0 = arith.constant 0 : i32
    return %2, %c0_i32 : i32, i32
  }
}

module attributes {stable_mosaic.version = 11 : i64} {
  func.func @dense_pe_kernel(%arg0: i32, %arg1: i32, %arg2: memref<256x32xf32, #tpu.memory_space<vmem>>, %arg3: memref<32x32xf32, #tpu.memory_space<vmem>>, %arg4: memref<8x32xf32, #tpu.memory_space<vmem>>, %arg5: memref<1536x32xf32, #tpu.memory_space<any>>, %arg6: memref<256x32xf32, #tpu.memory_space<vmem>>) attributes {dimension_semantics = [#tpu.dimension_semantics<parallel>, #tpu.dimension_semantics<parallel>], iteration_bounds = array<i64: 2, 1>, scalar_prefetch = 0 : i64, scratch_operands = 0 : i64, tpu.core_type = #tpu.core_type<tc>, window_params = [{transform_indices = @transform_0, window_bounds = array<i64: 256, 32>}, {pipeline_mode = #tpu.pipeline_mode<synchronous>, transform_indices = @transform_1, window_bounds = array<i64: 32, 32>}, {pipeline_mode = #tpu.pipeline_mode<synchronous>, transform_indices = @transform_2, window_bounds = array<i64: 8, 32>}, {}, {transform_indices = @transform_4, window_bounds = array<i64: 256, 32>}]} {
    %c0 = arith.constant 0 : index
    %c0_0 = arith.constant 0 : index
    %0 = vector.load %arg4[%c0, %c0_0] : memref<8x32xf32, #tpu.memory_space<vmem>>, vector<8x32xf32>
    %1 = vector.extract_strided_slice %0 {offsets = [0, 0], sizes = [1, 32], strides = [1, 1]} : vector<8x32xf32> to vector<1x32xf32>
    %2 = vector.extract_strided_slice %0 {offsets = [1, 0], sizes = [1, 32], strides = [1, 1]} : vector<8x32xf32> to vector<1x32xf32>
    %3 = vector.extract_strided_slice %0 {offsets = [2, 0], sizes = [1, 32], strides = [1, 1]} : vector<8x32xf32> to vector<1x32xf32>
    %4 = vector.extract_strided_slice %0 {offsets = [3, 0], sizes = [1, 32], strides = [1, 1]} : vector<8x32xf32> to vector<1x32xf32>
    %5 = vector.extract_strided_slice %0 {offsets = [4, 0], sizes = [1, 32], strides = [1, 1]} : vector<8x32xf32> to vector<1x32xf32>
    %c0_1 = arith.constant 0 : index
    %c0_2 = arith.constant 0 : index
    %6 = vector.load %arg2[%c0_1, %c0_2] : memref<256x32xf32, #tpu.memory_space<vmem>>, vector<256x32xf32>
    %c0_3 = arith.constant 0 : index
    %c0_4 = arith.constant 0 : index
    %7 = vector.load %arg3[%c0_3, %c0_4] : memref<32x32xf32, #tpu.memory_space<vmem>>, vector<32x32xf32>
    %cst = arith.constant dense<0.000000e+00> : vector<256x32xf32>
    %8 = tpu.matmul %6, %7, %cst {dimension_numbers = #tpu.dot_dimension_numbers<[1], [0], [0], [1], [0, 0, 1, 1], [], []>, precision = #tpu.contract_precision<fp32>} : vector<256x32xf32>, vector<32x32xf32>, vector<256x32xf32> -> vector<256x32xf32>
    %9 = vector.broadcast %1 : vector<1x32xf32> to vector<256x32xf32>
    %10 = arith.addf %8, %9 : vector<256x32xf32>
    %cst_5 = arith.constant dense<0.000000e+00> : vector<256xf32>
    %11 = vector.multi_reduction <add>, %10, %cst_5 [1] : vector<256x32xf32> to vector<256xf32>
    %12 = vector.shape_cast %11 : vector<256xf32> to vector<256x1xf32>
    %cst_6 = arith.constant 3.200000e+01 : f32
    %13 = vector.broadcast %cst_6 : f32 to vector<256x1xf32>
    %14 = arith.divf %12, %13 : vector<256x1xf32>
    %15 = vector.broadcast %14 : vector<256x1xf32> to vector<256x32xf32>
    %16 = arith.subf %10, %15 : vector<256x32xf32>
    %17 = arith.mulf %16, %16 : vector<256x32xf32>
    %cst_7 = arith.constant dense<0.000000e+00> : vector<256xf32>
    %18 = vector.multi_reduction <add>, %17, %cst_7 [1] : vector<256x32xf32> to vector<256xf32>
    %19 = vector.shape_cast %18 : vector<256xf32> to vector<256x1xf32>
    %cst_8 = arith.constant 3.200000e+01 : f32
    %20 = vector.broadcast %cst_8 : f32 to vector<256x1xf32>
    %21 = arith.divf %19, %20 : vector<256x1xf32>
    %22 = vector.broadcast %14 : vector<256x1xf32> to vector<256x32xf32>
    %23 = arith.subf %10, %22 : vector<256x32xf32>
    %cst_9 = arith.constant 9.99999974E-6 : f32
    %24 = vector.broadcast %cst_9 : f32 to vector<256x1xf32>
    %25 = arith.addf %21, %24 : vector<256x1xf32>
    %26 = math.rsqrt %25 : vector<256x1xf32>
    %27 = vector.broadcast %26 : vector<256x1xf32> to vector<256x32xf32>
    %28 = arith.mulf %23, %27 : vector<256x32xf32>
    %29 = vector.broadcast %2 : vector<1x32xf32> to vector<256x32xf32>
    %30 = arith.mulf %28, %29 : vector<256x32xf32>
    %31 = vector.broadcast %3 : vector<1x32xf32> to vector<256x32xf32>
    %32 = arith.addf %30, %31 : vector<256x32xf32>
    %cst_10 = arith.constant dense<0.000000e+00> : vector<256xf32>
    %33 = vector.multi_reduction <add>, %32, %cst_10 [1] : vector<256x32xf32> to vector<256xf32>
    %34 = vector.shape_cast %33 : vector<256xf32> to vector<256x1xf32>
    %cst_11 = arith.constant 3.200000e+01 : f32
    %35 = vector.broadcast %cst_11 : f32 to vector<256x1xf32>
    %36 = arith.divf %34, %35 : vector<256x1xf32>
    %37 = vector.broadcast %36 : vector<256x1xf32> to vector<256x32xf32>
    %38 = arith.subf %32, %37 : vector<256x32xf32>
    %39 = arith.mulf %38, %38 : vector<256x32xf32>
    %cst_12 = arith.constant dense<0.000000e+00> : vector<256xf32>
    %40 = vector.multi_reduction <add>, %39, %cst_12 [1] : vector<256x32xf32> to vector<256xf32>
    %41 = vector.shape_cast %40 : vector<256xf32> to vector<256x1xf32>
    %cst_13 = arith.constant 3.200000e+01 : f32
    %42 = vector.broadcast %cst_13 : f32 to vector<256x1xf32>
    %43 = arith.divf %41, %42 : vector<256x1xf32>
    %44 = vector.broadcast %36 : vector<256x1xf32> to vector<256x32xf32>
    %45 = arith.subf %32, %44 : vector<256x32xf32>
    %cst_14 = arith.constant 9.99999974E-6 : f32
    %46 = vector.broadcast %cst_14 : f32 to vector<256x1xf32>
    %47 = arith.addf %43, %46 : vector<256x1xf32>
    %48 = math.rsqrt %47 : vector<256x1xf32>
    %49 = vector.broadcast %48 : vector<256x1xf32> to vector<256x32xf32>
    %50 = arith.mulf %45, %49 : vector<256x32xf32>
    %51 = vector.broadcast %4 : vector<1x32xf32> to vector<256x32xf32>
    %52 = arith.mulf %50, %51 : vector<256x32xf32>
    %53 = vector.broadcast %5 : vector<1x32xf32> to vector<256x32xf32>
    %54 = arith.addf %52, %53 : vector<256x32xf32>
    %c0_15 = arith.constant 0 : index
    %c0_16 = arith.constant 0 : index
    %55 = vector.load %arg6[%c0_15, %c0_16] : memref<256x32xf32, #tpu.memory_space<vmem>>, vector<256x32xf32>
    tpu.vector_store %arg6[%c0_15, %c0_16], %54 {strides = array<i32>} : memref<256x32xf32, #tpu.memory_space<vmem>>, vector<256x32xf32>,
    return
  }
  func.func @transform_0(%arg0: i32, %arg1: i32) -> (i32, i32) {
    %c1_i32 = arith.constant 1 : i32
    %0 = arith.muli %arg0, %c1_i32 : i32
    %1 = arith.addi %0, %arg1 : i32
    %c0_i32 = arith.constant 0 : i32
    %c0_i32_0 = arith.constant 0 : i32
    return %1, %c0_i32 : i32, i32
  }
  func.func @transform_1(%arg0: i32, %arg1: i32) -> (i32, i32) {
    %c0_i32 = arith.constant 0 : i32
    %c0_i32_0 = arith.constant 0 : i32
    %c0_i32_1 = arith.constant 0 : i32
    return %c0_i32, %c0_i32_0 : i32, i32
  }
  func.func @transform_2(%arg0: i32, %arg1: i32) -> (i32, i32) {
    %c0_i32 = arith.constant 0 : i32
    %c0_i32_0 = arith.constant 0 : i32
    %c0_i32_1 = arith.constant 0 : i32
    return %c0_i32, %c0_i32_0 : i32, i32
  }
  func.func @transform_4(%arg0: i32, %arg1: i32) -> (i32, i32) {
    %c3_i32 = arith.constant 3 : i32
    %0 = arith.muli %arg0, %c3_i32 : i32
    %c2_i32 = arith.constant 2 : i32
    %1 = arith.addi %0, %c2_i32 : i32
    %2 = arith.addi %1, %arg1 : i32
    %c0_i32 = arith.constant 0 : i32
    %c0_i32_0 = arith.constant 0 : i32
    return %2, %c0_i32 : i32, i32
  }
}

</mosaic_0001>

<bundles_post_ra>
// kernel: _lambda_.3
= control target key start
LH: loop header
LB: loop body
LE: loop exit
PB: predicated region body
PF: predicated region fallthrough
CT: control target
= control target key end

     0   :  { %s4156_s12 = smov 0   ;;  %s4158_s13 = smov 0   ;;  %s6952_s0 = inlined_call_operand.vmem [shape: f32[512,176], index: 0, kind: input, shape index: {}]   ;;  %s6953_s1 = inlined_call_operand.vmem [shape: f32[176,32], index: 1, kind: input, shape index: {}]   ;;  %s6954_s2 = inlined_call_operand.vmem [shape: f32[8,32], index: 2, kind: input, shape index: {}]   ;;  %s6955_s3 = inlined_call_operand.vmem [shape: f32[1536,32], index: 3, kind: output, shape index: {}]  }
   0x1   :  { %s4160_s14 = smov 0  }
   0x2 LB: > { %s25_s15 = sadd.s32 1, %s4129_s13  ;;  %p3947_p0 = scmp.ge.s32.totalorder %s4133_s14, 1  ;;  %s4133_s14 = sphi %s4160_s14, %s13_s14   ;;  %s4129_s13 = sphi %s4158_s13, %s7641_s13   ;;  %s4125_s12 = sphi %s4156_s12, %s7640_s12  }
   0x3   : > { %p27_p1 = scmp.ge.s32.totalorder %s25_s15, 2  ;;  %p159_p2 = scmp.lt.s32.totalorder %s4133_s14, 3 }
   0x5   : > { %s7643_s15 = smov (%p27_p1, %s25_s15), 0  ;;  %p160_p3 = pnand %p3947_p0, %p159_p2 }
   0x7   : > { %163 = sbr.rel (%p160_p3) target bundleno = 1259 (0x4eb), region = 32 }
   0xc   : > { %v286_v0 = vld [vmem:[%s6953_s1 + $0x78] sm:$0xff]  ;;  %v285_v1 = vld [vmem:[%s6953_s1 + $0x70] sm:$0xff]  ;;  %v284_v2 = vld [vmem:[%s6953_s1 + $0x68] sm:$0xff]  ;;  %v6971_v3 = vmov 0.0   ;;  %s3948_s5 = sshll.u32 %s4125_s12, 5  ;;  %vm297_vm0 = vcmask 392192  }
   0xd   : > { %394 = vmatprep.subr.mxu0 %v6971_v3  ;;  %v4186_v4 = vand.u32 4294901760, %v286_v0  ;;  %v4188_v5 = vand.u32 4294901760, %v285_v1  ;;  %v4190_v6 = vand.u32 4294901760, %v284_v2  ;;  %v283_v7 = vld [vmem:[%s6953_s1 + $0x60] sm:$0xff]  ;;  %961 = vmatprep.subr.mxu1 %v6971_v3  ;;  %v282_v8 = vld [vmem:[%s6953_s1 + $0x58] sm:$0xff]  ;;  %v281_v9 = vld [vmem:[%s6953_s1 + $0x50] sm:$0xff] }
   0xe   : > { %v4202_v10 = vand.u32 4294901760, %v283_v7  ;;  %v4204_v11 = vand.u32 4294901760, %v282_v8  ;;  %v4206_v12 = vand.u32 4294901760, %v281_v9  ;;  %v280_v13 = vld [vmem:[%s6953_s1 + $0x48] sm:$0xff]  ;;  %v279_v14 = vld [vmem:[%s6953_s1 + $0x40] sm:$0xff]  ;;  %v278_v19 = vld [vmem:[%s6953_s1 + $0x38] sm:$0xff] }
   0xf   : > { %396 = vmatpush1.msra.mxu0 %v4186_v4  ;;  %v4217_v15 = vsub.f32 %v286_v0, %v4186_v4  ;;  %v4220_v16 = vsub.f32 %v285_v1, %v4188_v5  ;;  %v4222_v17 = vand.u32 4294901760, %v280_v13  ;;  %v4225_v18 = vsub.f32 %v284_v2, %v4190_v6  ;;  %p4245_p4 = scmp.lt.s32.totalorder %s3948_s5, 63  ;;  %v277_v29 = vld [vmem:[%s6953_s1 + $0x30] sm:$0xff]  ;;  %v276_v34 = vld [vmem:[%s6953_s1 + $0x28] sm:$0xff]  ;;  %v275_v41 = vld [vmem:[%s6953_s1 + $0x20] sm:$0xff]  ;;  %s3951_s24 = smul.u32 96, %s4125_s12 }
  0x10   : > { %397 = vmatprep.subr.mxu0 %v6971_v3  ;;  %v4232_v20 = vsub.f32 %v283_v7, %v4202_v10  ;;  %v4235_v21 = vsub.f32 %v282_v8, %v4204_v11  ;;  %v4241_v25 = vand.u32 4294901760, %v279_v14  ;;  %v4251_v27 = vand.u32 4294901760, %v278_v19  ;;  %v274_v44 = vld [vmem:[%s6953_s1 + $0x18] sm:$0xff]  ;;  %v273_v54 = vld [vmem:[%s6953_s1 + $0x10] sm:$0xff]  ;;  %v272_v59 = vld [vmem:[%s6953_s1 + $0x8] sm:$0xff] }
  0x11   : > { %399 = vmatpush1.msra.mxu0 %v4188_v5  ;;  %v6969_v22 = vand.u32 4294901760, %v4217_v15  ;;  %v6968_v23 = vand.u32 4294901760, %v4220_v16  ;;  %v6967_v24 = vand.u32 4294901760, %v4225_v18  ;;  %v4258_v30 = vsub.f32 %v281_v9, %v4206_v12  ;;  %s7645_s5 = smov (!%p4245_p4, %s3948_s5), 63  ;;  %v271_v61 = vld [vmem:[%s6953_s1] sm:$0xff]  ;;  %p199_p5 = scmp.lt.s32.totalorder %s3951_s24, 191 }
  0x12   : > { %400 = vmatprep.subr.mxu0 %v6971_v3  ;;  %v6965_v26 = vand.u32 4294901760, %v4232_v20  ;;  %v6964_v28 = vand.u32 4294901760, %v4235_v21  ;;  %v4274_v35 = vsub.f32 %v280_v13, %v4222_v17  ;;  %v4281_v39 = vand.u32 4294901760, %v277_v29  ;;  %s3955_s23 = sshll.u32 %s7645_s5, 4  ;;  %v292_v13 = vld [vmem:[%s6953_s1 + $0xa8] sm:$0xff] }
  0x13   : > { %402 = vmatpush1.msra.mxu0 %v4190_v6  ;;  %v965_v31 = vsub.f32 %v4217_v15, %v6969_v22  ;;  %v972_v32 = vsub.f32 %v4220_v16, %v6968_v23  ;;  %v979_v33 = vsub.f32 %v4225_v18, %v6967_v24  ;;  %v6963_v40 = vand.u32 4294901760, %v4258_v30  ;;  %s4354_s30 = scalar_lea.vmem %s6952_s0, %s3955_s23  ;;  %s7647_s24 = smov (!%p199_p5, %s3951_s24), 191 }
  0x14   : > { %403 = vmatprep.subr.mxu0 %v6971_v3  ;;  %v986_v36 = vsub.f32 %v4232_v20, %v6965_v26  ;;  %v4294_v42 = vand.u32 4294901760, %v276_v34  ;;  %v4297_v43 = vsub.f32 %v279_v14, %v4241_v25  ;;  %v993_v46 = vsub.f32 %v4235_v21, %v6964_v28  ;;  %v211_v22 = vld [vmem:[%s4354_s30 + $0x20] sm:$0xff]  ;;  %s3952_s12 = sshll.u32 %s7647_s24, 3 }
  0x15   : > { %405 = vmatpush1.msra.mxu0 %v4202_v10  ;;  %v966_v37 = vand.u32 4294901760, %v965_v31  ;;  %v973_v38 = vand.u32 4294901760, %v972_v32  ;;  %v980_v45 = vand.u32 4294901760, %v979_v33  ;;  %v6962_v47 = vand.u32 4294901760, %v4274_v35  ;;  %v208_v31 = vld [vmem:[%s4354_s30 + $0x8] sm:$0xff]  ;;  %v291_v33 = vld [vmem:[%s6953_s1 + $0xa0] sm:$0xff]  ;;  %s6783_s29 = scalar_lea.vmem %s6955_s3, %s3952_s12 }
  0x16   : > { %406 = vmatprep.subr.mxu0 %v6971_v3  ;;  %v4308_v48 = vsub.f32 %v278_v19, %v4251_v27  ;;  %v987_v49 = vand.u32 4294901760, %v986_v36  ;;  %v4312_v50 = vand.u32 4294901760, %v275_v41  ;;  %v1000_v51 = vsub.f32 %v4258_v30, %v6963_v40 }
  0x17   : > { %408 = vmatpush1.msra.mxu0 %v4204_v11  ;;  %967 = vmatpush1.msra.mxu1 %v966_v37  ;;  %v6961_v52 = vand.u32 4294901760, %v4297_v43  ;;  %v4319_v53 = vand.u32 4294901760, %v274_v44  ;;  %v4325_v55 = vsub.f32 %v277_v29, %v4281_v39  ;;  %v994_v56 = vand.u32 4294901760, %v993_v46 }
  0x18   : > { %409 = vmatprep.subr.mxu0 %v6971_v3  ;;  %968 = vmatprep.subr.mxu1 %v6971_v3  ;;  %7226 = vst [vmem:[#allocation2_spill] sm:$0xff] %v4312_v50  ;;  %v1007_v57 = vsub.f32 %v4274_v35, %v6962_v47  ;;  %v6960_v58 = vand.u32 4294901760, %v4308_v48  ;;  %v4339_v60 = vsub.f32 %v276_v34, %v4294_v42  ;;  %v4346_v62 = vand.u32 4294901760, %v273_v54  ;;  %v209_v47 = vld [vmem:[%s4354_s30 + $0x10] sm:$0xff] }
  0x19   : > { %411 = vmatpush1.msra.mxu0 %v4206_v12  ;;  %974 = vmatpush1.msra.mxu1 %v973_v38  ;;  %7227 = vst [vmem:[#allocation3_spill] sm:$0xff] %v4319_v53  ;;  %v4349_v63 = vsub.f32 %v275_v41, %v4312_v50  ;;  %v1001_v0 = vand.u32 4294901760, %v1000_v51  ;;  %v1014_v1 = vsub.f32 %v4297_v43, %v6961_v52  ;;  %v6959_v2 = vand.u32 4294901760, %v4325_v55 }
  0x1a   : > { %412 = vmatprep.subr.mxu0 %v6971_v3  ;;  %975 = vmatprep.subr.mxu1 %v6971_v3  ;;  %7228 = vst [vmem:[#allocation4_spill] sm:$0xff] %v4346_v62  ;;  %v4362_v7 = vsub.f32 %v274_v44, %v4319_v53  ;;  %v4366_v8 = vand.u32 4294901760, %v272_v59  ;;  %v4368_v9 = vand.u32 4294901760, %v271_v61  ;;  %v1008_v14 = vand.u32 4294901760, %v1007_v57  ;;  %v210_v44 = vld [vmem:[%s4354_s30 + $0x18] sm:$0xff]  ;;  %v207_v57 = vld [vmem:[%s4354_s30] sm:$0xff] }
  0x1b   : > { %414 = vmatpush1.msra.mxu0 %v4222_v17  ;;  %981 = vmatpush1.msra.mxu1 %v980_v45  ;;  %7229 = vst [vmem:[#allocation5_spill] sm:$0xff] %v4349_v63  ;;  %v1021_v19 = vsub.f32 %v4308_v48, %v6960_v58  ;;  %v6957_v29 = vand.u32 4294901760, %v4339_v60  ;;  %v6956_v32 = vand.u32 4294901760, %v4349_v63  ;;  %v4386_v34 = vsub.f32 %v273_v54, %v4346_v62 }
  0x1c   : > { %415 = vmatprep.subr.mxu0 %v6971_v3  ;;  %982 = vmatprep.subr.mxu1 %v6971_v3  ;;  %7230 = vst [vmem:[#allocation6_spill] sm:$0xff] %v4362_v7  ;;  %7231 = vst [vmem:[#allocation7_spill] sm:$0xff] %v4366_v8  ;;  %v1015_v36 = vand.u32 4294901760, %v1014_v1  ;;  %v1028_v37 = vsub.f32 %v4325_v55, %v6959_v2  ;;  %v4392_v38 = vand.u32 4294901760, %v292_v13  ;;  %v6958_v41 = vand.u32 4294901760, %v4362_v7 }
  0x1d   : > { %417 = vmatpush1.msra.mxu0 %v4241_v25  ;;  %988 = vmatpush1.msra.mxu1 %v987_v49  ;;  %7232 = vst [vmem:[#allocation8_spill] sm:$0xff] %v4368_v9  ;;  %7233 = vst [vmem:[#allocation9_spill] sm:$0xff] %v4386_v34  ;;  %v4399_v45 = vsub.f32 %v272_v59, %v4366_v8  ;;  %v4402_v46 = vsub.f32 %v271_v61, %v4368_v9  ;;  %v299_v49 = vsel %vm297_vm0, %v208_v31, 0  ;;  %v289_v31 = vld [vmem:[%s6953_s1 + $0x90] sm:$0xff]  ;;  %vm2862_vm1 = vcmask 261120  }
  0x1e   : > { %418 = vmatprep.subr.mxu0 %v6971_v3  ;;  %989 = vmatprep.subr.mxu1 %v6971_v3  ;;  %7234 = vst [vmem:[#allocation10_spill] sm:$0xff] %v4392_v38  ;;  %v1022_v51 = vand.u32 4294901760, %v1021_v19  ;;  %v1035_v54 = vsub.f32 %v4339_v60, %v6957_v29  ;;  %v1042_v59 = vsub.f32 %v4349_v63, %v6956_v32  ;;  %v6966_v61 = vand.u32 4294901760, %v4386_v34  ;;  %v220_v63 = vld [vmem:[%s4354_s30 + $0x68] sm:$0xff] }
  0x1f   : > { %420 = vmatpush1.msra.mxu0 %v4251_v27  ;;  %995 = vmatpush1.msra.mxu1 %v994_v56  ;;  %7235 = vst [vmem:[#allocation11_spill] sm:$0xff] %v4399_v45  ;;  %7236 = vst [vmem:[#allocation12_spill] sm:$0xff] %v4402_v46  ;;  %v4409_v56 = vand.u32 4294901760, %v291_v33  ;;  %v302_v1 = vsel %vm297_vm0, %v210_v44, 0  ;;  %v4426_v19 = vsub.f32 %v4362_v7, %v6958_v41  ;;  %v4434_v29 = vand.u32 4294901760, %v299_v49  ;;  %v212_v41 = vld [vmem:[%s4354_s30 + $0x28] sm:$0xff] }
  0x20   : > { %421 = vmatprep.subr.mxu0 %v6971_v3  ;;  %996 = vmatprep.subr.mxu1 %v6971_v3  ;;  %v4432_v32 = vsub.f32 %v292_v13, %v4392_v38  ;;  %v4440_v44 = vand.u32 4294901760, %v207_v57  ;;  %v1036_v2 = vand.u32 4294901760, %v1035_v54  ;;  %v4449_v52 = vand.u32 4294901760, %v302_v1  ;;  %v288_v54 = vld [vmem:[%s6953_s1 + $0x88] sm:$0xff] }
  0x21   : > { %423 = vmatpush1.msra.mxu0 %v4281_v39  ;;  %1002 = vmatpush1.msra.mxu1 %v1001_v0  ;;  %7237 = vst [vmem:[#allocation13_spill] sm:$0xff] %v4409_v56  ;;  %v290_v0 = vld [vmem:[%s6953_s1 + $0x98] sm:$0xff]  ;;  %7239 = vst [vmem:[#allocation15_spill] sm:$0xff] %v4434_v29  ;;  %v4447_v13 = vsub.f32 %v291_v33, %v4409_v56  ;;  %v1043_v40 = vand.u32 4294901760, %v1042_v59  ;;  %v1056_v28 = vsub.f32 %v4386_v34, %v6966_v61  ;;  %v287_v59 = vld [vmem:[%s6953_s1 + $0x80] sm:$0xff] }
  0x22   : > { %424 = vmatprep.subr.mxu0 %v6971_v3  ;;  %1003 = vmatprep.subr.mxu1 %v6971_v3  ;;  %7238 = vst [vmem:[#allocation14_spill] sm:$0xff] %v4432_v32  ;;  %7240 = vst [vmem:[#allocation16_spill] sm:$0xff] %v4440_v44  ;;  %v4444_v58 = vand.u32 4294901760, %v290_v0  ;;  %v1050_v33 = vand.u32 4294901760, %v4426_v19  ;;  %v4469_v61 = vsub.f32 %v299_v49, %v4434_v29  ;;  %v305_v24 = vsel %vm297_vm0, %v212_v41, 0  ;;  %v214_v41 = vld [vmem:[%s4354_s30 + $0x38] sm:$0xff] }
  0x23   : > { %426 = vmatpush1.msra.mxu0 %v4294_v42  ;;  %1009 = vmatpush1.msra.mxu1 %v1008_v14  ;;  %v1029_v14 = vand.u32 4294901760, %v1028_v37  ;;  %v6973_v37 = vand.u32 4294901760, %v4402_v46  ;;  %7242 = vst [vmem:[#allocation18_spill] sm:$0xff] %v4447_v13  ;;  %7243 = vst [vmem:[#allocation19_spill] sm:$0xff] %v4449_v52  ;;  %v4483_v23 = vsub.f32 %v207_v57, %v4440_v44  ;;  %v4485_v49 = vand.u32 4294901760, %v209_v47 }
  0x24   : > { %427 = vmatprep.subr.mxu0 %v6971_v3  ;;  %1010 = vmatprep.subr.mxu1 %v6971_v3  ;;  %7241 = vst [vmem:[#allocation17_spill] sm:$0xff] %v4444_v58  ;;  %7245 = vst [vmem:[#allocation21_spill] sm:$0xff] %v4469_v61  ;;  %v7251_v57 = vmov 0.0   ;;  %v4515_v34 = vand.u32 4294901760, %v211_v22  ;;  %v7258_v26 = vand.u32 4294901760, %v4447_v13 }
  0x25   : > { %429 = vmatpush1.msra.mxu0 %v4312_v50  ;;  %1016 = vmatpush1.msra.mxu1 %v1015_v36  ;;  %v6970_v36 = vand.u32 4294901760, %v4399_v45  ;;  %v4480_v19 = vsub.f32 %v4402_v46, %v6973_v37  ;;  %7246 = vst [vmem:[#allocation22_spill] sm:$0xff] %v4483_v23  ;;  %7247 = vst [vmem:[#allocation23_spill] sm:$0xff] %v4485_v49  ;;  %v4497_v37 = vand.u32 4294901760, %v305_v24  ;;  %v1057_v46 = vand.u32 4294901760, %v1056_v28 }
  0x26   : > { %430 = vmatprep.subr.mxu0 %v6971_v3  ;;  %1017 = vmatprep.subr.mxu1 %v6971_v3  ;;  %7256 = vst [vmem:[#allocation30_spill] sm:$0xff] %v4515_v34  ;;  %v308_v28 = vsel %vm297_vm0, %v214_v41, 0  ;;  %v4530_v41 = vsub.f32 %v4447_v13, %v7258_v26 }
  0x27   : > { %432 = vmatpush1.msra.mxu0 %v4319_v53  ;;  %1023 = vmatpush1.msra.mxu1 %v1022_v51  ;;  %v4457_v51 = vand.u32 4294901760, %v289_v31  ;;  %7250 = vst [vmem:[#allocation26_spill] sm:$0xff] %v4497_v37  ;;  %v4544_v26 = vand.u32 4294901760, %v308_v28 }
  0x28   : > { %433 = vmatprep.subr.mxu0 %v6971_v3  ;;  %1024 = vmatprep.subr.mxu1 %v6971_v3 }
  0x29   : > { %7244 = vst [vmem:[#allocation20_spill] sm:$0xff] %v4457_v51  ;;  %435 = vmatpush1.msra.mxu0 %v4346_v62  ;;  %1030 = vmatpush1.msra.mxu1 %v1029_v14  ;;  %v1063_v14 = vsub.f32 %v4399_v45, %v6970_v36  ;;  %v4492_v36 = vsub.f32 %v290_v0, %v4444_v58  ;;  %v4501_v45 = vand.u32 4294901760, %v288_v54  ;;  %v7255_v0 = vand.u32 4294901760, %v4432_v32  ;;  %v216_v62 = vld [vmem:[%s4354_s30 + $0x48] sm:$0xff] }
  0x2a   : > { %436 = vmatprep.subr.mxu0 %v6971_v3  ;;  %1031 = vmatprep.subr.mxu1 %v6971_v3  ;;  %v4495_v3 = vsub.f32 %v302_v1, %v4449_v52  ;;  %7260 = vst [vmem:[#allocation33_spill] sm:$0xff] %v4544_v26 }
  0x2b   : > { %438 = vmatpush1.msra.mxu0 %v4366_v8  ;;  %1037 = vmatpush1.msra.mxu1 %v1036_v2  ;;  %7248 = vst [vmem:[#allocation24_spill] sm:$0xff] %v4492_v36  ;;  %7252 = vst [vmem:[#allocation27_spill] sm:$0xff] %v4501_v45  ;;  %v4503_v8 = vand.u32 4294901760, %v287_v59  ;;  %v4506_v2 = vsub.f32 %v289_v31, %v4457_v51  ;;  %v4512_v1 = vsub.f32 %v4432_v32, %v7255_v0 }
  0x2c   : > { %7249 = vst [vmem:[#allocation25_spill] sm:$0xff] %v4495_v3  ;;  %439 = vmatprep.subr.mxu0 %v7251_v57  ;;  %1038 = vmatprep.subr.mxu1 %v7251_v57  ;;  %v1064_v31 = vand.u32 4294901760, %v1063_v14  ;;  %v4524_v0 = vsub.f32 %v209_v47, %v4485_v49  ;;  %v311_v32 = vsel %vm297_vm0, %v216_v62, 0  ;;  %v7261_v14 = vand.u32 4294901760, %v4469_v61  ;;  %v218_v47 = vld [vmem:[%s4354_s30 + $0x58] sm:$0xff] }
  0x2d   : > { %7253 = vst [vmem:[#allocation28_spill] sm:$0xff] %v4503_v8  ;;  %7254 = vst [vmem:[#allocation29_spill] sm:$0xff] %v4506_v2  ;;  %441 = vmatpush1.msra.mxu0 %v4368_v9  ;;  %1044 = vmatpush1.msra.mxu1 %v1043_v40  ;;  %v1071_v40 = vand.u32 4294901760, %v4480_v19  ;;  %v4535_v19 = vsub.f32 %v305_v24, %v4497_v37  ;;  %v213_v9 = vld [vmem:[%s4354_s30 + $0x30] sm:$0xff]  ;;  %v1098_v24 = vand.u32 4294901760, %v4512_v1  ;;  %v7262_v62 = vand.u32 4294901760, %v4483_v23 }
  0x2e   : > { %462 = vmatprep.subr.mxu0 %v7251_v57  ;;  %1045 = vmatprep.subr.mxu1 %v7251_v57  ;;  %7257 = vst [vmem:[#allocation31_spill] sm:$0xff] %v4524_v0  ;;  %v483_v13 = vsub.f32 %v4469_v61, %v7261_v14  ;;  %v4567_v14 = vand.u32 4294901760, %v311_v32  ;;  %v7265_v61 = vand.u32 4294901760, %v4492_v36  ;;  %v7266_v53 = vand.u32 4294901760, %v4495_v3 }
  0x2f   : > { %464 = vmatpush2.msra.mxu0 %v4392_v38  ;;  %1051 = vmatpush1.msra.mxu1 %v1050_v33  ;;  %7259 = vst [vmem:[#allocation32_spill] sm:$0xff] %v4535_v19  ;;  %v4542_v33 = vsub.f32 %v288_v54, %v4501_v45  ;;  %v4553_v38 = vsub.f32 %v287_v59, %v4503_v8  ;;  %v215_v59 = vld [vmem:[%s4354_s30 + $0x40] sm:$0xff]  ;;  %v7272_v1 = vand.u32 4294901760, %v4535_v19 }
  0x30   : > { %465 = vmatprep.subr.mxu0 %v7251_v57  ;;  %1052 = vmatprep.subr.mxu1 %v7251_v57  ;;  %v4556_v54 = vsub.f32 %v211_v22, %v4515_v34  ;;  %7264 = vst [vmem:[#allocation35_spill] sm:$0xff] %v4567_v14  ;;  %v1105_v22 = vand.u32 4294901760, %v4530_v41  ;;  %v1111_v7 = vsub.f32 %v4492_v36, %v7265_v61  ;;  %v314_v61 = vsel %vm297_vm0, %v218_v47, 0 }
  0x31   : > { %467 = vmatpush2.msra.mxu0 %v4409_v56  ;;  %1058 = vmatpush1.msra.mxu1 %v1057_v46  ;;  %v489_v46 = vsub.f32 %v4483_v23, %v7262_v62  ;;  %v4565_v56 = vand.u32 4294901760, %v213_v9  ;;  %v498_v62 = vsub.f32 %v4495_v3, %v7266_v53  ;;  %v7267_v23 = vand.u32 4294901760, %v4506_v2 }
  0x32   : > { %468 = vmatprep.subr.mxu0 %v7251_v57  ;;  %1059 = vmatprep.subr.mxu1 %v7251_v57  ;;  %v484_v53 = vand.u32 4294901760, %v483_v13  ;;  %v4592_v36 = vand.u32 4294901760, %v215_v59  ;;  %v513_v41 = vsub.f32 %v4535_v19, %v7272_v1  ;;  %v7275_v19 = vand.u32 4294901760, %v4553_v38 }
  0x33   : > { %7263 = vst [vmem:[#allocation34_spill] sm:$0xff] %v4565_v56  ;;  %470 = vmatpush2.msra.mxu0 %v4444_v58  ;;  %1065 = vmatpush1.msra.mxu1 %v1064_v31  ;;  %v1118_v31 = vsub.f32 %v4506_v2, %v7267_v23  ;;  %v4586_v58 = vsub.f32 %v308_v28, %v4544_v26  ;;  %v490_v23 = vand.u32 4294901760, %v489_v46  ;;  %v7270_v28 = vand.u32 4294901760, %v4524_v0  ;;  %v217_v2 = vld [vmem:[%s4354_s30 + $0x50] sm:$0xff] }
  0x34   : > { %471 = vmatprep.subr.mxu0 %v7251_v57  ;;  %1066 = vmatprep.subr.mxu1 %v7251_v57  ;;  %7269 = vst [vmem:[#allocation37_spill] sm:$0xff] %v4592_v36  ;;  %v4601_v13 = vsub.f32 %v213_v9, %v4565_v56  ;;  %v499_v3 = vand.u32 4294901760, %v498_v62  ;;  %v4610_v46 = vand.u32 4294901760, %v314_v61  ;;  %v1112_v9 = vand.u32 4294901760, %v1111_v7 }
  0x35   : > { %7268 = vst [vmem:[#allocation36_spill] sm:$0xff] %v4586_v58  ;;  %473 = vmatpush2.msra.mxu0 %v4457_v51  ;;  %1072 = vmatpush1.msra.mxu1 %v1071_v40  ;;  %v504_v47 = vsub.f32 %v4524_v0, %v7270_v28  ;;  %v4604_v40 = vsub.f32 %v311_v32, %v4567_v14  ;;  %v7274_v28 = vand.u32 4294901760, %v4542_v33  ;;  %v317_v62 = vsel %vm297_vm0, %v220_v63, 0  ;;  %v222_v0 = vld [vmem:[%s4354_s30 + $0x78] sm:$0xff] }
  0x36   : > { %474 = vmatprep.subr.mxu0 %v7251_v57  ;;  %1093 = vmatprep.subr.mxu1 %v7251_v57  ;;  %7273 = vst [vmem:[#allocation39_spill] sm:$0xff] %v4610_v46  ;;  %v1119_v1 = vand.u32 4294901760, %v1118_v31  ;;  %v7276_v7 = vand.u32 4294901760, %v4556_v54  ;;  %v219_v31 = vld [vmem:[%s4354_s30 + $0x60] sm:$0xff] }
  0x37   : > { %7271 = vst [vmem:[#allocation38_spill] sm:$0xff] %v4604_v40  ;;  %476 = vmatpush2.msra.mxu0 %v4501_v45  ;;  %1099 = vmatpush2.msra.mxu1 %v1098_v24  ;;  %v1125_v32 = vsub.f32 %v4542_v33, %v7274_v28  ;;  %v1132_v45 = vsub.f32 %v4553_v38, %v7275_v19  ;;  %v505_v24 = vand.u32 4294901760, %v504_v47  ;;  %v514_v19 = vand.u32 4294901760, %v513_v41 }
  0x38   : > { %477 = vmatprep.subr.mxu0 %v7251_v57  ;;  %1100 = vmatprep.subr.mxu1 %v7251_v57  ;;  %v519_v51 = vsub.f32 %v4556_v54, %v7276_v7  ;;  %v4629_v28 = vsub.f32 %v215_v59, %v4592_v36  ;;  %v4638_v7 = vsub.f32 %v314_v61, %v4610_v46  ;;  %v4640_v59 = vand.u32 4294901760, %v317_v62  ;;  %v221_v61 = vld [vmem:[%s4354_s30 + $0x70] sm:$0xff] }
  0x39   : > { %479 = vmatpush2.msra.mxu0 %v4503_v8  ;;  %485 = vmatprep.mubr.f32.mxu0 %v484_v53  ;;  %v4633_v53 = vand.u32 4294901760, %v217_v2  ;;  %v7281_v47 = vand.u32 4294901760, %v4586_v58  ;;  %v4650_v63 = vand.u32 4294901760, %v219_v31 }
  0x3a   : > { %7277 = vst [vmem:[#allocation40_spill] sm:$0xff] %v4629_v28  ;;  %1106 = vmatpush2.msra.mxu1 %v1105_v22  ;;  %491 = vmatmul.mubr.f32.vlgmr.msra.gmra.mxu0 %v490_v23  ;;  %7279 = vst [vmem:[#allocation42_spill] sm:$0xff] %v4638_v7  ;;  %v320_v22 = vsel %vm297_vm0, %v222_v0, 0  ;;  %v1126_v23 = vand.u32 4294901760, %v1125_v32  ;;  %v520_v41 = vand.u32 4294901760, %v519_v51  ;;  %v224_v0 = vld [vmem:[%s4354_s30 + $0x88] sm:$0xff] }
  0x3b   : > { %7278 = vst [vmem:[#allocation41_spill] sm:$0xff] %v4633_v53  ;;  %1107 = vmatprep.subr.mxu1 %v7251_v57  ;;  %500 = vmatprep.mubr.f32.mxu0 %v499_v3  ;;  %7280 = vst [vmem:[#allocation43_spill] sm:$0xff] %v4640_v59  ;;  %v528_v8 = vsub.f32 %v4586_v58, %v7281_v47  ;;  %v1133_v3 = vand.u32 4294901760, %v1132_v45  ;;  %v7284_v47 = vand.u32 4294901760, %v4604_v40  ;;  %v4662_v51 = vand.u32 4294901760, %v320_v22 }
  0x3c   : > { %1113 = vmatpush2.msra.mxu1 %v1112_v9  ;;  %1360 = vmatprep.subr.mxu0 %v7251_v57  ;;  %7282 = vst [vmem:[#allocation44_spill] sm:$0xff] %v4650_v63  ;;  %v7283_v9 = vand.u32 4294901760, %v4601_v13  ;;  %v4660_v45 = vsub.f32 %v217_v2, %v4633_v53  ;;  %v7288_v2 = vand.u32 4294901760, %v4629_v28 }
  0x3d   : > { %1114 = vmatprep.subr.mxu1 %v7251_v57  ;;  %1136 = vmatprep.mubr.f32.mxu1 %v4434_v29  ;;  %v543_v58 = vsub.f32 %v4604_v40, %v7284_v47  ;;  %7286 = vst [vmem:[#allocation46_spill] sm:$0xff] %v4662_v51  ;;  %v323_v47 = vsel %vm297_vm0, %v224_v0, 0  ;;  %v226_v29 = vld [vmem:[%s4354_s30 + $0x98] sm:$0xff]  ;;  %v4685_v40 = vsub.f32 %v320_v22, %v4662_v51 }
  0x3e   : > { %1120 = vmatpush2.msra.mxu1 %v1119_v1  ;;  %506 = vmatmul.mubr.f32.gmra.mxu0 %v505_v24  ;;  %v534_v32 = vsub.f32 %v4601_v13, %v7283_v9  ;;  %7285 = vst [vmem:[#allocation45_spill] sm:$0xff] %v4660_v45  ;;  %v4668_v24 = vsub.f32 %v317_v62, %v4640_v59  ;;  %v529_v9 = vand.u32 4294901760, %v528_v8  ;;  %v4681_v62 = vand.u32 4294901760, %v221_v61 }
  0x3f   : > { %1121 = vmatprep.subr.mxu1 %v7251_v57  ;;  %515 = vmatprep.mubr.f32.mxu0 %v514_v19  ;;  %v549_v19 = vsub.f32 %v4629_v28, %v7288_v2  ;;  %v4679_v1 = vsub.f32 %v219_v31, %v4650_v63  ;;  %v7036_v0 = vand.u32 4294901760, %v4660_v45  ;;  %7291 = vst [vmem:[#allocation50_spill] sm:$0xff] %v4685_v40  ;;  %v7292_v2 = vand.u32 4294901760, %v4638_v7  ;;  %v228_v28 = vld [vmem:[%s4354_s30 + $0xa8] sm:$0xff] }
  0x40   : > { %7287 = vst [vmem:[#allocation47_spill] sm:$0xff] %v4668_v24  ;;  %1127 = vmatpush2.msra.mxu1 %v1126_v23  ;;  %1363 = vmatpush1.msra.mxu0 %v4217_v15  ;;  %7290 = vst [vmem:[#allocation49_spill] sm:$0xff] %v4681_v62  ;;  %v535_v8 = vand.u32 4294901760, %v534_v32  ;;  %v544_v23 = vand.u32 4294901760, %v543_v58  ;;  %v326_v58 = vsel %vm297_vm0, %v226_v29, 0 }
  0x41   : > { %1128 = vmatprep.subr.mxu1 %v7251_v57  ;;  %1364 = vmatprep.subr.mxu0 %v7251_v57  ;;  %7289 = vst [vmem:[#allocation48_spill] sm:$0xff] %v4679_v1  ;;  %v558_v31 = vsub.f32 %v4638_v7, %v7292_v2  ;;  %v550_v22 = vand.u32 4294901760, %v549_v19  ;;  %v4702_v2 = vsub.f32 %v221_v61, %v4681_v62  ;;  %v225_v19 = vld [vmem:[%s4354_s30 + $0x90] sm:$0xff] }
  0x42   : > { %1134 = vmatpush2.msra.mxu1 %v1133_v3  ;;  %521 = vmatmul.mubr.f32.gmra.mxu0 %v520_v41  ;;  %v4693_v3 = vand.u32 4294901760, %v323_v47  ;;  %v223_v41 = vld [vmem:[%s4354_s30 + $0x80] sm:$0xff]  ;;  %v564_v29 = vsub.f32 %v4660_v45, %v7036_v0  ;;  %v329_v0 = vsel %vm297_vm0, %v228_v28, 0  ;;  %v7301_v28 = vand.u32 4294901760, %v4685_v40 }
  0x43   : > { %1138 = vmatmul.mubr.f32.vlgmr.msra.gmra.mxu1 %v4440_v44  ;;  %1757 = vmatprep.subr.mxu1 %v7251_v57  ;;  %7294 = vst [vmem:[#allocation52_spill] sm:$0xff] %v4702_v2  ;;  %v4710_v44 = vand.u32 4294901760, %v223_v41  ;;  %v559_v61 = vand.u32 4294901760, %v558_v31 }
  0x44   : > { %7293 = vst [vmem:[#allocation51_spill] sm:$0xff] %v4693_v3  ;;  %1759 = vmatpush1.msra.mxu1 %v4186_v4  ;;  %530 = vmatprep.mubr.f32.mxu0 %v529_v9  ;;  %v4720_v7 = vsub.f32 %v323_v47, %v4693_v3  ;;  %v4731_v9 = vand.u32 4294901760, %v225_v19  ;;  %v230_v47 = vld [vmem:[%s4354_s30 + $0xb8] sm:$0xff] }
  0x45   : > { %1143 = vmatprep.mubr.f32.mxu1 %v4449_v52  ;;  %1367 = vmatpush1.msra.mxu0 %v4220_v16  ;;  %7295 = vst [vmem:[#allocation53_spill] sm:$0xff] %v4710_v44  ;;  %v4712_v52 = vand.u32 4294901760, %v326_v58 }
  0x46   : > { %536 = vmatmul.mubr.f32.gmra.mxu0 %v535_v8  ;;  %1760 = vmatprep.subr.mxu1 %v7251_v57  ;;  %v7297_v8 = vand.u32 4294901760, %v4668_v24  ;;  %7298 = vst [vmem:[#allocation55_spill] sm:$0xff] %v4720_v7  ;;  %7300 = vst [vmem:[#allocation56_spill] sm:$0xff] %v4731_v9 }
  0x47   : > { %7296 = vst [vmem:[#allocation54_spill] sm:$0xff] %v4712_v52  ;;  %1145 = vmatmul.mubr.f32.gmra.mxu1 %v4485_v49  ;;  %545 = vmatprep.mubr.f32.mxu0 %v544_v23  ;;  %v7299_v23 = vand.u32 4294901760, %v4679_v1  ;;  %v588_v49 = vsub.f32 %v4685_v40, %v7301_v28  ;;  %v4742_v45 = vsub.f32 %v326_v58, %v4712_v52  ;;  %v232_v28 = vld [vmem:[%s4354_s30 + $0xc8] sm:$0xff]  ;;  %v7305_v58 = vand.u32 4294901760, %v4702_v2 }
  0x48   : > { %v573_v32 = vsub.f32 %v4668_v24, %v7297_v8  ;;  %1150 = vmatprep.mubr.f32.mxu1 %v4497_v37  ;;  %1762 = vmatpush1.msra.mxu1 %v4188_v5  ;;  %v565_v37 = vand.u32 4294901760, %v564_v29  ;;  %v4739_v24 = vsub.f32 %v223_v41, %v4710_v44  ;;  %v227_v29 = vld [vmem:[%s4354_s30 + $0xa0] sm:$0xff]  ;;  %v332_v41 = vsel %vm297_vm0, %v230_v47, 0 }
  0x49   : > { %1368 = vmatprep.subr.mxu0 %v7251_v57  ;;  %1763 = vmatprep.subr.mxu1 %v7251_v57  ;;  %v579_v31 = vsub.f32 %v4679_v1, %v7299_v23  ;;  %7303 = vst [vmem:[#allocation58_spill] sm:$0xff] %v4742_v45  ;;  %v589_v8 = vand.u32 4294901760, %v588_v49  ;;  %v4774_v49 = vand.u32 4294901760, %v332_v41 }
  0x4a   : > { %551 = vmatmul.mubr.f32.gmra.mxu0 %v550_v22  ;;  %1765 = vmatpush1.msra.mxu1 %v4190_v6  ;;  %7302 = vst [vmem:[#allocation57_spill] sm:$0xff] %v4739_v24  ;;  %v574_v23 = vand.u32 4294901760, %v573_v32  ;;  %v4746_v22 = vand.u32 4294901760, %v329_v0  ;;  %v594_v32 = vsub.f32 %v4702_v2, %v7305_v58  ;;  %v7308_v58 = vand.u32 4294901760, %v4720_v7 }
  0x4b   : > { %1152 = vmatmul.mubr.f32.gmra.mxu1 %v4515_v34  ;;  %560 = vmatprep.mubr.f32.mxu0 %v559_v61  ;;  %v580_v40 = vand.u32 4294901760, %v579_v31  ;;  %v4759_v61 = vsub.f32 %v225_v19, %v4731_v9  ;;  %v4764_v31 = vand.u32 4294901760, %v227_v29  ;;  %v229_v34 = vld [vmem:[%s4354_s30 + $0xb0] sm:$0xff]  ;;  %7310 = vst [vmem:[#allocation63_spill] sm:$0xff] %v4774_v49 }
  0x4c   : > { %7304 = vst [vmem:[#allocation59_spill] sm:$0xff] %v4746_v22  ;;  %1157 = vmatprep.mubr.f32.mxu1 %v4544_v26  ;;  %1371 = vmatpush1.msra.mxu0 %v4225_v18  ;;  %v603_v19 = vsub.f32 %v4720_v7, %v7308_v58  ;;  %v335_v26 = vsel %vm297_vm0, %v232_v28, 0  ;;  %v595_v47 = vand.u32 4294901760, %v594_v32  ;;  %v4782_v58 = vand.u32 4294901760, %v229_v34 }
  0x4d   : > { %1372 = vmatprep.subr.mxu0 %v7251_v57  ;;  %1766 = vmatprep.subr.mxu1 %v7251_v57  ;;  %7306 = vst [vmem:[#allocation60_spill] sm:$0xff] %v4759_v61  ;;  %7307 = vst [vmem:[#allocation61_spill] sm:$0xff] %v4764_v31  ;;  %v4793_v7 = vsub.f32 %v227_v29, %v4764_v31  ;;  %v4795_v2 = vand.u32 4294901760, %v335_v26  ;;  %v236_v29 = vld [vmem:[%s4354_s30 + $0xe8] sm:$0xff] }
  0x4e   : > { %566 = vmatmul.mubr.f32.gmra.mxu0 %v565_v37  ;;  %1768 = vmatpush1.msra.mxu1 %v4202_v10  ;;  %v4772_v37 = vsub.f32 %v329_v0, %v4746_v22  ;;  %7311 = vst [vmem:[#allocation64_spill] sm:$0xff] %v4782_v58  ;;  %v234_v0 = vld [vmem:[%s4354_s30 + $0xd8] sm:$0xff] }
  0x4f   : > { %1159 = vmatmul.mubr.f32.gmra.mxu1 %v4565_v56  ;;  %575 = vmatprep.mubr.f32.mxu0 %v574_v23  ;;  %v7312_v56 = vand.u32 4294901760, %v4739_v24  ;;  %7314 = vst [vmem:[#allocation65_spill] sm:$0xff] %v4793_v7  ;;  %7315 = vst [vmem:[#allocation66_spill] sm:$0xff] %v4795_v2  ;;  %v231_v23 = vld [vmem:[%s4354_s30 + $0xc0] sm:$0xff] }
  0x50   : > { %7309 = vst [vmem:[#allocation62_spill] sm:$0xff] %v4772_v37  ;;  %1164 = vmatprep.mubr.f32.mxu1 %v4567_v14  ;;  %1375 = vmatpush1.msra.mxu0 %v4232_v20  ;;  %v7313_v14 = vand.u32 4294901760, %v4742_v45 }
  0x51   : > { %1376 = vmatprep.subr.mxu0 %v7251_v57  ;;  %1769 = vmatprep.subr.mxu1 %v7251_v57  ;;  %v609_v28 = vsub.f32 %v4739_v24, %v7312_v56  ;;  %v4801_v56 = vsub.f32 %v332_v41, %v4774_v49  ;;  %v4815_v41 = vand.u32 4294901760, %v231_v23 }
  0x52   : > { %581 = vmatmul.mubr.f32.gmra.mxu0 %v580_v40  ;;  %1771 = vmatpush1.msra.mxu1 %v4204_v11  ;;  %v618_v32 = vsub.f32 %v4742_v45, %v7313_v14  ;;  %v604_v40 = vand.u32 4294901760, %v603_v19  ;;  %v338_v14 = vsel %vm297_vm0, %v234_v0, 0  ;;  %v7317_v45 = vand.u32 4294901760, %v4759_v61 }
  0x53   : > { %1166 = vmatmul.mubr.f32.gmra.mxu1 %v4592_v36  ;;  %590 = vmatprep.mubr.f32.mxu0 %v589_v8  ;;  %7316 = vst [vmem:[#allocation67_spill] sm:$0xff] %v4801_v56  ;;  %v4813_v8 = vsub.f32 %v229_v34, %v4782_v58  ;;  %7319 = vst [vmem:[#allocation69_spill] sm:$0xff] %v4815_v41  ;;  %v610_v19 = vand.u32 4294901760, %v609_v28  ;;  %v7321_v34 = vand.u32 4294901760, %v4772_v37  ;;  %v4828_v28 = vand.u32 4294901760, %v338_v14 }
  0x54   : > { %1171 = vmatprep.mubr.f32.mxu1 %v4610_v46  ;;  %1379 = vmatpush1.msra.mxu0 %v4235_v21  ;;  %v624_v24 = vsub.f32 %v4759_v61, %v7317_v45  ;;  %v619_v1 = vand.u32 4294901760, %v618_v32  ;;  %v4820_v46 = vsub.f32 %v335_v26, %v4795_v2  ;;  %v233_v45 = vld [vmem:[%s4354_s30 + $0xd0] sm:$0xff]  ;;  %v341_v32 = vsel %vm297_vm0, %v236_v29, 0  ;;  %v235_v61 = vld [vmem:[%s4354_s30 + $0xe0] sm:$0xff] }
  0x55   : > { %1380 = vmatprep.subr.mxu0 %v7251_v57  ;;  %1772 = vmatprep.subr.mxu1 %v7251_v57  ;;  %7318 = vst [vmem:[#allocation68_spill] sm:$0xff] %v4813_v8  ;;  %v633_v36 = vsub.f32 %v4772_v37, %v7321_v34  ;;  %7322 = vst [vmem:[#allocation71_spill] sm:$0xff] %v4828_v28  ;;  %v4839_v34 = vand.u32 4294901760, %v233_v45  ;;  %v7325_v29 = vand.u32 4294901760, %v4793_v7  ;;  %v4847_v37 = vand.u32 4294901760, %v341_v32 }
  0x56   : > { %596 = vmatmul.mubr.f32.gmra.mxu0 %v595_v47  ;;  %1774 = vmatpush1.msra.mxu1 %v4206_v12  ;;  %7320 = vst [vmem:[#allocation70_spill] sm:$0xff] %v4820_v46  ;;  %v238_v47 = vld [vmem:[%s4354_s30 + $0xf8] sm:$0xff]  ;;  %v625_v0 = vand.u32 4294901760, %v624_v24  ;;  %v7327_v26 = vand.u32 4294901760, %v4801_v56  ;;  %v4854_v24 = vsub.f32 %v338_v14, %v4828_v28  ;;  %v240_v14 = vld [vmem:[%s4354_s30 + $0x108] sm:$0xff] }
  0x57   : > { %1173 = vmatmul.mubr.f32.gmra.mxu1 %v4633_v53  ;;  %605 = vmatprep.mubr.f32.mxu0 %v604_v40  ;;  %v4837_v40 = vsub.f32 %v231_v23, %v4815_v41  ;;  %7324 = vst [vmem:[#allocation73_spill] sm:$0xff] %v4839_v34  ;;  %7326 = vst [vmem:[#allocation74_spill] sm:$0xff] %v4847_v37  ;;  %v634_v23 = vand.u32 4294901760, %v633_v36  ;;  %v7329_v53 = vand.u32 4294901760, %v4813_v8 }
  0x58   : > { %1178 = vmatprep.mubr.f32.mxu1 %v4640_v59  ;;  %1383 = vmatpush1.msra.mxu0 %v4258_v30  ;;  %v639_v59 = vsub.f32 %v4793_v7, %v7325_v29  ;;  %7328 = vst [vmem:[#allocation75_spill] sm:$0xff] %v4854_v24  ;;  %v344_v29 = vsel %vm297_vm0, %v238_v47, 0  ;;  %v7331_v47 = vand.u32 4294901760, %v4820_v46 }
  0x59   : > { %1384 = vmatprep.subr.mxu0 %v7251_v57  ;;  %1775 = vmatprep.subr.mxu1 %v7251_v57  ;;  %7323 = vst [vmem:[#allocation72_spill] sm:$0xff] %v4837_v40 }
  0x5a   : > { %611 = vmatmul.mubr.f32.gmra.mxu0 %v610_v19  ;;  %1777 = vmatpush1.msra.mxu1 %v4222_v17  ;;  %v648_v19 = vsub.f32 %v4801_v56, %v7327_v26  ;;  %v640_v26 = vand.u32 4294901760, %v639_v59  ;;  %v4881_v56 = vand.u32 4294901760, %v344_v29  ;;  %v237_v59 = vld [vmem:[%s4354_s30 + $0xf0] sm:$0xff] }
  0x5b   : > { %1180 = vmatmul.mubr.f32.gmra.mxu1 %v4650_v63  ;;  %620 = vmatprep.mubr.f32.mxu0 %v619_v1  ;;  %v654_v63 = vsub.f32 %v4813_v8, %v7329_v53  ;;  %v4867_v1 = vsub.f32 %v233_v45, %v4839_v34  ;;  %v4875_v53 = vsub.f32 %v341_v32, %v4847_v37  ;;  %v4877_v8 = vand.u32 4294901760, %v235_v61  ;;  %v242_v32 = vld [vmem:[%s4354_s30 + $0x118] sm:$0xff] }
  0x5c   : > { %1185 = vmatprep.mubr.f32.mxu1 %v4662_v51  ;;  %1387 = vmatpush1.msra.mxu0 %v4274_v35  ;;  %v663_v51 = vsub.f32 %v4820_v46, %v7331_v47  ;;  %v649_v45 = vand.u32 4294901760, %v648_v19  ;;  %7334 = vst [vmem:[#allocation79_spill] sm:$0xff] %v4881_v56  ;;  %v7335_v46 = vand.u32 4294901760, %v4837_v40 }
  0x5d   : > { %1388 = vmatprep.subr.mxu0 %v7251_v57  ;;  %1778 = vmatprep.subr.mxu1 %v7251_v57  ;;  %7330 = vst [vmem:[#allocation76_spill] sm:$0xff] %v4867_v1  ;;  %7332 = vst [vmem:[#allocation77_spill] sm:$0xff] %v4875_v53  ;;  %v655_v47 = vand.u32 4294901760, %v654_v63  ;;  %v4899_v63 = vand.u32 4294901760, %v237_v59 }
  0x5e   : > { %626 = vmatmul.mubr.f32.gmra.mxu0 %v625_v0  ;;  %1780 = vmatpush1.msra.mxu1 %v4241_v25  ;;  %7333 = vst [vmem:[#allocation78_spill] sm:$0xff] %v4877_v8  ;;  %v347_v0 = vsel %vm297_vm0, %v240_v14, 0  ;;  %v664_v19 = vand.u32 4294901760, %v663_v51  ;;  %v239_v14 = vld [vmem:[%s4354_s30 + $0x100] sm:$0xff]  ;;  %v4907_v51 = vsub.f32 %v344_v29, %v4881_v56 }
  0x5f   : > { %1187 = vmatmul.mubr.f32.gmra.mxu1 %v4681_v62  ;;  %635 = vmatprep.mubr.f32.mxu0 %v634_v23  ;;  %v669_v62 = vsub.f32 %v4837_v40, %v7335_v46  ;;  %7337 = vst [vmem:[#allocation81_spill] sm:$0xff] %v4899_v63  ;;  %v7338_v46 = vand.u32 4294901760, %v4854_v24  ;;  %v4919_v29 = vand.u32 4294901760, %v239_v14 }
  0x60   : > { %1192 = vmatprep.mubr.f32.mxu1 %v4693_v3  ;;  %1391 = vmatpush1.msra.mxu0 %v4297_v43  ;;  %v4896_v3 = vsub.f32 %v235_v61, %v4877_v8  ;;  %7339 = vst [vmem:[#allocation82_spill] sm:$0xff] %v4907_v51  ;;  %v350_v61 = vsel %vm297_vm0, %v242_v32, 0  ;;  %v7343_v32 = vand.u32 4294901760, %v4875_v53 }
  0x61   : > { %1392 = vmatprep.subr.mxu0 %v7251_v57  ;;  %1781 = vmatprep.subr.mxu1 %v7251_v57  ;;  %v678_v23 = vsub.f32 %v4854_v24, %v7338_v46  ;;  %v670_v36 = vand.u32 4294901760, %v669_v62  ;;  %7342 = vst [vmem:[#allocation84_spill] sm:$0xff] %v4919_v29  ;;  %v244_v46 = vld [vmem:[%s4354_s30 + $0x128] sm:$0xff]  ;;  %v4927_v62 = vsub.f32 %v237_v59, %v4899_v63 }
  0x62   : > { %641 = vmatmul.mubr.f32.gmra.mxu0 %v640_v26  ;;  %7336 = vst [vmem:[#allocation80_spill] sm:$0xff] %v4896_v3  ;;  %1783 = vmatpush1.msra.mxu1 %v4251_v27  ;;  %v4909_v26 = vand.u32 4294901760, %v347_v0  ;;  %v353_v59 = vsel %vm297_vm0, %v244_v46, 0 }
  0x63   : > { %1194 = vmatmul.mubr.f32.gmra.mxu1 %v4710_v44  ;;  %650 = vmatprep.mubr.f32.mxu0 %v649_v45  ;;  %v7341_v44 = vand.u32 4294901760, %v4867_v1  ;;  %7344 = vst [vmem:[#allocation85_spill] sm:$0xff] %v4927_v62  ;;  %v679_v40 = vand.u32 4294901760, %v678_v23 }
  0x64   : > { %7340 = vst [vmem:[#allocation83_spill] sm:$0xff] %v4909_v26  ;;  %1199 = vmatprep.mubr.f32.mxu1 %v4712_v52  ;;  %1395 = vmatpush1.msra.mxu0 %v4308_v48  ;;  %v693_v52 = vsub.f32 %v4875_v53, %v7343_v32  ;;  %v4936_v7 = vsub.f32 %v347_v0, %v4909_v26  ;;  %v246_v32 = vld [vmem:[%s4354_s30 + $0x138] sm:$0xff] }
  0x65   : > { %v684_v45 = vsub.f32 %v4867_v1, %v7341_v44  ;;  %1396 = vmatprep.subr.mxu0 %v7251_v57  ;;  %1784 = vmatprep.subr.mxu1 %v7251_v57  ;;  %v4930_v44 = vand.u32 4294901760, %v350_v61  ;;  %v241_v1 = vld [vmem:[%s4354_s30 + $0x110] sm:$0xff]  ;;  %v4943_v53 = vsub.f32 %v239_v14, %v4919_v29  ;;  %v243_v14 = vld [vmem:[%s4354_s30 + $0x120] sm:$0xff] }
  0x66   : > { %656 = vmatmul.mubr.f32.gmra.mxu0 %v655_v47  ;;  %1786 = vmatpush1.msra.mxu1 %v4281_v39  ;;  %7346 = vst [vmem:[#allocation87_spill] sm:$0xff] %v4936_v7  ;;  %v4947_v23 = vand.u32 4294901760, %v241_v1  ;;  %v694_v0 = vand.u32 4294901760, %v693_v52 }
  0x67   : > { %7345 = vst [vmem:[#allocation86_spill] sm:$0xff] %v4930_v44  ;;  %1201 = vmatmul.mubr.f32.gmra.mxu1 %v4731_v9  ;;  %665 = vmatprep.mubr.f32.mxu0 %v664_v19  ;;  %v685_v24 = vand.u32 4294901760, %v684_v45  ;;  %7347 = vst [vmem:[#allocation88_spill] sm:$0xff] %v4943_v53  ;;  %v7349_v19 = vand.u32 4294901760, %v4896_v3  ;;  %v4954_v46 = vsub.f32 %v350_v61, %v4930_v44  ;;  %v7351_v45 = vand.u32 4294901760, %v4907_v51 }
  0x68   : > { %1206 = vmatprep.mubr.f32.mxu1 %v4746_v22  ;;  %1399 = vmatpush1.msra.mxu0 %v4325_v55  ;;  %7348 = vst [vmem:[#allocation89_spill] sm:$0xff] %v4947_v23  ;;  %v4963_v9 = vand.u32 4294901760, %v353_v59  ;;  %v4970_v22 = vsub.f32 %v241_v1, %v4947_v23 }
  0x69   : > { %1400 = vmatprep.subr.mxu0 %v7251_v57  ;;  %1787 = vmatprep.subr.mxu1 %v7251_v57  ;;  %v699_v47 = vsub.f32 %v4896_v3, %v7349_v19  ;;  %7350 = vst [vmem:[#allocation90_spill] sm:$0xff] %v4954_v46  ;;  %v708_v52 = vsub.f32 %v4907_v51, %v7351_v45  ;;  %v356_v19 = vsel %vm297_vm0, %v246_v32, 0  ;;  %v248_v45 = vld [vmem:[%s4354_s30 + $0x148] sm:$0xff]  ;;  %v7355_v32 = vand.u32 4294901760, %v4927_v62  ;;  %v245_v3 = vld [vmem:[%s4354_s30 + $0x130] sm:$0xff] }
  0x6a   : > { %671 = vmatmul.mubr.f32.gmra.mxu0 %v670_v36  ;;  %1789 = vmatpush1.msra.mxu1 %v4294_v42  ;;  %7352 = vst [vmem:[#allocation91_spill] sm:$0xff] %v4963_v9  ;;  %7353 = vst [vmem:[#allocation92_spill] sm:$0xff] %v4970_v22  ;;  %v4982_v1 = vand.u32 4294901760, %v356_v19  ;;  %v7357_v51 = vand.u32 4294901760, %v4936_v7 }
  0x6b   : > { %1208 = vmatmul.mubr.f32.gmra.mxu1 %v4764_v31  ;;  %680 = vmatprep.mubr.f32.mxu0 %v679_v40  ;;  %v4973_v40 = vand.u32 4294901760, %v243_v14  ;;  %v700_v36 = vand.u32 4294901760, %v699_v47  ;;  %v709_v61 = vand.u32 4294901760, %v708_v52  ;;  %v4989_v47 = vsub.f32 %v353_v59, %v4963_v9 }
  0x6c   : > { %1213 = vmatprep.mubr.f32.mxu1 %v4774_v49  ;;  %1403 = vmatpush1.msra.mxu0 %v4339_v60  ;;  %v714_v49 = vsub.f32 %v4927_v62, %v7355_v32  ;;  %7356 = vst [vmem:[#allocation94_spill] sm:$0xff] %v4982_v1  ;;  %v7359_v32 = vld [vmem:[#allocation5_spill] sm:$0xff]  ;;  %v359_v31 = vsel %vm297_vm0, %v248_v45, 0  ;;  %v7360_v62 = vand.u32 4294901760, %v4943_v53  ;;  %v7362_v45 = vand.u32 4294901760, %v4954_v46 }
  0x6d   : > { %1404 = vmatprep.subr.mxu0 %v7251_v57  ;;  %7354 = vst [vmem:[#allocation93_spill] sm:$0xff] %v4973_v40  ;;  %1790 = vmatprep.subr.mxu1 %v7251_v57  ;;  %7358 = vst [vmem:[#allocation95_spill] sm:$0xff] %v4989_v47  ;;  %v5000_v52 = vsub.f32 %v243_v14, %v4973_v40 }
  0x6e   : > { %686 = vmatmul.mubr.f32.gmra.mxu0 %v685_v24  ;;  %1792 = vmatpush1.msra.mxu1 %v4312_v50  ;;  %v723_v24 = vsub.f32 %v4936_v7, %v7357_v51  ;;  %v250_v51 = vld [vmem:[%s4354_s30 + $0x158] sm:$0xff]  ;;  %v715_v59 = vand.u32 4294901760, %v714_v49  ;;  %v5016_v50 = vand.u32 4294901760, %v359_v31  ;;  %v247_v49 = vld [vmem:[%s4354_s30 + $0x140] sm:$0xff] }
  0x6f   : > { %1215 = vmatmul.mubr.f32.gmra.mxu1 %v4782_v58  ;;  %695 = vmatprep.mubr.f32.mxu0 %v694_v0  ;;  %v729_v58 = vsub.f32 %v4943_v53, %v7360_v62  ;;  %7361 = vst [vmem:[#allocation96_spill] sm:$0xff] %v5000_v52  ;;  %v5009_v62 = vsub.f32 %v356_v19, %v4982_v1  ;;  %v5011_v0 = vand.u32 4294901760, %v245_v3  ;;  %v7365_v53 = vld [vmem:[#allocation3_spill] sm:$0xff]  ;;  %v362_v19 = vsel %vm297_vm0, %v250_v51, 0  ;;  %v7375_v7 = vld [vmem:[#allocation9_spill] sm:$0xff] }
  0x70   : > { %1220 = vmatprep.mubr.f32.mxu1 %v4795_v2  ;;  %1407 = vmatpush1.msra.mxu0 %v7359_v32  ;;  %v738_v2 = vsub.f32 %v4954_v46, %v7362_v45  ;;  %v724_v14 = vand.u32 4294901760, %v723_v24  ;;  %7366 = vst [vmem:[#allocation99_spill] sm:$0xff] %v5016_v50  ;;  %v252_v45 = vld [vmem:[%s4354_s30 + $0x168] sm:$0xff]  ;;  %v5033_v51 = vand.u32 4294901760, %v247_v49 }
  0x71   : > { %1408 = vmatprep.subr.mxu0 %v7251_v57  ;;  %1793 = vmatprep.subr.mxu1 %v7251_v57  ;;  %7363 = vst [vmem:[#allocation97_spill] sm:$0xff] %v5009_v62  ;;  %7364 = vst [vmem:[#allocation98_spill] sm:$0xff] %v5011_v0  ;;  %v730_v46 = vand.u32 4294901760, %v729_v58  ;;  %v249_v58 = vld [vmem:[%s4354_s30 + $0x150] sm:$0xff] }
  0x72   : > { %701 = vmatmul.mubr.f32.gmra.mxu0 %v700_v36  ;;  %1795 = vmatpush1.msra.mxu1 %v7365_v53  ;;  %v7367_v36 = vld [vmem:[#allocation6_spill] sm:$0xff]  ;;  %v7368_v53 = vand.u32 4294901760, %v4970_v22  ;;  %v739_v24 = vand.u32 4294901760, %v738_v2  ;;  %7370 = vst [vmem:[#allocation101_spill] sm:$0xff] %v5033_v51  ;;  %v5044_v2 = vand.u32 4294901760, %v362_v19  ;;  %v5053_v32 = vand.u32 4294901760, %v249_v58 }
  0x73   : > { %1222 = vmatmul.mubr.f32.gmra.mxu1 %v4815_v41  ;;  %710 = vmatprep.mubr.f32.mxu0 %v709_v61 }
  0x74   : > { %1227 = vmatprep.mubr.f32.mxu1 %v4828_v28  ;;  %1411 = vmatpush1.msra.mxu0 %v7367_v36  ;;  %v744_v41 = vsub.f32 %v4970_v22, %v7368_v53  ;;  %v5031_v28 = vsub.f32 %v245_v3, %v5011_v0  ;;  %v7371_v36 = vld [vmem:[#allocation4_spill] sm:$0xff]  ;;  %v7372_v53 = vand.u32 4294901760, %v4989_v47  ;;  %7374 = vst [vmem:[#allocation103_spill] sm:$0xff] %v5044_v2  ;;  %v365_v3 = vsel %vm297_vm0, %v252_v45, 0  ;;  %v254_v22 = vld [vmem:[%s4354_s30 + $0x178] sm:$0xff] }
  0x75   : > { %1412 = vmatprep.subr.mxu0 %v7251_v57  ;;  %1796 = vmatprep.subr.mxu1 %v7251_v57  ;;  %7377 = vst [vmem:[#allocation104_spill] sm:$0xff] %v5053_v32 }
  0x76   : > { %716 = vmatmul.mubr.f32.gmra.mxu0 %v715_v59  ;;  %7369 = vst [vmem:[#allocation100_spill] sm:$0xff] %v5031_v28  ;;  %1798 = vmatpush1.msra.mxu1 %v7371_v36  ;;  %v753_v61 = vsub.f32 %v4989_v47, %v7372_v53  ;;  %v5042_v59 = vsub.f32 %v359_v31, %v5016_v50  ;;  %v745_v36 = vand.u32 4294901760, %v744_v41  ;;  %v7378_v31 = vand.u32 4294901760, %v5009_v62 }
  0x77   : > { %1229 = vmatmul.mubr.f32.gmra.mxu1 %v4839_v34  ;;  %725 = vmatprep.mubr.f32.mxu0 %v724_v14  ;;  %v7376_v14 = vand.u32 4294901760, %v5000_v52  ;;  %v5064_v41 = vand.u32 4294901760, %v365_v3  ;;  %v368_v53 = vsel %vm297_vm0, %v254_v22, 0 }
  0x78   : > { %7373 = vst [vmem:[#allocation102_spill] sm:$0xff] %v5042_v59  ;;  %1234 = vmatprep.mubr.f32.mxu1 %v4847_v37  ;;  %1415 = vmatpush1.msra.mxu0 %v7375_v7  ;;  %v768_v45 = vsub.f32 %v5009_v62, %v7378_v31  ;;  %v5062_v37 = vsub.f32 %v247_v49, %v5033_v51  ;;  %v754_v47 = vand.u32 4294901760, %v753_v61  ;;  %v7383_v49 = vld [vmem:[#allocation11_spill] sm:$0xff] }
  0x79   : > { %v759_v34 = vsub.f32 %v5000_v52, %v7376_v14  ;;  %1416 = vmatprep.subr.mxu0 %v7251_v57  ;;  %1799 = vmatprep.subr.mxu1 %v7251_v57  ;;  %7380 = vst [vmem:[#allocation106_spill] sm:$0xff] %v5064_v41  ;;  %v251_v14 = vld [vmem:[%s4354_s30 + $0x160] sm:$0xff]  ;;  %v7381_v52 = vld [vmem:[#allocation7_spill] sm:$0xff]  ;;  %v5071_v31 = vsub.f32 %v362_v19, %v5044_v2  ;;  %v7386_v19 = vand.u32 4294901760, %v5031_v28 }
  0x7a   : > { %731 = vmatmul.mubr.f32.gmra.mxu0 %v730_v46  ;;  %7379 = vst [vmem:[#allocation105_spill] sm:$0xff] %v5062_v37  ;;  %1801 = vmatpush1.msra.mxu1 %v7381_v52  ;;  %v5077_v7 = vsub.f32 %v249_v58, %v5053_v32  ;;  %v5079_v52 = vand.u32 4294901760, %v251_v14  ;;  %v256_v61 = vld [vmem:[%s4354_s30 + $0x188] sm:$0xff]  ;;  %v5091_v58 = vand.u32 4294901760, %v368_v53  ;;  %v253_v46 = vld [vmem:[%s4354_s30 + $0x170] sm:$0xff] }
  0x7b   : > { %1236 = vmatmul.mubr.f32.gmra.mxu1 %v4877_v8  ;;  %740 = vmatprep.mubr.f32.mxu0 %v739_v24  ;;  %7382 = vst [vmem:[#allocation107_spill] sm:$0xff] %v5071_v31  ;;  %v760_v62 = vand.u32 4294901760, %v759_v34  ;;  %v774_v22 = vsub.f32 %v5031_v28, %v7386_v19  ;;  %v5089_v34 = vsub.f32 %v365_v3, %v5064_v41  ;;  %v769_v8 = vand.u32 4294901760, %v768_v45  ;;  %v7391_v24 = vld [vmem:[#allocation12_spill] sm:$0xff]  ;;  %v258_v45 = vld [vmem:[%s4354_s30 + $0x198] sm:$0xff]  ;;  %v7399_v28 = vld [vmem:[#allocation14_spill] sm:$0xff] }
  0x7c   : > { %1241 = vmatprep.mubr.f32.mxu1 %v4881_v56  ;;  %1419 = vmatpush1.msra.mxu0 %v7383_v49  ;;  %7384 = vst [vmem:[#allocation108_spill] sm:$0xff] %v5077_v7  ;;  %7385 = vst [vmem:[#allocation109_spill] sm:$0xff] %v5079_v52  ;;  %v7389_v56 = vld [vmem:[#allocation8_spill] sm:$0xff]  ;;  %v371_v3 = vsel %vm297_vm0, %v256_v61, 0  ;;  %v7394_v19 = vand.u32 4294901760, %v5062_v37 }
  0x7d   : > { %1420 = vmatprep.subr.mxu0 %v7251_v57  ;;  %1802 = vmatprep.subr.mxu1 %v7251_v57  ;;  %7387 = vst [vmem:[#allocation110_spill] sm:$0xff] %v5089_v34  ;;  %7388 = vst [vmem:[#allocation111_spill] sm:$0xff] %v5091_v58 }
  0x7e   : > { %746 = vmatmul.mubr.f32.gmra.mxu0 %v745_v36  ;;  %1804 = vmatpush1.msra.mxu1 %v7389_v56  ;;  %v7390_v36 = vand.u32 4294901760, %v5042_v59  ;;  %v5105_v56 = vsub.f32 %v251_v14, %v5079_v52  ;;  %v789_v61 = vsub.f32 %v5062_v37, %v7394_v19  ;;  %v5117_v14 = vsub.f32 %v368_v53, %v5091_v58 }
  0x7f   : > { %1243 = vmatmul.mubr.f32.gmra.mxu1 %v4899_v63  ;;  %755 = vmatprep.mubr.f32.mxu0 %v754_v47  ;;  %v5107_v47 = vand.u32 4294901760, %v253_v46  ;;  %v374_v19 = vsel %vm297_vm0, %v258_v45, 0  ;;  %v7400_v53 = vand.u32 4294901760, %v5077_v7 }
  0x80   : > { %v783_v49 = vsub.f32 %v5042_v59, %v7390_v36  ;;  %1248 = vmatprep.mubr.f32.mxu1 %v4909_v26  ;;  %1423 = vmatpush1.msra.mxu0 %v7391_v24  ;;  %7392 = vst [vmem:[#allocation112_spill] sm:$0xff] %v5105_v56  ;;  %v775_v36 = vand.u32 4294901760, %v774_v22  ;;  %7395 = vst [vmem:[#allocation114_spill] sm:$0xff] %v5117_v14  ;;  %v7396_v26 = vld [vmem:[#allocation10_spill] sm:$0xff]  ;;  %v7397_v59 = vand.u32 4294901760, %v5071_v31  ;;  %v5124_v22 = vand.u32 4294901760, %v371_v3 }
  0x81   : > { %7393 = vst [vmem:[#allocation113_spill] sm:$0xff] %v5107_v47  ;;  %1444 = vmatprep.subr.mxu0 %v7251_v57  ;;  %1825 = vmatprep.subr.mxu1 %v7251_v57  ;;  %v255_v24 = vld [vmem:[%s4354_s30 + $0x180] sm:$0xff]  ;;  %v804_v37 = vsub.f32 %v5077_v7, %v7400_v53  ;;  %v790_v45 = vand.u32 4294901760, %v789_v61  ;;  %v262_v53 = vld [vmem:[%s4354_s30 + $0x1b8] sm:$0xff] }
  0x82   : > { %761 = vmatmul.mubr.f32.gmra.mxu0 %v760_v62  ;;  %1827 = vmatpush2.msra.mxu1 %v7396_v26  ;;  %v784_v63 = vand.u32 4294901760, %v783_v49  ;;  %v798_v62 = vsub.f32 %v5071_v31, %v7397_v59  ;;  %7398 = vst [vmem:[#allocation115_spill] sm:$0xff] %v5124_v22  ;;  %v5135_v49 = vsub.f32 %v253_v46, %v5107_v47  ;;  %v260_v59 = vld [vmem:[%s4354_s30 + $0x1a8] sm:$0xff]  ;;  %v5144_v7 = vand.u32 4294901760, %v255_v24  ;;  %v7405_v61 = vld [vmem:[#allocation18_spill] sm:$0xff] }
  0x83   : > { %1250 = vmatmul.mubr.f32.gmra.mxu1 %v4919_v29  ;;  %770 = vmatprep.mubr.f32.mxu0 %v769_v8  ;;  %v7403_v8 = vld [vmem:[#allocation13_spill] sm:$0xff]  ;;  %v5149_v31 = vsub.f32 %v371_v3, %v5124_v22  ;;  %v5151_v26 = vand.u32 4294901760, %v374_v19 }
  0x84   : > { %1255 = vmatprep.mubr.f32.mxu1 %v4930_v44  ;;  %1447 = vmatpush2.msra.mxu0 %v7399_v28  ;;  %7401 = vst [vmem:[#allocation116_spill] sm:$0xff] %v5135_v49  ;;  %v7402_v44 = vand.u32 4294901760, %v5089_v34  ;;  %v799_v46 = vand.u32 4294901760, %v798_v62 }
  0x85   : > { %1448 = vmatprep.subr.mxu0 %v7251_v57  ;;  %1828 = vmatprep.subr.mxu1 %v7251_v57  ;;  %7404 = vst [vmem:[#allocation117_spill] sm:$0xff] %v5149_v31 }
  0x86   : > { %776 = vmatmul.mubr.f32.gmra.mxu0 %v775_v36  ;;  %v813_v29 = vsub.f32 %v5089_v34, %v7402_v44  ;;  %1830 = vmatpush2.msra.mxu1 %v7403_v8  ;;  %v257_v36 = vld [vmem:[%s4354_s30 + $0x190] sm:$0xff]  ;;  %v377_v44 = vsel %vm297_vm0, %v260_v59, 0  ;;  %v805_v34 = vand.u32 4294901760, %v804_v37  ;;  %v7406_v8 = vand.u32 4294901760, %v5105_v56 }
  0x87   : > { %1257 = vmatmul.mubr.f32.gmra.mxu1 %v4947_v23  ;;  %785 = vmatprep.mubr.f32.mxu0 %v784_v63  ;;  %v5168_v23 = vsub.f32 %v255_v24, %v5144_v7  ;;  %v5170_v37 = vand.u32 4294901760, %v257_v36  ;;  %v7411_v24 = vld [vmem:[#allocation24_spill] sm:$0xff] }
  0x88   : > { %1262 = vmatprep.mubr.f32.mxu1 %v4963_v9  ;;  %1451 = vmatpush2.msra.mxu0 %v7405_v61  ;;  %v819_v63 = vsub.f32 %v5105_v56, %v7406_v8  ;;  %v814_v3 = vand.u32 4294901760, %v813_v29  ;;  %v7407_v9 = vand.u32 4294901760, %v5117_v14  ;;  %v259_v61 = vld [vmem:[%s4354_s30 + $0x1a0] sm:$0xff]  ;;  %v7409_v8 = vld [vmem:[#allocation17_spill] sm:$0xff]  ;;  %v5177_v29 = vsub.f32 %v374_v19, %v5151_v26 }
  0x89   : > { %1452 = vmatprep.subr.mxu0 %v7251_v57  ;;  %1831 = vmatprep.subr.mxu1 %v7251_v57  ;;  %7408 = vst [vmem:[#allocation118_spill] sm:$0xff] %v5168_v23  ;;  %v5184_v56 = vand.u32 4294901760, %v259_v61  ;;  %v7412_v19 = vand.u32 4294901760, %v5135_v49 }
  0x8a   : > { %791 = vmatmul.mubr.f32.gmra.mxu0 %v790_v45  ;;  %v828_v59 = vsub.f32 %v5117_v14, %v7407_v9  ;;  %1833 = vmatpush2.msra.mxu1 %v7409_v8  ;;  %7410 = vst [vmem:[#allocation119_spill] sm:$0xff] %v5177_v29  ;;  %v5179_v45 = vand.u32 4294901760, %v377_v44  ;;  %v380_v9 = vsel %vm297_vm0, %v262_v53, 0  ;;  %v820_v14 = vand.u32 4294901760, %v819_v63  ;;  %v264_v8 = vld [vmem:[%s4354_s30 + $0x1c8] sm:$0xff]  ;;  %v261_v63 = vld [vmem:[%s4354_s30 + $0x1b0] sm:$0xff] }
  0x8b   : > { %1264 = vmatmul.mubr.f32.gmra.mxu1 %v4973_v40  ;;  %800 = vmatprep.mubr.f32.mxu0 %v799_v46  ;;  %v834_v46 = vsub.f32 %v5135_v49, %v7412_v19  ;;  %v5194_v53 = vsub.f32 %v257_v36, %v5170_v37  ;;  %v7414_v40 = vld [vmem:[#allocation20_spill] sm:$0xff]  ;;  %v383_v36 = vsel %vm297_vm0, %v264_v8, 0  ;;  %v7417_v49 = vld [vmem:[#allocation29_spill] sm:$0xff] }
  0x8c   : > { %1269 = vmatprep.mubr.f32.mxu1 %v4982_v1  ;;  %1455 = vmatpush2.msra.mxu0 %v7411_v24  ;;  %v5196_v1 = vand.u32 4294901760, %v380_v9  ;;  %v829_v24 = vand.u32 4294901760, %v828_v59  ;;  %v5206_v62 = vsub.f32 %v377_v44, %v5179_v45  ;;  %v266_v59 = vld [vmem:[%s4354_s30 + $0x1d8] sm:$0xff]  ;;  %v7424_v8 = vld [vmem:[#allocation28_spill] sm:$0xff] }
  0x8d   : > { %1456 = vmatprep.subr.mxu0 %v7251_v57  ;;  %1834 = vmatprep.subr.mxu1 %v7251_v57  ;;  %7413 = vst [vmem:[#allocation120_spill] sm:$0xff] %v5194_v53  ;;  %v835_v44 = vand.u32 4294901760, %v834_v46  ;;  %v7423_v46 = vand.u32 4294901760, %v5194_v53 }
  0x8e   : > { %806 = vmatmul.mubr.f32.gmra.mxu0 %v805_v34  ;;  %1836 = vmatpush2.msra.mxu1 %v7414_v40  ;;  %v7415_v34 = vand.u32 4294901760, %v5149_v31  ;;  %7416 = vst [vmem:[#allocation121_spill] sm:$0xff] %v5206_v62  ;;  %v5212_v40 = vsub.f32 %v259_v61, %v5184_v56  ;;  %v5224_v61 = vsub.f32 %v380_v9, %v5196_v1  ;;  %v386_v9 = vsel %vm297_vm0, %v266_v59, 0 }
  0x8f   : > { %1271 = vmatmul.mubr.f32.gmra.mxu1 %v5011_v0  ;;  %815 = vmatprep.mubr.f32.mxu0 %v814_v3  ;;  %v5214_v3 = vand.u32 4294901760, %v261_v63 }
  0x90   : > { %v843_v28 = vsub.f32 %v5149_v31, %v7415_v34  ;;  %1276 = vmatprep.mubr.f32.mxu1 %v5016_v50  ;;  %1459 = vmatpush2.msra.mxu0 %v7417_v49  ;;  %7418 = vst [vmem:[#allocation122_spill] sm:$0xff] %v5212_v40  ;;  %v7419_v34 = vand.u32 4294901760, %v5168_v23  ;;  %7420 = vst [vmem:[#allocation123_spill] sm:$0xff] %v5224_v61  ;;  %v7421_v50 = vld [vmem:[#allocation27_spill] sm:$0xff]  ;;  %v7422_v31 = vand.u32 4294901760, %v5177_v29  ;;  %v5232_v49 = vand.u32 4294901760, %v383_v36 }
  0x91   : > { %1460 = vmatprep.subr.mxu0 %v7251_v57  ;;  %1837 = vmatprep.subr.mxu1 %v7251_v57 }
  0x92   : > { %821 = vmatmul.mubr.f32.gmra.mxu0 %v820_v14  ;;  %v849_v19 = vsub.f32 %v5168_v23, %v7419_v34  ;;  %1839 = vmatpush2.msra.mxu1 %v7421_v50  ;;  %v844_v0 = vand.u32 4294901760, %v843_v28  ;;  %v858_v14 = vsub.f32 %v5177_v29, %v7422_v31  ;;  %v263_v34 = vld [vmem:[%s4354_s30 + $0x1c0] sm:$0xff]  ;;  %v268_v28 = vld [vmem:[%s4354_s30 + $0x1e8] sm:$0xff]  ;;  %v7425_v29 = vand.u32 4294901760, %v5206_v62 }
  0x93   : > { %1278 = vmatmul.mubr.f32.gmra.mxu1 %v5033_v51  ;;  %830 = vmatprep.mubr.f32.mxu0 %v829_v24  ;;  %v5240_v24 = vsub.f32 %v261_v63, %v5214_v3  ;;  %v5249_v51 = vand.u32 4294901760, %v263_v34  ;;  %v5259_v23 = vand.u32 4294901760, %v386_v9  ;;  %v389_v59 = vsel %vm297_vm0, %v268_v28, 0 }
  0x94   : > { %1283 = vmatprep.mubr.f32.mxu1 %v5044_v2  ;;  %1463 = vmatpush2.msra.mxu0 %v4542_v33  ;;  %v850_v31 = vand.u32 4294901760, %v849_v19  ;;  %v864_v2 = vsub.f32 %v5194_v53, %v7423_v46  ;;  %v859_v63 = vand.u32 4294901760, %v858_v14  ;;  %v5257_v19 = vsub.f32 %v383_v36, %v5232_v49  ;;  %v265_v46 = vld [vmem:[%s4354_s30 + $0x1d0] sm:$0xff] }
  0x95   : > { %1464 = vmatprep.subr.mxu0 %v7251_v57  ;;  %1840 = vmatprep.subr.mxu1 %v7251_v57  ;;  %v5278_v53 = vand.u32 4294901760, %v265_v46 }
  0x96   : > { %836 = vmatmul.mubr.f32.gmra.mxu0 %v835_v44  ;;  %1842 = vmatpush2.msra.mxu1 %v7424_v8  ;;  %v873_v44 = vsub.f32 %v5206_v62, %v7425_v29  ;;  %7426 = vst [vmem:[#allocation27_spill] sm:$0xff] %v5257_v19  ;;  %v270_v29 = vld [vmem:[%s4354_s30 + $0x1f8] sm:$0xff]  ;;  %v865_v36 = vand.u32 4294901760, %v864_v2  ;;  %v5276_v62 = vsub.f32 %v263_v34, %v5249_v51  ;;  %v267_v2 = vld [vmem:[%s4354_s30 + $0x1e0] sm:$0xff] }
  0x97   : > { %1285 = vmatmul.mubr.f32.gmra.mxu1 %v5053_v32  ;;  %845 = vmatprep.mubr.f32.mxu0 %v844_v0  ;;  %v7427_v32 = vand.u32 4294901760, %v5212_v40  ;;  %v5297_v14 = vand.u32 4294901760, %v267_v2 }
  0x98   : > { %1290 = vmatprep.mubr.f32.mxu1 %v5064_v41  ;;  %1467 = vmatpush2.msra.mxu0 %v4553_v38  ;;  %v7428_v41 = vand.u32 4294901760, %v5224_v61 }
  0x99   : > { %v879_v0 = vsub.f32 %v5212_v40, %v7427_v32  ;;  %2196 = vmatprep.subr.mxu0 %v7251_v57  ;;  %2551 = vmatprep.subr.mxu1 %v7251_v57  ;;  %v874_v32 = vand.u32 4294901760, %v873_v44  ;;  %v5283_v40 = vsub.f32 %v386_v9, %v5259_v23  ;;  %v7220_v44 = vand.u32 4294901760, %v5276_v62 }
  0x9a   : > { %851 = vmatmul.mubr.f32.gmra.mxu0 %v850_v31  ;;  %v888_v28 = vsub.f32 %v5224_v61, %v7428_v41  ;;  %v5285_v31 = vand.u32 4294901760, %v389_v59  ;;  %v392_v41 = vsel %vm297_vm0, %v270_v29, 0  ;;  %v7429_v61 = vand.u32 4294901760, %v5240_v24 }
  0x9b   : > { %1292 = vmatmul.mubr.f32.gmra.mxu1 %v5079_v52  ;;  %860 = vmatprep.mubr.f32.mxu0 %v859_v63  ;;  %v880_v34 = vand.u32 4294901760, %v879_v0  ;;  %v5295_v9 = vsub.f32 %v265_v46, %v5278_v53 }
  0x9c   : > { %1297 = vmatprep.mubr.f32.mxu1 %v5091_v58  ;;  %v894_v52 = vsub.f32 %v5240_v24, %v7429_v61  ;;  %v889_v63 = vand.u32 4294901760, %v888_v28  ;;  %v7430_v58 = vand.u32 4294901760, %v5257_v19  ;;  %v5305_v61 = vsub.f32 %v389_v59, %v5285_v31  ;;  %v269_v28 = vld [vmem:[%s4354_s30 + $0x1f0] sm:$0xff] }
  0x9d   : > { %v5318_v29 = vand.u32 4294901760, %v269_v28 }
  0x9e   : > { %866 = vmatmul.mubr.f32.gmra.mxu0 %v865_v36  ;;  %v903_v0 = vsub.f32 %v5257_v19, %v7430_v58  ;;  %v5307_v36 = vand.u32 4294901760, %v392_v41  ;;  %v895_v46 = vand.u32 4294901760, %v894_v52  ;;  %v5316_v58 = vsub.f32 %v267_v2, %v5297_v14 }
  0x9f   : > { %1299 = vmatmul.mubr.f32.gmra.mxu1 %v5107_v47  ;;  %875 = vmatprep.mubr.f32.mxu0 %v874_v32  ;;  %v909_v32 = vsub.f32 %v5276_v62, %v7220_v44  ;;  %v7221_v47 = vand.u32 4294901760, %v5295_v9  ;;  %v7431_v19 = vand.u32 4294901760, %v5283_v40 }
  0xa0   : > { %1304 = vmatprep.mubr.f32.mxu1 %v5124_v22  ;;  %v904_v59 = vand.u32 4294901760, %v903_v0  ;;  %v5326_v22 = vsub.f32 %v392_v41, %v5307_v36  ;;  %v5334_v0 = vsub.f32 %v269_v28, %v5318_v29 }
  0xa1   : > { %v918_v52 = vsub.f32 %v5283_v40, %v7431_v19  ;;  %v910_v2 = vand.u32 4294901760, %v909_v32  ;;  %v924_v44 = vsub.f32 %v5295_v9, %v7221_v47 }
  0xa2   : > { %881 = vmatmul.mubr.f32.gmra.mxu0 %v880_v34  ;;  %v7222_v34 = vand.u32 4294901760, %v5305_v61  ;;  %v953_v28 = vand.u32 4294901760, %v5334_v0 }
  0xa3   : > { %1306 = vmatmul.mubr.f32.gmra.mxu1 %v5144_v7  ;;  %890 = vmatprep.mubr.f32.mxu0 %v889_v63  ;;  %v938_v63 = vand.u32 4294901760, %v5316_v58  ;;  %v919_v19 = vand.u32 4294901760, %v918_v52  ;;  %v925_v32 = vand.u32 4294901760, %v924_v44 }
  0xa4   : > { %1311 = vmatprep.mubr.f32.mxu1 %v5151_v26  ;;  %v933_v41 = vsub.f32 %v5305_v61, %v7222_v34  ;;  %v954_v44 = vsub.f32 %v5334_v0, %v953_v28 }
  0xa5   : > { %v939_v47 = vsub.f32 %v5316_v58, %v938_v63 }
  0xa6   : > { %896 = vmatmul.mubr.f32.gmra.mxu0 %v895_v46  ;;  %v947_v46 = vand.u32 4294901760, %v5326_v22 }
  0xa7   : > { %1313 = vmatmul.mubr.f32.gmra.mxu1 %v5170_v37  ;;  %905 = vmatprep.mubr.f32.mxu0 %v904_v59  ;;  %v934_v59 = vand.u32 4294901760, %v933_v41  ;;  %v940_v34 = vand.u32 4294901760, %v939_v47  ;;  %v7432_v47 = vld [vmem:[#allocation21_spill] sm:$0xff]  ;;  %v7433_v41 = vld [vmem:[#allocation22_spill] sm:$0xff] }
  0xa8   : > { %1318 = vmatprep.mubr.f32.mxu1 %v5179_v45  ;;  %v948_v52 = vsub.f32 %v5326_v22, %v947_v46 }
  0xaa   : > { %911 = vmatmul.mubr.f32.gmra.mxu0 %v910_v2  ;;  %v949_v2 = vand.u32 4294901760, %v948_v52  ;;  %v7437_v52 = vld [vmem:[#allocation32_spill] sm:$0xff] }
  0xab   : > { %1320 = vmatmul.mubr.f32.gmra.mxu1 %v5184_v56  ;;  %920 = vmatprep.mubr.f32.mxu0 %v919_v19  ;;  %v955_v19 = vand.u32 4294901760, %v954_v44  ;;  %v7438_v44 = vand.u32 4294901760, %v7432_v47 }
  0xac   : > { %1325 = vmatprep.mubr.f32.mxu1 %v5196_v1 }
  0xae   : > { %926 = vmatmul.mubr.f32.gmra.mxu0 %v925_v32  ;;  %v7434_v32 = vld [vmem:[#allocation25_spill] sm:$0xff] }
  0xaf   : > { %1327 = vmatmul.mubr.f32.gmra.mxu1 %v5214_v3  ;;  %935 = vmatprep.mubr.f32.mxu0 %v934_v59  ;;  %v7436_v59 = vld [vmem:[#allocation31_spill] sm:$0xff] }
  0xb0   : > { %1332 = vmatprep.mubr.f32.mxu1 %v5232_v49 }
  0xb2   : > { %941 = vmatmul.mubr.f32.gmra.mxu0 %v940_v34  ;;  %v7435_v34 = vand.u32 4294901760, %v4217_v15  ;;  %v7440_v15 = vand.u32 4294901760, %v7433_v41 }
  0xb3   : > { %1334 = vmatmul.mubr.f32.gmra.mxu1 %v5249_v51  ;;  %950 = vmatprep.mubr.f32.mxu0 %v949_v2  ;;  %v7439_v2 = vand.u32 4294901760, %v4220_v16  ;;  %v7444_v16 = vand.u32 4294901760, %v7436_v59 }
  0xb4   : > { %1339 = vmatprep.mubr.f32.mxu1 %v5259_v23 }
  0xb6   : > { %956 = vmatmul.mubr.f32.gmra.mxu0 %v955_v19  ;;  %v7441_v19 = vld [vmem:[#allocation36_spill] sm:$0xff] }
  0xb7   : > { %1341 = vmatmul.mubr.f32.gmra.mxu1 %v5278_v53  ;;  %1470 = vmatprep.mubr.f32.mxu0 %v7432_v47  ;;  %v7443_v47 = vand.u32 4294901760, %v4225_v18  ;;  %v7449_v18 = vld [vmem:[#allocation42_spill] sm:$0xff] }
  0xb8   : > { %1346 = vmatprep.mubr.f32.mxu1 %v5285_v31 }
  0xba   : > { %1473 = vmatmul.mubr.f32.vlgmr.msra.gmra.mxu0 %v7433_v41  ;;  %v7445_v41 = vld [vmem:[#allocation38_spill] sm:$0xff] }
  0xbb   : > { %1348 = vmatmul.mubr.f32.gmra.mxu1 %v5297_v14  ;;  %1479 = vmatprep.mubr.f32.mxu0 %v7434_v32 }
  0xbc   : > { %1353 = vmatprep.mubr.f32.mxu1 %v5307_v36  ;;  %2200 = vmatpush1.msra.mxu0 %v7435_v34  ;;  %v7442_v34 = vand.u32 4294901760, %v7434_v32  ;;  %v7450_v32 = vand.u32 4294901760, %v7441_v19 }
  0xbd   : > { %2201 = vmatprep.subr.mxu0 %v7251_v57 }
  0xbe   : > { %1482 = vmatmul.mubr.f32.gmra.mxu0 %v7436_v59  ;;  %v7451_v59 = vand.u32 4294901760, %v4232_v20 }
  0xbf   : > { %1355 = vmatmul.mubr.f32.gmra.mxu1 %v5318_v29  ;;  %1488 = vmatprep.mubr.f32.mxu0 %v7437_v52 }
  0xc0   : > { %1846 = vmatprep.mubr.f32.mxu1 %v7438_v44  ;;  %2205 = vmatpush1.msra.mxu0 %v7439_v2  ;;  %v7446_v44 = vand.u32 4294901760, %v7437_v52  ;;  %v7453_v52 = vand.u32 4294901760, %v4601_v13  ;;  %v7455_v2 = vand.u32 4294901760, %v7445_v41 }
  0xc1   : > { %2206 = vmatprep.subr.mxu0 %v7251_v57 }
  0xc2   : > { %1491 = vmatmul.mubr.f32.gmra.mxu0 %v4556_v54 }
  0xc3   : > { %1850 = vmatmul.mubr.f32.vlgmr.msra.gmra.mxu1 %v7440_v15  ;;  %1497 = vmatprep.mubr.f32.mxu0 %v7441_v19  ;;  %v7456_v15 = vand.u32 4294901760, %v4235_v21  ;;  %v7460_v19 = vand.u32 4294901760, %v7449_v18 }
  0xc4   : > { %2553 = vmatpush1.msra.mxu1 %v4186_v4  ;;  %1857 = vmatprep.mubr.f32.mxu1 %v7442_v34  ;;  %v7447_v4 = vld [vmem:[#allocation40_spill] sm:$0xff]  ;;  %v7461_v34 = vand.u32 4294901760, %v4258_v30 }
  0xc5   : > { %2554 = vmatprep.subr.mxu1 %v7251_v57  ;;  %2210 = vmatpush1.msra.mxu0 %v7443_v47  ;;  %v7458_v20 = vand.u32 4294901760, %v7447_v4  ;;  %v7464_v47 = vld [vmem:[#allocation55_spill] sm:$0xff] }
  0xc6   : > { %1500 = vmatmul.mubr.f32.gmra.mxu0 %v4601_v13  ;;  %2556 = vmatpush1.msra.mxu1 %v4188_v5  ;;  %v7448_v5 = vand.u32 4294901760, %v4556_v54  ;;  %v7454_v54 = vld [vmem:[#allocation47_spill] sm:$0xff]  ;;  %v7459_v13 = vld [vmem:[#allocation50_spill] sm:$0xff] }
  0xc7   : > { %1861 = vmatmul.mubr.f32.gmra.mxu1 %v7444_v16  ;;  %1506 = vmatprep.mubr.f32.mxu0 %v7445_v41  ;;  %v7465_v16 = vand.u32 4294901760, %v7454_v54  ;;  %v7466_v41 = vand.u32 4294901760, %v4274_v35 }
  0xc8   : > { %1868 = vmatprep.mubr.f32.mxu1 %v7446_v44  ;;  %2557 = vmatprep.subr.mxu1 %v7251_v57  ;;  %v7469_v44 = vld [vmem:[#allocation58_spill] sm:$0xff] }
  0xc9   : > { %2559 = vmatpush1.msra.mxu1 %v4190_v6  ;;  %2211 = vmatprep.subr.mxu0 %v7251_v57  ;;  %v7452_v6 = vld [vmem:[#allocation45_spill] sm:$0xff] }
  0xca   : > { %1509 = vmatmul.mubr.f32.gmra.mxu0 %v7447_v4  ;;  %2560 = vmatprep.subr.mxu1 %v7251_v57  ;;  %v7463_v21 = vand.u32 4294901760, %v7452_v6  ;;  %v7470_v4 = vand.u32 4294901760, %v7459_v13 }
  0xcb   : > { %1872 = vmatmul.mubr.f32.gmra.mxu1 %v7448_v5  ;;  %1515 = vmatprep.mubr.f32.mxu0 %v7449_v18  ;;  %v7471_v5 = vand.u32 4294901760, %v4297_v43  ;;  %v7474_v18 = vld [vmem:[#allocation62_spill] sm:$0xff] }
  0xcc   : > { %1879 = vmatprep.mubr.f32.mxu1 %v7450_v32  ;;  %2215 = vmatpush1.msra.mxu0 %v7451_v59  ;;  %v7475_v32 = vand.u32 4294901760, %v7464_v47  ;;  %v7476_v59 = vand.u32 4294901760, %v4308_v48 }
  0xcd   : > { %2562 = vmatpush1.msra.mxu1 %v4202_v10  ;;  %2216 = vmatprep.subr.mxu0 %v7251_v57  ;;  %v7457_v10 = vld [vmem:[#allocation48_spill] sm:$0xff] }
  0xce   : > { %1518 = vmatmul.mubr.f32.gmra.mxu0 %v7452_v6  ;;  %2563 = vmatprep.subr.mxu1 %v7251_v57  ;;  %v7468_v30 = vand.u32 4294901760, %v7457_v10  ;;  %v7479_v6 = vld [vmem:[#allocation67_spill] sm:$0xff] }
  0xcf   : > { %1883 = vmatmul.mubr.f32.gmra.mxu1 %v7453_v52  ;;  %1524 = vmatprep.mubr.f32.mxu0 %v7454_v54  ;;  %v7480_v52 = vand.u32 4294901760, %v7469_v44  ;;  %v7481_v54 = vand.u32 4294901760, %v4325_v55 }
  0xd0   : > { %1890 = vmatprep.mubr.f32.mxu1 %v7455_v2  ;;  %2220 = vmatpush1.msra.mxu0 %v7456_v15  ;;  %v7484_v2 = vld [vmem:[#allocation70_spill] sm:$0xff]  ;;  %v7485_v15 = vand.u32 4294901760, %v7474_v18 }
  0xd1   : > { %2565 = vmatpush1.msra.mxu1 %v4204_v11  ;;  %2221 = vmatprep.subr.mxu0 %v7251_v57  ;;  %v7462_v11 = vld [vmem:[#allocation52_spill] sm:$0xff] }
  0xd2   : > { %1527 = vmatmul.mubr.f32.gmra.mxu0 %v7457_v10  ;;  %2566 = vmatprep.subr.mxu1 %v7251_v57  ;;  %v7473_v35 = vand.u32 4294901760, %v7462_v11  ;;  %v7486_v10 = vand.u32 4294901760, %v4339_v60  ;;  %v7493_v60 = vld [vmem:[#allocation2_spill] sm:$0xff] }
  0xd3   : > { %1894 = vmatmul.mubr.f32.gmra.mxu1 %v7458_v20  ;;  %1533 = vmatprep.mubr.f32.mxu0 %v7459_v13  ;;  %v7489_v20 = vld [vmem:[#allocation75_spill] sm:$0xff]  ;;  %v7490_v13 = vand.u32 4294901760, %v7479_v6 }
  0xd4   : > { %1901 = vmatprep.mubr.f32.mxu1 %v7460_v19  ;;  %2225 = vmatpush1.msra.mxu0 %v7461_v34  ;;  %v7491_v19 = vld [vmem:[#allocation5_spill] sm:$0xff] }
  0xd5   : > { %2568 = vmatpush1.msra.mxu1 %v4206_v12  ;;  %2226 = vmatprep.subr.mxu0 %v7251_v57  ;;  %v7467_v12 = vld [vmem:[#allocation57_spill] sm:$0xff]  ;;  %v7492_v34 = vand.u32 4294901760, %v7491_v19 }
  0xd6   : > { %1536 = vmatmul.mubr.f32.gmra.mxu0 %v7462_v11  ;;  %2569 = vmatprep.subr.mxu1 %v7251_v57  ;;  %v7478_v43 = vand.u32 4294901760, %v7467_v12 }
  0xd7   : > { %1905 = vmatmul.mubr.f32.gmra.mxu1 %v7463_v21  ;;  %1542 = vmatprep.mubr.f32.mxu0 %v7464_v47  ;;  %v7496_v21 = vld [vmem:[#allocation77_spill] sm:$0xff]  ;;  %v7497_v47 = vand.u32 4294901760, %v7484_v2 }
  0xd8   : > { %1912 = vmatprep.mubr.f32.mxu1 %v7465_v16  ;;  %2230 = vmatpush1.msra.mxu0 %v7466_v41  ;;  %v293_v16 = vlaneseq  ;;  %v7498_v41 = vld [vmem:[#allocation6_spill] sm:$0xff] }
  0xd9   : > { %2571 = vmatpush1.msra.mxu1 %v4222_v17  ;;  %2231 = vmatprep.subr.mxu0 %v7251_v57  ;;  %v7472_v17 = vld [vmem:[#allocation60_spill] sm:$0xff] }
  0xda   : > { %1545 = vmatmul.mubr.f32.gmra.mxu0 %v7467_v12  ;;  %2572 = vmatprep.subr.mxu1 %v7251_v57  ;;  %v7483_v48 = vand.u32 4294901760, %v7472_v17  ;;  %v7499_v12 = vand.u32 4294901760, %v7498_v41  ;;  %v7525_v41 = vld [vmem:[#allocation95_spill] sm:$0xff] }
  0xdb   : > { %1916 = vmatmul.mubr.f32.gmra.mxu1 %v7468_v30  ;;  %1551 = vmatprep.mubr.f32.mxu0 %v7469_v44  ;;  %v7500_v30 = vld [vmem:[#allocation3_spill] sm:$0xff]  ;;  %v7501_v44 = vld [vmem:[#allocation80_spill] sm:$0xff] }
  0xdc   : > { %1923 = vmatprep.mubr.f32.mxu1 %v7470_v4  ;;  %2235 = vmatpush1.msra.mxu0 %v7471_v5  ;;  %v7503_v5 = vld [vmem:[#allocation82_spill] sm:$0xff] }
  0xdd   : > { %2574 = vmatpush1.msra.mxu1 %v4241_v25  ;;  %2236 = vmatprep.subr.mxu0 %v7251_v57  ;;  %v7477_v25 = vld [vmem:[#allocation65_spill] sm:$0xff] }
  0xde   : > { %1554 = vmatmul.mubr.f32.gmra.mxu0 %v7472_v17  ;;  %2575 = vmatprep.subr.mxu1 %v7251_v57  ;;  %v7488_v55 = vand.u32 4294901760, %v7477_v25  ;;  %v7504_v17 = vand.u32 4294901760, %v7489_v20 }
  0xdf   : > { %1927 = vmatmul.mubr.f32.gmra.mxu1 %v7473_v35  ;;  %1560 = vmatprep.mubr.f32.mxu0 %v7474_v18  ;;  %v5513_v35 = vshrl.u32 %v293_v16, 7  ;;  %v7506_v18 = vld [vmem:[#allocation9_spill] sm:$0xff] }
  0xe0   : > { %1934 = vmatprep.mubr.f32.mxu1 %v7475_v32  ;;  %2240 = vmatpush1.msra.mxu0 %v7476_v59  ;;  %v7507_v32 = vand.u32 4294901760, %v7506_v18  ;;  %v7508_v59 = vld [vmem:[#allocation4_spill] sm:$0xff] }
  0xe1   : > { %2577 = vmatpush1.msra.mxu1 %v4251_v27  ;;  %2241 = vmatprep.subr.mxu0 %v7251_v57  ;;  %v7482_v27 = vld [vmem:[#allocation68_spill] sm:$0xff]  ;;  %7505 = vst [vmem:[#allocation28_spill] sm:$0xff] %v5513_v35 }
  0xe2   : > { %1563 = vmatmul.mubr.f32.gmra.mxu0 %v7477_v25  ;;  %2578 = vmatprep.subr.mxu1 %v7251_v57  ;;  %v7495_v11 = vand.u32 4294901760, %v7482_v27  ;;  %v7509_v25 = vld [vmem:[#allocation85_spill] sm:$0xff] }
  0xe3   : > { %1938 = vmatmul.mubr.f32.gmra.mxu1 %v7478_v43  ;;  %1569 = vmatprep.mubr.f32.mxu0 %v7479_v6  ;;  %v7511_v6 = vld [vmem:[#allocation87_spill] sm:$0xff]  ;;  %v7524_v16 = vand.u32 4294901760, %v7509_v25 }
  0xe4   : > { %1945 = vmatprep.mubr.f32.mxu1 %v7480_v52  ;;  %2245 = vmatpush1.msra.mxu0 %v7481_v54  ;;  %v7512_v52 = vand.u32 4294901760, %v7496_v21  ;;  %v295_v54 = vsub.s32 0, %v5513_v35 }
  0xe5   : > { %2580 = vmatpush1.msra.mxu1 %v4281_v39  ;;  %2246 = vmatprep.subr.mxu0 %v7251_v57  ;;  %v7487_v39 = vld [vmem:[#allocation72_spill] sm:$0xff] }
  0xe6   : > { %1572 = vmatmul.mubr.f32.gmra.mxu0 %v7482_v27  ;;  %2581 = vmatprep.subr.mxu1 %v7251_v57  ;;  %v7502_v4 = vand.u32 4294901760, %v7487_v39  ;;  %v7513_v27 = vld [vmem:[#allocation11_spill] sm:$0xff] }
  0xe7   : > { %1949 = vmatmul.mubr.f32.gmra.mxu1 %v7483_v48  ;;  %1578 = vmatprep.mubr.f32.mxu0 %v7484_v2  ;;  %v7514_v48 = vand.u32 4294901760, %v7513_v27  ;;  %v206_v2 = vld [vmem:[%s6954_s2] sm:$0xff] }
  0xe8   : > { %1956 = vmatprep.mubr.f32.mxu1 %v7485_v15  ;;  %2250 = vmatpush1.msra.mxu0 %v7486_v10  ;;  %v7515_v15 = vld [vmem:[#allocation7_spill] sm:$0xff] }
  0xe9   : > { %2583 = vmatpush1.msra.mxu1 %v4294_v42  ;;  %2251 = vmatprep.subr.mxu0 %v7251_v57  ;;  %v7494_v42 = vld [vmem:[#allocation76_spill] sm:$0xff] }
  0xea   : > { %1581 = vmatmul.mubr.f32.gmra.mxu0 %v7487_v39  ;;  %2584 = vmatprep.subr.mxu1 %v7251_v57  ;;  %v7510_v43 = vand.u32 4294901760, %v7494_v42  ;;  %v7516_v39 = vld [vmem:[#allocation88_spill] sm:$0xff] }
  0xeb   : > { %1960 = vmatmul.mubr.f32.gmra.mxu1 %v7488_v55  ;;  %1587 = vmatprep.mubr.f32.mxu0 %v7489_v20  ;;  %v7517_v55 = vand.u32 4294901760, %v7501_v44  ;;  %v7518_v20 = vld [vmem:[#allocation90_spill] sm:$0xff] }
  0xec   : > { %1967 = vmatprep.mubr.f32.mxu1 %v7490_v13  ;;  %2255 = vmatpush1.msra.mxu0 %v7492_v34  ;;  %v5539_v13 = vrot.slane %v206_v2, %v295_v54  ;;  %v7519_v34 = vand.u32 4294901760, %v7503_v5  ;;  %v7533_v27 = vand.u32 4294901760, %v7518_v20 }
  0xed   : > { %2586 = vmatpush1.msra.mxu1 %v7493_v60  ;;  %2256 = vmatprep.subr.mxu0 %v7251_v57  ;;  %v7520_v60 = vld [vmem:[#allocation12_spill] sm:$0xff] }
  0xee   : > { %1590 = vmatmul.mubr.f32.gmra.mxu0 %v7494_v42  ;;  %2587 = vmatprep.subr.mxu1 %v7251_v57  ;;  %v7521_v42 = vand.u32 4294901760, %v7520_v60  ;;  %v7539_v60 = vld [vmem:[#allocation102_spill] sm:$0xff] }
  0xef   : > { %1971 = vmatmul.mubr.f32.gmra.mxu1 %v7495_v11  ;;  %1596 = vmatprep.mubr.f32.mxu0 %v7496_v21  ;;  %v7522_v11 = vld [vmem:[#allocation8_spill] sm:$0xff] }
  0xf0   : > { %1978 = vmatprep.mubr.f32.mxu1 %v7497_v47  ;;  %2260 = vmatpush1.msra.mxu0 %v7499_v12  ;;  %v7523_v47 = vld [vmem:[#allocation92_spill] sm:$0xff] }
  0xf1   : > { %2589 = vmatpush1.msra.mxu1 %v7500_v30  ;;  %2261 = vmatprep.subr.mxu0 %v7251_v57 }
  0xf2   : > { %1599 = vmatmul.mubr.f32.gmra.mxu0 %v7501_v44  ;;  %2590 = vmatprep.subr.mxu1 %v7251_v57  ;;  %v7526_v44 = vand.u32 4294901760, %v7511_v6 }
  0xf3   : > { %1982 = vmatmul.mubr.f32.gmra.mxu1 %v7502_v4  ;;  %1605 = vmatprep.mubr.f32.mxu0 %v7503_v5  ;;  %v7527_v4 = vld [vmem:[#allocation14_spill] sm:$0xff] }
  0xf4   : > { %1989 = vmatprep.mubr.f32.mxu1 %v7504_v17  ;;  %2265 = vmatpush1.msra.mxu0 %v7507_v32  ;;  %v7528_v5 = vand.u32 4294901760, %v7527_v4  ;;  %v7529_v17 = vld [vmem:[#allocation10_spill] sm:$0xff]  ;;  %v7530_v32 = vld [vmem:[#allocation96_spill] sm:$0xff]  ;;  %v7544_v4 = vld [vmem:[#allocation105_spill] sm:$0xff] }
  0xf5   : > { %2592 = vmatpush1.msra.mxu1 %v7508_v59  ;;  %2266 = vmatprep.subr.mxu0 %v7251_v57 }
  0xf6   : > { %1608 = vmatmul.mubr.f32.gmra.mxu0 %v7509_v25  ;;  %2593 = vmatprep.subr.mxu1 %v7251_v57  ;;  %v7531_v25 = vand.u32 4294901760, %v7516_v39 }
  0xf7   : > { %1993 = vmatmul.mubr.f32.gmra.mxu1 %v7510_v43  ;;  %1614 = vmatprep.mubr.f32.mxu0 %v7511_v6  ;;  %v7532_v43 = vld [vmem:[#allocation97_spill] sm:$0xff] }
  0xf8   : > { %2000 = vmatprep.mubr.f32.mxu1 %v7512_v52  ;;  %2270 = vmatpush1.msra.mxu0 %v7514_v48  ;;  %v7534_v48 = vld [vmem:[#allocation18_spill] sm:$0xff] }
  0xf9   : > { %2595 = vmatpush1.msra.mxu1 %v7515_v15  ;;  %2271 = vmatprep.subr.mxu0 %v7251_v57  ;;  %v7535_v2 = vand.u32 4294901760, %v7534_v48 }
  0xfa   : > { %v492_v10 = vpop.f32.mrf.mxu0  ;;  %1617 = vmatmul.mubr.f32.gmra.mxu0 %v7516_v39  ;;  %2596 = vmatprep.subr.mxu1 %v7251_v57 }
  0xfb   : > { %2004 = vmatmul.mubr.f32.gmra.mxu1 %v7517_v55  ;;  %1623 = vmatprep.mubr.f32.mxu0 %v7518_v20  ;;  %v493_v12 = vadd.f32 %v492_v10, %v5539_v13  ;;  %v7536_v10 = vld [vmem:[#allocation13_spill] sm:$0xff]  ;;  %v7537_v55 = vld [vmem:[#allocation100_spill] sm:$0xff] }
  0xfc   : > { %v494_v19 = vpop.f32.mrf.mxu0  ;;  %2011 = vmatprep.mubr.f32.mxu1 %v7519_v34  ;;  %2275 = vmatpush1.msra.mxu0 %v7521_v42  ;;  %v7538_v34 = vand.u32 4294901760, %v7523_v47 }
  0xfd   : > { %2598 = vmatpush1.msra.mxu1 %v7522_v11  ;;  %2296 = vmatprep.subr.mxu0 %v7251_v57 }
  0xfe   : > { %v507_v21 = vpop.f32.mrf.mxu0  ;;  %1626 = vmatmul.mubr.f32.gmra.mxu0 %v7523_v47  ;;  %2619 = vmatprep.subr.mxu1 %v7251_v57 }
  0xff   : > { %2015 = vmatmul.mubr.f32.gmra.mxu1 %v7524_v16  ;;  %1632 = vmatprep.mubr.f32.mxu0 %v7525_v41  ;;  %v508_v6 = vadd.f32 %v507_v21, %v5539_v13  ;;  %v7540_v21 = vand.u32 4294901760, %v7525_v41  ;;  %v7541_v16 = vld [vmem:[#allocation24_spill] sm:$0xff] }
 0x100   : > { %v509_v30 = vpop.f32.mrf.mxu0  ;;  %2022 = vmatprep.mubr.f32.mxu1 %v7526_v44  ;;  %2300 = vmatpush2.msra.mxu0 %v7528_v5  ;;  %v7543_v44 = vld [vmem:[#allocation17_spill] sm:$0xff] }
 0x101   : > { %2621 = vmatpush2.msra.mxu1 %v7529_v17  ;;  %2301 = vmatprep.subr.mxu0 %v7251_v57  ;;  %v7545_v17 = vand.u32 4294901760, %v7530_v32 }
 0x102   : > { %v522_v18 = vpop.f32.mrf.mxu0  ;;  %1635 = vmatmul.mubr.f32.gmra.mxu0 %v7530_v32  ;;  %2622 = vmatprep.subr.mxu1 %v7251_v57 }
 0x103   : > { %v1139_v59 = vpop.f32.mrf.mxu1  ;;  %2026 = vmatmul.mubr.f32.gmra.mxu1 %v7531_v25  ;;  %1641 = vmatprep.mubr.f32.mxu0 %v7532_v43  ;;  %v523_v20 = vadd.f32 %v522_v18, %v5539_v13  ;;  %v7546_v18 = vld [vmem:[#allocation107_spill] sm:$0xff] }
 0x104   : > { %v5565_v52 = vadd.f32 %v1139_v59, %v493_v12  ;;  %v524_v54 = vpop.f32.mrf.mxu0  ;;  %2033 = vmatprep.mubr.f32.mxu1 %v7533_v27  ;;  %2305 = vmatpush2.msra.mxu0 %v7535_v2  ;;  %v7542_v12 = vand.u32 4294901760, %v7541_v16  ;;  %v7550_v2 = vld [vmem:[#allocation20_spill] sm:$0xff] }
 0x105   : > { %v1141_v15 = vpop.f32.mrf.mxu1  ;;  %2624 = vmatpush2.msra.mxu1 %v7536_v10  ;;  %2306 = vmatprep.subr.mxu0 %v7251_v57  ;;  %v7548_v54 = vld [vmem:[#allocation29_spill] sm:$0xff] }
 0x106   : > { %v537_v39 = vpop.f32.mrf.mxu0  ;;  %1644 = vmatmul.mubr.f32.gmra.mxu0 %v7537_v55  ;;  %2625 = vmatprep.subr.mxu1 %v7251_v57  ;;  %v7549_v27 = vand.u32 4294901760, %v7548_v54  ;;  %v7551_v15 = vld [vmem:[#allocation108_spill] sm:$0xff]  ;;  %v7563_v54 = vld [vmem:[#allocation117_spill] sm:$0xff] }
 0x107   : > { %v1146_v19 = vpop.f32.mrf.mxu1  ;;  %2037 = vmatmul.mubr.f32.gmra.mxu1 %v7538_v34  ;;  %1650 = vmatprep.mubr.f32.mxu0 %v7539_v60  ;;  %v538_v41 = vadd.f32 %v537_v39, %v5539_v13  ;;  %v7552_v39 = vand.u32 4294901760, %v7537_v55 }
 0x108   : > { %v5579_v42 = vadd.f32 %v1146_v19, %v508_v6  ;;  %v539_v11 = vpop.f32.mrf.mxu0  ;;  %2044 = vmatprep.mubr.f32.mxu1 %v7540_v21  ;;  %2310 = vmatpush2.msra.mxu0 %v7542_v12  ;;  %v7547_v6 = vand.u32 4294901760, %v7532_v43  ;;  %v7553_v19 = vld [vmem:[#allocation110_spill] sm:$0xff]  ;;  %v7555_v21 = vand.u32 4294901760, %v4542_v33  ;;  %v7556_v12 = vld [vmem:[#allocation112_spill] sm:$0xff] }
 0x109   : > { %v1148_v30 = vpop.f32.mrf.mxu1  ;;  %2627 = vmatpush2.msra.mxu1 %v7543_v44  ;;  %2311 = vmatprep.subr.mxu0 %v7251_v57  ;;  %v7554_v11 = vand.u32 4294901760, %v7539_v60  ;;  %v7557_v44 = vand.u32 4294901760, %v7544_v4 }
 0x10a   : > { %v552_v47 = vpop.f32.mrf.mxu0  ;;  %1653 = vmatmul.mubr.f32.gmra.mxu0 %v7544_v4  ;;  %2628 = vmatprep.subr.mxu1 %v7251_v57 }
 0x10b   : > { %v1153_v5 = vpop.f32.mrf.mxu1  ;;  %2048 = vmatmul.mubr.f32.gmra.mxu1 %v7545_v17  ;;  %1659 = vmatprep.mubr.f32.mxu0 %v7546_v18  ;;  %v553_v43 = vadd.f32 %v552_v47, %v5539_v13  ;;  %v7558_v47 = vld [vmem:[#allocation114_spill] sm:$0xff]  ;;  %v7559_v17 = vand.u32 4294901760, %v7546_v18 }
 0x10c   : > { %v5593_v59 = vadd.f32 %v1153_v5, %v523_v20  ;;  %v554_v25 = vpop.f32.mrf.mxu0  ;;  %2055 = vmatprep.mubr.f32.mxu1 %v7547_v6  ;;  %2315 = vmatpush2.msra.mxu0 %v7549_v27  ;;  %v7562_v6 = vand.u32 4294901760, %v7551_v15 }
 0x10d   : > { %v1155_v48 = vpop.f32.mrf.mxu1  ;;  %2630 = vmatpush2.msra.mxu1 %v7550_v2  ;;  %2316 = vmatprep.subr.mxu0 %v7251_v57  ;;  %v7561_v25 = vld [vmem:[#allocation116_spill] sm:$0xff] }
 0x10e   : > { %v567_v32 = vpop.f32.mrf.mxu0  ;;  %1662 = vmatmul.mubr.f32.gmra.mxu0 %v7551_v15  ;;  %2631 = vmatprep.subr.mxu1 %v7251_v57  ;;  %v7567_v15 = vld [vmem:[#allocation119_spill] sm:$0xff] }
 0x10f   : > { %v1160_v10 = vpop.f32.mrf.mxu1  ;;  %2059 = vmatmul.mubr.f32.gmra.mxu1 %v7552_v39  ;;  %1668 = vmatprep.mubr.f32.mxu0 %v7553_v19  ;;  %v568_v60 = vadd.f32 %v567_v32, %v5539_v13  ;;  %v7566_v39 = vand.u32 4294901760, %v7556_v12 }
 0x110   : > { %v5607_v34 = vadd.f32 %v1160_v10, %v538_v41  ;;  %v569_v20 = vpop.f32.mrf.mxu0  ;;  %2066 = vmatprep.mubr.f32.mxu1 %v7554_v11  ;;  %2320 = vmatpush2.msra.mxu0 %v7555_v21  ;;  %v7568_v21 = vand.u32 4294901760, %v7558_v47 }
 0x111   : > { %v1162_v16 = vpop.f32.mrf.mxu1  ;;  %2321 = vmatprep.subr.mxu0 %v7251_v57  ;;  %2633 = vmatpush2.msra.mxu1 %v7421_v50  ;;  %v7560_v50 = vand.u32 4294901760, %v4553_v38  ;;  %v7564_v38 = vand.u32 4294901760, %v7553_v19 }
 0x112   : > { %v582_v55 = vpop.f32.mrf.mxu0  ;;  %1671 = vmatmul.mubr.f32.gmra.mxu0 %v7556_v12  ;;  %2634 = vmatprep.subr.mxu1 %v7251_v57  ;;  %v7571_v12 = vld [vmem:[#allocation121_spill] sm:$0xff] }
 0x113   : > { %v1167_v30 = vpop.f32.mrf.mxu1  ;;  %2070 = vmatmul.mubr.f32.gmra.mxu1 %v7557_v44  ;;  %1677 = vmatprep.mubr.f32.mxu0 %v7558_v47  ;;  %v583_v27 = vadd.f32 %v582_v55, %v5539_v13  ;;  %v7569_v55 = vld [vmem:[#allocation120_spill] sm:$0xff]  ;;  %v7570_v44 = vand.u32 4294901760, %v7561_v25 }
 0x114   : > { %v5621_v33 = vadd.f32 %v1167_v30, %v553_v43  ;;  %v584_v5 = vpop.f32.mrf.mxu0  ;;  %2077 = vmatprep.mubr.f32.mxu1 %v7559_v17  ;;  %2325 = vmatpush2.msra.mxu0 %v7560_v50  ;;  %v7572_v50 = vand.u32 4294901760, %v7563_v54 }
 0x115   : > { %v1169_v41 = vpop.f32.mrf.mxu1  ;;  %2636 = vmatpush2.msra.mxu1 %v7424_v8  ;;  %v7565_v8 = vld [vmem:[#allocation118_spill] sm:$0xff] }
 0x116   : > { %v597_v57 = vpop.f32.mrf.mxu0  ;;  %1680 = vmatmul.mubr.f32.gmra.mxu0 %v7561_v25  ;;  %v7575_v25 = vld [vmem:[#allocation123_spill] sm:$0xff] }
 0x117   : > { %v1174_v4 = vpop.f32.mrf.mxu1  ;;  %2081 = vmatmul.mubr.f32.gmra.mxu1 %v7562_v6  ;;  %1686 = vmatprep.mubr.f32.mxu0 %v7563_v54  ;;  %v598_v43 = vadd.f32 %v597_v57, %v5539_v13  ;;  %v7573_v57 = vld [vmem:[#allocation122_spill] sm:$0xff]  ;;  %v7574_v6 = vand.u32 4294901760, %v7565_v8 }
 0x118   : > { %v5633_v48 = vadd.f32 %v1174_v4, %v568_v60  ;;  %v599_v18 = vpop.f32.mrf.mxu0  ;;  %2088 = vmatprep.mubr.f32.mxu1 %v7564_v38 }
 0x119   : > { %v1176_v2 = vpop.f32.mrf.mxu1 }
 0x11a   : > { %v612_v32 = vpop.f32.mrf.mxu0  ;;  %1689 = vmatmul.mubr.f32.gmra.mxu0 %v7565_v8  ;;  %v7576_v2 = vand.u32 4294901760, %v7567_v15  ;;  %v7578_v8 = vld [vmem:[#allocation27_spill] sm:$0xff] }
 0x11b   : > { %v1181_v10 = vpop.f32.mrf.mxu1  ;;  %2092 = vmatmul.mubr.f32.gmra.mxu1 %v7566_v39  ;;  %1695 = vmatprep.mubr.f32.mxu0 %v7567_v15  ;;  %v613_v60 = vadd.f32 %v612_v32, %v5539_v13  ;;  %v7577_v39 = vand.u32 4294901760, %v7569_v55 }
 0x11c   : > { %v5642_v20 = vadd.f32 %v1181_v10, %v583_v27  ;;  %v614_v11 = vpop.f32.mrf.mxu0  ;;  %2099 = vmatprep.mubr.f32.mxu1 %v7568_v21 }
 0x11d   : > { %v1183_v19 = vpop.f32.mrf.mxu1 }
 0x11e   : > { %v627_v16 = vpop.f32.mrf.mxu0  ;;  %1698 = vmatmul.mubr.f32.gmra.mxu0 %v7569_v55  ;;  %v7579_v19 = vand.u32 4294901760, %v7571_v12 }
 0x11f   : > { %v1188_v30 = vpop.f32.mrf.mxu1  ;;  %2103 = vmatmul.mubr.f32.gmra.mxu1 %v7570_v44  ;;  %1704 = vmatprep.mubr.f32.mxu0 %v7571_v12  ;;  %v628_v27 = vadd.f32 %v627_v16, %v5539_v13  ;;  %v7580_v44 = vand.u32 4294901760, %v7573_v57 }
 0x120   : > { %v5651_v5 = vadd.f32 %v1188_v30, %v598_v43  ;;  %v629_v17 = vpop.f32.mrf.mxu0  ;;  %2110 = vmatprep.mubr.f32.mxu1 %v7572_v50  ;;  %v7581_v50 = vand.u32 4294901760, %v7575_v25 }
 0x121   : > { %v1190_v47 = vpop.f32.mrf.mxu1 }
 0x122   : > { %v642_v41 = vpop.f32.mrf.mxu0  ;;  %1707 = vmatmul.mubr.f32.gmra.mxu0 %v7573_v57 }
 0x123   : > { %v1195_v4 = vpop.f32.mrf.mxu1  ;;  %2114 = vmatmul.mubr.f32.gmra.mxu1 %v7574_v6  ;;  %1713 = vmatprep.mubr.f32.mxu0 %v7575_v25  ;;  %v643_v43 = vadd.f32 %v642_v41, %v5539_v13 }
 0x124   : > { %v5660_v18 = vadd.f32 %v1195_v4, %v613_v60  ;;  %v644_v38 = vpop.f32.mrf.mxu0  ;;  %2121 = vmatprep.mubr.f32.mxu1 %v7576_v2  ;;  %v7582_v4 = vand.u32 4294901760, %v5240_v24 }
 0x125   : > { %v1197_v54 = vpop.f32.mrf.mxu1  ;;  %v7583_v38 = vand.u32 4294901760, %v7578_v8 }
 0x126   : > { %v657_v32 = vpop.f32.mrf.mxu0  ;;  %1716 = vmatmul.mubr.f32.gmra.mxu0 %v5240_v24 }
 0x127   : > { %v1202_v10 = vpop.f32.mrf.mxu1  ;;  %2125 = vmatmul.mubr.f32.gmra.mxu1 %v7577_v39  ;;  %1722 = vmatprep.mubr.f32.mxu0 %v7578_v8  ;;  %v658_v55 = vadd.f32 %v657_v32, %v5539_v13  ;;  %v7584_v32 = vand.u32 4294901760, %v5276_v62 }
 0x128   : > { %v5669_v11 = vadd.f32 %v1202_v10, %v628_v27  ;;  %v659_v21 = vpop.f32.mrf.mxu0  ;;  %2132 = vmatprep.mubr.f32.mxu1 %v7579_v19 }
 0x129   : > { %v1204_v15 = vpop.f32.mrf.mxu1 }
 0x12a   : > { %v672_v16 = vpop.f32.mrf.mxu0  ;;  %1725 = vmatmul.mubr.f32.gmra.mxu0 %v5276_v62  ;;  %v7586_v15 = vand.u32 4294901760, %v5295_v9  ;;  %v7587_v62 = vld [vmem:[#allocation15_spill] sm:$0xff] }
 0x12b   : > { %v1209_v30 = vpop.f32.mrf.mxu1  ;;  %2136 = vmatmul.mubr.f32.gmra.mxu1 %v7580_v44  ;;  %1731 = vmatprep.mubr.f32.mxu0 %v5283_v40  ;;  %v673_v57 = vadd.f32 %v672_v16, %v5539_v13 }
 0x12c   : > { %v5678_v60 = vadd.f32 %v1209_v30, %v643_v43  ;;  %v674_v17 = vpop.f32.mrf.mxu0  ;;  %2143 = vmatprep.mubr.f32.mxu1 %v7581_v50  ;;  %v7585_v43 = vand.u32 4294901760, %v5283_v40  ;;  %v7589_v50 = vld [vmem:[#allocation16_spill] sm:$0xff] }
 0x12d   : > { %v1211_v12 = vpop.f32.mrf.mxu1 }
 0x12e   : > { %v687_v47 = vpop.f32.mrf.mxu0  ;;  %1734 = vmatmul.mubr.f32.gmra.mxu0 %v5295_v9  ;;  %v7590_v9 = vld [vmem:[#allocation19_spill] sm:$0xff] }
 0x12f   : > { %v1216_v41 = vpop.f32.mrf.mxu1  ;;  %2147 = vmatmul.mubr.f32.gmra.mxu1 %v7582_v4  ;;  %1740 = vmatprep.mubr.f32.mxu0 %v5305_v61  ;;  %v688_v24 = vadd.f32 %v687_v47, %v5539_v13 }
 0x130   : > { %v5687_v6 = vadd.f32 %v1216_v41, %v658_v55  ;;  %v689_v27 = vpop.f32.mrf.mxu0  ;;  %2154 = vmatprep.mubr.f32.mxu1 %v7583_v38  ;;  %v7588_v55 = vand.u32 4294901760, %v5305_v61 }
 0x131   : > { %v1218_v25 = vpop.f32.mrf.mxu1  ;;  %v7591_v27 = vld [vmem:[#allocation23_spill] sm:$0xff] }
 0x132   : > { %v702_v2 = vpop.f32.mrf.mxu0  ;;  %1743 = vmatmul.mubr.f32.gmra.mxu0 %v5316_v58  ;;  %v7592_v58 = vld [vmem:[#allocation26_spill] sm:$0xff] }
 0x133   : > { %v1223_v54 = vpop.f32.mrf.mxu1  ;;  %2158 = vmatmul.mubr.f32.gmra.mxu1 %v7584_v32  ;;  %1749 = vmatprep.mubr.f32.mxu0 %v5326_v22  ;;  %v703_v16 = vadd.f32 %v702_v2, %v5539_v13 }
 0x134   : > { %v5696_v10 = vadd.f32 %v1223_v54, %v673_v57  ;;  %v704_v39 = vpop.f32.mrf.mxu0  ;;  %2165 = vmatprep.mubr.f32.mxu1 %v7585_v43 }
 0x135   : > { %v1225_v8 = vpop.f32.mrf.mxu1 }
 0x136   : > { %v717_v21 = vpop.f32.mrf.mxu0  ;;  %1752 = vmatmul.mubr.f32.gmra.mxu0 %v5334_v0 }
 0x137   : > { %v1230_v19 = vpop.f32.mrf.mxu1  ;;  %2169 = vmatmul.mubr.f32.gmra.mxu1 %v7586_v15  ;;  %2327 = vmatprep.mubr.f32.mxu0 %v7587_v62  ;;  %v718_v47 = vadd.f32 %v717_v21, %v5539_v13  ;;  %v7595_v21 = vld [vmem:[#allocation34_spill] sm:$0xff]  ;;  %v7596_v15 = vld [vmem:[#allocation35_spill] sm:$0xff] }
 0x138   : > { %v5705_v30 = vadd.f32 %v1230_v19, %v688_v24  ;;  %v719_v44 = vpop.f32.mrf.mxu0  ;;  %2176 = vmatprep.mubr.f32.mxu1 %v7588_v55  ;;  %v7594_v24 = vld [vmem:[#allocation33_spill] sm:$0xff] }
 0x139   : > { %v1232_v40 = vpop.f32.mrf.mxu1 }
 0x13a   : > { %v732_v17 = vpop.f32.mrf.mxu0  ;;  %2329 = vmatmul.mubr.f32.vlgmr.msra.gmra.mxu0 %v7589_v50 }
 0x13b   : > { %v1237_v12 = vpop.f32.mrf.mxu1  ;;  %2180 = vmatmul.mubr.f32.gmra.mxu1 %v938_v63  ;;  %2334 = vmatprep.mubr.f32.mxu0 %v7590_v9  ;;  %v733_v63 = vadd.f32 %v732_v17, %v5539_v13  ;;  %v7597_v17 = vld [vmem:[#allocation37_spill] sm:$0xff] }
 0x13c   : > { %v5714_v41 = vadd.f32 %v1237_v12, %v703_v16  ;;  %v734_v4 = vpop.f32.mrf.mxu0  ;;  %2187 = vmatprep.mubr.f32.mxu1 %v947_v46  ;;  %v7593_v46 = vld [vmem:[#allocation30_spill] sm:$0xff]  ;;  %v7598_v12 = vld [vmem:[#allocation39_spill] sm:$0xff] }
 0x13d   : > { %v1239_v61 = vpop.f32.mrf.mxu1 }
 0x13e   : > { %v747_v57 = vpop.f32.mrf.mxu0  ;;  %2336 = vmatmul.mubr.f32.gmra.mxu0 %v7591_v27 }
 0x13f   : > { %v1244_v38 = vpop.f32.mrf.mxu1  ;;  %2191 = vmatmul.mubr.f32.gmra.mxu1 %v953_v28  ;;  %2341 = vmatprep.mubr.f32.mxu0 %v7592_v58  ;;  %v748_v0 = vadd.f32 %v747_v57, %v5539_v13 }
 0x140   : > { %v5723_v25 = vadd.f32 %v1244_v38, %v718_v47  ;;  %v749_v2 = vpop.f32.mrf.mxu0  ;;  %2638 = vmatprep.mubr.f32.mxu1 %v7587_v62 }
 0x141   : > { %v1246_v54 = vpop.f32.mrf.mxu1 }
 0x142   : > { %v762_v22 = vpop.f32.mrf.mxu0  ;;  %2343 = vmatmul.mubr.f32.gmra.mxu0 %v7593_v46 }
 0x143   : > { %v1251_v32 = vpop.f32.mrf.mxu1  ;;  %2640 = vmatmul.mubr.f32.vlgmr.msra.gmra.mxu1 %v7589_v50  ;;  %2348 = vmatprep.mubr.f32.mxu0 %v7594_v24  ;;  %v763_v62 = vadd.f32 %v762_v22, %v5539_v13 }
 0x144   : > { %v5730_v28 = vadd.f32 %v1251_v32, %v733_v63  ;;  %v764_v39 = vpop.f32.mrf.mxu0  ;;  %2645 = vmatprep.mubr.f32.mxu1 %v7590_v9  ;;  %v7601_v32 = vld [vmem:[#allocation44_spill] sm:$0xff] }
 0x145   : > { %v1253_v43 = vpop.f32.mrf.mxu1 }
 0x146   : > { %v777_v8 = vpop.f32.mrf.mxu0  ;;  %2350 = vmatmul.mubr.f32.gmra.mxu0 %v7595_v21 }
 0x147   : > { %v1258_v19 = vpop.f32.mrf.mxu1  ;;  %2647 = vmatmul.mubr.f32.gmra.mxu1 %v7591_v27  ;;  %2355 = vmatprep.mubr.f32.mxu0 %v7596_v15  ;;  %v778_v9 = vadd.f32 %v777_v8, %v5539_v13  ;;  %v7599_v27 = vld [vmem:[#allocation41_spill] sm:$0xff] }
 0x148   : > { %v5737_v16 = vadd.f32 %v1258_v19, %v748_v0  ;;  %v779_v44 = vpop.f32.mrf.mxu0  ;;  %2652 = vmatprep.mubr.f32.mxu1 %v7592_v58  ;;  %v7600_v58 = vld [vmem:[#allocation43_spill] sm:$0xff]  ;;  %v7602_v0 = vld [vmem:[#allocation46_spill] sm:$0xff] }
 0x149   : > { %v1260_v55 = vpop.f32.mrf.mxu1  ;;  %v7604_v44 = vld [vmem:[#allocation51_spill] sm:$0xff] }
 0x14a   : > { %v792_v40 = vpop.f32.mrf.mxu0  ;;  %2357 = vmatmul.mubr.f32.gmra.mxu0 %v7597_v17 }
 0x14b   : > { %v1265_v50 = vpop.f32.mrf.mxu1  ;;  %2654 = vmatmul.mubr.f32.gmra.mxu1 %v7593_v46  ;;  %2362 = vmatprep.mubr.f32.mxu0 %v7598_v12  ;;  %v793_v63 = vadd.f32 %v792_v40, %v5539_v13 }
 0x14c   : > { %v5744_v47 = vadd.f32 %v1265_v50, %v763_v62  ;;  %v794_v4 = vpop.f32.mrf.mxu0  ;;  %2659 = vmatprep.mubr.f32.mxu1 %v7594_v24  ;;  %v7603_v62 = vld [vmem:[#allocation49_spill] sm:$0xff] }
 0x14d   : > { %v1267_v61 = vpop.f32.mrf.mxu1  ;;  %v7605_v4 = vld [vmem:[#allocation53_spill] sm:$0xff] }
 0x14e   : > { %v807_v57 = vpop.f32.mrf.mxu0  ;;  %2364 = vmatmul.mubr.f32.gmra.mxu0 %v7599_v27  ;;  %v7606_v61 = vld [vmem:[#allocation54_spill] sm:$0xff] }
 0x14f   : > { %v1272_v38 = vpop.f32.mrf.mxu1  ;;  %2661 = vmatmul.mubr.f32.gmra.mxu1 %v7595_v21  ;;  %2369 = vmatprep.mubr.f32.mxu0 %v7600_v58  ;;  %v808_v39 = vadd.f32 %v807_v57, %v5539_v13 }
 0x150   : > { %v5751_v2 = vadd.f32 %v1272_v38, %v778_v9  ;;  %v809_v54 = vpop.f32.mrf.mxu0  ;;  %2666 = vmatprep.mubr.f32.mxu1 %v7596_v15 }
 0x151   : > { %v1274_v22 = vpop.f32.mrf.mxu1 }
 0x152   : > { %v822_v46 = vpop.f32.mrf.mxu0  ;;  %2371 = vmatmul.mubr.f32.gmra.mxu0 %v7601_v32  ;;  %v7607_v22 = vld [vmem:[#allocation56_spill] sm:$0xff] }
 0x153   : > { %v1279_v24 = vpop.f32.mrf.mxu1  ;;  %2668 = vmatmul.mubr.f32.gmra.mxu1 %v7597_v17  ;;  %2376 = vmatprep.mubr.f32.mxu0 %v7602_v0  ;;  %v823_v55 = vadd.f32 %v822_v46, %v5539_v13  ;;  %v7608_v46 = vld [vmem:[#allocation59_spill] sm:$0xff] }
 0x154   : > { %v5758_v43 = vadd.f32 %v1279_v24, %v793_v63  ;;  %v824_v8 = vpop.f32.mrf.mxu0  ;;  %2673 = vmatprep.mubr.f32.mxu1 %v7598_v12 }
 0x155   : > { %v1281_v21 = vpop.f32.mrf.mxu1 }
 0x156   : > { %v837_v19 = vpop.f32.mrf.mxu0  ;;  %2378 = vmatmul.mubr.f32.gmra.mxu0 %v7603_v62 }
 0x157   : > { %v1286_v15 = vpop.f32.mrf.mxu1  ;;  %2675 = vmatmul.mubr.f32.gmra.mxu1 %v7599_v27  ;;  %2383 = vmatprep.mubr.f32.mxu0 %v7604_v44  ;;  %v838_v57 = vadd.f32 %v837_v19, %v5539_v13  ;;  %v7609_v19 = vld [vmem:[#allocation61_spill] sm:$0xff] }
 0x158   : > { %v5765_v40 = vadd.f32 %v1286_v15, %v808_v39  ;;  %v839_v17 = vpop.f32.mrf.mxu0  ;;  %2680 = vmatprep.mubr.f32.mxu1 %v7600_v58  ;;  %v7610_v15 = vld [vmem:[#allocation63_spill] sm:$0xff] }
 0x159   : > { %v1288_v50 = vpop.f32.mrf.mxu1 }
 0x15a   : > { %v852_v9 = vpop.f32.mrf.mxu0  ;;  %2385 = vmatmul.mubr.f32.gmra.mxu0 %v7605_v4 }
 0x15b   : > { %v1293_v12 = vpop.f32.mrf.mxu1  ;;  %2682 = vmatmul.mubr.f32.gmra.mxu1 %v7601_v32  ;;  %2390 = vmatprep.mubr.f32.mxu0 %v7606_v61  ;;  %v853_v32 = vadd.f32 %v852_v9, %v5539_v13 }
 0x15c   : > { %v5772_v27 = vadd.f32 %v1293_v12, %v823_v55  ;;  %v854_v38 = vpop.f32.mrf.mxu0  ;;  %2687 = vmatprep.mubr.f32.mxu1 %v7602_v0  ;;  %v7611_v12 = vld [vmem:[#allocation64_spill] sm:$0xff] }
 0x15d   : > { %v1295_v63 = vpop.f32.mrf.mxu1 }
 0x15e   : > { %v867_v54 = vpop.f32.mrf.mxu0  ;;  %2392 = vmatmul.mubr.f32.gmra.mxu0 %v7607_v22 }
 0x15f   : > { %v1300_v58 = vpop.f32.mrf.mxu1  ;;  %2689 = vmatmul.mubr.f32.gmra.mxu1 %v7603_v62  ;;  %2397 = vmatprep.mubr.f32.mxu0 %v7608_v46  ;;  %v868_v62 = vadd.f32 %v867_v54, %v5539_v13 }
 0x160   : > { %v5779_v24 = vadd.f32 %v1300_v58, %v838_v57  ;;  %v869_v39 = vpop.f32.mrf.mxu0  ;;  %2694 = vmatprep.mubr.f32.mxu1 %v7604_v44  ;;  %v7612_v57 = vld [vmem:[#allocation66_spill] sm:$0xff] }
 0x161   : > { %v1302_v8 = vpop.f32.mrf.mxu1  ;;  %v7614_v39 = vld [vmem:[#allocation71_spill] sm:$0xff] }
 0x162   : > { %v882_v21 = vpop.f32.mrf.mxu0  ;;  %2399 = vmatmul.mubr.f32.gmra.mxu0 %v7609_v19 }
 0x163   : > { %v1307_v0 = vpop.f32.mrf.mxu1  ;;  %2696 = vmatmul.mubr.f32.gmra.mxu1 %v7605_v4  ;;  %2404 = vmatprep.mubr.f32.mxu0 %v7610_v15  ;;  %v883_v4 = vadd.f32 %v882_v21, %v5539_v13 }
 0x164   : > { %v5786_v55 = vadd.f32 %v1307_v0, %v853_v32  ;;  %v884_v17 = vpop.f32.mrf.mxu0  ;;  %2701 = vmatprep.mubr.f32.mxu1 %v7606_v61  ;;  %v7613_v32 = vld [vmem:[#allocation69_spill] sm:$0xff] }
 0x165   : > { %v1309_v50 = vpop.f32.mrf.mxu1  ;;  %v7615_v17 = vld [vmem:[#allocation73_spill] sm:$0xff] }
 0x166   : > { %v897_v9 = vpop.f32.mrf.mxu0  ;;  %2406 = vmatmul.mubr.f32.gmra.mxu0 %v7611_v12  ;;  %v7616_v50 = vld [vmem:[#allocation74_spill] sm:$0xff] }
 0x167   : > { %v1314_v44 = vpop.f32.mrf.mxu1  ;;  %2703 = vmatmul.mubr.f32.gmra.mxu1 %v7607_v22  ;;  %2411 = vmatprep.mubr.f32.mxu0 %v7612_v57  ;;  %v898_v22 = vadd.f32 %v897_v9, %v5539_v13 }
 0x168   : > { %v5793_v38 = vadd.f32 %v1314_v44, %v868_v62  ;;  %v899_v63 = vpop.f32.mrf.mxu0  ;;  %2708 = vmatprep.mubr.f32.mxu1 %v7608_v46 }
 0x169   : > { %v1316_v54 = vpop.f32.mrf.mxu1 }
 0x16a   : > { %v912_v58 = vpop.f32.mrf.mxu0  ;;  %2413 = vmatmul.mubr.f32.gmra.mxu0 %v7613_v32  ;;  %v7617_v54 = vld [vmem:[#allocation78_spill] sm:$0xff] }
 0x16b   : > { %v1321_v61 = vpop.f32.mrf.mxu1  ;;  %2710 = vmatmul.mubr.f32.gmra.mxu1 %v7609_v19  ;;  %2418 = vmatprep.mubr.f32.mxu0 %v7614_v39  ;;  %v913_v19 = vadd.f32 %v912_v58, %v5539_v13 }
 0x16c   : > { %v5800_v8 = vadd.f32 %v1321_v61, %v883_v4  ;;  %v914_v0 = vpop.f32.mrf.mxu0  ;;  %2715 = vmatprep.mubr.f32.mxu1 %v7610_v15  ;;  %v7618_v61 = vld [vmem:[#allocation79_spill] sm:$0xff] }
 0x16d   : > { %v1323_v21 = vpop.f32.mrf.mxu1 }
 0x16e   : > { %v927_v62 = vpop.f32.mrf.mxu0  ;;  %2420 = vmatmul.mubr.f32.gmra.mxu0 %v7615_v17 }
 0x16f   : > { %v1328_v46 = vpop.f32.mrf.mxu1  ;;  %2717 = vmatmul.mubr.f32.gmra.mxu1 %v7611_v12  ;;  %2425 = vmatprep.mubr.f32.mxu0 %v7616_v50  ;;  %v928_v12 = vadd.f32 %v927_v62, %v5539_v13 }
 0x170   : > { %v5807_v44 = vadd.f32 %v1328_v46, %v898_v22  ;;  %v929_v63 = vpop.f32.mrf.mxu0  ;;  %2722 = vmatprep.mubr.f32.mxu1 %v7612_v57  ;;  %v7620_v46 = vld [vmem:[#allocation81_spill] sm:$0xff] }
 0x171   : > { %v1330_v9 = vpop.f32.mrf.mxu1  ;;  %v7621_v63 = vld [vmem:[#allocation83_spill] sm:$0xff] }
 0x172   : > { %v942_v4 = vpop.f32.mrf.mxu0  ;;  %2427 = vmatmul.mubr.f32.gmra.mxu0 %v7617_v54 }
 0x173   : > { %v1335_v15 = vpop.f32.mrf.mxu1  ;;  %2724 = vmatmul.mubr.f32.gmra.mxu1 %v7613_v32  ;;  %2432 = vmatprep.mubr.f32.mxu0 %v7618_v61  ;;  %v943_v32 = vadd.f32 %v942_v4, %v5539_v13 }
 0x174   : > { %v5814_v0 = vadd.f32 %v1335_v15, %v913_v19  ;;  %v944_v21 = vpop.f32.mrf.mxu0  ;;  %2729 = vmatprep.mubr.f32.mxu1 %v7614_v39  ;;  %v7622_v15 = vld [vmem:[#allocation84_spill] sm:$0xff] }
 0x175   : > { %v1337_v58 = vpop.f32.mrf.mxu1 }
 0x176   : > { %7619 = vst [vmem:[#allocation21_spill] sm:$0xff] %v5814_v0  ;;  %v957_v22 = vpop.f32.mrf.mxu0  ;;  %2434 = vmatmul.mubr.f32.gmra.mxu0 %v7620_v46  ;;  %v7623_v58 = vld [vmem:[#allocation86_spill] sm:$0xff] }
 0x177   : > { %v1342_v57 = vpop.f32.mrf.mxu1  ;;  %2731 = vmatmul.mubr.f32.gmra.mxu1 %v7615_v17  ;;  %2439 = vmatprep.mubr.f32.mxu0 %v7621_v63  ;;  %v958_v17 = vadd.f32 %v957_v22, %v5539_v13 }
 0x178   : > { %v5821_v9 = vadd.f32 %v1342_v57, %v928_v12  ;;  %v959_v35 = vpop.f32.mrf.mxu0  ;;  %2736 = vmatprep.mubr.f32.mxu1 %v7616_v50  ;;  %v7624_v12 = vld [vmem:[#allocation89_spill] sm:$0xff] }
 0x179   : > { %v1344_v62 = vpop.f32.mrf.mxu1 }
 0x17a   : > { %v1474_v19 = vpop.f32.mrf.mxu0  ;;  %2441 = vmatmul.mubr.f32.gmra.mxu0 %v7622_v15 }
 0x17b   : > { %v1349_v39 = vpop.f32.mrf.mxu1  ;;  %v1475_v21 = vadd.f32 %v1474_v19, %v5565_v52  ;;  %2738 = vmatmul.mubr.f32.gmra.mxu1 %v7617_v54  ;;  %2446 = vmatprep.mubr.f32.mxu0 %v7623_v58  ;;  %v7625_v52 = vld [vmem:[#allocation91_spill] sm:$0xff] }
 0x17c   : > { %v5829_v0 = vadd.f32 %v1349_v39, %v943_v32  ;;  %v1476_v4 = vpop.f32.mrf.mxu0  ;;  %2743 = vmatprep.mubr.f32.mxu1 %v7618_v61  ;;  %v7626_v32 = vld [vmem:[#allocation93_spill] sm:$0xff] }
 0x17d   : > { %v1351_v35 = vpop.f32.mrf.mxu1  ;;  %v7627_v4 = vld [vmem:[#allocation94_spill] sm:$0xff] }
 0x17e   : > { %v1483_v50 = vpop.f32.mrf.mxu0  ;;  %2448 = vmatmul.mubr.f32.gmra.mxu0 %v7624_v12 }
 0x17f   : > { %v1356_v57 = vpop.f32.mrf.mxu1  ;;  %v1484_v62 = vadd.f32 %v1483_v50, %v5579_v42  ;;  %2745 = vmatmul.mubr.f32.gmra.mxu1 %v7620_v46  ;;  %2453 = vmatprep.mubr.f32.mxu0 %v7625_v52  ;;  %v7628_v50 = vld [vmem:[#allocation98_spill] sm:$0xff] }
 0x180   : > { %v5836_v54 = vadd.f32 %v1356_v57, %v958_v17  ;;  %v1485_v19 = vpop.f32.mrf.mxu0  ;;  %2750 = vmatprep.mubr.f32.mxu1 %v7621_v63 }
 0x181   : > { %v1358_v13 = vpop.f32.mrf.mxu1 }
 0x182   : > { %v1492_v22 = vpop.f32.mrf.mxu0  ;;  %2455 = vmatmul.mubr.f32.gmra.mxu0 %v7626_v32 }
 0x183   : > { %v1493_v61 = vadd.f32 %v1492_v22, %v5593_v59  ;;  %v1851_v39 = vpop.f32.mrf.mxu1  ;;  %2752 = vmatmul.mubr.f32.gmra.mxu1 %v7622_v15  ;;  %2460 = vmatprep.mubr.f32.mxu0 %v7627_v4  ;;  %v7629_v59 = vld [vmem:[#allocation99_spill] sm:$0xff]  ;;  %v7630_v22 = vld [vmem:[#allocation101_spill] sm:$0xff] }
 0x184   : > { %v5843_v42 = vadd.f32 %v1851_v39, %v1475_v21  ;;  %v1494_v46 = vpop.f32.mrf.mxu0  ;;  %2757 = vmatprep.mubr.f32.mxu1 %v7623_v58 }
 0x185   : > { %v1853_v17 = vpop.f32.mrf.mxu1 }
 0x186   : > { %v1501_v35 = vpop.f32.mrf.mxu0  ;;  %2462 = vmatmul.mubr.f32.gmra.mxu0 %v7628_v50 }
 0x187   : > { %v1502_v63 = vadd.f32 %v1501_v35, %v5607_v34  ;;  %v1862_v57 = vpop.f32.mrf.mxu1  ;;  %2759 = vmatmul.mubr.f32.gmra.mxu1 %v7624_v12  ;;  %2467 = vmatprep.mubr.f32.mxu0 %v7629_v59  ;;  %v7631_v34 = vld [vmem:[#allocation103_spill] sm:$0xff]  ;;  %v7632_v35 = vld [vmem:[#allocation104_spill] sm:$0xff] }
 0x188   : > { %v5850_v19 = vadd.f32 %v1862_v57, %v1484_v62  ;;  %v1503_v15 = vpop.f32.mrf.mxu0  ;;  %2764 = vmatprep.mubr.f32.mxu1 %v7625_v52 }
 0x189   : > { %v1864_v21 = vpop.f32.mrf.mxu1 }
 0x18a   : > { %v1510_v13 = vpop.f32.mrf.mxu0  ;;  %2469 = vmatmul.mubr.f32.gmra.mxu0 %v7630_v22 }
 0x18b   : > { %v1511_v58 = vadd.f32 %v1510_v13, %v5621_v33  ;;  %v1873_v39 = vpop.f32.mrf.mxu1  ;;  %2766 = vmatmul.mubr.f32.gmra.mxu1 %v7626_v32  ;;  %2474 = vmatprep.mubr.f32.mxu0 %v7631_v34  ;;  %v7633_v33 = vld [vmem:[#allocation106_spill] sm:$0xff]  ;;  %v7634_v13 = vld [vmem:[#allocation109_spill] sm:$0xff] }
 0x18c   : > { %v5857_v46 = vadd.f32 %v1873_v39, %v1493_v61  ;;  %v1512_v12 = vpop.f32.mrf.mxu0  ;;  %2771 = vmatprep.mubr.f32.mxu1 %v7627_v4 }
 0x18d   : > { %v1875_v62 = vpop.f32.mrf.mxu1 }
 0x18e   : > { %v1519_v17 = vpop.f32.mrf.mxu0  ;;  %2476 = vmatmul.mubr.f32.gmra.mxu0 %v7632_v35 }
 0x18f   : > { %v1520_v52 = vadd.f32 %v1519_v17, %v5633_v48  ;;  %v1884_v57 = vpop.f32.mrf.mxu1  ;;  %2773 = vmatmul.mubr.f32.gmra.mxu1 %v7628_v50  ;;  %2481 = vmatprep.mubr.f32.mxu0 %v7633_v33  ;;  %v7635_v48 = vld [vmem:[#allocation111_spill] sm:$0xff]  ;;  %v7636_v17 = vld [vmem:[#allocation113_spill] sm:$0xff] }
 0x190   : > { %v5864_v15 = vadd.f32 %v1884_v57, %v1502_v63  ;;  %v1521_v32 = vpop.f32.mrf.mxu0  ;;  %2778 = vmatprep.mubr.f32.mxu1 %v7629_v59 }
 0x191   : > { %v1886_v61 = vpop.f32.mrf.mxu1 }
 0x192   : > { %v1528_v21 = vpop.f32.mrf.mxu0  ;;  %2483 = vmatmul.mubr.f32.gmra.mxu0 %v7634_v13 }
 0x193   : > { %v1529_v4 = vadd.f32 %v1528_v21, %v5642_v20  ;;  %v1895_v39 = vpop.f32.mrf.mxu1  ;;  %2780 = vmatmul.mubr.f32.gmra.mxu1 %v7630_v22  ;;  %2488 = vmatprep.mubr.f32.mxu0 %v7635_v48  ;;  %v7637_v20 = vld [vmem:[#allocation115_spill] sm:$0xff] }
 0x194   : > { %v5871_v12 = vadd.f32 %v1895_v39, %v1511_v58  ;;  %v1530_v50 = vpop.f32.mrf.mxu0  ;;  %2785 = vmatprep.mubr.f32.mxu1 %v7631_v34 }
 0x195   : > { %v1897_v63 = vpop.f32.mrf.mxu1 }
 0x196   : > { %v1537_v62 = vpop.f32.mrf.mxu0  ;;  %2490 = vmatmul.mubr.f32.gmra.mxu0 %v7636_v17 }
 0x197   : > { %v1538_v59 = vadd.f32 %v1537_v62, %v5651_v5  ;;  %v1906_v57 = vpop.f32.mrf.mxu1  ;;  %2787 = vmatmul.mubr.f32.gmra.mxu1 %v7632_v35  ;;  %2495 = vmatprep.mubr.f32.mxu0 %v7637_v20 }
 0x198   : > { %v5878_v32 = vadd.f32 %v1906_v57, %v1520_v52  ;;  %v1539_v22 = vpop.f32.mrf.mxu0  ;;  %2792 = vmatprep.mubr.f32.mxu1 %v7633_v33 }
 0x199   : > { %v1908_v58 = vpop.f32.mrf.mxu1 }
 0x19a   : > { %v1546_v61 = vpop.f32.mrf.mxu0  ;;  %2497 = vmatmul.mubr.f32.gmra.mxu0 %v5144_v7 }
 0x19b   : > { %v1547_v34 = vadd.f32 %v1546_v61, %v5660_v18  ;;  %v1917_v21 = vpop.f32.mrf.mxu1  ;;  %2794 = vmatmul.mubr.f32.gmra.mxu1 %v7634_v13  ;;  %2502 = vmatprep.mubr.f32.mxu0 %v5151_v26 }
 0x19c   : > { %v5885_v5 = vadd.f32 %v1917_v21, %v1529_v4  ;;  %v1548_v35 = vpop.f32.mrf.mxu0  ;;  %2799 = vmatprep.mubr.f32.mxu1 %v7635_v48 }
 0x19d   : > { %v1919_v52 = vpop.f32.mrf.mxu1 }
 0x19e   : > { %v1555_v39 = vpop.f32.mrf.mxu0  ;;  %2504 = vmatmul.mubr.f32.gmra.mxu0 %v5170_v37 }
 0x19f   : > { %v1556_v33 = vadd.f32 %v1555_v39, %v5669_v11  ;;  %v1928_v50 = vpop.f32.mrf.mxu1  ;;  %2801 = vmatmul.mubr.f32.gmra.mxu1 %v7636_v17  ;;  %2509 = vmatprep.mubr.f32.mxu0 %v5179_v45 }
 0x1a0   : > { %v5892_v18 = vadd.f32 %v1928_v50, %v1538_v59  ;;  %v1557_v13 = vpop.f32.mrf.mxu0  ;;  %2806 = vmatprep.mubr.f32.mxu1 %v7637_v20 }
 0x1a1   : > { %v1930_v4 = vpop.f32.mrf.mxu1 }
 0x1a2   : > { %v1564_v63 = vpop.f32.mrf.mxu0  ;;  %2511 = vmatmul.mubr.f32.gmra.mxu0 %v5184_v56 }
 0x1a3   : > { %v1565_v48 = vadd.f32 %v1564_v63, %v5678_v60  ;;  %v1939_v62 = vpop.f32.mrf.mxu1  ;;  %2808 = vmatmul.mubr.f32.gmra.mxu1 %v5144_v7  ;;  %2516 = vmatprep.mubr.f32.mxu0 %v5196_v1 }
 0x1a4   : > { %v5899_v11 = vadd.f32 %v1939_v62, %v1547_v34  ;;  %v1566_v17 = vpop.f32.mrf.mxu0  ;;  %2813 = vmatprep.mubr.f32.mxu1 %v5151_v26 }
 0x1a5   : > { %v1941_v59 = vpop.f32.mrf.mxu1 }
 0x1a6   : > { %v1573_v57 = vpop.f32.mrf.mxu0  ;;  %2518 = vmatmul.mubr.f32.gmra.mxu0 %v5214_v3 }
 0x1a7   : > { %v1574_v20 = vadd.f32 %v1573_v57, %v5687_v6  ;;  %v1950_v22 = vpop.f32.mrf.mxu1  ;;  %2815 = vmatmul.mubr.f32.gmra.mxu1 %v5170_v37  ;;  %2523 = vmatprep.mubr.f32.mxu0 %v5232_v49 }
 0x1a8   : > { %v5906_v60 = vadd.f32 %v1950_v22, %v1556_v33  ;;  %v1575_v7 = vpop.f32.mrf.mxu0  ;;  %2820 = vmatprep.mubr.f32.mxu1 %v5179_v45 }
 0x1a9   : > { %v1952_v58 = vpop.f32.mrf.mxu1 }
 0x1aa   : > { %v1582_v61 = vpop.f32.mrf.mxu0  ;;  %2525 = vmatmul.mubr.f32.gmra.mxu0 %v5249_v51 }
 0x1ab   : > { %v1583_v26 = vadd.f32 %v1582_v61, %v5696_v10  ;;  %v1961_v34 = vpop.f32.mrf.mxu1  ;;  %2822 = vmatmul.mubr.f32.gmra.mxu1 %v5184_v56  ;;  %2530 = vmatprep.mubr.f32.mxu0 %v5259_v23 }
 0x1ac   : > { %v5913_v6 = vadd.f32 %v1961_v34, %v1565_v48  ;;  %v1584_v37 = vpop.f32.mrf.mxu0  ;;  %2827 = vmatprep.mubr.f32.mxu1 %v5196_v1 }
 0x1ad   : > { %v1963_v21 = vpop.f32.mrf.mxu1 }
 0x1ae   : > { %v1591_v35 = vpop.f32.mrf.mxu0  ;;  %2532 = vmatmul.mubr.f32.gmra.mxu0 %v5278_v53 }
 0x1af   : > { %v1592_v45 = vadd.f32 %v1591_v35, %v5705_v30  ;;  %v1972_v52 = vpop.f32.mrf.mxu1  ;;  %2829 = vmatmul.mubr.f32.gmra.mxu1 %v5214_v3  ;;  %2537 = vmatprep.mubr.f32.mxu0 %v5285_v31 }
 0x1b0   : > { %v5920_v10 = vadd.f32 %v1972_v52, %v1574_v20  ;;  %v1593_v56 = vpop.f32.mrf.mxu0  ;;  %2834 = vmatprep.mubr.f32.mxu1 %v5232_v49 }
 0x1b1   : > { %v1974_v39 = vpop.f32.mrf.mxu1 }
 0x1b2   : > { %v1600_v33 = vpop.f32.mrf.mxu0  ;;  %2539 = vmatmul.mubr.f32.gmra.mxu0 %v5297_v14 }
 0x1b3   : > { %v1601_v1 = vadd.f32 %v1600_v33, %v5714_v41  ;;  %v1983_v50 = vpop.f32.mrf.mxu1  ;;  %2836 = vmatmul.mubr.f32.gmra.mxu1 %v5249_v51  ;;  %2544 = vmatprep.mubr.f32.mxu0 %v5307_v36 }
 0x1b4   : > { %v5927_v30 = vadd.f32 %v1983_v50, %v1583_v26  ;;  %v1602_v3 = vpop.f32.mrf.mxu0  ;;  %2841 = vmatprep.mubr.f32.mxu1 %v5259_v23 }
 0x1b5   : > { %v1985_v13 = vpop.f32.mrf.mxu1 }
 0x1b6   : > { %v1609_v4 = vpop.f32.mrf.mxu0  ;;  %2546 = vmatmul.mubr.f32.gmra.mxu0 %v5318_v29 }
 0x1b7   : > { %v1610_v49 = vadd.f32 %v1609_v4, %v5723_v25  ;;  %v1994_v63 = vpop.f32.mrf.mxu1  ;;  %2843 = vmatmul.mubr.f32.gmra.mxu1 %v5278_v53 }
 0x1b8   : > { %v5933_v41 = vadd.f32 %v1994_v63, %v1592_v45  ;;  %v1611_v48 = vpop.f32.mrf.mxu0  ;;  %2848 = vmatprep.mubr.f32.mxu1 %v5285_v31 }
 0x1b9   : > { %v1996_v51 = vpop.f32.mrf.mxu1 }
 0x1ba   : > { %v1618_v62 = vpop.f32.mrf.mxu0 }
 0x1bb   : > { %v1619_v17 = vadd.f32 %v1618_v62, %v5730_v28  ;;  %v2005_v59 = vpop.f32.mrf.mxu1  ;;  %2850 = vmatmul.mubr.f32.gmra.mxu1 %v5297_v14 }
 0x1bc   : > { %v5938_v23 = vadd.f32 %v2005_v59, %v1601_v1  ;;  %v1620_v57 = vpop.f32.mrf.mxu0  ;;  %2855 = vmatprep.mubr.f32.mxu1 %v5307_v36 }
 0x1bd   : > { %v2007_v25 = vpop.f32.mrf.mxu1 }
 0x1be   : > { %v1627_v20 = vpop.f32.mrf.mxu0 }
 0x1bf   : > { %v1628_v53 = vadd.f32 %v1627_v20, %v5737_v16  ;;  %v2016_v22 = vpop.f32.mrf.mxu1  ;;  %2857 = vmatmul.mubr.f32.gmra.mxu1 %v5318_v29 }
 0x1c0   : > { %v5943_v31 = vadd.f32 %v2016_v22, %v1610_v49  ;;  %v1629_v7 = vpop.f32.mrf.mxu0 }
 0x1c1   : > { %v2018_v58 = vpop.f32.mrf.mxu1 }
 0x1c2   : > { %v1636_v28 = vpop.f32.mrf.mxu0 }
 0x1c3   : > { %v1637_v61 = vadd.f32 %v1636_v28, %v5744_v47  ;;  %v2027_v14 = vpop.f32.mrf.mxu1 }
 0x1c4   : > { %v5946_v26 = vadd.f32 %v2027_v14, %v1619_v17  ;;  %v1638_v34 = vpop.f32.mrf.mxu0 }
 0x1c5   : > { %v2029_v37 = vpop.f32.mrf.mxu1 }
 0x1c6   : > { %v1645_v36 = vpop.f32.mrf.mxu0 }
 0x1c7   : > { %v1646_v21 = vadd.f32 %v1645_v36, %v5751_v2  ;;  %v2038_v35 = vpop.f32.mrf.mxu1 }
 0x1c8   : > { %v5949_v16 = vadd.f32 %v2038_v35, %v1628_v53  ;;  %v1647_v45 = vpop.f32.mrf.mxu0 }
 0x1c9   : > { %v2040_v29 = vpop.f32.mrf.mxu1 }
 0x1ca   : > { %v1654_v52 = vpop.f32.mrf.mxu0 }
 0x1cb   : > { %v1655_v56 = vadd.f32 %v1654_v52, %v5758_v43  ;;  %v2049_v39 = vpop.f32.mrf.mxu1 }
 0x1cc   : > { %v5952_v33 = vadd.f32 %v2049_v39, %v1637_v61  ;;  %v1656_v47 = vpop.f32.mrf.mxu0 }
 0x1cd   : > { %v2051_v1 = vpop.f32.mrf.mxu1 }
 0x1ce   : > { %v1663_v50 = vpop.f32.mrf.mxu0 }
 0x1cf   : > { %v1664_v3 = vadd.f32 %v1663_v50, %v5765_v40  ;;  %v2060_v13 = vpop.f32.mrf.mxu1 }
 0x1d0   : > { %v5955_v4 = vadd.f32 %v2060_v13, %v1646_v21  ;;  %v1665_v2 = vpop.f32.mrf.mxu0 }
 0x1d1   : > { %v2062_v49 = vpop.f32.mrf.mxu1  ;;  %v7638_v2 = vld [vmem:[#allocation21_spill] sm:$0xff] }
 0x1d2   : > { %v1672_v63 = vpop.f32.mrf.mxu0 }
 0x1d3   : > { %v1673_v48 = vadd.f32 %v1672_v63, %v5772_v27  ;;  %v2071_v51 = vpop.f32.mrf.mxu1 }
 0x1d4   : > { %v5958_v62 = vadd.f32 %v2071_v51, %v1655_v56  ;;  %v1674_v43 = vpop.f32.mrf.mxu0 }
 0x1d5   : > { %v2073_v17 = vpop.f32.mrf.mxu1 }
 0x1d6   : > { %v1681_v59 = vpop.f32.mrf.mxu0 }
 0x1d7   : > { %v1682_v57 = vadd.f32 %v1681_v59, %v5779_v24  ;;  %v2082_v25 = vpop.f32.mrf.mxu1 }
 0x1d8   : > { %v5961_v20 = vadd.f32 %v2082_v25, %v1664_v3  ;;  %v1683_v40 = vpop.f32.mrf.mxu0 }
 0x1d9   : > { %v2084_v53 = vpop.f32.mrf.mxu1 }
 0x1da   : > { %v1690_v22 = vpop.f32.mrf.mxu0 }
 0x1db   : > { %v1691_v7 = vadd.f32 %v1690_v22, %v5786_v55  ;;  %v2093_v58 = vpop.f32.mrf.mxu1 }
 0x1dc   : > { %v5964_v28 = vadd.f32 %v2093_v58, %v1673_v48  ;;  %v1692_v27 = vpop.f32.mrf.mxu0 }
 0x1dd   : > { %v2095_v61 = vpop.f32.mrf.mxu1 }
 0x1de   : > { %v1699_v14 = vpop.f32.mrf.mxu0 }
 0x1df   : > { %v1700_v34 = vadd.f32 %v1699_v14, %v5793_v38  ;;  %v2104_v37 = vpop.f32.mrf.mxu1 }
 0x1e0   : > { %v5967_v36 = vadd.f32 %v2104_v37, %v1682_v57  ;;  %v1701_v24 = vpop.f32.mrf.mxu0 }
 0x1e1   : > { %v2106_v21 = vpop.f32.mrf.mxu1 }
 0x1e2   : > { %v1708_v35 = vpop.f32.mrf.mxu0 }
 0x1e3   : > { %v1709_v45 = vadd.f32 %v1708_v35, %v5800_v8  ;;  %v2115_v29 = vpop.f32.mrf.mxu1 }
 0x1e4   : > { %v5970_v52 = vadd.f32 %v2115_v29, %v1691_v7  ;;  %v1710_v55 = vpop.f32.mrf.mxu0 }
 0x1e5   : > { %v2117_v56 = vpop.f32.mrf.mxu1 }
 0x1e6   : > { %v1717_v39 = vpop.f32.mrf.mxu0 }
 0x1e7   : > { %v1718_v47 = vadd.f32 %v1717_v39, %v5807_v44  ;;  %v2126_v1 = vpop.f32.mrf.mxu1 }
 0x1e8   : > { %v5973_v50 = vadd.f32 %v2126_v1, %v1700_v34  ;;  %v1719_v38 = vpop.f32.mrf.mxu0 }
 0x1e9   : > { %v2128_v3 = vpop.f32.mrf.mxu1 }
 0x1ea   : > { %v1726_v13 = vpop.f32.mrf.mxu0 }
 0x1eb   : > { %v1727_v49 = vadd.f32 %v1726_v13, %v7638_v2  ;;  %v2137_v63 = vpop.f32.mrf.mxu1 }
 0x1ec   : > { %v5976_v48 = vadd.f32 %v2137_v63, %v1709_v45  ;;  %v1728_v8 = vpop.f32.mrf.mxu0 }
 0x1ed   : > { %v2139_v51 = vpop.f32.mrf.mxu1 }
 0x1ee   : > { %v1735_v43 = vpop.f32.mrf.mxu0 }
 0x1ef   : > { %v1736_v17 = vadd.f32 %v1735_v43, %v5821_v9  ;;  %v2148_v59 = vpop.f32.mrf.mxu1 }
 0x1f0   : > { %v5979_v57 = vadd.f32 %v2148_v59, %v1718_v47  ;;  %v1737_v44 = vpop.f32.mrf.mxu0 }
 0x1f1   : > { %v2150_v25 = vpop.f32.mrf.mxu1 }
 0x1f2   : > { %v1744_v40 = vpop.f32.mrf.mxu0 }
 0x1f3   : > { %v1745_v53 = vadd.f32 %v1744_v40, %v5829_v0  ;;  %v2159_v22 = vpop.f32.mrf.mxu1 }
 0x1f4   : > { %v5982_v7 = vadd.f32 %v2159_v22, %v1727_v49  ;;  %v1746_v58 = vpop.f32.mrf.mxu0 }
 0x1f5   : > { %v2161_v27 = vpop.f32.mrf.mxu1 }
 0x1f6   : > { %v1753_v61 = vpop.f32.mrf.mxu0 }
 0x1f7   : > { %v1754_v14 = vadd.f32 %v1753_v61, %v5836_v54  ;;  %v2170_v34 = vpop.f32.mrf.mxu1 }
 0x1f8   : > { %v5985_v37 = vadd.f32 %v2170_v34, %v1736_v17  ;;  %v1755_v9 = vpop.f32.mrf.mxu0 }
 0x1f9   : > { %v2172_v24 = vpop.f32.mrf.mxu1 }
 0x1fa   : > { %v2330_v21 = vpop.f32.mrf.mxu0 }
 0x1fb   : > { %v2181_v35 = vpop.f32.mrf.mxu1  ;;  %v2331_v38 = vadd.f32 %v2330_v21, %v5843_v42 }
 0x1fc   : > { %v5987_v45 = vadd.f32 %v2181_v35, %v1745_v53  ;;  %v2332_v29 = vpop.f32.mrf.mxu0 }
 0x1fd   : > { %v2183_v55 = vpop.f32.mrf.mxu1 }
 0x1fe   : > { %v2337_v0 = vpop.f32.mrf.mxu0 }
 0x1ff   : > { %v2192_v56 = vpop.f32.mrf.mxu1  ;;  %v2338_v63 = vadd.f32 %v2337_v0, %v5850_v19 }
 0x200   : > { %v5989_v39 = vadd.f32 %v2192_v56, %v1754_v14  ;;  %v2339_v47 = vpop.f32.mrf.mxu0 }
 0x201   : > { %v2194_v1 = vpop.f32.mrf.mxu1 }
 0x202   : > { %v2344_v54 = vpop.f32.mrf.mxu0 }
 0x203   : > { %v2641_v3 = vpop.f32.mrf.mxu1  ;;  %v2345_v42 = vadd.f32 %v2344_v54, %v5857_v46 }
 0x204   : > { %v5992_v13 = vadd.f32 %v2641_v3, %v2331_v38  ;;  %v2346_v2 = vpop.f32.mrf.mxu0 }
 0x205   : > { %v2643_v49 = vpop.f32.mrf.mxu1 }
 0x206   : > { %v2351_v8 = vpop.f32.mrf.mxu0  ;;  %v2863_v51 = vsel %vm2862_vm1, %v5992_v13, 0.0 }
 0x207   : > { %v2648_v43 = vpop.f32.mrf.mxu1  ;;  %2864 = vadd.xlane.f32.xlu0 %v2863_v51  ;;  %v2352_v27 = vadd.f32 %v2351_v8, %v5864_v15 }
 0x208   : > { %v5997_v17 = vadd.f32 %v2648_v43, %v2338_v63  ;;  %v2353_v59 = vpop.f32.mrf.mxu0 }
 0x209   : > { %v2650_v44 = vpop.f32.mrf.mxu1 }
 0x20a   : > { %v2358_v25 = vpop.f32.mrf.mxu0  ;;  %v2866_v40 = vsel %vm2862_vm1, %v5997_v17, 0.0 }
 0x20b   : > { %v2655_v53 = vpop.f32.mrf.mxu1  ;;  %2867 = vadd.xlane.f32.xlu0 %v2866_v40  ;;  %v2359_v21 = vadd.f32 %v2358_v25, %v5871_v12 }
 0x20c   : > { %v6002_v22 = vadd.f32 %v2655_v53, %v2345_v42  ;;  %v2360_v19 = vpop.f32.mrf.mxu0 }
 0x20d   : > { %v2657_v58 = vpop.f32.mrf.mxu1 }
 0x20e   : > { %v2365_v61 = vpop.f32.mrf.mxu0  ;;  %v2869_v14 = vsel %vm2862_vm1, %v6002_v22, 0.0 }
 0x20f   : > { %v2662_v34 = vpop.f32.mrf.mxu1  ;;  %2870 = vadd.xlane.f32.xlu1 %v2869_v14  ;;  %v2366_v47 = vadd.f32 %v2365_v61, %v5878_v32 }
 0x210   : > { %v6007_v9 = vadd.f32 %v2662_v34, %v2352_v27  ;;  %v2367_v46 = vpop.f32.mrf.mxu0 }
 0x211   : > { %v2664_v24 = vpop.f32.mrf.mxu1 }
 0x212   : > { %v2372_v35 = vpop.f32.mrf.mxu0  ;;  %v2872_v29 = vsel %vm2862_vm1, %v6007_v9, 0.0 }
 0x213   : > { %v2669_v55 = vpop.f32.mrf.mxu1  ;;  %2873 = vadd.xlane.f32.xlu1 %v2872_v29  ;;  %v2373_v49 = vadd.f32 %v2372_v35, %v5885_v5 }
 0x214   : > { %v6012_v0 = vadd.f32 %v2669_v55, %v2359_v21  ;;  %v2374_v15 = vpop.f32.mrf.mxu0 }
 0x215   : > { %v2671_v56 = vpop.f32.mrf.mxu1 }
 0x216   : > { %v2379_v1 = vpop.f32.mrf.mxu0  ;;  %v2875_v38 = vsel %vm2862_vm1, %v6012_v0, 0.0 }
 0x217   : > { %v2676_v54 = vpop.f32.mrf.mxu1  ;;  %2876 = vadd.xlane.f32.xlu0 %v2875_v38  ;;  %v2380_v44 = vadd.f32 %v2379_v1, %v5892_v18 }
 0x218   : > { %v6017_v3 = vadd.f32 %v2676_v54, %v2366_v47  ;;  %v2381_v12 = vpop.f32.mrf.mxu0 }
 0x219   : > { %v2678_v2 = vpop.f32.mrf.mxu1 }
 0x21a   : > { %v2386_v63 = vpop.f32.mrf.mxu0  ;;  %v2878_v8 = vsel %vm2862_vm1, %v6017_v3, 0.0 }
 0x21b   : > { %v2683_v51 = vpop.f32.mrf.mxu1  ;;  %2879 = vadd.xlane.f32.xlu1 %v2878_v8  ;;  %v2387_v58 = vadd.f32 %v2386_v63, %v5899_v11 }
 0x21c   : > { %v6022_v43 = vadd.f32 %v2683_v51, %v2373_v49  ;;  %v2388_v32 = vpop.f32.mrf.mxu0 }
 0x21d   : > { %v2685_v59 = vpop.f32.mrf.mxu1 }
 0x21e   : > { %v2393_v42 = vpop.f32.mrf.mxu0  ;;  %v2881_v25 = vsel %vm2862_vm1, %v6022_v43, 0.0 }
 0x21f   : > { %v2690_v40 = vpop.f32.mrf.mxu1  ;;  %2882 = vadd.xlane.f32.xlu0 %v2881_v25  ;;  %v2394_v24 = vadd.f32 %v2393_v42, %v5906_v60 }
 0x220   : > { %v6027_v53 = vadd.f32 %v2690_v40, %v2380_v44  ;;  %v2395_v5 = vpop.f32.mrf.mxu0 }
 0x221   : > { %v2692_v19 = vpop.f32.mrf.mxu1 }
 0x222   : > { %v2400_v27 = vpop.f32.mrf.mxu0  ;;  %v2884_v61 = vsel %vm2862_vm1, %v6027_v53, 0.0 }
 0x223   : > { %v2697_v14 = vpop.f32.mrf.mxu1  ;;  %2885 = vadd.xlane.f32.xlu1 %v2884_v61  ;;  %v2401_v56 = vadd.f32 %v2400_v27, %v5913_v6 }
 0x224   : > { %v6032_v34 = vadd.f32 %v2697_v14, %v2387_v58  ;;  %v2402_v18 = vpop.f32.mrf.mxu0 }
 0x225   : > { %v2699_v46 = vpop.f32.mrf.mxu1 }
 0x226   : > { %v2407_v21 = vpop.f32.mrf.mxu0  ;;  %v2887_v35 = vsel %vm2862_vm1, %v6032_v34, 0.0 }
 0x227   : > { %v2704_v29 = vpop.f32.mrf.mxu1  ;;  %2888 = vadd.xlane.f32.xlu0 %v2887_v35  ;;  %v2408_v2 = vadd.f32 %v2407_v21, %v5920_v10 }
 0x228   : > { %v6037_v55 = vadd.f32 %v2704_v29, %v2394_v24  ;;  %v2409_v11 = vpop.f32.mrf.mxu0 }
 0x229   : > { %v2706_v15 = vpop.f32.mrf.mxu1 }
 0x22a   : > { %v2414_v47 = vpop.f32.mrf.mxu0  ;;  %v2890_v1 = vsel %vm2862_vm1, %v6037_v55, 0.0 }
 0x22b   : > { %v2711_v38 = vpop.f32.mrf.mxu1  ;;  %2891 = vadd.xlane.f32.xlu1 %v2890_v1  ;;  %v2415_v59 = vadd.f32 %v2414_v47, %v5927_v30 }
 0x22c   : > { %v6042_v54 = vadd.f32 %v2711_v38, %v2401_v56  ;;  %v2416_v60 = vpop.f32.mrf.mxu0 }
 0x22d   : > { %v2713_v12 = vpop.f32.mrf.mxu1 }
 0x22e   : > { %v2421_v49 = vpop.f32.mrf.mxu0  ;;  %v2893_v63 = vsel %vm2862_vm1, %v6042_v54, 0.0 }
 0x22f   : > { %v2718_v8 = vpop.f32.mrf.mxu1  ;;  %2894 = vadd.xlane.f32.xlu0 %v2893_v63  ;;  %v2422_v19 = vadd.f32 %v2421_v49, %v5933_v41 }
 0x230   : > { %v6047_v51 = vadd.f32 %v2718_v8, %v2408_v2  ;;  %v2423_v6 = vpop.f32.mrf.mxu0 }
 0x231   : > { %v2720_v32 = vpop.f32.mrf.mxu1 }
 0x232   : > { %v2428_v44 = vpop.f32.mrf.mxu0  ;;  %v2896_v42 = vsel %vm2862_vm1, %v6047_v51, 0.0 }
 0x233   : > { %v2725_v25 = vpop.f32.mrf.mxu1  ;;  %2897 = vadd.xlane.f32.xlu1 %v2896_v42  ;;  %v2429_v46 = vadd.f32 %v2428_v44, %v5938_v23 }
 0x234   : > { %v6052_v40 = vadd.f32 %v2725_v25, %v2415_v59  ;;  %v2430_v10 = vpop.f32.mrf.mxu0 }
 0x235   : > { %v2727_v5 = vpop.f32.mrf.mxu1 }
 0x236   : > { %v2435_v58 = vpop.f32.mrf.mxu0  ;;  %v2899_v27 = vsel %vm2862_vm1, %v6052_v40, 0.0 }
 0x237   : > { %v2732_v61 = vpop.f32.mrf.mxu1  ;;  %2900 = vadd.xlane.f32.xlu0 %v2899_v27  ;;  %v2436_v15 = vadd.f32 %v2435_v58, %v5943_v31 }
 0x238   : > { %v6057_v14 = vadd.f32 %v2732_v61, %v2422_v19  ;;  %v2437_v30 = vpop.f32.mrf.mxu0 }
 0x239   : > { %v2734_v18 = vpop.f32.mrf.mxu1 }
 0x23a   : > { %v2442_v24 = vpop.f32.mrf.mxu0  ;;  %v2902_v21 = vsel %vm2862_vm1, %v6057_v14, 0.0 }
 0x23b   : > { %v2739_v35 = vpop.f32.mrf.mxu1  ;;  %2903 = vadd.xlane.f32.xlu1 %v2902_v21  ;;  %v2443_v12 = vadd.f32 %v2442_v24, %v5946_v26 }
 0x23c   : > { %v6062_v29 = vadd.f32 %v2739_v35, %v2429_v46  ;;  %v2444_v41 = vpop.f32.mrf.mxu0 }
 0x23d   : > { %v2741_v11 = vpop.f32.mrf.mxu1 }
 0x23e   : > { %v2449_v56 = vpop.f32.mrf.mxu0  ;;  %v2905_v47 = vsel %vm2862_vm1, %v6062_v29, 0.0 }
 0x23f   : > { %v2746_v1 = vpop.f32.mrf.mxu1  ;;  %2906 = vadd.xlane.f32.xlu0 %v2905_v47  ;;  %v2450_v32 = vadd.f32 %v2449_v56, %v5949_v16 }
 0x240   : > { %v6067_v38 = vadd.f32 %v2746_v1, %v2436_v15  ;;  %v2451_v23 = vpop.f32.mrf.mxu0 }
 0x241   : > { %v2748_v60 = vpop.f32.mrf.mxu1 }
 0x242   : > { %v2456_v2 = vpop.f32.mrf.mxu0  ;;  %v2908_v49 = vsel %vm2862_vm1, %v6067_v38, 0.0 }
 0x243   : > { %v2753_v63 = vpop.f32.mrf.mxu1  ;;  %2909 = vadd.xlane.f32.xlu1 %v2908_v49  ;;  %v2457_v5 = vadd.f32 %v2456_v2, %v5952_v33 }
 0x244   : > { %v6072_v8 = vadd.f32 %v2753_v63, %v2443_v12  ;;  %v2458_v31 = vpop.f32.mrf.mxu0 }
 0x245   : > { %v2755_v6 = vpop.f32.mrf.mxu1 }
 0x246   : > { %v2463_v59 = vpop.f32.mrf.mxu0  ;;  %v2911_v44 = vsel %vm2862_vm1, %v6072_v8, 0.0 }
 0x247   : > { %v2760_v42 = vpop.f32.mrf.mxu1  ;;  %2912 = vadd.xlane.f32.xlu0 %v2911_v44  ;;  %v2464_v18 = vadd.f32 %v2463_v59, %v5955_v4 }
 0x248   : > { %v6077_v25 = vadd.f32 %v2760_v42, %v2450_v32  ;;  %v2465_v26 = vpop.f32.mrf.mxu0 }
 0x249   : > { %v2762_v10 = vpop.f32.mrf.mxu1 }
 0x24a   : > { %v2470_v19 = vpop.f32.mrf.mxu0  ;;  %v2914_v58 = vsel %vm2862_vm1, %v6077_v25, 0.0 }
 0x24b   : > { %v2767_v27 = vpop.f32.mrf.mxu1  ;;  %2915 = vadd.xlane.f32.xlu1 %v2914_v58  ;;  %v2471_v11 = vadd.f32 %v2470_v19, %v5958_v62 }
 0x24c   : > { %v6082_v61 = vadd.f32 %v2767_v27, %v2457_v5  ;;  %v2472_v16 = vpop.f32.mrf.mxu0 }
 0x24d   : > { %v2769_v30 = vpop.f32.mrf.mxu1 }
 0x24e   : > { %v2477_v46 = vpop.f32.mrf.mxu0  ;;  %v2917_v24 = vsel %vm2862_vm1, %v6082_v61, 0.0 }
 0x24f   : > { %v2774_v21 = vpop.f32.mrf.mxu1  ;;  %2918 = vadd.xlane.f32.xlu0 %v2917_v24  ;;  %v2478_v60 = vadd.f32 %v2477_v46, %v5961_v20 }
 0x250   : > { %v6087_v35 = vadd.f32 %v2774_v21, %v2464_v18  ;;  %v2479_v33 = vpop.f32.mrf.mxu0 }
 0x251   : > { %v2776_v41 = vpop.f32.mrf.mxu1 }
 0x252   : > { %v2484_v15 = vpop.f32.mrf.mxu0  ;;  %v2920_v56 = vsel %vm2862_vm1, %v6087_v35, 0.0 }
 0x253   : > { %v2781_v47 = vpop.f32.mrf.mxu1  ;;  %2921 = vadd.xlane.f32.xlu1 %v2920_v56  ;;  %v2485_v6 = vadd.f32 %v2484_v15, %v5964_v28 }
 0x254   : > { %v6092_v1 = vadd.f32 %v2781_v47, %v2471_v11  ;;  %v2486_v4 = vpop.f32.mrf.mxu0 }
 0x255   : > { %v2783_v23 = vpop.f32.mrf.mxu1 }
 0x256   : > { %v2491_v12 = vpop.f32.mrf.mxu0  ;;  %v2923_v2 = vsel %vm2862_vm1, %v6092_v1, 0.0 }
 0x257   : > { %v2788_v49 = vpop.f32.mrf.mxu1  ;;  %2924 = vadd.xlane.f32.xlu0 %v2923_v2  ;;  %v2492_v10 = vadd.f32 %v2491_v12, %v5967_v36 }
 0x258   : > { %v6097_v63 = vadd.f32 %v2788_v49, %v2478_v60  ;;  %v2493_v62 = vpop.f32.mrf.mxu0 }
 0x259   : > { %v2790_v31 = vpop.f32.mrf.mxu1 }
 0x25a   : > { %v2498_v32 = vpop.f32.mrf.mxu0  ;;  %v2926_v59 = vsel %vm2862_vm1, %v6097_v63, 0.0 }
 0x25b   : > { %v2795_v44 = vpop.f32.mrf.mxu1  ;;  %2927 = vadd.xlane.f32.xlu1 %v2926_v59  ;;  %v2499_v30 = vadd.f32 %v2498_v32, %v5970_v52 }
 0x25c   : > { %v6102_v42 = vadd.f32 %v2795_v44, %v2485_v6  ;;  %v2500_v20 = vpop.f32.mrf.mxu0 }
 0x25d   : > { %v2797_v26 = vpop.f32.mrf.mxu1 }
 0x25e   : > { %v2505_v5 = vpop.f32.mrf.mxu0  ;;  %v2929_v19 = vsel %vm2862_vm1, %v6102_v42, 0.0 }
 0x25f   : > { %v2802_v58 = vpop.f32.mrf.mxu1  ;;  %2930 = vadd.xlane.f32.xlu0 %v2929_v19  ;;  %v2506_v41 = vadd.f32 %v2505_v5, %v5973_v50 }
 0x260   : > { %v6107_v27 = vadd.f32 %v2802_v58, %v2492_v10  ;;  %v2507_v28 = vpop.f32.mrf.mxu0 }
 0x261   : > { %v2804_v16 = vpop.f32.mrf.mxu1 }
 0x262   : > { %v2512_v18 = vpop.f32.mrf.mxu0  ;;  %v2932_v46 = vsel %vm2862_vm1, %v6107_v27, 0.0 }
 0x263   : > { %v2809_v24 = vpop.f32.mrf.mxu1  ;;  %2933 = vadd.xlane.f32.xlu1 %v2932_v46  ;;  %v2513_v23 = vadd.f32 %v2512_v18, %v5976_v48 }
 0x264   : > { %v6112_v21 = vadd.f32 %v2809_v24, %v2499_v30  ;;  %v2514_v36 = vpop.f32.mrf.mxu0 }
 0x265   : > { %v2811_v33 = vpop.f32.mrf.mxu1 }
 0x266   : > { %v2519_v11 = vpop.f32.mrf.mxu0  ;;  %v2935_v15 = vsel %vm2862_vm1, %v6112_v21, 0.0 }
 0x267   : > { %v2816_v56 = vpop.f32.mrf.mxu1  ;;  %2936 = vadd.xlane.f32.xlu0 %v2935_v15  ;;  %v2520_v31 = vadd.f32 %v2519_v11, %v5979_v57 }
 0x268   : > { %v6117_v47 = vadd.f32 %v2816_v56, %v2506_v41  ;;  %v2521_v52 = vpop.f32.mrf.mxu0 }
 0x269   : > { %v2818_v4 = vpop.f32.mrf.mxu1 }
 0x26a   : > { %v2526_v60 = vpop.f32.mrf.mxu0  ;;  %v2938_v12 = vsel %vm2862_vm1, %v6117_v47, 0.0 }
 0x26b   : > { %v2823_v2 = vpop.f32.mrf.mxu1  ;;  %2939 = vadd.xlane.f32.xlu1 %v2938_v12  ;;  %v2527_v26 = vadd.f32 %v2526_v60, %v5982_v7 }
 0x26c   : > { %v6122_v49 = vadd.f32 %v2823_v2, %v2513_v23  ;;  %v2528_v50 = vpop.f32.mrf.mxu0 }
 0x26d   : > { %v2825_v62 = vpop.f32.mrf.mxu1 }
 0x26e   : > { %v2533_v6 = vpop.f32.mrf.mxu0  ;;  %v2941_v32 = vsel %vm2862_vm1, %v6122_v49, 0.0 }
 0x26f   : > { %v2830_v59 = vpop.f32.mrf.mxu1  ;;  %2942 = vadd.xlane.f32.xlu0 %v2941_v32  ;;  %v2534_v16 = vadd.f32 %v2533_v6, %v5985_v37 }
 0x270   : > { %v6127_v44 = vadd.f32 %v2830_v59, %v2520_v31  ;;  %v2535_v48 = vpop.f32.mrf.mxu0 }
 0x271   : > { %v2832_v20 = vpop.f32.mrf.mxu1 }
 0x272   : > { %v2540_v10 = vpop.f32.mrf.mxu0  ;;  %v2944_v5 = vsel %vm2862_vm1, %v6127_v44, 0.0 }
 0x273   : > { %v2837_v19 = vpop.f32.mrf.mxu1  ;;  %2945 = vadd.xlane.f32.xlu1 %v2944_v5  ;;  %v2541_v33 = vadd.f32 %v2540_v10, %v5987_v45 }
 0x274   : > { %v6132_v58 = vadd.f32 %v2837_v19, %v2527_v26  ;;  %v2542_v57 = vpop.f32.mrf.mxu0 }
 0x275   : > { %v2839_v28 = vpop.f32.mrf.mxu1 }
 0x276   : > { %v2547_v30 = vpop.f32.mrf.mxu0  ;;  %v2947_v18 = vsel %vm2862_vm1, %v6132_v58, 0.0 }
 0x277   : > { %v2844_v46 = vpop.f32.mrf.mxu1  ;;  %2948 = vadd.xlane.f32.xlu0 %v2947_v18  ;;  %v2548_v56 = vadd.f32 %v2547_v30, %v5989_v39 }
 0x278   : > { %v6137_v24 = vadd.f32 %v2844_v46, %v2534_v16  ;;  %v2549_v7 = vpop.f32.mrf.mxu0 }
 0x279   : > { %v2846_v36 = vpop.f32.mrf.mxu1 }
 0x27a   : > { %v2950_v41 = vsel %vm2862_vm1, %v6137_v24, 0.0 }
 0x27b   : > { %v2851_v11 = vpop.f32.mrf.mxu1  ;;  %2951 = vadd.xlane.f32.xlu1 %v2950_v41 }
 0x27c   : > { %v6142_v15 = vadd.f32 %v2851_v11, %v2541_v33 }
 0x27d   : > { %v2853_v37 = vpop.f32.mrf.mxu1 }
 0x27e   : > { %v2953_v52 = vsel %vm2862_vm1, %v6142_v15, 0.0 }
 0x27f   : > { %v2858_v4 = vpop.f32.mrf.mxu1  ;;  %2954 = vadd.xlane.f32.xlu0 %v2953_v52 }
 0x280   : > { %v6147_v23 = vadd.f32 %v2858_v4, %v2548_v56 }
 0x281   : > { %v2860_v60 = vpop.f32.mrf.mxu1 }
 0x282   : > { %v2956_v45 = vsel %vm2862_vm1, %v6147_v23, 0.0 }
 0x283   : > { %2957 = vadd.xlane.f32.xlu1 %v2956_v45 }
 0x290   : > { %v2865_v12 = vpop.xlane.xlu0 %2864 }
 0x291   : > { %v2960_v2 = vmul.f32 0.03125, %v2865_v12 }
 0x293   : > { %v6152_v50 = vsub.f32 %v5992_v13, %v2960_v2 }
 0x294   : > { %v2868_v62 = vpop.xlane.xlu0 %2867 }
 0x295   : > { %v2961_v31 = vmul.f32 0.03125, %v2868_v62  ;;  %v3024_v39 = vmul.f32 %v6152_v50, %v6152_v50 }
 0x297   : > { %v6157_v6 = vsub.f32 %v5997_v17, %v2961_v31  ;;  %v3056_v32 = vsel %vm2862_vm1, %v3024_v39, 0.0 }
 0x298   : > { %v2871_v59 = vpop.xlane.xlu1 %2870  ;;  %3057 = vadd.xlane.f32.xlu0 %v3056_v32 }
 0x299   : > { %v2962_v48 = vmul.f32 0.03125, %v2871_v59  ;;  %v3025_v20 = vmul.f32 %v6157_v6, %v6157_v6 }
 0x29b   : > { %v6163_v26 = vsub.f32 %v6002_v22, %v2962_v48  ;;  %v3059_v13 = vsel %vm2862_vm1, %v3025_v20, 0.0 }
 0x29c   : > { %v2874_v10 = vpop.xlane.xlu1 %2873  ;;  %3060 = vadd.xlane.f32.xlu1 %v3059_v13 }
 0x29d   : > { %v2963_v5 = vmul.f32 0.03125, %v2874_v10  ;;  %v3026_v17 = vmul.f32 %v6163_v26, %v6163_v26 }
 0x29f   : > { %v6169_v19 = vsub.f32 %v6007_v9, %v2963_v5  ;;  %v3062_v57 = vsel %vm2862_vm1, %v3026_v17, 0.0 }
 0x2a0   : > { %3063 = vadd.xlane.f32.xlu0 %v3062_v57  ;;  %v2877_v28 = vpop.xlane.xlu0 %2876 }
 0x2a1   : > { %v2964_v16 = vmul.f32 0.03125, %v2877_v28  ;;  %v3027_v22 = vmul.f32 %v6169_v19, %v6169_v19 }
 0x2a3   : > { %v6175_v30 = vsub.f32 %v6012_v0, %v2964_v16  ;;  %v3065_v18 = vsel %vm2862_vm1, %v3027_v22, 0.0 }
 0x2a4   : > { %v2880_v46 = vpop.xlane.xlu1 %2879  ;;  %3066 = vadd.xlane.f32.xlu1 %v3065_v18 }
 0x2a5   : > { %v2965_v7 = vmul.f32 0.03125, %v2880_v46  ;;  %v3028_v9 = vmul.f32 %v6175_v30, %v6175_v30 }
 0x2a7   : > { %v6181_v36 = vsub.f32 %v6017_v3, %v2965_v7  ;;  %v3068_v33 = vsel %vm2862_vm1, %v3028_v9, 0.0 }
 0x2a8   : > { %3069 = vadd.xlane.f32.xlu0 %v3068_v33  ;;  %v2883_v41 = vpop.xlane.xlu0 %2882 }
 0x2a9   : > { %v2966_v11 = vmul.f32 0.03125, %v2883_v41  ;;  %v3029_v0 = vmul.f32 %v6181_v36, %v6181_v36 }
 0x2ab   : > { %v6187_v37 = vsub.f32 %v6022_v43, %v2966_v11  ;;  %v3071_v56 = vsel %vm2862_vm1, %v3029_v0, 0.0 }
 0x2ac   : > { %v2886_v52 = vpop.xlane.xlu1 %2885  ;;  %3072 = vadd.xlane.f32.xlu1 %v3071_v56 }
 0x2ad   : > { %v2967_v4 = vmul.f32 0.03125, %v2886_v52  ;;  %v3030_v3 = vmul.f32 %v6187_v37, %v6187_v37 }
 0x2af   : > { %v6193_v60 = vsub.f32 %v6027_v53, %v2967_v4  ;;  %v3074_v45 = vsel %vm2862_vm1, %v3030_v3, 0.0 }
 0x2b0   : > { %3075 = vadd.xlane.f32.xlu0 %v3074_v45  ;;  %v2889_v12 = vpop.xlane.xlu0 %2888 }
 0x2b1   : > { %v2968_v2 = vmul.f32 0.03125, %v2889_v12  ;;  %v3031_v43 = vmul.f32 %v6193_v60, %v6193_v60 }
 0x2b3   : > { %v6199_v62 = vsub.f32 %v6032_v34, %v2968_v2  ;;  %v3077_v31 = vsel %vm2862_vm1, %v3031_v43, 0.0 }
 0x2b4   : > { %v2892_v39 = vpop.xlane.xlu1 %2891  ;;  %3078 = vadd.xlane.f32.xlu1 %v3077_v31 }
 0x2b5   : > { %v2969_v32 = vmul.f32 0.03125, %v2892_v39  ;;  %v3032_v53 = vmul.f32 %v6199_v62, %v6199_v62 }
 0x2b7   : > { %v6205_v59 = vsub.f32 %v6037_v55, %v2969_v32  ;;  %v3080_v48 = vsel %vm2862_vm1, %v3032_v53, 0.0 }
 0x2b8   : > { %3081 = vadd.xlane.f32.xlu0 %v3080_v48  ;;  %v2895_v20 = vpop.xlane.xlu0 %2894 }
 0x2b9   : > { %v2970_v13 = vmul.f32 0.03125, %v2895_v20  ;;  %v3033_v34 = vmul.f32 %v6205_v59, %v6205_v59 }
 0x2bb   : > { %v6211_v10 = vsub.f32 %v6042_v54, %v2970_v13  ;;  %v3083_v5 = vsel %vm2862_vm1, %v3033_v34, 0.0 }
 0x2bc   : > { %v2898_v17 = vpop.xlane.xlu1 %2897  ;;  %3084 = vadd.xlane.f32.xlu1 %v3083_v5 }
 0x2bd   : > { %v2971_v57 = vmul.f32 0.03125, %v2898_v17  ;;  %v3034_v55 = vmul.f32 %v6211_v10, %v6211_v10 }
 0x2bf   : > { %v6217_v28 = vsub.f32 %v6047_v51, %v2971_v57  ;;  %v3086_v16 = vsel %vm2862_vm1, %v3034_v55, 0.0 }
 0x2c0   : > { %3087 = vadd.xlane.f32.xlu0 %v3086_v16  ;;  %v2901_v22 = vpop.xlane.xlu0 %2900 }
 0x2c1   : > { %v2972_v18 = vmul.f32 0.03125, %v2901_v22  ;;  %v3035_v54 = vmul.f32 %v6217_v28, %v6217_v28 }
 0x2c3   : > { %v6223_v46 = vsub.f32 %v6052_v40, %v2972_v18  ;;  %v3089_v7 = vsel %vm2862_vm1, %v3035_v54, 0.0 }
 0x2c4   : > { %v2904_v9 = vpop.xlane.xlu1 %2903  ;;  %3090 = vadd.xlane.f32.xlu1 %v3089_v7 }
 0x2c5   : > { %v2973_v33 = vmul.f32 0.03125, %v2904_v9  ;;  %v3036_v51 = vmul.f32 %v6223_v46, %v6223_v46 }
 0x2c7   : > { %v6229_v41 = vsub.f32 %v6057_v14, %v2973_v33  ;;  %v3092_v11 = vsel %vm2862_vm1, %v3036_v51, 0.0 }
 0x2c8   : > { %3093 = vadd.xlane.f32.xlu0 %v3092_v11  ;;  %v2907_v0 = vpop.xlane.xlu0 %2906 }
 0x2c9   : > { %v2974_v56 = vmul.f32 0.03125, %v2907_v0  ;;  %v3037_v40 = vmul.f32 %v6229_v41, %v6229_v41 }
 0x2cb   : > { %v6235_v52 = vsub.f32 %v6062_v29, %v2974_v56  ;;  %v3095_v4 = vsel %vm2862_vm1, %v3037_v40, 0.0 }
 0x2cc   : > { %v2910_v3 = vpop.xlane.xlu1 %2909  ;;  %3096 = vadd.xlane.f32.xlu1 %v3095_v4 }
 0x2cd   : > { %v2975_v45 = vmul.f32 0.03125, %v2910_v3  ;;  %v3038_v14 = vmul.f32 %v6235_v52, %v6235_v52 }
 0x2cf   : > { %v6241_v12 = vsub.f32 %v6067_v38, %v2975_v45  ;;  %v3098_v2 = vsel %vm2862_vm1, %v3038_v14, 0.0 }
 0x2d0   : > { %3099 = vadd.xlane.f32.xlu0 %v3098_v2  ;;  %v2913_v43 = vpop.xlane.xlu0 %2912 }
 0x2d1   : > { %v2976_v31 = vmul.f32 0.03125, %v2913_v43  ;;  %v3039_v29 = vmul.f32 %v6241_v12, %v6241_v12 }
 0x2d3   : > { %v6247_v39 = vsub.f32 %v6072_v8, %v2976_v31  ;;  %v3101_v32 = vsel %vm2862_vm1, %v3039_v29, 0.0 }
 0x2d4   : > { %v2916_v53 = vpop.xlane.xlu1 %2915  ;;  %3102 = vadd.xlane.f32.xlu1 %v3101_v32 }
 0x2d5   : > { %v2977_v48 = vmul.f32 0.03125, %v2916_v53  ;;  %v3040_v38 = vmul.f32 %v6247_v39, %v6247_v39 }
 0x2d7   : > { %v6253_v20 = vsub.f32 %v6077_v25, %v2977_v48  ;;  %v3104_v13 = vsel %vm2862_vm1, %v3040_v38, 0.0 }
 0x2d8   : > { %3105 = vadd.xlane.f32.xlu0 %v3104_v13  ;;  %v2919_v34 = vpop.xlane.xlu0 %2918 }
 0x2d9   : > { %v2978_v5 = vmul.f32 0.03125, %v2919_v34  ;;  %v3041_v8 = vmul.f32 %v6253_v20, %v6253_v20 }
 0x2db   : > { %v6259_v17 = vsub.f32 %v6082_v61, %v2978_v5  ;;  %v3107_v57 = vsel %vm2862_vm1, %v3041_v8, 0.0 }
 0x2dc   : > { %v2922_v55 = vpop.xlane.xlu1 %2921  ;;  %3108 = vadd.xlane.f32.xlu1 %v3107_v57 }
 0x2dd   : > { %v2979_v16 = vmul.f32 0.03125, %v2922_v55  ;;  %v3042_v25 = vmul.f32 %v6259_v17, %v6259_v17 }
 0x2df   : > { %v6265_v22 = vsub.f32 %v6087_v35, %v2979_v16  ;;  %v3110_v18 = vsel %vm2862_vm1, %v3042_v25, 0.0 }
 0x2e0   : > { %3111 = vadd.xlane.f32.xlu0 %v3110_v18  ;;  %v2925_v54 = vpop.xlane.xlu0 %2924 }
 0x2e1   : > { %v2980_v7 = vmul.f32 0.03125, %v2925_v54  ;;  %v3043_v61 = vmul.f32 %v6265_v22, %v6265_v22 }
 0x2e3   : > { %v6271_v9 = vsub.f32 %v6092_v1, %v2980_v7  ;;  %v3113_v33 = vsel %vm2862_vm1, %v3043_v61, 0.0 }
 0x2e4   : > { %v2928_v51 = vpop.xlane.xlu1 %2927  ;;  %3114 = vadd.xlane.f32.xlu1 %v3113_v33 }
 0x2e5   : > { %v2981_v11 = vmul.f32 0.03125, %v2928_v51  ;;  %v3044_v35 = vmul.f32 %v6271_v9, %v6271_v9 }
 0x2e7   : > { %v6277_v0 = vsub.f32 %v6097_v63, %v2981_v11  ;;  %v3116_v56 = vsel %vm2862_vm1, %v3044_v35, 0.0 }
 0x2e8   : > { %3117 = vadd.xlane.f32.xlu0 %v3116_v56  ;;  %v2931_v40 = vpop.xlane.xlu0 %2930 }
 0x2e9   : > { %v2982_v4 = vmul.f32 0.03125, %v2931_v40  ;;  %v3045_v1 = vmul.f32 %v6277_v0, %v6277_v0 }
 0x2eb   : > { %v6283_v3 = vsub.f32 %v6102_v42, %v2982_v4  ;;  %v3119_v45 = vsel %vm2862_vm1, %v3045_v1, 0.0 }
 0x2ec   : > { %v2934_v14 = vpop.xlane.xlu1 %2933  ;;  %3120 = vadd.xlane.f32.xlu1 %v3119_v45 }
 0x2ed   : > { %v2983_v2 = vmul.f32 0.03125, %v2934_v14  ;;  %v3046_v63 = vmul.f32 %v6283_v3, %v6283_v3 }
 0x2ef   : > { %v6289_v43 = vsub.f32 %v6107_v27, %v2983_v2  ;;  %v3122_v31 = vsel %vm2862_vm1, %v3046_v63, 0.0 }
 0x2f0   : > { %3123 = vadd.xlane.f32.xlu0 %v3122_v31  ;;  %v2937_v29 = vpop.xlane.xlu0 %2936 }
 0x2f1   : > { %v2984_v32 = vmul.f32 0.03125, %v2937_v29  ;;  %v3047_v42 = vmul.f32 %v6289_v43, %v6289_v43 }
 0x2f3   : > { %v6295_v53 = vsub.f32 %v6112_v21, %v2984_v32  ;;  %v3125_v48 = vsel %vm2862_vm1, %v3047_v42, 0.0 }
 0x2f4   : > { %v2940_v38 = vpop.xlane.xlu1 %2939  ;;  %3126 = vadd.xlane.f32.xlu1 %v3125_v48 }
 0x2f5   : > { %v2985_v13 = vmul.f32 0.03125, %v2940_v38  ;;  %v3048_v27 = vmul.f32 %v6295_v53, %v6295_v53 }
 0x2f7   : > { %v6301_v34 = vsub.f32 %v6117_v47, %v2985_v13  ;;  %v3128_v5 = vsel %vm2862_vm1, %v3048_v27, 0.0 }
 0x2f8   : > { %3129 = vadd.xlane.f32.xlu0 %v3128_v5  ;;  %v2943_v8 = vpop.xlane.xlu0 %2942 }
 0x2f9   : > { %v2986_v57 = vmul.f32 0.03125, %v2943_v8  ;;  %v3049_v21 = vmul.f32 %v6301_v34, %v6301_v34 }
 0x2fb   : > { %v6307_v55 = vsub.f32 %v6122_v49, %v2986_v57  ;;  %v3131_v16 = vsel %vm2862_vm1, %v3049_v21, 0.0 }
 0x2fc   : > { %v2946_v25 = vpop.xlane.xlu1 %2945  ;;  %3132 = vadd.xlane.f32.xlu1 %v3131_v16 }
 0x2fd   : > { %v2987_v18 = vmul.f32 0.03125, %v2946_v25  ;;  %v3050_v47 = vmul.f32 %v6307_v55, %v6307_v55 }
 0x2ff   : > { %v6313_v54 = vsub.f32 %v6127_v44, %v2987_v18  ;;  %v3134_v7 = vsel %vm2862_vm1, %v3050_v47, 0.0  ;;  %v7639_v18 = vld [vmem:[#allocation28_spill] sm:$0xff] }
 0x300   : > { %3135 = vadd.xlane.f32.xlu0 %v3134_v7  ;;  %v2949_v61 = vpop.xlane.xlu0 %2948  ;;  %v3282_v47 = vsub.s32 1, %v7639_v18 }
 0x301   : > { %v2988_v33 = vmul.f32 0.03125, %v2949_v61  ;;  %v3051_v49 = vmul.f32 %v6313_v54, %v6313_v54  ;;  %v3318_v61 = vsub.s32 2, %v7639_v18 }
 0x303   : > { %v6319_v51 = vsub.f32 %v6132_v58, %v2988_v33  ;;  %v3137_v11 = vsel %vm2862_vm1, %v3051_v49, 0.0 }
 0x304   : > { %v2952_v35 = vpop.xlane.xlu1 %2951  ;;  %3138 = vadd.xlane.f32.xlu1 %v3137_v11  ;;  %v4109_v11 = vld [vmem:[%s6954_s2] sm:$0xff] }
 0x305   : > { %v2989_v56 = vmul.f32 0.03125, %v2952_v35  ;;  %v3052_v44 = vmul.f32 %v6319_v51, %v6319_v51  ;;  %v6348_v35 = vrot.slane %v4109_v11, %v3282_v47 }
 0x307   : > { %v6325_v40 = vsub.f32 %v6137_v24, %v2989_v56  ;;  %v3140_v4 = vsel %vm2862_vm1, %v3052_v44, 0.0 }
 0x308   : > { %3141 = vadd.xlane.f32.xlu0 %v3140_v4  ;;  %v2955_v1 = vpop.xlane.xlu0 %2954 }
 0x309   : > { %v2990_v45 = vmul.f32 0.03125, %v2955_v1  ;;  %v3053_v58 = vmul.f32 %v6325_v40, %v6325_v40  ;;  %v6351_v1 = vrot.slane %v4109_v11, %v3318_v61 }
 0x30b   : > { %v6331_v14 = vsub.f32 %v6142_v15, %v2990_v45  ;;  %v3143_v2 = vsel %vm2862_vm1, %v3053_v58, 0.0 }
 0x30c   : > { %v2958_v63 = vpop.xlane.xlu1 %2957  ;;  %3144 = vadd.xlane.f32.xlu1 %v3143_v2 }
 0x30d   : > { %v2991_v31 = vmul.f32 0.03125, %v2958_v63  ;;  %v3054_v24 = vmul.f32 %v6331_v14, %v6331_v14 }
 0x30f   : > { %v6337_v29 = vsub.f32 %v6147_v23, %v2991_v31  ;;  %v3146_v32 = vsel %vm2862_vm1, %v3054_v24, 0.0 }
 0x310   : > { %3147 = vadd.xlane.f32.xlu0 %v3146_v32 }
 0x311   : > { %v3055_v42 = vmul.f32 %v6337_v29, %v6337_v29 }
 0x313   : > { %v3149_v15 = vsel %vm2862_vm1, %v3055_v42, 0.0 }
 0x314   : > { %3150 = vadd.xlane.f32.xlu1 %v3149_v15 }
 0x321   : > { %v3058_v48 = vpop.xlane.xlu0 %3057 }
 0x322   : > { %v3152_v38 = vmul.f32 0.03125, %v3058_v48 }
 0x324   : > { %v3184_v13 = vadd.f32 1e-05, %v3152_v38 }
 0x325   : > { %v3061_v27 = vpop.xlane.xlu1 %3060 }
 0x326   : > { %3981 = vrsqrt.f32 %v3184_v13  ;;  %v3153_v5 = vmul.f32 0.03125, %v3061_v27 }
 0x328   : > { %v3185_v8 = vadd.f32 1e-05, %v3153_v5 }
 0x329   : > { %v3064_v57 = vpop.xlane.xlu0 %3063 }
 0x32a   : > { %3983 = vrsqrt.f32 %v3185_v8  ;;  %v3154_v23 = vmul.f32 0.03125, %v3064_v57 }
 0x32c   : > { %v3186_v21 = vadd.f32 1e-05, %v3154_v23 }
 0x32d   : > { %v3067_v16 = vpop.xlane.xlu1 %3066 }
 0x32e   : > { %3985 = vrsqrt.f32 %v3186_v21  ;;  %v3155_v25 = vmul.f32 0.03125, %v3067_v16 }
 0x330   : > { %v3187_v7 = vadd.f32 1e-05, %v3155_v25 }
 0x331   : > { %v3070_v33 = vpop.xlane.xlu0 %3069 }
 0x332   : > { %3987 = vrsqrt.f32 %v3187_v7  ;;  %v3156_v49 = vmul.f32 0.03125, %v3070_v33 }
 0x333   : > { %v3982_v56 = vpop.eup %3981 }
 0x334   : > { %v3188_v44 = vadd.f32 1e-05, %v3156_v49  ;;  %v3248_v4 = vmul.f32 %v3982_v56, %v6152_v50 }
 0x335   : > { %v3073_v45 = vpop.xlane.xlu1 %3072 }
 0x336   : > { %3989 = vrsqrt.f32 %v3188_v44  ;;  %v3157_v58 = vmul.f32 0.03125, %v3073_v45  ;;  %v3284_v2 = vmul.f32 %v6348_v35, %v3248_v4 }
 0x337   : > { %v3984_v63 = vpop.eup %3983 }
 0x338   : > { %v3189_v31 = vadd.f32 1e-05, %v3157_v58  ;;  %v6355_v24 = vadd.f32 %v6351_v1, %v3284_v2  ;;  %v3249_v32 = vmul.f32 %v3984_v63, %v6157_v6 }
 0x339   : > { %v3076_v42 = vpop.xlane.xlu0 %3075 }
 0x33a   : > { %3991 = vrsqrt.f32 %v3189_v31  ;;  %v3158_v15 = vmul.f32 0.03125, %v3076_v42  ;;  %v3352_v50 = vsel %vm2862_vm1, %v6355_v24, 0.0  ;;  %v3285_v48 = vmul.f32 %v6348_v35, %v3249_v32 }
 0x33b   : > { %v3986_v38 = vpop.eup %3985  ;;  %3353 = vadd.xlane.f32.xlu0 %v3352_v50 }
 0x33c   : > { %v3190_v13 = vadd.f32 1e-05, %v3158_v15  ;;  %v6362_v27 = vadd.f32 %v6351_v1, %v3285_v48  ;;  %v3250_v5 = vmul.f32 %v3986_v38, %v6163_v26 }
 0x33d   : > { %v3079_v8 = vpop.xlane.xlu1 %3078 }
 0x33e   : > { %3993 = vrsqrt.f32 %v3190_v13  ;;  %v3159_v57 = vmul.f32 0.03125, %v3079_v8  ;;  %v3355_v6 = vsel %vm2862_vm1, %v6362_v27, 0.0  ;;  %v3286_v23 = vmul.f32 %v6348_v35, %v3250_v5 }
 0x33f   : > { %v3988_v21 = vpop.eup %3987  ;;  %3356 = vadd.xlane.f32.xlu1 %v3355_v6 }
 0x340   : > { %v3191_v16 = vadd.f32 1e-05, %v3159_v57  ;;  %v6369_v25 = vadd.f32 %v6351_v1, %v3286_v23  ;;  %v3251_v47 = vmul.f32 %v3988_v21, %v6169_v19 }
 0x341   : > { %v3082_v7 = vpop.xlane.xlu0 %3081 }
 0x342   : > { %3995 = vrsqrt.f32 %v3191_v16  ;;  %v3160_v61 = vmul.f32 0.03125, %v3082_v7  ;;  %v3358_v26 = vsel %vm2862_vm1, %v6369_v25, 0.0  ;;  %v3287_v33 = vmul.f32 %v6348_v35, %v3251_v47 }
 0x343   : > { %v3990_v49 = vpop.eup %3989  ;;  %3359 = vadd.xlane.f32.xlu0 %v3358_v26 }
 0x344   : > { %v3192_v11 = vadd.f32 1e-05, %v3160_v61  ;;  %v6376_v56 = vadd.f32 %v6351_v1, %v3287_v33  ;;  %v3252_v44 = vmul.f32 %v3990_v49, %v6175_v30 }
 0x345   : > { %v3085_v4 = vpop.xlane.xlu1 %3084 }
 0x346   : > { %3997 = vrsqrt.f32 %v3192_v11  ;;  %v3161_v45 = vmul.f32 0.03125, %v3085_v4  ;;  %v3361_v19 = vsel %vm2862_vm1, %v6376_v56, 0.0  ;;  %v3288_v58 = vmul.f32 %v6348_v35, %v3252_v44 }
 0x347   : > { %v3992_v2 = vpop.eup %3991  ;;  %3362 = vadd.xlane.f32.xlu1 %v3361_v19 }
 0x348   : > { %v3193_v63 = vadd.f32 1e-05, %v3161_v45  ;;  %v6383_v31 = vadd.f32 %v6351_v1, %v3288_v58  ;;  %v3253_v32 = vmul.f32 %v3992_v2, %v6181_v36 }
 0x349   : > { %v3088_v42 = vpop.xlane.xlu0 %3087 }
 0x34a   : > { %3999 = vrsqrt.f32 %v3193_v63  ;;  %v3162_v15 = vmul.f32 0.03125, %v3088_v42  ;;  %v3364_v30 = vsel %vm2862_vm1, %v6383_v31, 0.0  ;;  %v3289_v50 = vmul.f32 %v6348_v35, %v3253_v32 }
 0x34b   : > { %v3994_v48 = vpop.eup %3993  ;;  %3365 = vadd.xlane.f32.xlu0 %v3364_v30 }
 0x34c   : > { %v3194_v38 = vadd.f32 1e-05, %v3162_v15  ;;  %v6390_v13 = vadd.f32 %v6351_v1, %v3289_v50  ;;  %v3254_v5 = vmul.f32 %v3994_v48, %v6187_v37 }
 0x34d   : > { %v3091_v8 = vpop.xlane.xlu1 %3090 }
 0x34e   : > { %4001 = vrsqrt.f32 %v3194_v38  ;;  %v3163_v57 = vmul.f32 0.03125, %v3091_v8  ;;  %v3367_v36 = vsel %vm2862_vm1, %v6390_v13, 0.0  ;;  %v3290_v6 = vmul.f32 %v6348_v35, %v3254_v5 }
 0x34f   : > { %v3996_v23 = vpop.eup %3995  ;;  %3368 = vadd.xlane.f32.xlu1 %v3367_v36 }
 0x350   : > { %v3195_v21 = vadd.f32 1e-05, %v3163_v57  ;;  %v6397_v16 = vadd.f32 %v6351_v1, %v3290_v6  ;;  %v3255_v47 = vmul.f32 %v3996_v23, %v6193_v60 }
 0x351   : > { %v3094_v7 = vpop.xlane.xlu0 %3093 }
 0x352   : > { %4003 = vrsqrt.f32 %v3195_v21  ;;  %v3164_v61 = vmul.f32 0.03125, %v3094_v7  ;;  %v3370_v37 = vsel %vm2862_vm1, %v6397_v16, 0.0  ;;  %v3291_v26 = vmul.f32 %v6348_v35, %v3255_v47 }
 0x353   : > { %v3998_v33 = vpop.eup %3997  ;;  %3371 = vadd.xlane.f32.xlu0 %v3370_v37 }
 0x354   : > { %v3196_v49 = vadd.f32 1e-05, %v3164_v61  ;;  %v6404_v11 = vadd.f32 %v6351_v1, %v3291_v26  ;;  %v3256_v44 = vmul.f32 %v3998_v33, %v6199_v62 }
 0x355   : > { %v3097_v4 = vpop.xlane.xlu1 %3096 }
 0x356   : > { %4005 = vrsqrt.f32 %v3196_v49  ;;  %v3165_v45 = vmul.f32 0.03125, %v3097_v4  ;;  %v3373_v60 = vsel %vm2862_vm1, %v6404_v11, 0.0  ;;  %v3292_v19 = vmul.f32 %v6348_v35, %v3256_v44 }
 0x357   : > { %v4000_v58 = vpop.eup %3999  ;;  %3374 = vadd.xlane.f32.xlu1 %v3373_v60 }
 0x358   : > { %v3197_v2 = vadd.f32 1e-05, %v3165_v45  ;;  %v6411_v63 = vadd.f32 %v6351_v1, %v3292_v19  ;;  %v3257_v32 = vmul.f32 %v4000_v58, %v6205_v59 }
 0x359   : > { %v3100_v42 = vpop.xlane.xlu0 %3099 }
 0x35a   : > { %4007 = vrsqrt.f32 %v3197_v2  ;;  %v3166_v15 = vmul.f32 0.03125, %v3100_v42  ;;  %v3376_v62 = vsel %vm2862_vm1, %v6411_v63, 0.0  ;;  %v3293_v30 = vmul.f32 %v6348_v35, %v3257_v32 }
 0x35b   : > { %v4002_v50 = vpop.eup %4001  ;;  %3377 = vadd.xlane.f32.xlu0 %v3376_v62 }
 0x35c   : > { %v3198_v48 = vadd.f32 1e-05, %v3166_v15  ;;  %v6418_v38 = vadd.f32 %v6351_v1, %v3293_v30  ;;  %v3258_v5 = vmul.f32 %v4002_v50, %v6211_v10 }
 0x35d   : > { %v3103_v8 = vpop.xlane.xlu1 %3102 }
 0x35e   : > { %4009 = vrsqrt.f32 %v3198_v48  ;;  %v3167_v57 = vmul.f32 0.03125, %v3103_v8  ;;  %v3379_v59 = vsel %vm2862_vm1, %v6418_v38, 0.0  ;;  %v3294_v36 = vmul.f32 %v6348_v35, %v3258_v5 }
 0x35f   : > { %v4004_v6 = vpop.eup %4003  ;;  %3380 = vadd.xlane.f32.xlu1 %v3379_v59 }
 0x360   : > { %v3199_v23 = vadd.f32 1e-05, %v3167_v57  ;;  %v6425_v21 = vadd.f32 %v6351_v1, %v3294_v36  ;;  %v3259_v47 = vmul.f32 %v4004_v6, %v6217_v28 }
 0x361   : > { %v3106_v7 = vpop.xlane.xlu0 %3105 }
 0x362   : > { %4011 = vrsqrt.f32 %v3199_v23  ;;  %v3168_v61 = vmul.f32 0.03125, %v3106_v7  ;;  %v3382_v10 = vsel %vm2862_vm1, %v6425_v21, 0.0  ;;  %v3295_v37 = vmul.f32 %v6348_v35, %v3259_v47 }
 0x363   : > { %v4006_v26 = vpop.eup %4005  ;;  %3383 = vadd.xlane.f32.xlu0 %v3382_v10 }
 0x364   : > { %v3200_v33 = vadd.f32 1e-05, %v3168_v61  ;;  %v6432_v49 = vadd.f32 %v6351_v1, %v3295_v37  ;;  %v3260_v44 = vmul.f32 %v4006_v26, %v6223_v46 }
 0x365   : > { %v3109_v4 = vpop.xlane.xlu1 %3108 }
 0x366   : > { %4013 = vrsqrt.f32 %v3200_v33  ;;  %v3169_v45 = vmul.f32 0.03125, %v3109_v4  ;;  %v3385_v28 = vsel %vm2862_vm1, %v6432_v49, 0.0  ;;  %v3296_v60 = vmul.f32 %v6348_v35, %v3260_v44 }
 0x367   : > { %v4008_v19 = vpop.eup %4007  ;;  %3386 = vadd.xlane.f32.xlu1 %v3385_v28 }
 0x368   : > { %v3201_v58 = vadd.f32 1e-05, %v3169_v45  ;;  %v6439_v2 = vadd.f32 %v6351_v1, %v3296_v60  ;;  %v3261_v32 = vmul.f32 %v4008_v19, %v6229_v41 }
 0x369   : > { %v3112_v42 = vpop.xlane.xlu0 %3111 }
 0x36a   : > { %4015 = vrsqrt.f32 %v3201_v58  ;;  %v3170_v15 = vmul.f32 0.03125, %v3112_v42  ;;  %v3388_v46 = vsel %vm2862_vm1, %v6439_v2, 0.0  ;;  %v3297_v62 = vmul.f32 %v6348_v35, %v3261_v32 }
 0x36b   : > { %v4010_v30 = vpop.eup %4009  ;;  %3389 = vadd.xlane.f32.xlu0 %v3388_v46 }
 0x36c   : > { %v3202_v50 = vadd.f32 1e-05, %v3170_v15  ;;  %v6446_v48 = vadd.f32 %v6351_v1, %v3297_v62  ;;  %v3262_v5 = vmul.f32 %v4010_v30, %v6235_v52 }
 0x36d   : > { %v3115_v8 = vpop.xlane.xlu1 %3114 }
 0x36e   : > { %4017 = vrsqrt.f32 %v3202_v50  ;;  %v3171_v57 = vmul.f32 0.03125, %v3115_v8  ;;  %v3391_v41 = vsel %vm2862_vm1, %v6446_v48, 0.0  ;;  %v3298_v59 = vmul.f32 %v6348_v35, %v3262_v5 }
 0x36f   : > { %v4012_v36 = vpop.eup %4011  ;;  %3392 = vadd.xlane.f32.xlu1 %v3391_v41 }
 0x370   : > { %v3203_v6 = vadd.f32 1e-05, %v3171_v57  ;;  %v6453_v23 = vadd.f32 %v6351_v1, %v3298_v59  ;;  %v3263_v47 = vmul.f32 %v4012_v36, %v6241_v12 }
 0x371   : > { %v3118_v7 = vpop.xlane.xlu0 %3117 }
 0x372   : > { %4019 = vrsqrt.f32 %v3203_v6  ;;  %v3172_v61 = vmul.f32 0.03125, %v3118_v7  ;;  %v3394_v52 = vsel %vm2862_vm1, %v6453_v23, 0.0  ;;  %v3299_v10 = vmul.f32 %v6348_v35, %v3263_v47 }
 0x373   : > { %v4014_v37 = vpop.eup %4013  ;;  %3395 = vadd.xlane.f32.xlu0 %v3394_v52 }
 0x374   : > { %v3204_v26 = vadd.f32 1e-05, %v3172_v61  ;;  %v6460_v33 = vadd.f32 %v6351_v1, %v3299_v10  ;;  %v3264_v44 = vmul.f32 %v4014_v37, %v6247_v39 }
 0x375   : > { %v3121_v4 = vpop.xlane.xlu1 %3120 }
 0x376   : > { %4021 = vrsqrt.f32 %v3204_v26  ;;  %v3173_v45 = vmul.f32 0.03125, %v3121_v4  ;;  %v3397_v12 = vsel %vm2862_vm1, %v6460_v33, 0.0  ;;  %v3300_v28 = vmul.f32 %v6348_v35, %v3264_v44 }
 0x377   : > { %v4016_v60 = vpop.eup %4015  ;;  %3398 = vadd.xlane.f32.xlu1 %v3397_v12 }
 0x378   : > { %v3205_v19 = vadd.f32 1e-05, %v3173_v45  ;;  %v6467_v58 = vadd.f32 %v6351_v1, %v3300_v28  ;;  %v3265_v32 = vmul.f32 %v4016_v60, %v6253_v20 }
 0x379   : > { %v3124_v42 = vpop.xlane.xlu0 %3123 }
 0x37a   : > { %4023 = vrsqrt.f32 %v3205_v19  ;;  %v3174_v15 = vmul.f32 0.03125, %v3124_v42  ;;  %v3400_v39 = vsel %vm2862_vm1, %v6467_v58, 0.0  ;;  %v3301_v46 = vmul.f32 %v6348_v35, %v3265_v32 }
 0x37b   : > { %v4018_v62 = vpop.eup %4017  ;;  %3401 = vadd.xlane.f32.xlu0 %v3400_v39 }
 0x37c   : > { %v3206_v30 = vadd.f32 1e-05, %v3174_v15  ;;  %v6474_v50 = vadd.f32 %v6351_v1, %v3301_v46  ;;  %v3266_v5 = vmul.f32 %v4018_v62, %v6259_v17 }
 0x37d   : > { %v3127_v8 = vpop.xlane.xlu1 %3126 }
 0x37e   : > { %4025 = vrsqrt.f32 %v3206_v30  ;;  %v3175_v57 = vmul.f32 0.03125, %v3127_v8  ;;  %v3403_v20 = vsel %vm2862_vm1, %v6474_v50, 0.0  ;;  %v3302_v41 = vmul.f32 %v6348_v35, %v3266_v5 }
 0x37f   : > { %v4020_v59 = vpop.eup %4019  ;;  %3404 = vadd.xlane.f32.xlu1 %v3403_v20 }
 0x380   : > { %v3207_v36 = vadd.f32 1e-05, %v3175_v57  ;;  %v6481_v6 = vadd.f32 %v6351_v1, %v3302_v41  ;;  %v3267_v47 = vmul.f32 %v4020_v59, %v6265_v22 }
 0x381   : > { %v3130_v7 = vpop.xlane.xlu0 %3129 }
 0x382   : > { %4027 = vrsqrt.f32 %v3207_v36  ;;  %v3176_v61 = vmul.f32 0.03125, %v3130_v7  ;;  %v3406_v17 = vsel %vm2862_vm1, %v6481_v6, 0.0  ;;  %v3303_v52 = vmul.f32 %v6348_v35, %v3267_v47 }
 0x383   : > { %v4022_v10 = vpop.eup %4021  ;;  %3407 = vadd.xlane.f32.xlu0 %v3406_v17 }
 0x384   : > { %v3208_v37 = vadd.f32 1e-05, %v3176_v61  ;;  %v6488_v26 = vadd.f32 %v6351_v1, %v3303_v52  ;;  %v3268_v44 = vmul.f32 %v4022_v10, %v6271_v9 }
 0x385   : > { %v3133_v4 = vpop.xlane.xlu1 %3132 }
 0x386   : > { %4029 = vrsqrt.f32 %v3208_v37  ;;  %v3177_v45 = vmul.f32 0.03125, %v3133_v4  ;;  %v3409_v22 = vsel %vm2862_vm1, %v6488_v26, 0.0  ;;  %v3304_v12 = vmul.f32 %v6348_v35, %v3268_v44 }
 0x387   : > { %v4024_v28 = vpop.eup %4023  ;;  %3410 = vadd.xlane.f32.xlu1 %v3409_v22 }
 0x388   : > { %v3209_v60 = vadd.f32 1e-05, %v3177_v45  ;;  %v6495_v19 = vadd.f32 %v6351_v1, %v3304_v12  ;;  %v3269_v32 = vmul.f32 %v4024_v28, %v6277_v0 }
 0x389   : > { %v3136_v42 = vpop.xlane.xlu0 %3135 }
 0x38a   : > { %4031 = vrsqrt.f32 %v3209_v60  ;;  %v3178_v15 = vmul.f32 0.03125, %v3136_v42  ;;  %v3412_v9 = vsel %vm2862_vm1, %v6495_v19, 0.0  ;;  %v3305_v39 = vmul.f32 %v6348_v35, %v3269_v32 }
 0x38b   : > { %v4026_v46 = vpop.eup %4025  ;;  %3413 = vadd.xlane.f32.xlu0 %v3412_v9 }
 0x38c   : > { %v3210_v62 = vadd.f32 1e-05, %v3178_v15  ;;  %v6502_v30 = vadd.f32 %v6351_v1, %v3305_v39  ;;  %v3270_v5 = vmul.f32 %v4026_v46, %v6283_v3 }
 0x38d   : > { %v3139_v8 = vpop.xlane.xlu1 %3138 }
 0x38e   : > { %4033 = vrsqrt.f32 %v3210_v62  ;;  %v3179_v57 = vmul.f32 0.03125, %v3139_v8  ;;  %v3415_v0 = vsel %vm2862_vm1, %v6502_v30, 0.0  ;;  %v3306_v20 = vmul.f32 %v6348_v35, %v3270_v5 }
 0x38f   : > { %v4028_v41 = vpop.eup %4027  ;;  %3416 = vadd.xlane.f32.xlu1 %v3415_v0 }
 0x390   : > { %v3211_v59 = vadd.f32 1e-05, %v3179_v57  ;;  %v6509_v36 = vadd.f32 %v6351_v1, %v3306_v20  ;;  %v3271_v47 = vmul.f32 %v4028_v41, %v6289_v43 }
 0x391   : > { %v3142_v7 = vpop.xlane.xlu0 %3141 }
 0x392   : > { %4035 = vrsqrt.f32 %v3211_v59  ;;  %v3180_v61 = vmul.f32 0.03125, %v3142_v7  ;;  %v3418_v3 = vsel %vm2862_vm1, %v6509_v36, 0.0  ;;  %v3307_v17 = vmul.f32 %v6348_v35, %v3271_v47 }
 0x393   : > { %v4030_v52 = vpop.eup %4029  ;;  %3419 = vadd.xlane.f32.xlu0 %v3418_v3 }
 0x394   : > { %v3212_v10 = vadd.f32 1e-05, %v3180_v61  ;;  %v6516_v37 = vadd.f32 %v6351_v1, %v3307_v17  ;;  %v3272_v44 = vmul.f32 %v4030_v52, %v6295_v53 }
 0x395   : > { %v3145_v4 = vpop.xlane.xlu1 %3144 }
 0x396   : > { %4037 = vrsqrt.f32 %v3212_v10  ;;  %v3181_v45 = vmul.f32 0.03125, %v3145_v4  ;;  %v3421_v43 = vsel %vm2862_vm1, %v6516_v37, 0.0  ;;  %v3308_v22 = vmul.f32 %v6348_v35, %v3272_v44 }
 0x397   : > { %v4032_v12 = vpop.eup %4031  ;;  %3422 = vadd.xlane.f32.xlu1 %v3421_v43 }
 0x398   : > { %v3213_v28 = vadd.f32 1e-05, %v3181_v45  ;;  %v6523_v60 = vadd.f32 %v6351_v1, %v3308_v22  ;;  %v3273_v32 = vmul.f32 %v4032_v12, %v6301_v34 }
 0x399   : > { %v3148_v42 = vpop.xlane.xlu0 %3147 }
 0x39a   : > { %4039 = vrsqrt.f32 %v3213_v28  ;;  %v3182_v15 = vmul.f32 0.03125, %v3148_v42  ;;  %v3424_v53 = vsel %vm2862_vm1, %v6523_v60, 0.0  ;;  %v3309_v9 = vmul.f32 %v6348_v35, %v3273_v32 }
 0x39b   : > { %v4034_v39 = vpop.eup %4033  ;;  %3425 = vadd.xlane.f32.xlu0 %v3424_v53 }
 0x39c   : > { %v3214_v46 = vadd.f32 1e-05, %v3182_v15  ;;  %v6530_v62 = vadd.f32 %v6351_v1, %v3309_v9  ;;  %v3274_v5 = vmul.f32 %v4034_v39, %v6307_v55 }
 0x39d   : > { %v3151_v8 = vpop.xlane.xlu1 %3150 }
 0x39e   : > { %4041 = vrsqrt.f32 %v3214_v46  ;;  %v3183_v57 = vmul.f32 0.03125, %v3151_v8  ;;  %v3427_v34 = vsel %vm2862_vm1, %v6530_v62, 0.0  ;;  %v3310_v0 = vmul.f32 %v6348_v35, %v3274_v5 }
 0x39f   : > { %v4036_v20 = vpop.eup %4035  ;;  %3428 = vadd.xlane.f32.xlu1 %v3427_v34 }
 0x3a0   : > { %v3215_v41 = vadd.f32 1e-05, %v3183_v57  ;;  %v6537_v59 = vadd.f32 %v6351_v1, %v3310_v0  ;;  %v3275_v47 = vmul.f32 %v4036_v20, %v6313_v54 }
 0x3a2   : > { %4043 = vrsqrt.f32 %v3215_v41  ;;  %v3430_v55 = vsel %vm2862_vm1, %v6537_v59, 0.0  ;;  %v3311_v7 = vmul.f32 %v6348_v35, %v3275_v47 }
 0x3a3   : > { %v4038_v61 = vpop.eup %4037  ;;  %3431 = vadd.xlane.f32.xlu0 %v3430_v55 }
 0x3a4   : > { %v6544_v3 = vadd.f32 %v6351_v1, %v3311_v7  ;;  %v3276_v17 = vmul.f32 %v4038_v61, %v6319_v51 }
 0x3a6   : > { %v3433_v52 = vsel %vm2862_vm1, %v6544_v3, 0.0  ;;  %v3312_v10 = vmul.f32 %v6348_v35, %v3276_v17 }
 0x3a7   : > { %v4040_v44 = vpop.eup %4039  ;;  %3434 = vadd.xlane.f32.xlu1 %v3433_v52 }
 0x3a8   : > { %v6551_v54 = vadd.f32 %v6351_v1, %v3312_v10  ;;  %v3277_v4 = vmul.f32 %v4040_v44, %v6325_v40 }
 0x3aa   : > { %v3436_v45 = vsel %vm2862_vm1, %v6551_v54, 0.0  ;;  %v3313_v43 = vmul.f32 %v6348_v35, %v3277_v4 }
 0x3ab   : > { %v4042_v22 = vpop.eup %4041  ;;  %3437 = vadd.xlane.f32.xlu0 %v3436_v45 }
 0x3ac   : > { %v6558_v51 = vadd.f32 %v6351_v1, %v3313_v43  ;;  %v3278_v12 = vmul.f32 %v4042_v22, %v6331_v14 }
 0x3ae   : > { %v3439_v28 = vsel %vm2862_vm1, %v6558_v51, 0.0  ;;  %v3314_v32 = vmul.f32 %v6348_v35, %v3278_v12 }
 0x3af   : > { %v4044_v42 = vpop.eup %4043  ;;  %3440 = vadd.xlane.f32.xlu1 %v3439_v28 }
 0x3b0   : > { %v6565_v40 = vadd.f32 %v6351_v1, %v3314_v32  ;;  %v3279_v15 = vmul.f32 %v4044_v42, %v6337_v29 }
 0x3b2   : > { %v3442_v53 = vsel %vm2862_vm1, %v6565_v40, 0.0  ;;  %v3315_v9 = vmul.f32 %v6348_v35, %v3279_v15 }
 0x3b3   : > { %3443 = vadd.xlane.f32.xlu0 %v3442_v53 }
 0x3b4   : > { %v6572_v14 = vadd.f32 %v6351_v1, %v3315_v9 }
 0x3b6   : > { %v3445_v39 = vsel %vm2862_vm1, %v6572_v14, 0.0 }
 0x3b7   : > { %3446 = vadd.xlane.f32.xlu1 %v3445_v39 }
 0x3c4   : > { %v3354_v46 = vpop.xlane.xlu0 %3353 }
 0x3c5   : > { %v3448_v5 = vmul.f32 0.03125, %v3354_v46 }
 0x3c7   : > { %v6577_v8 = vsub.f32 %v6355_v24, %v3448_v5 }
 0x3c8   : > { %v3357_v57 = vpop.xlane.xlu1 %3356 }
 0x3c9   : > { %v3449_v29 = vmul.f32 0.03125, %v3357_v57  ;;  %v3512_v34 = vmul.f32 %v6577_v8, %v6577_v8 }
 0x3cb   : > { %v6582_v35 = vsub.f32 %v6362_v27, %v3449_v29  ;;  %v3544_v1 = vsel %vm2862_vm1, %v3512_v34, 0.0 }
 0x3cc   : > { %3545 = vadd.xlane.f32.xlu0 %v3544_v1  ;;  %v3360_v0 = vpop.xlane.xlu0 %3359 }
 0x3cd   : > { %v3450_v20 = vmul.f32 0.03125, %v3360_v0  ;;  %v3513_v41 = vmul.f32 %v6582_v35, %v6582_v35 }
 0x3cf   : > { %v6588_v47 = vsub.f32 %v6369_v25, %v3450_v20  ;;  %v3547_v24 = vsel %vm2862_vm1, %v3513_v41, 0.0 }
 0x3d0   : > { %3548 = vadd.xlane.f32.xlu1 %v3547_v24  ;;  %v3363_v55 = vpop.xlane.xlu1 %3362 }
 0x3d1   : > { %v3451_v7 = vmul.f32 0.03125, %v3363_v55  ;;  %v3514_v27 = vmul.f32 %v6588_v47, %v6588_v47 }
 0x3d3   : > { %v6594_v61 = vsub.f32 %v6376_v56, %v3451_v7  ;;  %v3550_v17 = vsel %vm2862_vm1, %v3514_v27, 0.0 }
 0x3d4   : > { %3551 = vadd.xlane.f32.xlu0 %v3550_v17  ;;  %v3366_v52 = vpop.xlane.xlu0 %3365 }
 0x3d5   : > { %v3452_v10 = vmul.f32 0.03125, %v3366_v52  ;;  %v3515_v25 = vmul.f32 %v6594_v61, %v6594_v61 }
 0x3d7   : > { %v6600_v44 = vsub.f32 %v6383_v31, %v3452_v10  ;;  %v3553_v4 = vsel %vm2862_vm1, %v3515_v25, 0.0 }
 0x3d8   : > { %3554 = vadd.xlane.f32.xlu1 %v3553_v4  ;;  %v3369_v45 = vpop.xlane.xlu1 %3368 }
 0x3d9   : > { %v3453_v43 = vmul.f32 0.03125, %v3369_v45  ;;  %v3516_v56 = vmul.f32 %v6600_v44, %v6600_v44 }
 0x3db   : > { %v6606_v22 = vsub.f32 %v6390_v13, %v3453_v43  ;;  %v3556_v12 = vsel %vm2862_vm1, %v3516_v56, 0.0 }
 0x3dc   : > { %3557 = vadd.xlane.f32.xlu0 %v3556_v12  ;;  %v3372_v28 = vpop.xlane.xlu0 %3371 }
 0x3dd   : > { %v3454_v32 = vmul.f32 0.03125, %v3372_v28  ;;  %v3517_v31 = vmul.f32 %v6606_v22, %v6606_v22 }
 0x3df   : > { %v6612_v42 = vsub.f32 %v6397_v16, %v3454_v32  ;;  %v3559_v15 = vsel %vm2862_vm1, %v3517_v31, 0.0 }
 0x3e0   : > { %3560 = vadd.xlane.f32.xlu1 %v3559_v15  ;;  %v3375_v53 = vpop.xlane.xlu1 %3374 }
 0x3e1   : > { %v3455_v9 = vmul.f32 0.03125, %v3375_v53  ;;  %v3518_v13 = vmul.f32 %v6612_v42, %v6612_v42 }
 0x3e3   : > { %v6618_v39 = vsub.f32 %v6404_v11, %v3455_v9  ;;  %v3562_v46 = vsel %vm2862_vm1, %v3518_v13, 0.0 }
 0x3e4   : > { %3563 = vadd.xlane.f32.xlu0 %v3562_v46  ;;  %v3378_v5 = vpop.xlane.xlu0 %3377 }
 0x3e5   : > { %v3456_v57 = vmul.f32 0.03125, %v3378_v5  ;;  %v3519_v16 = vmul.f32 %v6618_v39, %v6618_v39 }
 0x3e7   : > { %v6624_v29 = vsub.f32 %v6411_v63, %v3456_v57  ;;  %v3565_v34 = vsel %vm2862_vm1, %v3519_v16, 0.0 }
 0x3e8   : > { %3566 = vadd.xlane.f32.xlu1 %v3565_v34  ;;  %v3381_v1 = vpop.xlane.xlu1 %3380 }
 0x3e9   : > { %v3457_v0 = vmul.f32 0.03125, %v3381_v1  ;;  %v3520_v11 = vmul.f32 %v6624_v29, %v6624_v29 }
 0x3eb   : > { %v6630_v20 = vsub.f32 %v6418_v38, %v3457_v0  ;;  %v3568_v41 = vsel %vm2862_vm1, %v3520_v11, 0.0 }
 0x3ec   : > { %3569 = vadd.xlane.f32.xlu0 %v3568_v41  ;;  %v3384_v24 = vpop.xlane.xlu0 %3383 }
 0x3ed   : > { %v3458_v55 = vmul.f32 0.03125, %v3384_v24  ;;  %v3521_v63 = vmul.f32 %v6630_v20, %v6630_v20 }
 0x3ef   : > { %v6636_v7 = vsub.f32 %v6425_v21, %v3458_v55  ;;  %v3571_v27 = vsel %vm2862_vm1, %v3521_v63, 0.0 }
 0x3f0   : > { %3572 = vadd.xlane.f32.xlu1 %v3571_v27  ;;  %v3387_v17 = vpop.xlane.xlu1 %3386 }
 0x3f1   : > { %v3459_v52 = vmul.f32 0.03125, %v3387_v17  ;;  %v3522_v38 = vmul.f32 %v6636_v7, %v6636_v7 }
 0x3f3   : > { %v6642_v10 = vsub.f32 %v6432_v49, %v3459_v52  ;;  %v3574_v25 = vsel %vm2862_vm1, %v3522_v38, 0.0 }
 0x3f4   : > { %3575 = vadd.xlane.f32.xlu0 %v3574_v25  ;;  %v3390_v4 = vpop.xlane.xlu0 %3389 }
 0x3f5   : > { %v3460_v45 = vmul.f32 0.03125, %v3390_v4  ;;  %v3523_v21 = vmul.f32 %v6642_v10, %v6642_v10 }
 0x3f7   : > { %v6648_v43 = vsub.f32 %v6439_v2, %v3460_v45  ;;  %v3577_v56 = vsel %vm2862_vm1, %v3523_v21, 0.0 }
 0x3f8   : > { %3578 = vadd.xlane.f32.xlu1 %v3577_v56  ;;  %v3393_v12 = vpop.xlane.xlu1 %3392 }
 0x3f9   : > { %v3461_v28 = vmul.f32 0.03125, %v3393_v12  ;;  %v3524_v49 = vmul.f32 %v6648_v43, %v6648_v43 }
 0x3fb   : > { %v6654_v32 = vsub.f32 %v6446_v48, %v3461_v28  ;;  %v3580_v31 = vsel %vm2862_vm1, %v3524_v49, 0.0 }
 0x3fc   : > { %3581 = vadd.xlane.f32.xlu0 %v3580_v31  ;;  %v3396_v15 = vpop.xlane.xlu0 %3395 }
 0x3fd   : > { %v3462_v53 = vmul.f32 0.03125, %v3396_v15  ;;  %v3525_v2 = vmul.f32 %v6654_v32, %v6654_v32 }
 0x3ff   : > { %v6660_v9 = vsub.f32 %v6453_v23, %v3462_v53  ;;  %v3583_v13 = vsel %vm2862_vm1, %v3525_v2, 0.0 }
 0x400   : > { %3584 = vadd.xlane.f32.xlu1 %v3583_v13  ;;  %v3399_v46 = vpop.xlane.xlu1 %3398 }
 0x401   : > { %v3463_v5 = vmul.f32 0.03125, %v3399_v46  ;;  %v3526_v48 = vmul.f32 %v6660_v9, %v6660_v9 }
 0x403   : > { %v6666_v57 = vsub.f32 %v6460_v33, %v3463_v5  ;;  %v3586_v16 = vsel %vm2862_vm1, %v3526_v48, 0.0 }
 0x404   : > { %3587 = vadd.xlane.f32.xlu0 %v3586_v16  ;;  %v3402_v34 = vpop.xlane.xlu0 %3401 }
 0x405   : > { %v3464_v1 = vmul.f32 0.03125, %v3402_v34  ;;  %v3527_v23 = vmul.f32 %v6666_v57, %v6666_v57 }
 0x407   : > { %v6672_v0 = vsub.f32 %v6467_v58, %v3464_v1  ;;  %v3589_v11 = vsel %vm2862_vm1, %v3527_v23, 0.0 }
 0x408   : > { %3590 = vadd.xlane.f32.xlu1 %v3589_v11  ;;  %v3405_v41 = vpop.xlane.xlu1 %3404 }
 0x409   : > { %v3465_v24 = vmul.f32 0.03125, %v3405_v41  ;;  %v3528_v33 = vmul.f32 %v6672_v0, %v6672_v0 }
 0x40b   : > { %v6678_v55 = vsub.f32 %v6474_v50, %v3465_v24  ;;  %v3592_v63 = vsel %vm2862_vm1, %v3528_v33, 0.0 }
 0x40c   : > { %3593 = vadd.xlane.f32.xlu0 %v3592_v63  ;;  %v3408_v27 = vpop.xlane.xlu0 %3407 }
 0x40d   : > { %v3466_v17 = vmul.f32 0.03125, %v3408_v27  ;;  %v3529_v58 = vmul.f32 %v6678_v55, %v6678_v55 }
 0x40f   : > { %v6684_v52 = vsub.f32 %v6481_v6, %v3466_v17  ;;  %v3595_v38 = vsel %vm2862_vm1, %v3529_v58, 0.0 }
 0x410   : > { %3596 = vadd.xlane.f32.xlu1 %v3595_v38  ;;  %v3411_v25 = vpop.xlane.xlu1 %3410 }
 0x411   : > { %v3467_v4 = vmul.f32 0.03125, %v3411_v25  ;;  %v3530_v50 = vmul.f32 %v6684_v52, %v6684_v52 }
 0x413   : > { %v6690_v45 = vsub.f32 %v6488_v26, %v3467_v4  ;;  %v3598_v21 = vsel %vm2862_vm1, %v3530_v50, 0.0 }
 0x414   : > { %3599 = vadd.xlane.f32.xlu0 %v3598_v21  ;;  %v3414_v56 = vpop.xlane.xlu0 %3413 }
 0x415   : > { %v3468_v12 = vmul.f32 0.03125, %v3414_v56  ;;  %v3531_v6 = vmul.f32 %v6690_v45, %v6690_v45 }
 0x417   : > { %v6696_v28 = vsub.f32 %v6495_v19, %v3468_v12  ;;  %v3601_v49 = vsel %vm2862_vm1, %v3531_v6, 0.0 }
 0x418   : > { %3602 = vadd.xlane.f32.xlu1 %v3601_v49  ;;  %v3417_v31 = vpop.xlane.xlu1 %3416 }
 0x419   : > { %v3469_v15 = vmul.f32 0.03125, %v3417_v31  ;;  %v3532_v26 = vmul.f32 %v6696_v28, %v6696_v28 }
 0x41b   : > { %v6702_v53 = vsub.f32 %v6502_v30, %v3469_v15  ;;  %v3604_v2 = vsel %vm2862_vm1, %v3532_v26, 0.0 }
 0x41c   : > { %3605 = vadd.xlane.f32.xlu0 %v3604_v2  ;;  %v3420_v13 = vpop.xlane.xlu0 %3419 }
 0x41d   : > { %v3470_v46 = vmul.f32 0.03125, %v3420_v13  ;;  %v3533_v19 = vmul.f32 %v6702_v53, %v6702_v53 }
 0x41f   : > { %v6708_v5 = vsub.f32 %v6509_v36, %v3470_v46  ;;  %v3607_v48 = vsel %vm2862_vm1, %v3533_v19, 0.0 }
 0x420   : > { %3608 = vadd.xlane.f32.xlu1 %v3607_v48  ;;  %v3423_v16 = vpop.xlane.xlu1 %3422 }
 0x421   : > { %v3471_v34 = vmul.f32 0.03125, %v3423_v16  ;;  %v3534_v30 = vmul.f32 %v6708_v5, %v6708_v5 }
 0x423   : > { %v6714_v1 = vsub.f32 %v6516_v37, %v3471_v34  ;;  %v3610_v23 = vsel %vm2862_vm1, %v3534_v30, 0.0 }
 0x424   : > { %3611 = vadd.xlane.f32.xlu0 %v3610_v23  ;;  %v3426_v11 = vpop.xlane.xlu0 %3425 }
 0x425   : > { %v3472_v41 = vmul.f32 0.03125, %v3426_v11  ;;  %v3535_v36 = vmul.f32 %v6714_v1, %v6714_v1 }
 0x427   : > { %v6720_v24 = vsub.f32 %v6523_v60, %v3472_v41  ;;  %v3613_v33 = vsel %vm2862_vm1, %v3535_v36, 0.0 }
 0x428   : > { %3614 = vadd.xlane.f32.xlu1 %v3613_v33  ;;  %v3429_v63 = vpop.xlane.xlu1 %3428 }
 0x429   : > { %v3473_v27 = vmul.f32 0.03125, %v3429_v63  ;;  %v3536_v37 = vmul.f32 %v6720_v24, %v6720_v24 }
 0x42b   : > { %v6726_v17 = vsub.f32 %v6530_v62, %v3473_v27  ;;  %v3616_v58 = vsel %vm2862_vm1, %v3536_v37, 0.0 }
 0x42c   : > { %3617 = vadd.xlane.f32.xlu0 %v3616_v58  ;;  %v3432_v38 = vpop.xlane.xlu0 %3431 }
 0x42d   : > { %v3474_v25 = vmul.f32 0.03125, %v3432_v38  ;;  %v3537_v60 = vmul.f32 %v6726_v17, %v6726_v17 }
 0x42f   : > { %v6732_v4 = vsub.f32 %v6537_v59, %v3474_v25  ;;  %v3619_v50 = vsel %vm2862_vm1, %v3537_v60, 0.0 }
 0x430   : > { %3620 = vadd.xlane.f32.xlu1 %v3619_v50  ;;  %v3435_v21 = vpop.xlane.xlu1 %3434 }
 0x431   : > { %v3475_v56 = vmul.f32 0.03125, %v3435_v21  ;;  %v3538_v62 = vmul.f32 %v6732_v4, %v6732_v4 }
 0x433   : > { %v6738_v12 = vsub.f32 %v6544_v3, %v3475_v56  ;;  %v3622_v6 = vsel %vm2862_vm1, %v3538_v62, 0.0  ;;  %v3770_v56 = vsub.s32 3, %v7639_v18 }
 0x434   : > { %3623 = vadd.xlane.f32.xlu0 %v3622_v6  ;;  %v3438_v49 = vpop.xlane.xlu0 %3437  ;;  %v3806_v6 = vsub.s32 4, %v7639_v18 }
 0x435   : > { %v3476_v31 = vmul.f32 0.03125, %v3438_v49  ;;  %v3539_v59 = vmul.f32 %v6738_v12, %v6738_v12 }
 0x437   : > { %v6744_v15 = vsub.f32 %v6551_v54, %v3476_v31  ;;  %v3625_v26 = vsel %vm2862_vm1, %v3539_v59, 0.0  ;;  %v4110_v59 = vld [vmem:[%s6954_s2] sm:$0xff] }
 0x438   : > { %3626 = vadd.xlane.f32.xlu1 %v3625_v26  ;;  %v3441_v2 = vpop.xlane.xlu1 %3440  ;;  %v6774_v26 = vrot.slane %v4110_v59, %v3770_v56 }
 0x439   : > { %v3477_v13 = vmul.f32 0.03125, %v3441_v2  ;;  %v3540_v3 = vmul.f32 %v6744_v15, %v6744_v15 }
 0x43b   : > { %v6750_v46 = vsub.f32 %v6558_v51, %v3477_v13  ;;  %v3628_v19 = vsel %vm2862_vm1, %v3540_v3, 0.0  ;;  %v6776_v3 = vrot.slane %v4110_v59, %v3806_v6 }
 0x43c   : > { %3629 = vadd.xlane.f32.xlu0 %v3628_v19  ;;  %v3444_v48 = vpop.xlane.xlu0 %3443 }
 0x43d   : > { %v3478_v16 = vmul.f32 0.03125, %v3444_v48  ;;  %v3541_v54 = vmul.f32 %v6750_v46, %v6750_v46 }
 0x43f   : > { %v6756_v34 = vsub.f32 %v6565_v40, %v3478_v16  ;;  %v3631_v30 = vsel %vm2862_vm1, %v3541_v54, 0.0 }
 0x440   : > { %3632 = vadd.xlane.f32.xlu1 %v3631_v30  ;;  %v3447_v23 = vpop.xlane.xlu1 %3446 }
 0x441   : > { %v3479_v11 = vmul.f32 0.03125, %v3447_v23  ;;  %v3542_v51 = vmul.f32 %v6756_v34, %v6756_v34 }
 0x443   : > { %v6762_v41 = vsub.f32 %v6572_v14, %v3479_v11  ;;  %v3634_v36 = vsel %vm2862_vm1, %v3542_v51, 0.0 }
 0x444   : > { %3635 = vadd.xlane.f32.xlu0 %v3634_v36 }
 0x445   : > { %v3543_v33 = vmul.f32 %v6762_v41, %v6762_v41 }
 0x447   : > { %v3637_v40 = vsel %vm2862_vm1, %v3543_v33, 0.0 }
 0x448   : > { %3638 = vadd.xlane.f32.xlu1 %v3637_v40 }
 0x455   : > { %v3546_v63 = vpop.xlane.xlu0 %3545 }
 0x456   : > { %v3640_v27 = vmul.f32 0.03125, %v3546_v63 }
 0x458   : > { %v3672_v37 = vadd.f32 1e-05, %v3640_v27 }
 0x459   : > { %v3549_v58 = vpop.xlane.xlu1 %3548 }
 0x45a   : > { %4045 = vrsqrt.f32 %v3672_v37  ;;  %v3641_v38 = vmul.f32 0.03125, %v3549_v58 }
 0x45c   : > { %v3673_v25 = vadd.f32 1e-05, %v3641_v38 }
 0x45d   : > { %v3552_v60 = vpop.xlane.xlu0 %3551 }
 0x45e   : > { %4047 = vrsqrt.f32 %v3673_v25  ;;  %v3642_v14 = vmul.f32 0.03125, %v3552_v60 }
 0x460   : > { %v3674_v50 = vadd.f32 1e-05, %v3642_v14 }
 0x461   : > { %v3555_v21 = vpop.xlane.xlu1 %3554 }
 0x462   : > { %4049 = vrsqrt.f32 %v3674_v50  ;;  %v3643_v62 = vmul.f32 0.03125, %v3555_v21 }
 0x464   : > { %v3675_v49 = vadd.f32 1e-05, %v3643_v62 }
 0x465   : > { %v3558_v31 = vpop.xlane.xlu0 %3557 }
 0x466   : > { %4051 = vrsqrt.f32 %v3675_v49  ;;  %v3644_v2 = vmul.f32 0.03125, %v3558_v31 }
 0x467   : > { %v4046_v13 = vpop.eup %4045 }
 0x468   : > { %v3736_v19 = vmul.f32 %v4046_v13, %v6577_v8  ;;  %v3676_v48 = vadd.f32 1e-05, %v3644_v2 }
 0x469   : > { %v3561_v16 = vpop.xlane.xlu1 %3560 }
 0x46a   : > { %v3772_v18 = vmul.f32 %v6774_v26, %v3736_v19  ;;  %4053 = vrsqrt.f32 %v3676_v48  ;;  %v3645_v54 = vmul.f32 0.03125, %v3561_v16 }
 0x46b   : > { %v4048_v30 = vpop.eup %4047 }
 0x46c   : > { %v3808_v23 = vadd.f32 %v6776_v3, %v3772_v18  ;;  %v3737_v11 = vmul.f32 %v4048_v30, %v6582_v35  ;;  %v3677_v51 = vadd.f32 1e-05, %v3645_v54 }
 0x46d   : > { %v3564_v8 = vpop.xlane.xlu0 %3563 }
 0x46e   : > { %3840 = vst.msk [vmem:[%s6783_s29] sm:$0xff] %vm2862_vm1, %v3808_v23  ;;  %v3773_v36 = vmul.f32 %v6774_v26, %v3737_v11  ;;  %4055 = vrsqrt.f32 %v3677_v51  ;;  %v3646_v33 = vmul.f32 0.03125, %v3564_v8 }
 0x46f   : > { %v4050_v40 = vpop.eup %4049 }
 0x470   : > { %v3809_v63 = vadd.f32 %v6776_v3, %v3773_v36  ;;  %v3738_v27 = vmul.f32 %v4050_v40, %v6588_v47  ;;  %v3678_v37 = vadd.f32 1e-05, %v3646_v33 }
 0x471   : > { %v3567_v58 = vpop.xlane.xlu1 %3566 }
 0x472   : > { %3841 = vst.msk [vmem:[%s6783_s29 + $0x8] sm:$0xff] %vm2862_vm1, %v3809_v63  ;;  %v3774_v35 = vmul.f32 %v6774_v26, %v3738_v27  ;;  %4057 = vrsqrt.f32 %v3678_v37  ;;  %v3647_v38 = vmul.f32 0.03125, %v3567_v58 }
 0x473   : > { %v4052_v25 = vpop.eup %4051 }
 0x474   : > { %v3810_v60 = vadd.f32 %v6776_v3, %v3774_v35  ;;  %v3739_v14 = vmul.f32 %v4052_v25, %v6594_v61  ;;  %v3679_v50 = vadd.f32 1e-05, %v3647_v38 }
 0x475   : > { %v3570_v21 = vpop.xlane.xlu0 %3569 }
 0x476   : > { %3842 = vst.msk [vmem:[%s6783_s29 + $0x10] sm:$0xff] %vm2862_vm1, %v3810_v60  ;;  %v3775_v47 = vmul.f32 %v6774_v26, %v3739_v14  ;;  %4059 = vrsqrt.f32 %v3679_v50  ;;  %v3648_v56 = vmul.f32 0.03125, %v3570_v21 }
 0x477   : > { %v4054_v62 = vpop.eup %4053 }
 0x478   : > { %v3811_v6 = vadd.f32 %v6776_v3, %v3775_v47  ;;  %v3740_v49 = vmul.f32 %v4054_v62, %v6600_v44  ;;  %v3680_v31 = vadd.f32 1e-05, %v3648_v56 }
 0x479   : > { %v3573_v59 = vpop.xlane.xlu1 %3572 }
 0x47a   : > { %3843 = vst.msk [vmem:[%s6783_s29 + $0x18] sm:$0xff] %vm2862_vm1, %v3811_v6  ;;  %v3776_v61 = vmul.f32 %v6774_v26, %v3740_v49  ;;  %4061 = vrsqrt.f32 %v3680_v31  ;;  %v3649_v2 = vmul.f32 0.03125, %v3573_v59 }
 0x47b   : > { %v4056_v13 = vpop.eup %4055 }
 0x47c   : > { %v3812_v19 = vadd.f32 %v6776_v3, %v3776_v61  ;;  %v3741_v48 = vmul.f32 %v4056_v13, %v6606_v22  ;;  %v3681_v16 = vadd.f32 1e-05, %v3649_v2 }
 0x47d   : > { %v3576_v18 = vpop.xlane.xlu0 %3575 }
 0x47e   : > { %3844 = vst.msk [vmem:[%s6783_s29 + $0x20] sm:$0xff] %vm2862_vm1, %v3812_v19  ;;  %v3777_v44 = vmul.f32 %v6774_v26, %v3741_v48  ;;  %4063 = vrsqrt.f32 %v3681_v16  ;;  %v3650_v54 = vmul.f32 0.03125, %v3576_v18 }
 0x47f   : > { %v4058_v30 = vpop.eup %4057 }
 0x480   : > { %v3813_v23 = vadd.f32 %v6776_v3, %v3777_v44  ;;  %v3742_v11 = vmul.f32 %v4058_v30, %v6612_v42  ;;  %v3682_v51 = vadd.f32 1e-05, %v3650_v54 }
 0x481   : > { %v3579_v8 = vpop.xlane.xlu1 %3578 }
 0x482   : > { %3845 = vst.msk [vmem:[%s6783_s29 + $0x28] sm:$0xff] %vm2862_vm1, %v3813_v23  ;;  %v3778_v22 = vmul.f32 %v6774_v26, %v3742_v11  ;;  %4065 = vrsqrt.f32 %v3682_v51  ;;  %v3651_v36 = vmul.f32 0.03125, %v3579_v8 }
 0x483   : > { %v4060_v33 = vpop.eup %4059 }
 0x484   : > { %v3814_v40 = vadd.f32 %v6776_v3, %v3778_v22  ;;  %v3743_v63 = vmul.f32 %v4060_v33, %v6618_v39  ;;  %v3683_v27 = vadd.f32 1e-05, %v3651_v36 }
 0x485   : > { %v3582_v37 = vpop.xlane.xlu0 %3581 }
 0x486   : > { %3846 = vst.msk [vmem:[%s6783_s29 + $0x30] sm:$0xff] %vm2862_vm1, %v3814_v40  ;;  %v3779_v42 = vmul.f32 %v6774_v26, %v3743_v63  ;;  %4067 = vrsqrt.f32 %v3683_v27  ;;  %v3652_v58 = vmul.f32 0.03125, %v3582_v37 }
 0x487   : > { %v4062_v35 = vpop.eup %4061 }
 0x488   : > { %v3815_v38 = vadd.f32 %v6776_v3, %v3779_v42  ;;  %v3744_v25 = vmul.f32 %v4062_v35, %v6624_v29  ;;  %v3684_v60 = vadd.f32 1e-05, %v3652_v58 }
 0x489   : > { %v3585_v14 = vpop.xlane.xlu1 %3584 }
 0x48a   : > { %3847 = vst.msk [vmem:[%s6783_s29 + $0x38] sm:$0xff] %vm2862_vm1, %v3815_v38  ;;  %v3780_v39 = vmul.f32 %v6774_v26, %v3744_v25  ;;  %4069 = vrsqrt.f32 %v3684_v60  ;;  %v3653_v50 = vmul.f32 0.03125, %v3585_v14 }
 0x48b   : > { %v4064_v21 = vpop.eup %4063 }
 0x48c   : > { %v3816_v47 = vadd.f32 %v6776_v3, %v3780_v39  ;;  %v3745_v56 = vmul.f32 %v4064_v21, %v6630_v20  ;;  %v3685_v62 = vadd.f32 1e-05, %v3653_v50 }
 0x48d   : > { %v3588_v6 = vpop.xlane.xlu0 %3587 }
 0x48e   : > { %3848 = vst.msk [vmem:[%s6783_s29 + $0x40] sm:$0xff] %vm2862_vm1, %v3816_v47  ;;  %v3781_v29 = vmul.f32 %v6774_v26, %v3745_v56  ;;  %4071 = vrsqrt.f32 %v3685_v62  ;;  %v3654_v49 = vmul.f32 0.03125, %v3588_v6 }
 0x48f   : > { %v4066_v31 = vpop.eup %4065 }
 0x490   : > { %v3817_v59 = vadd.f32 %v6776_v3, %v3781_v29  ;;  %v3746_v61 = vmul.f32 %v4066_v31, %v6636_v7  ;;  %v3686_v2 = vadd.f32 1e-05, %v3654_v49 }
 0x491   : > { %v3591_v13 = vpop.xlane.xlu1 %3590 }
 0x492   : > { %3849 = vst.msk [vmem:[%s6783_s29 + $0x48] sm:$0xff] %vm2862_vm1, %v3817_v59  ;;  %v3782_v20 = vmul.f32 %v6774_v26, %v3746_v61  ;;  %4073 = vrsqrt.f32 %v3686_v2  ;;  %v3655_v19 = vmul.f32 0.03125, %v3591_v13 }
 0x493   : > { %v4068_v48 = vpop.eup %4067 }
 0x494   : > { %v3818_v16 = vadd.f32 %v6776_v3, %v3782_v20  ;;  %v3747_v18 = vmul.f32 %v4068_v48, %v6642_v10  ;;  %v3687_v44 = vadd.f32 1e-05, %v3655_v19 }
 0x495   : > { %v3594_v54 = vpop.xlane.xlu0 %3593 }
 0x496   : > { %3850 = vst.msk [vmem:[%s6783_s29 + $0x50] sm:$0xff] %vm2862_vm1, %v3818_v16  ;;  %v3783_v7 = vmul.f32 %v6774_v26, %v3747_v18  ;;  %4075 = vrsqrt.f32 %v3687_v44  ;;  %v3656_v30 = vmul.f32 0.03125, %v3594_v54 }
 0x497   : > { %v4070_v23 = vpop.eup %4069 }
 0x498   : > { %v3819_v11 = vadd.f32 %v6776_v3, %v3783_v7  ;;  %v3748_v51 = vmul.f32 %v4070_v23, %v6648_v43  ;;  %v3688_v8 = vadd.f32 1e-05, %v3656_v30 }
 0x499   : > { %v3597_v22 = vpop.xlane.xlu1 %3596 }
 0x49a   : > { %3851 = vst.msk [vmem:[%s6783_s29 + $0x58] sm:$0xff] %vm2862_vm1, %v3819_v11  ;;  %v3784_v10 = vmul.f32 %v6774_v26, %v3748_v51  ;;  %4077 = vrsqrt.f32 %v3688_v8  ;;  %v3657_v36 = vmul.f32 0.03125, %v3597_v22 }
 0x49b   : > { %v4072_v33 = vpop.eup %4071 }
 0x49c   : > { %v3820_v40 = vadd.f32 %v6776_v3, %v3784_v10  ;;  %v3749_v63 = vmul.f32 %v4072_v33, %v6654_v32  ;;  %v3689_v27 = vadd.f32 1e-05, %v3657_v36 }
 0x49d   : > { %v3600_v37 = vpop.xlane.xlu0 %3599 }
 0x49e   : > { %3852 = vst.msk [vmem:[%s6783_s29 + $0x60] sm:$0xff] %vm2862_vm1, %v3820_v40  ;;  %v3785_v43 = vmul.f32 %v6774_v26, %v3749_v63  ;;  %4079 = vrsqrt.f32 %v3689_v27  ;;  %v3658_v42 = vmul.f32 0.03125, %v3600_v37 }
 0x49f   : > { %v4074_v58 = vpop.eup %4073 }
 0x4a0   : > { %v3821_v35 = vadd.f32 %v6776_v3, %v3785_v43  ;;  %v3750_v38 = vmul.f32 %v4074_v58, %v6660_v9  ;;  %v3690_v25 = vadd.f32 1e-05, %v3658_v42 }
 0x4a1   : > { %v3603_v60 = vpop.xlane.xlu1 %3602 }
 0x4a2   : > { %3853 = vst.msk [vmem:[%s6783_s29 + $0x68] sm:$0xff] %vm2862_vm1, %v3821_v35  ;;  %v3786_v32 = vmul.f32 %v6774_v26, %v3750_v38  ;;  %4081 = vrsqrt.f32 %v3690_v25  ;;  %v3659_v14 = vmul.f32 0.03125, %v3603_v60 }
 0x4a3   : > { %v4076_v39 = vpop.eup %4075 }
 0x4a4   : > { %v3822_v50 = vadd.f32 %v6776_v3, %v3786_v32  ;;  %v3751_v21 = vmul.f32 %v4076_v39, %v6666_v57  ;;  %v3691_v47 = vadd.f32 1e-05, %v3659_v14 }
 0x4a5   : > { %v3606_v56 = vpop.xlane.xlu0 %3605 }
 0x4a6   : > { %3854 = vst.msk [vmem:[%s6783_s29 + $0x70] sm:$0xff] %vm2862_vm1, %v3822_v50  ;;  %v3787_v9 = vmul.f32 %v6774_v26, %v3751_v21  ;;  %4083 = vrsqrt.f32 %v3691_v47  ;;  %v3660_v62 = vmul.f32 0.03125, %v3606_v56 }
 0x4a7   : > { %v4078_v6 = vpop.eup %4077 }
 0x4a8   : > { %v3823_v29 = vadd.f32 %v6776_v3, %v3787_v9  ;;  %v3752_v49 = vmul.f32 %v4078_v6, %v6672_v0  ;;  %v3692_v31 = vadd.f32 1e-05, %v3660_v62 }
 0x4a9   : > { %v3609_v59 = vpop.xlane.xlu1 %3608 }
 0x4aa   : > { %3855 = vst.msk [vmem:[%s6783_s29 + $0x78] sm:$0xff] %vm2862_vm1, %v3823_v29  ;;  %v3788_v57 = vmul.f32 %v6774_v26, %v3752_v49  ;;  %4085 = vrsqrt.f32 %v3692_v31  ;;  %v3661_v61 = vmul.f32 0.03125, %v3609_v59 }
 0x4ab   : > { %v4080_v2 = vpop.eup %4079 }
 0x4ac   : > { %v3824_v13 = vadd.f32 %v6776_v3, %v3788_v57  ;;  %v3753_v20 = vmul.f32 %v4080_v2, %v6678_v55  ;;  %v3693_v19 = vadd.f32 1e-05, %v3661_v61 }
 0x4ad   : > { %v3612_v48 = vpop.xlane.xlu0 %3611 }
 0x4ae   : > { %3856 = vst.msk [vmem:[%s6783_s29 + $0x80] sm:$0xff] %vm2862_vm1, %v3824_v13  ;;  %v3789_v0 = vmul.f32 %v6774_v26, %v3753_v20  ;;  %4087 = vrsqrt.f32 %v3693_v19  ;;  %v3662_v16 = vmul.f32 0.03125, %v3612_v48 }
 0x4af   : > { %v4082_v18 = vpop.eup %4081 }
 0x4b0   : > { %v3825_v44 = vadd.f32 %v6776_v3, %v3789_v0  ;;  %v3754_v54 = vmul.f32 %v4082_v18, %v6684_v52  ;;  %v3694_v7 = vadd.f32 1e-05, %v3662_v16 }
 0x4b1   : > { %v3615_v30 = vpop.xlane.xlu1 %3614 }
 0x4b2   : > { %3857 = vst.msk [vmem:[%s6783_s29 + $0x88] sm:$0xff] %vm2862_vm1, %v3825_v44  ;;  %v3790_v55 = vmul.f32 %v6774_v26, %v3754_v54  ;;  %4089 = vrsqrt.f32 %v3694_v7  ;;  %v3663_v23 = vmul.f32 0.03125, %v3615_v30 }
 0x4b3   : > { %v4084_v11 = vpop.eup %4083 }
 0x4b4   : > { %v3826_v51 = vadd.f32 %v6776_v3, %v3790_v55  ;;  %v3755_v8 = vmul.f32 %v4084_v11, %v6690_v45  ;;  %v3695_v22 = vadd.f32 1e-05, %v3663_v23 }
 0x4b5   : > { %v3618_v10 = vpop.xlane.xlu0 %3617 }
 0x4b6   : > { %3858 = vst.msk [vmem:[%s6783_s29 + $0x90] sm:$0xff] %vm2862_vm1, %v3826_v51  ;;  %v3791_v52 = vmul.f32 %v6774_v26, %v3755_v8  ;;  %4091 = vrsqrt.f32 %v3695_v22  ;;  %v3664_v36 = vmul.f32 0.03125, %v3618_v10 }
 0x4b7   : > { %v4086_v33 = vpop.eup %4085 }
 0x4b8   : > { %v3827_v40 = vadd.f32 %v6776_v3, %v3791_v52  ;;  %v3756_v63 = vmul.f32 %v4086_v33, %v6696_v28  ;;  %v3696_v27 = vadd.f32 1e-05, %v3664_v36 }
 0x4b9   : > { %v3621_v37 = vpop.xlane.xlu1 %3620 }
 0x4ba   : > { %3859 = vst.msk [vmem:[%s6783_s29 + $0x98] sm:$0xff] %vm2862_vm1, %v3827_v40  ;;  %v3792_v45 = vmul.f32 %v6774_v26, %v3756_v63  ;;  %4093 = vrsqrt.f32 %v3696_v27  ;;  %v3665_v43 = vmul.f32 0.03125, %v3621_v37 }
 0x4bb   : > { %v4088_v42 = vpop.eup %4087 }
 0x4bc   : > { %v3828_v58 = vadd.f32 %v6776_v3, %v3792_v45  ;;  %v3757_v35 = vmul.f32 %v4088_v42, %v6702_v53  ;;  %v3697_v38 = vadd.f32 1e-05, %v3665_v43 }
 0x4bd   : > { %v3624_v25 = vpop.xlane.xlu0 %3623 }
 0x4be   : > { %3860 = vst.msk [vmem:[%s6783_s29 + $0xa0] sm:$0xff] %vm2862_vm1, %v3828_v58  ;;  %v3793_v28 = vmul.f32 %v6774_v26, %v3757_v35  ;;  %4095 = vrsqrt.f32 %v3697_v38  ;;  %v3666_v60 = vmul.f32 0.03125, %v3624_v25 }
 0x4bf   : > { %v4090_v32 = vpop.eup %4089 }
 0x4c0   : > { %v3829_v14 = vadd.f32 %v6776_v3, %v3793_v28  ;;  %v3758_v39 = vmul.f32 %v4090_v32, %v6708_v5  ;;  %v3698_v50 = vadd.f32 1e-05, %v3666_v60 }
 0x4c1   : > { %v3627_v21 = vpop.xlane.xlu1 %3626 }
 0x4c2   : > { %3861 = vst.msk [vmem:[%s6783_s29 + $0xa8] sm:$0xff] %vm2862_vm1, %v3829_v14  ;;  %v3794_v53 = vmul.f32 %v6774_v26, %v3758_v39  ;;  %4097 = vrsqrt.f32 %v3698_v50  ;;  %v3667_v47 = vmul.f32 0.03125, %v3627_v21 }
 0x4c3   : > { %v4092_v56 = vpop.eup %4091 }
 0x4c4   : > { %v3830_v9 = vadd.f32 %v6776_v3, %v3794_v53  ;;  %v3759_v62 = vmul.f32 %v4092_v56, %v6714_v1  ;;  %v3699_v6 = vadd.f32 1e-05, %v3667_v47 }
 0x4c5   : > { %v3630_v29 = vpop.xlane.xlu0 %3629 }
 0x4c6   : > { %3862 = vst.msk [vmem:[%s6783_s29 + $0xb0] sm:$0xff] %vm2862_vm1, %v3830_v9  ;;  %v3795_v5 = vmul.f32 %v6774_v26, %v3759_v62  ;;  %4099 = vrsqrt.f32 %v3699_v6  ;;  %v3668_v49 = vmul.f32 0.03125, %v3630_v29 }
 0x4c7   : > { %v4094_v31 = vpop.eup %4093 }
 0x4c8   : > { %v3831_v59 = vadd.f32 %v6776_v3, %v3795_v5  ;;  %v3760_v57 = vmul.f32 %v4094_v31, %v6720_v24  ;;  %v3700_v61 = vadd.f32 1e-05, %v3668_v49 }
 0x4c9   : > { %v3633_v2 = vpop.xlane.xlu1 %3632 }
 0x4ca   : > { %3863 = vst.msk [vmem:[%s6783_s29 + $0xb8] sm:$0xff] %vm2862_vm1, %v3831_v59  ;;  %v3796_v1 = vmul.f32 %v6774_v26, %v3760_v57  ;;  %4101 = vrsqrt.f32 %v3700_v61  ;;  %v3669_v13 = vmul.f32 0.03125, %v3633_v2 }
 0x4cb   : > { %v4096_v20 = vpop.eup %4095 }
 0x4cc   : > { %v3832_v19 = vadd.f32 %v6776_v3, %v3796_v1  ;;  %v3761_v48 = vmul.f32 %v4096_v20, %v6726_v17  ;;  %v3701_v0 = vadd.f32 1e-05, %v3669_v13 }
 0x4cd   : > { %v3636_v16 = vpop.xlane.xlu0 %3635 }
 0x4ce   : > { %3864 = vst.msk [vmem:[%s6783_s29 + $0xc0] sm:$0xff] %vm2862_vm1, %v3832_v19  ;;  %v3797_v24 = vmul.f32 %v6774_v26, %v3761_v48  ;;  %4103 = vrsqrt.f32 %v3701_v0  ;;  %v3670_v18 = vmul.f32 0.03125, %v3636_v16 }
 0x4cf   : > { %v4098_v44 = vpop.eup %4097 }
 0x4d0   : > { %v3833_v54 = vadd.f32 %v6776_v3, %v3797_v24  ;;  %v3762_v7 = vmul.f32 %v4098_v44, %v6732_v4  ;;  %v3702_v30 = vadd.f32 1e-05, %v3670_v18 }
 0x4d1   : > { %v3639_v55 = vpop.xlane.xlu1 %3638 }
 0x4d2   : > { %3865 = vst.msk [vmem:[%s6783_s29 + $0xc8] sm:$0xff] %vm2862_vm1, %v3833_v54  ;;  %v3798_v17 = vmul.f32 %v6774_v26, %v3762_v7  ;;  %4105 = vrsqrt.f32 %v3702_v30  ;;  %v3671_v23 = vmul.f32 0.03125, %v3639_v55 }
 0x4d3   : > { %v4100_v11 = vpop.eup %4099 }
 0x4d4   : > { %v3834_v51 = vadd.f32 %v6776_v3, %v3798_v17  ;;  %v3763_v8 = vmul.f32 %v4100_v11, %v6738_v12  ;;  %v3703_v22 = vadd.f32 1e-05, %v3671_v23 }
 0x4d6   : > { %3866 = vst.msk [vmem:[%s6783_s29 + $0xd0] sm:$0xff] %vm2862_vm1, %v3834_v51  ;;  %v3799_v4 = vmul.f32 %v6774_v26, %v3763_v8  ;;  %4107 = vrsqrt.f32 %v3703_v22 }
 0x4d7   : > { %v4102_v10 = vpop.eup %4101 }
 0x4d8   : > { %v3835_v52 = vadd.f32 %v6776_v3, %v3799_v4  ;;  %v3764_v36 = vmul.f32 %v4102_v10, %v6744_v15 }
 0x4da   : > { %3867 = vst.msk [vmem:[%s6783_s29 + $0xd8] sm:$0xff] %vm2862_vm1, %v3835_v52  ;;  %v3800_v33 = vmul.f32 %v6774_v26, %v3764_v36 }
 0x4db   : > { %v4104_v40 = vpop.eup %4103 }
 0x4dc   : > { %v3836_v12 = vadd.f32 %v6776_v3, %v3800_v33  ;;  %v3765_v63 = vmul.f32 %v4104_v40, %v6750_v46 }
 0x4de   : > { %3868 = vst.msk [vmem:[%s6783_s29 + $0xe0] sm:$0xff] %vm2862_vm1, %v3836_v12  ;;  %v3801_v27 = vmul.f32 %v6774_v26, %v3765_v63 }
 0x4df   : > { %v4106_v37 = vpop.eup %4105 }
 0x4e0   : > { %v3837_v45 = vadd.f32 %v6776_v3, %v3801_v27  ;;  %v3766_v15 = vmul.f32 %v4106_v37, %v6756_v34 }
 0x4e2   : > { %3869 = vst.msk [vmem:[%s6783_s29 + $0xe8] sm:$0xff] %vm2862_vm1, %v3837_v45  ;;  %v3802_v43 = vmul.f32 %v6774_v26, %v3766_v15 }
 0x4e3   : > { %v4108_v42 = vpop.eup %4107 }
 0x4e4   : > { %v3838_v58 = vadd.f32 %v6776_v3, %v3802_v43  ;;  %v3767_v35 = vmul.f32 %v4108_v42, %v6762_v41 }
 0x4e6   : > { %3870 = vst.msk [vmem:[%s6783_s29 + $0xf0] sm:$0xff] %vm2862_vm1, %v3838_v58  ;;  %v3803_v46 = vmul.f32 %v6774_v26, %v3767_v35 }
 0x4e8   : > { %v3839_v38 = vadd.f32 %v6776_v3, %v3803_v46 }
 0x4ea   : > { %3871 = vst.msk [vmem:[%s6783_s29 + $0xf8] sm:$0xff] %vm2862_vm1, %v3839_v38 }
 0x4eb PF: > { %s13_s14 = sadd.s32 1, %s4133_s14   ;;  %s7640_s12 = smov %s4129_s13 }
 0x4ec   : > { %p10_p6 = scmp.ge.s32.totalorder %s13_s14, 4   ;;  %s7641_s13 = smov %s7643_s15 }
 0x4ee   :  { %12 = sbr.rel (!%p10_p6) target bundleno = 2 (0x2), region = 62 }

// kernel: _lambda_.4
= control target key start
LH: loop header
LB: loop body
LE: loop exit
PB: predicated region body
PF: predicated region fallthrough
CT: control target
= control target key end

     0   :  { %s1205_s15 = smov 0   ;;  %s1207_s16 = smov 0   ;;  %s1475_s0 = inlined_call_operand.vmem [shape: f32[128,48], index: 0, kind: input, shape index: {}]   ;;  %s1476_s1 = inlined_call_operand.vmem [shape: f32[48,32], index: 1, kind: input, shape index: {}]   ;;  %s1477_s2 = inlined_call_operand.vmem [shape: f32[8,32], index: 2, kind: input, shape index: {}]   ;;  %s1478_s3 = inlined_call_operand.vmem [shape: f32[1536,32], index: 3, kind: input, shape index: {}, may-alias: {3,4}]   ;;  %s1479_s4 = inlined_call_operand.vmem [shape: f32[1536,32], index: 4, kind: output, shape index: {}, may-alias: {3,4}]  }
   0x1   :  { %s1209_s17 = smov 0   ;;  %s1211_s18 = smov 0  }
   0x2   :  { %s1213_s19 = smov 0  }
   0x3 LB: > { %s23_s3 = sadd.s32 1, %s1168_s17  ;;  %s26_s20 = sadd.s32 1, %s1172_s18  ;;  %s1176_s19 = sphi %s1213_s19, %s14_s19   ;;  %s1172_s18 = sphi %s1211_s18, %s1484_s18   ;;  %s1168_s17 = sphi %s1209_s17, %s1483_s17   ;;  %s1164_s16 = sphi %s1207_s16, %s1482_s16   ;;  %s1160_s15 = sphi %s1205_s15, %s1481_s15  }
   0x4   : > { %p24_p0 = scmp.ge.s32.totalorder %s23_s3, 16  ;;  %p941_p1 = scmp.ge.s32.totalorder %s1176_s19, 1 }
   0x5   : > { %p183_p2 = scmp.lt.s32.totalorder %s1176_s19, 33 }
   0x6   : > { %s1486_s3 = smov (%p24_p0, %s23_s3), 0  ;;  %s1488_s20 = smov (!%p24_p0, %s26_s20), %s1172_s18 }
   0x7   : > { %p184_p3 = pnand %p941_p1, %p183_p2  ;;  %p28_p4 = scmp.ge.s32.totalorder %s1488_s20, 2 }
   0x8   : > { %s942_s21 = sshll.u32 (!%p184_p3), %s1164_s16, 3  ;;  %s943_s22 = sadd.s32 (!%p184_p3), 4294967292, %s1160_s15 }
   0x9   : > { %s1490_s20 = smov (%p28_p4, %s1488_s20), 0  ;;  %187 = sbr.rel (%p184_p3) target bundleno = 894 (0x37e), region = 32 }
   0xa   : > { %p218_p5 = scmp.gt.s32.totalorder (!%p184_p3), %s943_s22, 0  ;;  %p944_p6 = scmp.lt.s32.totalorder (!%p184_p3), %s943_s22, 7 }
   0xb   : > { %s234_s25 = smul.u32 (!%p184_p3), 48, %s1164_s16  ;;  %p247_p7 = scmp.ge.s32.totalorder (!%p184_p3), %s1160_s15, 4 }
   0xc   : > { %p248_p8 = scmp.lt.s32.totalorder (!%p184_p3), %s1160_s15, 12 }
   0xd   : > { %s235_s26 = sadd.s32 (!%p184_p3), 16, %s234_s25 }
   0xe   : > { %v1244_v0 = vld [vmem:[%s1477_s2] sm:$0xff]  ;;  %s1492_s22 = smov (!%p218_p5, %s943_s22), 0  ;;  %s236_s27 = sadd.s32 %s1160_s15, %s235_s26 }
   0xf   : > { %s1494_s22 = smov (!%p944_p6, %s1492_s22), 7  ;;  %p1250_p9 = pnand %p248_p8, %p247_p7 }
  0x10   : > { %s222_s29 = sadd.s32 %s1494_s22, %s942_s21  ;;  %s950_s30 = sshll.u32 %s236_s27, 1 }
  0x11   : > { %p223_p10 = scmp.lt.s32.totalorder %s222_s29, 15  ;;  %p238_p11 = scmp.lt.s32.totalorder %s950_s30, 191 }
  0x12   : > { %252 = sbr.rel (%p1250_p9) target bundleno = 885 (0x375), region = 36 }
  0x13   : > { %s1496_s29 = smov (!%p223_p10, %s222_s29), 15  ;;  %s1498_s30 = smov (!%p238_p11, %s950_s30), 191 }
  0x14   : > { %s949_s5 = sshll.u32 %s1496_s29, 3  ;;  %s951_s9 = sshll.u32 %s1498_s30, 3 }
  0x15   : > { %s226_s8 = scalar_lea.vmem %s1475_s0, %s949_s5  ;;  %s1260_s12 = scalar_lea.vmem %s1479_s4, %s951_s9 }
  0x17   : > { %v260_v1 = vld [vmem:[%s1476_s1 + $0x28] sm:$0xff]  ;;  %v259_v2 = vld [vmem:[%s1476_s1 + $0x20] sm:$0xff]  ;;  %v258_v3 = vld [vmem:[%s1476_s1 + $0x18] sm:$0xff]  ;;  %vm265_vm0 = vcmask 392192   ;;  %v1178_v4 = vmov 0.0   ;;  %vm1179_vm1 = vmmov 0   ;;  %v261_v45 = vlaneseq }
  0x18   : > { %1002 = vmatprep.subr.mxu0 %v1178_v4  ;;  %v1274_v5 = vand.u32 4294901760, %v260_v1  ;;  %v1276_v6 = vand.u32 4294901760, %v259_v2  ;;  %v1278_v7 = vand.u32 4294901760, %v258_v3  ;;  %v257_v8 = vld [vmem:[%s1476_s1 + $0x10] sm:$0xff]  ;;  %1017 = vmatprep.subr.mxu1 %v1178_v4  ;;  %v256_v9 = vld [vmem:[%s1476_s1 + $0x8] sm:$0xff]  ;;  %v255_v10 = vld [vmem:[%s1476_s1] sm:$0xff] }
  0x19   : > { %v1290_v11 = vand.u32 4294901760, %v257_v8  ;;  %v1292_v12 = vand.u32 4294901760, %v256_v9  ;;  %v1294_v13 = vand.u32 4294901760, %v255_v10  ;;  %1014 = vmatprep.mubr.msk.f32.mxu0 %vm1179_vm1, %v1178_v4  ;;  %v254_v14 = vld [vmem:[%s226_s8] sm:$0xff]  ;;  %1029 = vmatprep.mubr.msk.f32.mxu1 %vm1179_vm1, %v1178_v4  ;;  %v1436_v46 = vshrl.u32 %v261_v45, 7 }
  0x1a   : > { %1003 = vmatpush3.msra.mxu0 %v1274_v5  ;;  %v1302_v15 = vsub.f32 %v260_v1, %v1274_v5  ;;  %v1305_v16 = vsub.f32 %v259_v2, %v1276_v6  ;;  %v267_v17 = vsel %vm265_vm0, %v254_v14, 0  ;;  %v1309_v18 = vsub.f32 %v258_v3, %v1278_v7  ;;  %v253_v56 = vld [vmem:[%s1477_s2] sm:$0xff] }
  0x1b   : > { %1004 = vmatprep.subr.mxu0 %v1178_v4  ;;  %v1312_v19 = vand.u32 4294901760, %v267_v17  ;;  %v1315_v20 = vsub.f32 %v257_v8, %v1290_v11  ;;  %v1318_v21 = vsub.f32 %v256_v9, %v1292_v12  ;;  %v1325_v25 = vsub.f32 %v255_v10, %v1294_v13 }
  0x1c   : > { %1005 = vmatpush3.msra.mxu0 %v1276_v6  ;;  %v373_v22 = vand.u32 4294901760, %v1302_v15  ;;  %v380_v23 = vand.u32 4294901760, %v1305_v16  ;;  %v387_v24 = vand.u32 4294901760, %v1309_v18  ;;  %v825_v47 = vsub.s32 4, %v1436_v46 }
  0x1d   : > { %1006 = vmatprep.subr.mxu0 %v1178_v4  ;;  %v1329_v26 = vsub.f32 %v267_v17, %v1312_v19  ;;  %v394_v27 = vand.u32 4294901760, %v1315_v20  ;;  %v401_v31 = vand.u32 4294901760, %v1318_v21  ;;  %v408_v36 = vand.u32 4294901760, %v1325_v25 }
  0x1e   : > { %1007 = vmatpush3.msra.mxu0 %v1278_v7  ;;  %v374_v28 = vsub.f32 %v1302_v15, %v373_v22  ;;  %v381_v29 = vsub.f32 %v1305_v16, %v380_v23  ;;  %v388_v30 = vsub.f32 %v1309_v18, %v387_v24  ;;  %vm832_vm2 = vcmask 257024  }
  0x1f   : > { %1008 = vmatprep.subr.mxu0 %v1178_v4  ;;  %v342_v32 = vand.u32 4294901760, %v1329_v26  ;;  %v395_v35 = vsub.f32 %v1315_v20, %v394_v27  ;;  %v402_v39 = vsub.f32 %v1318_v21, %v401_v31  ;;  %v409_v42 = vsub.f32 %v1325_v25, %v408_v36 }
  0x20   : > { %1009 = vmatpush3.msra.mxu0 %v1290_v11  ;;  %v375_v33 = vand.u32 4294901760, %v374_v28  ;;  %v382_v34 = vand.u32 4294901760, %v381_v29  ;;  %v389_v38 = vand.u32 4294901760, %v388_v30  ;;  %v831_v48 = vrot.slane %v1244_v0, %v825_v47 }
  0x21   : > { %1010 = vmatprep.subr.mxu0 %v1178_v4  ;;  %v343_v37 = vsub.f32 %v1329_v26, %v342_v32  ;;  %v396_v41 = vand.u32 4294901760, %v395_v35  ;;  %v403_v43 = vand.u32 4294901760, %v402_v39  ;;  %v410_v44 = vand.u32 4294901760, %v409_v42 }
  0x22   : > { %1011 = vmatpush3.msra.mxu0 %v1292_v12  ;;  %1018 = vmatpush3.msra.mxu1 %v375_v33  ;;  %833 = vst.msk [vmem:[%s1260_s12] sm:$0xf] %vm832_vm2, %v831_v48  ;;  %835 = vst.msk [vmem:[%s1260_s12 + $0xc] sm:$0xf] %vm832_vm2, %v831_v48  ;;  %v263_v54 = vsub.s32 0, %v1436_v46  ;;  %vm780_vm3 = vcmask 261120  }
  0x23   : > { %1012 = vmatprep.subr.mxu0 %v1178_v4  ;;  %1019 = vmatprep.subr.mxu1 %v1178_v4  ;;  %v344_v40 = vand.u32 4294901760, %v343_v37  ;;  %v802_v17 = vsub.s32 2, %v1436_v46  ;;  %v820_v33 = vsub.s32 3, %v1436_v46 }
  0x24   : > { %1013 = vmatpush3.msra.mxu0 %v1294_v13  ;;  %1020 = vmatpush3.msra.mxu1 %v382_v34  ;;  %v264_v57 = vrot.slane %v253_v56, %v263_v54 }
  0x25   : > { %1021 = vmatprep.subr.mxu1 %v1178_v4  ;;  %1032 = vmatprep.subr.mxu0 %v1178_v4  ;;  %v821_v34 = vrot.slane %v253_v56, %v820_v33 }
  0x26   : > { %1015 = vmatmul.mubr.f32.vlgmr.msra.gmra.mxu0 %v344_v40  ;;  %1022 = vmatpush3.msra.mxu1 %v389_v38 }
  0x27   : > { %1033 = vmatpush3.msra.mxu0 %v1302_v15  ;;  %1023 = vmatprep.subr.mxu1 %v1178_v4 }
  0x28   : > { %1034 = vmatprep.subr.mxu0 %v1178_v4  ;;  %1024 = vmatpush3.msra.mxu1 %v396_v41 }
  0x29   : > { %1035 = vmatpush3.msra.mxu0 %v1305_v16  ;;  %1025 = vmatprep.subr.mxu1 %v1178_v4  ;;  %v797_v16 = vsub.s32 1, %v1436_v46 }
  0x2a   : > { %1036 = vmatprep.subr.mxu0 %v1178_v4  ;;  %1026 = vmatpush3.msra.mxu1 %v403_v43 }
  0x2b   : > { %1037 = vmatpush3.msra.mxu0 %v1309_v18  ;;  %1027 = vmatprep.subr.mxu1 %v1178_v4  ;;  %v798_v18 = vrot.slane %v253_v56, %v797_v16 }
  0x2c   : > { %1038 = vmatprep.subr.mxu0 %v1178_v4  ;;  %1028 = vmatpush3.msra.mxu1 %v410_v44 }
  0x2d   : > { %1039 = vmatpush3.msra.mxu0 %v1315_v20  ;;  %1030 = vmatmul.mubr.f32.vlgmr.msra.gmra.mxu1 %v1312_v19 }
  0x2e   : > { %1040 = vmatprep.subr.mxu0 %v1178_v4  ;;  %1047 = vmatprep.subr.mxu1 %v1178_v4 }
  0x2f   : > { %1041 = vmatpush3.msra.mxu0 %v1318_v21  ;;  %1048 = vmatpush3.msra.mxu1 %v1274_v5  ;;  %v803_v21 = vrot.slane %v253_v56, %v802_v17 }
  0x30   : > { %1042 = vmatprep.subr.mxu0 %v1178_v4  ;;  %1049 = vmatprep.subr.mxu1 %v1178_v4 }
  0x31   : > { %1043 = vmatpush3.msra.mxu0 %v1325_v25  ;;  %1044 = vmatprep.mubr.msk.f32.mxu0 %vm1179_vm1, %v1178_v4 }
  0x32   : > { %1050 = vmatpush3.msra.mxu1 %v1276_v6  ;;  %1045 = vmatmul.mubr.f32.vlgmr.msra.gmra.mxu0 %v1329_v26 }
  0x33   : > { %1051 = vmatprep.subr.mxu1 %v1178_v4  ;;  %1062 = vmatprep.subr.mxu0 %v1178_v4 }
  0x34   : > { %1052 = vmatpush3.msra.mxu1 %v1278_v7  ;;  %1063 = vmatpush3.msra.mxu0 %v373_v22 }
  0x35   : > { %1053 = vmatprep.subr.mxu1 %v1178_v4  ;;  %1064 = vmatprep.subr.mxu0 %v1178_v4 }
  0x36   : > { %1054 = vmatpush3.msra.mxu1 %v1290_v11  ;;  %1065 = vmatpush3.msra.mxu0 %v380_v23 }
  0x37   : > { %1055 = vmatprep.subr.mxu1 %v1178_v4  ;;  %1066 = vmatprep.subr.mxu0 %v1178_v4 }
  0x38   : > { %1056 = vmatpush3.msra.mxu1 %v1292_v12  ;;  %1067 = vmatpush3.msra.mxu0 %v387_v24 }
  0x39   : > { %1057 = vmatprep.subr.mxu1 %v1178_v4  ;;  %1068 = vmatprep.subr.mxu0 %v1178_v4 }
  0x3a   : > { %1058 = vmatpush3.msra.mxu1 %v1294_v13  ;;  %1059 = vmatprep.mubr.msk.f32.mxu1 %vm1179_vm1, %v1178_v4 }
  0x3b   : > { %1069 = vmatpush3.msra.mxu0 %v394_v27  ;;  %1060 = vmatmul.mubr.f32.vlgmr.msra.gmra.mxu1 %v342_v32 }
  0x3c   : > { %1070 = vmatprep.subr.mxu0 %v1178_v4  ;;  %1077 = vmatprep.subr.mxu1 %v1178_v4 }
  0x3d   : > { %1071 = vmatpush3.msra.mxu0 %v401_v31  ;;  %1078 = vmatpush3.msra.mxu1 %v1274_v5 }
  0x3e   : > { %1072 = vmatprep.subr.mxu0 %v1178_v4  ;;  %1079 = vmatprep.subr.mxu1 %v1178_v4 }
  0x3f   : > { %1073 = vmatpush3.msra.mxu0 %v408_v36  ;;  %1074 = vmatprep.mubr.msk.f32.mxu0 %vm1179_vm1, %v1178_v4  ;;  %v826_v36 = vrot.slane %v253_v56, %v825_v47 }
  0x40   : > { %1080 = vmatpush3.msra.mxu1 %v1276_v6  ;;  %1075 = vmatmul.mubr.f32.vlgmr.msra.gmra.mxu0 %v1312_v19 }
  0x41   : > { %1081 = vmatprep.subr.mxu1 %v1178_v4  ;;  %1089 = vmatprep.mubr.msk.f32.mxu1 %vm1179_vm1, %v1178_v4 }
  0x42   : > { %1082 = vmatpush3.msra.mxu1 %v1278_v7 }
  0x43   : > { %1083 = vmatprep.subr.mxu1 %v1178_v4 }
  0x44   : > { %1084 = vmatpush3.msra.mxu1 %v1290_v11 }
  0x45   : > { %1085 = vmatprep.subr.mxu1 %v1178_v4 }
  0x46   : > { %1086 = vmatpush3.msra.mxu1 %v1292_v12 }
  0x47   : > { %1087 = vmatprep.subr.mxu1 %v1178_v4 }
  0x48   : > { %1088 = vmatpush3.msra.mxu1 %v1294_v13 }
  0x49   : > { %1090 = vmatmul.mubr.f32.vlgmr.msra.gmra.mxu1 %v1312_v19 }
  0xe6   : > { %v346_v49 = vpop.f32.mrf.mxu0 }
  0xe7   : > { %v347_v59 = vadd.f32 %v346_v49, %v264_v57 }
  0xe8   : > { %v1016_v50 = vpop.f32.mrf.mxu0 }
  0xed   : > { %v447_v51 = vpop.f32.mrf.mxu1 }
  0xee   : > { %v448_v61 = vadd.f32 %v447_v51, %v347_v59 }
  0xef   : > { %v1031_v52 = vpop.f32.mrf.mxu1 }
  0xf2   : > { %v531_v53 = vpop.f32.mrf.mxu0 }
  0xf3   : > { %v532_v1 = vadd.f32 %v531_v53, %v448_v61 }
  0xf4   : > { %v1046_v55 = vpop.f32.mrf.mxu0 }
  0xfb   : > { %v610_v58 = vpop.f32.mrf.mxu1 }
  0xfc   : > { %v611_v2 = vadd.f32 %v610_v58, %v532_v1 }
  0xfd   : > { %v1061_v60 = vpop.f32.mrf.mxu1 }
 0x100   : > { %v699_v62 = vpop.f32.mrf.mxu0 }
 0x101   : > { %v700_v3 = vadd.f32 %v699_v62, %v611_v2 }
 0x102   : > { %v1076_v63 = vpop.f32.mrf.mxu0 }
 0x109   : > { %v776_v4 = vpop.f32.mrf.mxu1 }
 0x10a   : > { %v777_v5 = vadd.f32 %v776_v4, %v700_v3 }
 0x10b   : > { %v1091_v6 = vpop.f32.mrf.mxu1 }
 0x10c   : > { %v781_v7 = vsel %vm780_vm3, %v777_v5, 0.0 }
 0x10d   : > { %782 = vadd.xlane.f32.xlu0 %v781_v7 }
 0x196   : > { %v783_v8 = vpop.xlane.xlu0 %782 }
 0x197   : > { %v785_v9 = vmul.f32 0.03125, %v783_v8 }
 0x199   : > { %v786_v10 = vsub.f32 %v777_v5, %v785_v9 }
 0x19b   : > { %v787_v11 = vmul.f32 %v786_v10, %v786_v10 }
 0x19d   : > { %v788_v12 = vsel %vm780_vm3, %v787_v11, 0.0 }
 0x19e   : > { %789 = vadd.xlane.f32.xlu0 %v788_v12 }
 0x227   : > { %v790_v13 = vpop.xlane.xlu0 %789 }
 0x228   : > { %v791_v14 = vmul.f32 0.03125, %v790_v13 }
 0x22a   : > { %v792_v15 = vadd.f32 1e-05, %v791_v14 }
 0x22c   : > { %1134 = vrsqrt.f32 %v792_v15 }
 0x239   : > { %v1135_v19 = vpop.eup %1134 }
 0x23a   : > { %v794_v20 = vmul.f32 %v1135_v19, %v786_v10 }
 0x23c   : > { %v799_v22 = vmul.f32 %v798_v18, %v794_v20 }
 0x23e   : > { %v804_v23 = vadd.f32 %v803_v21, %v799_v22 }
 0x240   : > { %v805_v24 = vsel %vm780_vm3, %v804_v23, 0.0 }
 0x241   : > { %806 = vadd.xlane.f32.xlu1 %v805_v24 }
 0x2ca   : > { %v807_v25 = vpop.xlane.xlu1 %806 }
 0x2cb   : > { %v808_v26 = vmul.f32 0.03125, %v807_v25 }
 0x2cd   : > { %v809_v27 = vsub.f32 %v804_v23, %v808_v26 }
 0x2cf   : > { %v810_v28 = vmul.f32 %v809_v27, %v809_v27 }
 0x2d1   : > { %v811_v29 = vsel %vm780_vm3, %v810_v28, 0.0 }
 0x2d2   : > { %812 = vadd.xlane.f32.xlu1 %v811_v29 }
 0x35b   : > { %v813_v30 = vpop.xlane.xlu1 %812 }
 0x35c   : > { %v814_v31 = vmul.f32 0.03125, %v813_v30 }
 0x35e   : > { %v815_v32 = vadd.f32 1e-05, %v814_v31 }
 0x360   : > { %1136 = vrsqrt.f32 %v815_v32 }
 0x36d   : > { %v1137_v35 = vpop.eup %1136 }
 0x36e   : > { %v817_v37 = vmul.f32 %v1137_v35, %v809_v27 }
 0x370   : > { %v822_v38 = vmul.f32 %v821_v34, %v817_v37 }
 0x372   : > { %v827_v39 = vadd.f32 %v826_v36, %v822_v38 }
 0x374   : > { %834 = vst.msk [vmem:[%s1260_s12 + $0x4] sm:$0xff] %vm780_vm3, %v827_v39 }
 0x375 PF: > { %838 = sbr.rel (!%p1250_p9) target bundleno = 894 (0x37e), region = 40  ;;  %v839_v40 = vlaneseq (%p1250_p9)  ;;  %vm843_vm4 = vcmask (%p1250_p9), 261120  }
 0x377   : > { %v840_v41 = vshrl.u32 (%p1250_p9), %v839_v40, 7 }
 0x379   : > { %v841_v42 = vsub.s32 (%p1250_p9), 4, %v840_v41 }
 0x37b   : > { %v842_v43 = vrot.slane %v1244_v0, %v841_v42 }
 0x37d   : > { %844 = vst.msk [vmem:[%s1260_s12] sm:$0xff] %vm843_vm4, %v842_v43  ;;  %845 = vst.msk [vmem:[%s1260_s12 + $0x8] sm:$0xff] %vm843_vm4, %v842_v43 }
 0x37e PF: > { %s14_s19 = sadd.s32 1, %s1176_s19   ;;  %s1481_s15 = smov %s1168_s17 }
 0x37f   : > { %p11_p12 = scmp.ge.s32.totalorder %s14_s19, 34   ;;  %s1482_s16 = smov %s1172_s18 }
 0x380   : > { %s1483_s17 = smov %s1486_s3  ;;  %s1484_s18 = smov %s1490_s20 }
 0x381   :  { %13 = sbr.rel (!%p11_p12) target bundleno = 3 (0x3), region = 70 }

// kernel: _lambda_.5
= control target key start
LH: loop header
LB: loop body
LE: loop exit
PB: predicated region body
PF: predicated region fallthrough
CT: control target
= control target key end

     0   :  { %s4017_s15 = smov 0   ;;  %s4019_s16 = smov 0   ;;  %s5894_s0 = inlined_call_operand.vmem [shape: f32[512,32], index: 0, kind: input, shape index: {}]   ;;  %s5895_s1 = inlined_call_operand.vmem [shape: f32[32,32], index: 1, kind: input, shape index: {}]   ;;  %s5896_s2 = inlined_call_operand.vmem [shape: f32[8,32], index: 2, kind: input, shape index: {}]   ;;  %s5897_s3 = inlined_call_operand.vmem [shape: f32[1536,32], index: 3, kind: input, shape index: {}, may-alias: {3,4}]   ;;  %s5898_s4 = inlined_call_operand.vmem [shape: f32[1536,32], index: 4, kind: output, shape index: {}, may-alias: {3,4}]  }
   0x1   :  { %s4021_s17 = smov 0  }
   0x2 LB: > { %s26_s3 = sadd.s32 1, %s3986_s16  ;;  %p3252_p0 = scmp.ge.s32.totalorder %s3990_s17, 1  ;;  %s3990_s17 = sphi %s4021_s17, %s14_s17   ;;  %s3986_s16 = sphi %s4019_s16, %s6072_s16   ;;  %s3982_s15 = sphi %s4017_s15, %s6071_s15  }
   0x3   : > { %p28_p1 = scmp.ge.s32.totalorder %s26_s3, 2  ;;  %p161_p2 = scmp.lt.s32.totalorder %s3990_s17, 3 }
   0x5   : > { %s6074_s3 = smov (%p28_p1, %s26_s3), 0  ;;  %p162_p3 = pnand %p3252_p0, %p161_p2 }
   0x7   : > { %165 = sbr.rel (%p162_p3) target bundleno = 1040 (0x410), region = 32 }
   0xc   : > { %v245_v0 = vld [vmem:[%s5895_s1 + $0x18] sm:$0xff]  ;;  %v244_v1 = vld [vmem:[%s5895_s1 + $0x10] sm:$0xff]  ;;  %v243_v2 = vld [vmem:[%s5895_s1 + $0x8] sm:$0xff]  ;;  %s3253_s24 = sshll.u32 %s3982_s15, 5  ;;  %vm250_vm0 = vcmask 261120   ;;  %s3261_s9 = smul.u32 96, %s3982_s15 }
   0xd   : > { %v4047_v3 = vand.u32 4294901760, %v245_v0  ;;  %v4049_v4 = vand.u32 4294901760, %v244_v1  ;;  %v4051_v5 = vand.u32 4294901760, %v243_v2  ;;  %v242_v6 = vld [vmem:[%s5895_s1] sm:$0xff]  ;;  %p191_p4 = scmp.lt.s32.totalorder %s3253_s24, 63 }
   0xe   : > { %v4056_v7 = vand.u32 4294901760, %v242_v6  ;;  %s3260_s10 = sadd.s32 64, %s3261_s9 }
   0xf   : > { %3478 = vmatprep.subr.mxu0 %v4047_v3  ;;  %v4060_v8 = vsub.f32 %v245_v0, %v4047_v3  ;;  %v4063_v9 = vsub.f32 %v244_v1, %v4049_v4  ;;  %v4066_v10 = vsub.f32 %v243_v2, %v4051_v5  ;;  %s6076_s24 = smov (!%p191_p4, %s3253_s24), 63  ;;  %p201_p5 = scmp.lt.s32.totalorder %s3260_s10, 191 }
  0x10   : > { %3479 = vmatpush3.msra.mxu0 %v4047_v3  ;;  %v4070_v11 = vsub.f32 %v242_v6, %v4056_v7  ;;  %s3254_s27 = sshll.u32 %s6076_s24, 3 }
  0x11   : > { %v4073_v12 = vand.u32 4294901760, %v4060_v8  ;;  %3480 = vmatprep.subr.mxu0 %v4049_v4  ;;  %v4077_v13 = vand.u32 4294901760, %v4063_v9  ;;  %v4080_v14 = vand.u32 4294901760, %v4066_v10  ;;  %s4089_s30 = scalar_lea.vmem %s5894_s0, %s3254_s27  ;;  %s6078_s10 = smov (!%p201_p5, %s3260_s10), 191 }
  0x12   : > { %3481 = vmatpush3.msra.mxu0 %v4049_v4  ;;  %v4084_v15 = vand.u32 4294901760, %v4070_v11  ;;  %v210_v19 = vld [vmem:[%s4089_s30] sm:$0xff]  ;;  %v211_v20 = vld [vmem:[%s4089_s30 + $0x8] sm:$0xff]  ;;  %v212_v21 = vld [vmem:[%s4089_s30 + $0x10] sm:$0xff]  ;;  %s3256_s13 = sshll.u32 %s6078_s10, 3 }
  0x13   : > { %v764_v16 = vsub.f32 %v4060_v8, %v4073_v12  ;;  %v771_v17 = vsub.f32 %v4063_v9, %v4077_v13  ;;  %3482 = vmatprep.subr.mxu0 %v4051_v5  ;;  %v778_v18 = vsub.f32 %v4066_v10, %v4080_v14  ;;  %v252_v23 = vsel %vm250_vm0, %v210_v19, 0  ;;  %v213_v26 = vld [vmem:[%s4089_s30 + $0x18] sm:$0xff]  ;;  %v214_v27 = vld [vmem:[%s4089_s30 + $0x20] sm:$0xff]  ;;  %v215_v28 = vld [vmem:[%s4089_s30 + $0x28] sm:$0xff]  ;;  %s5725_s18 = scalar_lea.vmem %s5898_s4, %s3256_s13 }
  0x14   : > { %3483 = vmatpush3.msra.mxu0 %v4051_v5  ;;  %v785_v22 = vsub.f32 %v4070_v11, %v4084_v15  ;;  %v255_v24 = vsel %vm250_vm0, %v211_v20, 0  ;;  %v258_v25 = vsel %vm250_vm0, %v212_v21, 0  ;;  %v4111_v32 = vand.u32 4294901760, %v252_v23  ;;  %v216_v37 = vld [vmem:[%s4089_s30 + $0x30] sm:$0xff]  ;;  %v217_v38 = vld [vmem:[%s4089_s30 + $0x38] sm:$0xff]  ;;  %v218_v63 = vld [vmem:[%s4089_s30 + $0x40] sm:$0xff] }
  0x15   : > { %v765_v29 = vand.u32 4294901760, %v764_v16  ;;  %v772_v30 = vand.u32 4294901760, %v771_v17  ;;  %v779_v31 = vand.u32 4294901760, %v778_v18  ;;  %3484 = vmatprep.subr.mxu0 %v4056_v7  ;;  %v4114_v34 = vand.u32 4294901760, %v255_v24  ;;  %v219_v16 = vld [vmem:[%s4089_s30 + $0x48] sm:$0xff]  ;;  %v220_v21 = vld [vmem:[%s4089_s30 + $0x50] sm:$0xff] }
  0x16   : > { %3485 = vmatpush3.msra.mxu0 %v4056_v7  ;;  %v786_v33 = vand.u32 4294901760, %v785_v22  ;;  %v4116_v35 = vand.u32 4294901760, %v258_v25  ;;  %v261_v36 = vsel %vm250_vm0, %v213_v26, 0  ;;  %v4122_v39 = vsub.f32 %v252_v23, %v4111_v32  ;;  %3542 = vmatprep.mubr.f32.mxu1 %v4111_v32  ;;  %v222_v26 = vld [vmem:[%s4089_s30 + $0x60] sm:$0xff] }
  0x17   : > { %5960 = vst [vmem:[#allocation2_spill] sm:$0xff] %v4114_v34  ;;  %3534 = vmatprep.subr.mxu1 %v765_v29  ;;  %v4125_v40 = vand.u32 4294901760, %v261_v36  ;;  %v264_v41 = vsel %vm250_vm0, %v214_v27, 0  ;;  %v267_v42 = vsel %vm250_vm0, %v215_v28, 0  ;;  %3590 = vmatprep.subr.mxu0 %v4060_v8  ;;  %v4131_v43 = vsub.f32 %v255_v24, %v4114_v34 }
  0x18   : > { %5961 = vst [vmem:[#allocation3_spill] sm:$0xff] %v4116_v35  ;;  %3535 = vmatpush3.msra.mxu1 %v765_v29  ;;  %v4134_v44 = vsub.f32 %v258_v25, %v4116_v35  ;;  %v4136_v45 = vand.u32 4294901760, %v264_v41  ;;  %v4138_v46 = vand.u32 4294901760, %v267_v42  ;;  %v5912_v47 = vand.u32 4294901760, %v4122_v39  ;;  %v221_v25 = vld [vmem:[%s4089_s30 + $0x58] sm:$0xff] }
  0x19   : > { %5962 = vst [vmem:[#allocation4_spill] sm:$0xff] %v4125_v40  ;;  %3536 = vmatprep.subr.mxu1 %v772_v30  ;;  %v4142_v48 = vsub.f32 %v261_v36, %v4125_v40  ;;  %v270_v49 = vsel %vm250_vm0, %v216_v37, 0  ;;  %v273_v50 = vsel %vm250_vm0, %v217_v38, 0  ;;  %v5910_v51 = vand.u32 4294901760, %v4131_v43  ;;  %v223_v38 = vld [vmem:[%s4089_s30 + $0x68] sm:$0xff] }
  0x1a   : > { %5963 = vst [vmem:[#allocation5_spill] sm:$0xff] %v4136_v45  ;;  %5964 = vst [vmem:[#allocation6_spill] sm:$0xff] %v4138_v46  ;;  %3537 = vmatpush3.msra.mxu1 %v772_v30  ;;  %v5908_v52 = vand.u32 4294901760, %v4134_v44  ;;  %v4149_v53 = vsub.f32 %v264_v41, %v4136_v45  ;;  %v4152_v54 = vsub.f32 %v267_v42, %v4138_v46  ;;  %v4158_v57 = vand.u32 4294901760, %v270_v49 }
  0x1b   : > { %3538 = vmatprep.subr.mxu1 %v779_v31  ;;  %v419_v55 = vsub.f32 %v4122_v39, %v5912_v47  ;;  %v5907_v56 = vand.u32 4294901760, %v4142_v48  ;;  %v4160_v58 = vand.u32 4294901760, %v273_v50  ;;  %v429_v59 = vsub.f32 %v4131_v43, %v5910_v51 }
  0x1c   : > { %5965 = vst [vmem:[#allocation7_spill] sm:$0xff] %v4158_v57  ;;  %3539 = vmatpush3.msra.mxu1 %v779_v31  ;;  %v439_v60 = vsub.f32 %v4134_v44, %v5908_v52  ;;  %v5906_v61 = vand.u32 4294901760, %v4149_v53  ;;  %v5905_v62 = vand.u32 4294901760, %v4152_v54  ;;  %v4175_v2 = vsub.f32 %v270_v49, %v4158_v57 }
  0x1d   : > { %5966 = vst [vmem:[#allocation8_spill] sm:$0xff] %v4160_v58  ;;  %3540 = vmatprep.subr.mxu1 %v786_v33  ;;  %v420_v0 = vand.u32 4294901760, %v419_v55  ;;  %v449_v1 = vsub.f32 %v4142_v48, %v5907_v56  ;;  %v4178_v6 = vsub.f32 %v273_v50, %v4160_v58  ;;  %v430_v17 = vand.u32 4294901760, %v429_v59  ;;  %v224_v50 = vld [vmem:[%s4089_s30 + $0x70] sm:$0xff] }
  0x1e   : > { %3541 = vmatpush3.msra.mxu1 %v786_v33  ;;  %v440_v18 = vand.u32 4294901760, %v439_v60  ;;  %v459_v19 = vsub.f32 %v4149_v53, %v5906_v61  ;;  %v469_v20 = vsub.f32 %v4152_v54, %v5905_v62  ;;  %v5904_v22 = vand.u32 4294901760, %v4175_v2 }
  0x1f   : > { %3486 = vmatprep.mubr.f32.mxu0 %v420_v0  ;;  %3543 = vmatmul.mubr.f32.vlgmr.msra.gmra.mxu1 %v4114_v34  ;;  %v5903_v23 = vand.u32 4294901760, %v4178_v6  ;;  %v276_v24 = vsel %vm250_vm0, %v218_v63, 0  ;;  %v450_v27 = vand.u32 4294901760, %v449_v1  ;;  %v279_v30 = vsel %vm250_vm0, %v219_v16, 0 }
  0x20   : > { %3487 = vmatmul.mubr.f32.vlgmr.msra.gmra.mxu0 %v430_v17  ;;  %3646 = vmatprep.subr.mxu1 %v4047_v3  ;;  %v460_v28 = vand.u32 4294901760, %v459_v19  ;;  %v4195_v29 = vand.u32 4294901760, %v276_v24  ;;  %v470_v31 = vand.u32 4294901760, %v469_v20  ;;  %v479_v33 = vsub.f32 %v4175_v2, %v5904_v22 }
  0x21   : > { %3591 = vmatpush3.msra.mxu0 %v4060_v8  ;;  %3647 = vmatpush3.msra.mxu1 %v4047_v3  ;;  %v4203_v36 = vand.u32 4294901760, %v279_v30  ;;  %v282_v37 = vsel %vm250_vm0, %v220_v21, 0  ;;  %v285_v8 = vsel %vm250_vm0, %v221_v25, 0  ;;  %v288_v49 = vsel %vm250_vm0, %v222_v26, 0 }
  0x22   : > { %5967 = vst [vmem:[#allocation9_spill] sm:$0xff] %v4195_v29  ;;  %3489 = vmatprep.mubr.f32.mxu0 %v440_v18  ;;  %3545 = vmatprep.mubr.f32.mxu1 %v4116_v35  ;;  %v4209_v41 = vsub.f32 %v276_v24, %v4195_v29  ;;  %v4211_v42 = vand.u32 4294901760, %v282_v37  ;;  %v480_v55 = vand.u32 4294901760, %v479_v33  ;;  %v489_v59 = vsub.f32 %v4178_v6, %v5903_v23  ;;  %v225_v18 = vld [vmem:[%s4089_s30 + $0x78] sm:$0xff]  ;;  %v230_v23 = vld [vmem:[%s4089_s30 + $0xa0] sm:$0xff] }
  0x23   : > { %5968 = vst [vmem:[#allocation10_spill] sm:$0xff] %v4203_v36  ;;  %3546 = vmatmul.mubr.f32.gmra.mxu1 %v4125_v40  ;;  %3592 = vmatprep.subr.mxu0 %v4063_v9  ;;  %v4222_v60 = vsub.f32 %v279_v30, %v4203_v36  ;;  %v4224_v63 = vand.u32 4294901760, %v285_v8  ;;  %v4231_v16 = vand.u32 4294901760, %v288_v49  ;;  %v291_v17 = vsel %vm250_vm0, %v223_v38, 0 }
  0x24   : > { %5969 = vst [vmem:[#allocation11_spill] sm:$0xff] %v4211_v42  ;;  %3490 = vmatmul.mubr.f32.gmra.mxu0 %v450_v27  ;;  %3548 = vmatprep.mubr.f32.mxu1 %v4136_v45  ;;  %v5901_v0 = vand.u32 4294901760, %v4209_v41  ;;  %v4229_v1 = vsub.f32 %v282_v37, %v4211_v42  ;;  %v4240_v21 = vand.u32 4294901760, %v291_v17  ;;  %v294_v24 = vsel %vm250_vm0, %v224_v50, 0  ;;  %v226_v37 = vld [vmem:[%s4089_s30 + $0x80] sm:$0xff]  ;;  %v240_v45 = vld [vmem:[%s4089_s30 + $0xf0] sm:$0xff] }
  0x25   : > { %5970 = vst [vmem:[#allocation12_spill] sm:$0xff] %v4224_v63  ;;  %5971 = vst [vmem:[#allocation13_spill] sm:$0xff] %v4231_v16  ;;  %3492 = vmatprep.mubr.f32.mxu0 %v460_v28  ;;  %v5900_v19 = vand.u32 4294901760, %v4222_v60  ;;  %3593 = vmatpush3.msra.mxu0 %v4063_v9  ;;  %v4238_v20 = vsub.f32 %v285_v8, %v4224_v63  ;;  %v4249_v27 = vsub.f32 %v288_v49, %v4231_v16 }
  0x26   : > { %5972 = vst [vmem:[#allocation14_spill] sm:$0xff] %v4240_v21  ;;  %v499_v25 = vsub.f32 %v4209_v41, %v5901_v0  ;;  %3648 = vmatprep.subr.mxu1 %v4049_v4  ;;  %v5899_v26 = vand.u32 4294901760, %v4229_v1  ;;  %v4251_v28 = vand.u32 4294901760, %v294_v24  ;;  %3594 = vmatprep.subr.mxu0 %v4066_v10  ;;  %v4257_v30 = vsub.f32 %v291_v17, %v4240_v21  ;;  %v227_v17 = vld [vmem:[%s4089_s30 + $0x88] sm:$0xff] }
  0x27   : > { %3549 = vmatmul.mubr.f32.gmra.mxu1 %v4138_v46  ;;  %v5902_v9 = vand.u32 4294901760, %v4238_v20  ;;  %v297_v33 = vsel %vm250_vm0, %v225_v18, 0  ;;  %3595 = vmatpush3.msra.mxu0 %v4066_v10  ;;  %v490_v38 = vand.u32 4294901760, %v489_v59  ;;  %v509_v8 = vsub.f32 %v4222_v60, %v5900_v19  ;;  %v228_v18 = vld [vmem:[%s4089_s30 + $0x90] sm:$0xff]  ;;  %v239_v46 = vld [vmem:[%s4089_s30 + $0xe8] sm:$0xff] }
  0x28   : > { %5973 = vst [vmem:[#allocation15_spill] sm:$0xff] %v4251_v28  ;;  %3493 = vmatmul.mubr.f32.gmra.mxu0 %v470_v31  ;;  %3551 = vmatprep.mubr.f32.mxu1 %v4158_v57  ;;  %v4267_v49 = vsub.f32 %v294_v24, %v4251_v28  ;;  %v500_v50 = vand.u32 4294901760, %v499_v25  ;;  %v519_v10 = vsub.f32 %v4229_v1, %v5899_v26  ;;  %v5909_v31 = vand.u32 4294901760, %v4249_v27  ;;  %v237_v57 = vld [vmem:[%s4089_s30 + $0xd8] sm:$0xff] }
  0x29   : > { %3495 = vmatprep.mubr.f32.mxu0 %v480_v55  ;;  %3649 = vmatpush3.msra.mxu1 %v4049_v4  ;;  %v4274_v59 = vand.u32 4294901760, %v297_v33  ;;  %v529_v24 = vsub.f32 %v4238_v20, %v5902_v9  ;;  %v300_v55 = vsel %vm250_vm0, %v226_v37, 0  ;;  %v5911_v25 = vand.u32 4294901760, %v4257_v30  ;;  %v229_v9 = vld [vmem:[%s4089_s30 + $0x98] sm:$0xff] }
  0x2a   : > { %3650 = vmatprep.subr.mxu1 %v4051_v5  ;;  %3596 = vmatprep.subr.mxu0 %v4070_v11  ;;  %v5913_v26 = vand.u32 4294901760, %v4267_v49  ;;  %v4290_v0 = vand.u32 4294901760, %v300_v55  ;;  %v510_v37 = vand.u32 4294901760, %v509_v8  ;;  %v303_v22 = vsel %vm250_vm0, %v227_v17, 0 }
  0x2b   : > { %5974 = vst [vmem:[#allocation16_spill] sm:$0xff] %v4274_v59  ;;  %3552 = vmatmul.mubr.f32.gmra.mxu1 %v4160_v58  ;;  %v4288_v19 = vsub.f32 %v297_v33, %v4274_v59  ;;  %3597 = vmatpush3.msra.mxu0 %v4070_v11  ;;  %v306_v62 = vsel %vm250_vm0, %v228_v18, 0  ;;  %v520_v61 = vand.u32 4294901760, %v519_v10  ;;  %v539_v33 = vsub.f32 %v4249_v27, %v5909_v31  ;;  %v231_v11 = vld [vmem:[%s4089_s30 + $0xa8] sm:$0xff] }
  0x2c   : > { %5975 = vst [vmem:[#allocation17_spill] sm:$0xff] %v4290_v0  ;;  %3496 = vmatmul.mubr.f32.gmra.mxu0 %v490_v38  ;;  %3554 = vmatprep.mubr.f32.mxu1 %v4195_v29  ;;  %v4302_v56 = vsub.f32 %v300_v55, %v4290_v0  ;;  %v4304_v52 = vand.u32 4294901760, %v303_v22  ;;  %v232_v38 = vld [vmem:[%s4089_s30 + $0xb0] sm:$0xff]  ;;  %v4309_v8 = vand.u32 4294901760, %v306_v62  ;;  %v309_v17 = vsel %vm250_vm0, %v229_v9, 0 }
  0x2d   : > { %3498 = vmatprep.mubr.f32.mxu0 %v500_v50  ;;  %3651 = vmatpush3.msra.mxu1 %v4051_v5  ;;  %v312_v50 = vsel %vm250_vm0, %v230_v23, 0  ;;  %v530_v10 = vand.u32 4294901760, %v529_v24  ;;  %v549_v18 = vsub.f32 %v4257_v30, %v5911_v25  ;;  %v559_v55 = vsub.f32 %v4267_v49, %v5913_v26 }
  0x2e   : > { %5976 = vst [vmem:[#allocation18_spill] sm:$0xff] %v4304_v52  ;;  %5977 = vst [vmem:[#allocation19_spill] sm:$0xff] %v4309_v8  ;;  %3652 = vmatprep.subr.mxu1 %v4056_v7  ;;  %3702 = vmatprep.subr.mxu0 %v4073_v12  ;;  %v4325_v23 = vsub.f32 %v303_v22, %v4304_v52  ;;  %v4327_v31 = vand.u32 4294901760, %v309_v17  ;;  %v315_v24 = vsel %vm250_vm0, %v231_v11, 0  ;;  %v318_v51 = vsel %vm250_vm0, %v232_v38, 0  ;;  %v234_v22 = vld [vmem:[%s4089_s30 + $0xc0] sm:$0xff] }
  0x2f   : > { %3555 = vmatmul.mubr.f32.gmra.mxu1 %v4203_v36  ;;  %v540_v25 = vand.u32 4294901760, %v539_v33  ;;  %v4333_v26 = vsub.f32 %v306_v62, %v4309_v8  ;;  %v4335_v9 = vand.u32 4294901760, %v312_v50  ;;  %v550_v11 = vand.u32 4294901760, %v549_v18 }
  0x30   : > { %3499 = vmatmul.mubr.f32.gmra.mxu0 %v510_v37  ;;  %3557 = vmatprep.mubr.f32.mxu1 %v4211_v42  ;;  %v233_v37 = vld [vmem:[%s4089_s30 + $0xb8] sm:$0xff]  ;;  %v560_v38 = vand.u32 4294901760, %v559_v55  ;;  %v4344_v33 = vand.u32 4294901760, %v318_v51  ;;  %v5980_v62 = vand.u32 4294901760, %v4288_v19  ;;  %v5932_v42 = vand.u32 4294901760, %v4325_v23 }
  0x31   : > { %3501 = vmatprep.mubr.f32.mxu0 %v520_v61  ;;  %5978 = vst [vmem:[#allocation20_spill] sm:$0xff] %v4335_v9  ;;  %3653 = vmatpush3.msra.mxu1 %v4056_v7  ;;  %v4342_v61 = vand.u32 4294901760, %v315_v24  ;;  %v4352_v36 = vsub.f32 %v309_v17, %v4327_v31  ;;  %v321_v18 = vsel %vm250_vm0, %v233_v37, 0  ;;  %v5981_v55 = vand.u32 4294901760, %v4302_v56 }
  0x32   : > { %3758 = vmatprep.subr.mxu1 %v4047_v3  ;;  %5979 = vst [vmem:[#allocation21_spill] sm:$0xff] %v4344_v33  ;;  %v569_v47 = vsub.f32 %v4288_v19, %v5980_v62  ;;  %v324_v29 = vsel %vm250_vm0, %v234_v22, 0  ;;  %v235_v62 = vld [vmem:[%s4089_s30 + $0xc8] sm:$0xff]  ;;  %v4371_v37 = vand.u32 4294901760, %v321_v18  ;;  %v589_v22 = vsub.f32 %v4325_v23, %v5932_v42 }
  0x33   : > { %3558 = vmatmul.mubr.f32.gmra.mxu1 %v4224_v63  ;;  %v579_v63 = vsub.f32 %v4302_v56, %v5981_v55  ;;  %v4366_v17 = vsub.f32 %v315_v24, %v4342_v61  ;;  %v236_v55 = vld [vmem:[%s4089_s30 + $0xd0] sm:$0xff]  ;;  %v4379_v24 = vand.u32 4294901760, %v324_v29 }
  0x34   : > { %3502 = vmatmul.mubr.f32.gmra.mxu0 %v530_v10  ;;  %3560 = vmatprep.mubr.f32.mxu1 %v4231_v16  ;;  %v4360_v16 = vsub.f32 %v312_v50, %v4335_v9  ;;  %v570_v50 = vand.u32 4294901760, %v569_v47  ;;  %v330_v47 = vsel %vm250_vm0, %v236_v55, 0 }
  0x35   : > { %3504 = vmatprep.mubr.f32.mxu0 %v540_v25  ;;  %v4369_v25 = vsub.f32 %v318_v51, %v4344_v33  ;;  %v5982_v51 = vand.u32 4294901760, %v4333_v26 }
  0x37   : > { %3561 = vmatmul.mubr.f32.gmra.mxu1 %v4240_v21  ;;  %v580_v21 = vand.u32 4294901760, %v579_v63  ;;  %v599_v58 = vsub.f32 %v4333_v26, %v5982_v51  ;;  %v4392_v63 = vsub.f32 %v321_v18, %v4371_v37  ;;  %v590_v51 = vand.u32 4294901760, %v589_v22 }
  0x38   : > { %3505 = vmatmul.mubr.f32.gmra.mxu0 %v550_v11  ;;  %3563 = vmatprep.mubr.f32.mxu1 %v4251_v28  ;;  %v327_v28 = vsel %vm250_vm0, %v235_v62, 0  ;;  %v5983_v62 = vand.u32 4294901760, %v4352_v36  ;;  %v4400_v11 = vsub.f32 %v324_v29, %v4379_v24  ;;  %v5984_v18 = vand.u32 4294901760, %v4360_v16 }
  0x39   : > { %3507 = vmatprep.mubr.f32.mxu0 %v560_v38  ;;  %v238_v38 = vld [vmem:[%s4089_s30 + $0xe0] sm:$0xff]  ;;  %v4402_v42 = vand.u32 4294901760, %v327_v28  ;;  %v600_v10 = vand.u32 4294901760, %v599_v58  ;;  %v5985_v29 = vand.u32 4294901760, %v4366_v17 }
  0x3a   : > { %v609_v55 = vsub.f32 %v4352_v36, %v5983_v62  ;;  %v336_v22 = vsel %vm250_vm0, %v238_v38, 0 }
  0x3b   : > { %3564 = vmatmul.mubr.f32.gmra.mxu1 %v4274_v59  ;;  %v619_v59 = vsub.f32 %v4360_v16, %v5984_v18  ;;  %v629_v62 = vsub.f32 %v4366_v17, %v5985_v29  ;;  %v339_v18 = vsel %vm250_vm0, %v239_v46, 0 }
  0x3c   : > { %3508 = vmatmul.mubr.f32.gmra.mxu0 %v570_v50  ;;  %3566 = vmatprep.mubr.f32.mxu1 %v4290_v0  ;;  %v4407_v50 = vand.u32 4294901760, %v330_v47  ;;  %v333_v0 = vsel %vm250_vm0, %v237_v57, 0  ;;  %v610_v57 = vand.u32 4294901760, %v609_v55 }
  0x3d   : > { %3510 = vmatprep.mubr.f32.mxu0 %v580_v21  ;;  %v5986_v21 = vand.u32 4294901760, %v4369_v25  ;;  %v4426_v40 = vand.u32 4294901760, %v333_v0  ;;  %v620_v29 = vand.u32 4294901760, %v619_v59  ;;  %v630_v55 = vand.u32 4294901760, %v629_v62 }
  0x3e   : > { %v4429_v35 = vsub.f32 %v330_v47, %v4407_v50  ;;  %v5988_v59 = vand.u32 4294901760, %v4400_v11  ;;  %v4448_v47 = vand.u32 4294901760, %v339_v18 }
  0x3f   : > { %3567 = vmatmul.mubr.f32.gmra.mxu1 %v4304_v52  ;;  %v639_v58 = vsub.f32 %v4369_v25, %v5986_v21  ;;  %v4424_v52 = vsub.f32 %v327_v28, %v4402_v42  ;;  %v4431_v21 = vand.u32 4294901760, %v336_v22  ;;  %v5987_v28 = vand.u32 4294901760, %v4392_v63 }
  0x40   : > { %3511 = vmatmul.mubr.f32.gmra.mxu0 %v590_v51  ;;  %3569 = vmatprep.mubr.f32.mxu1 %v4309_v8  ;;  %v342_v51 = vsel %vm250_vm0, %v240_v45, 0  ;;  %v241_v8 = vld [vmem:[%s4089_s30 + $0xf8] sm:$0xff]  ;;  %v4446_v45 = vsub.f32 %v333_v0, %v4426_v40  ;;  %v4464_v62 = vsub.f32 %v339_v18, %v4448_v47 }
  0x41   : > { %3513 = vmatprep.mubr.f32.mxu0 %v600_v10  ;;  %v640_v38 = vand.u32 4294901760, %v639_v58  ;;  %v649_v34 = vsub.f32 %v4392_v63, %v5987_v28  ;;  %v659_v10 = vsub.f32 %v4400_v11, %v5988_v59  ;;  %v5955_v46 = vand.u32 4294901760, %v4424_v52 }
  0x42   : > { %v4452_v58 = vsub.f32 %v336_v22, %v4431_v21  ;;  %v345_v28 = vsel %vm250_vm0, %v241_v8, 0  ;;  %v5989_v8 = vand.u32 4294901760, %v4429_v35 }
  0x43   : > { %3570 = vmatmul.mubr.f32.gmra.mxu1 %v4327_v31  ;;  %v650_v59 = vand.u32 4294901760, %v649_v34  ;;  %v669_v0 = vsub.f32 %v4424_v52, %v5955_v46  ;;  %v4466_v22 = vand.u32 4294901760, %v345_v28 }
  0x44   : > { %3514 = vmatmul.mubr.f32.gmra.mxu0 %v610_v57  ;;  %3572 = vmatprep.mubr.f32.mxu1 %v4335_v9  ;;  %v4454_v57 = vand.u32 4294901760, %v342_v51  ;;  %v660_v9 = vand.u32 4294901760, %v659_v10  ;;  %v679_v34 = vsub.f32 %v4429_v35, %v5989_v8  ;;  %v5957_v10 = vand.u32 4294901760, %v4464_v62 }
  0x45   : > { %3516 = vmatprep.mubr.f32.mxu0 %v620_v29  ;;  %v5956_v29 = vand.u32 4294901760, %v4446_v45  ;;  %v670_v18 = vand.u32 4294901760, %v669_v0  ;;  %v4482_v46 = vsub.f32 %v345_v28, %v4466_v22 }
  0x46   : > { %v680_v8 = vand.u32 4294901760, %v679_v34 }
  0x47   : > { %3573 = vmatmul.mubr.f32.gmra.mxu1 %v4342_v61  ;;  %v728_v28 = vand.u32 4294901760, %v4482_v46 }
  0x48   : > { %3517 = vmatmul.mubr.f32.gmra.mxu0 %v630_v55  ;;  %3575 = vmatprep.mubr.f32.mxu1 %v4344_v33  ;;  %v698_v55 = vand.u32 4294901760, %v4452_v58  ;;  %v4473_v33 = vsub.f32 %v342_v51, %v4454_v57 }
  0x49   : > { %3519 = vmatprep.mubr.f32.mxu0 %v640_v38  ;;  %v689_v38 = vsub.f32 %v4446_v45, %v5956_v29  ;;  %v709_v29 = vsub.f32 %v4464_v62, %v5957_v10 }
  0x4a   : > { %v699_v51 = vsub.f32 %v4452_v58, %v698_v55 }
  0x4b   : > { %3576 = vmatmul.mubr.f32.gmra.mxu1 %v4371_v37  ;;  %v690_v0 = vand.u32 4294901760, %v689_v38  ;;  %v729_v38 = vsub.f32 %v4482_v46, %v728_v28 }
  0x4c   : > { %3520 = vmatmul.mubr.f32.gmra.mxu0 %v650_v59  ;;  %3578 = vmatprep.mubr.f32.mxu1 %v4379_v24  ;;  %v718_v59 = vand.u32 4294901760, %v4473_v33 }
  0x4d   : > { %3522 = vmatprep.mubr.f32.mxu0 %v660_v9  ;;  %v700_v9 = vand.u32 4294901760, %v699_v51  ;;  %v5990_v51 = vand.u32 4294901760, %v4122_v39 }
  0x4e   : > { %v719_v34 = vsub.f32 %v4473_v33, %v718_v59 }
  0x4f   : > { %3579 = vmatmul.mubr.f32.gmra.mxu1 %v4402_v42 }
  0x50   : > { %3523 = vmatmul.mubr.f32.gmra.mxu0 %v670_v18  ;;  %3581 = vmatprep.mubr.f32.mxu1 %v4407_v50  ;;  %v710_v18 = vand.u32 4294901760, %v709_v29  ;;  %v720_v10 = vand.u32 4294901760, %v719_v34  ;;  %v5991_v29 = vand.u32 4294901760, %v4131_v43 }
  0x51   : > { %3525 = vmatprep.mubr.f32.mxu0 %v680_v8  ;;  %v730_v8 = vand.u32 4294901760, %v729_v38 }
  0x53   : > { %3582 = vmatmul.mubr.f32.gmra.mxu1 %v4426_v40 }
  0x54   : > { %3526 = vmatmul.mubr.f32.gmra.mxu0 %v690_v0  ;;  %3584 = vmatprep.mubr.f32.mxu1 %v4431_v21  ;;  %v5993_v0 = vand.u32 4294901760, %v4142_v48 }
  0x55   : > { %3528 = vmatprep.mubr.f32.mxu0 %v700_v9  ;;  %v6038_v9 = vld [vmem:[#allocation21_spill] sm:$0xff] }
  0x57   : > { %3585 = vmatmul.mubr.f32.gmra.mxu1 %v4448_v47 }
  0x58   : > { %3529 = vmatmul.mubr.f32.gmra.mxu0 %v710_v18  ;;  %3587 = vmatprep.mubr.f32.mxu1 %v4454_v57 }
  0x59   : > { %3531 = vmatprep.mubr.f32.mxu0 %v720_v10  ;;  %v5992_v10 = vand.u32 4294901760, %v4134_v44 }
  0x5b   : > { %3588 = vmatmul.mubr.f32.gmra.mxu1 %v4466_v22 }
  0x5c   : > { %3532 = vmatmul.mubr.f32.gmra.mxu0 %v730_v8  ;;  %3654 = vmatprep.mubr.f32.mxu1 %v5990_v51 }
  0x5d   : > { %3598 = vmatprep.mubr.f32.mxu0 %v4122_v39  ;;  %v5994_v39 = vand.u32 4294901760, %v4149_v53 }
  0x5f   : > { %3655 = vmatmul.mubr.f32.vlgmr.msra.gmra.mxu1 %v5991_v29 }
  0x60   : > { %3599 = vmatmul.mubr.f32.vlgmr.msra.gmra.mxu0 %v4131_v43  ;;  %3759 = vmatpush3.msra.mxu1 %v4047_v3  ;;  %v5995_v3 = vand.u32 4294901760, %v4152_v54  ;;  %v6002_v43 = vand.u32 4294901760, %v4249_v27 }
  0x61   : > { %3703 = vmatpush3.msra.mxu0 %v4073_v12  ;;  %3601 = vmatprep.mubr.f32.mxu0 %v4134_v44  ;;  %v5996_v12 = vand.u32 4294901760, %v4175_v2  ;;  %v6004_v44 = vand.u32 4294901760, %v4267_v49 }
  0x62   : > { %3657 = vmatprep.mubr.f32.mxu1 %v5992_v10  ;;  %3704 = vmatprep.subr.mxu0 %v4077_v13 }
  0x63   : > { %3658 = vmatmul.mubr.f32.gmra.mxu1 %v5993_v0  ;;  %3705 = vmatpush3.msra.mxu0 %v4077_v13  ;;  %v5998_v13 = vand.u32 4294901760, %v4209_v41 }
  0x64   : > { %3602 = vmatmul.mubr.f32.gmra.mxu0 %v4142_v48  ;;  %3660 = vmatprep.mubr.f32.mxu1 %v5994_v39  ;;  %v6005_v48 = vand.u32 4294901760, %v4288_v19 }
  0x65   : > { %3604 = vmatprep.mubr.f32.mxu0 %v4149_v53  ;;  %3760 = vmatprep.subr.mxu1 %v4049_v4  ;;  %v6006_v53 = vand.u32 4294901760, %v4302_v56 }
  0x66   : > { %3761 = vmatpush3.msra.mxu1 %v4049_v4  ;;  %3706 = vmatprep.subr.mxu0 %v4080_v14  ;;  %v5997_v4 = vand.u32 4294901760, %v4178_v6 }
  0x67   : > { %3661 = vmatmul.mubr.f32.gmra.mxu1 %v5995_v3  ;;  %3707 = vmatpush3.msra.mxu0 %v4080_v14  ;;  %v6000_v14 = vand.u32 4294901760, %v4229_v1 }
  0x68   : > { %3605 = vmatmul.mubr.f32.gmra.mxu0 %v4152_v54  ;;  %3663 = vmatprep.mubr.f32.mxu1 %v5996_v12  ;;  %v6007_v54 = vand.u32 4294901760, %v4325_v23 }
  0x69   : > { %3607 = vmatprep.mubr.f32.mxu0 %v4175_v2  ;;  %3762 = vmatprep.subr.mxu1 %v4051_v5  ;;  %v6008_v2 = vand.u32 4294901760, %v4333_v26 }
  0x6a   : > { %3763 = vmatpush3.msra.mxu1 %v4051_v5  ;;  %3708 = vmatprep.subr.mxu0 %v4084_v15  ;;  %v5999_v5 = vand.u32 4294901760, %v4222_v60 }
  0x6b   : > { %3664 = vmatmul.mubr.f32.gmra.mxu1 %v5997_v4  ;;  %3709 = vmatpush3.msra.mxu0 %v4084_v15  ;;  %v6001_v15 = vand.u32 4294901760, %v4238_v20 }
  0x6c   : > { %3608 = vmatmul.mubr.f32.gmra.mxu0 %v4178_v6  ;;  %3666 = vmatprep.mubr.f32.mxu1 %v5998_v13  ;;  %v6009_v6 = vand.u32 4294901760, %v4352_v36 }
  0x6d   : > { %3610 = vmatprep.mubr.f32.mxu0 %v4209_v41  ;;  %3764 = vmatprep.subr.mxu1 %v4056_v7  ;;  %v6010_v41 = vand.u32 4294901760, %v4360_v16 }
  0x6e   : > { %3765 = vmatpush3.msra.mxu1 %v4056_v7  ;;  %v6003_v7 = vand.u32 4294901760, %v4257_v30 }
  0x6f   : > { %3667 = vmatmul.mubr.f32.gmra.mxu1 %v5999_v5 }
  0x70   : > { %3611 = vmatmul.mubr.f32.gmra.mxu0 %v4222_v60  ;;  %3669 = vmatprep.mubr.f32.mxu1 %v6000_v14  ;;  %v6012_v60 = vand.u32 4294901760, %v4369_v25 }
  0x71   : > { %3613 = vmatprep.mubr.f32.mxu0 %v4229_v1  ;;  %v6013_v1 = vand.u32 4294901760, %v4392_v63 }
  0x73   : > { %3670 = vmatmul.mubr.f32.gmra.mxu1 %v6001_v15 }
  0x74   : > { %3614 = vmatmul.mubr.f32.gmra.mxu0 %v4238_v20  ;;  %3672 = vmatprep.mubr.f32.mxu1 %v6002_v43  ;;  %v6017_v20 = vand.u32 4294901760, %v4446_v45 }
  0x75   : > { %3616 = vmatprep.mubr.f32.mxu0 %v4249_v27  ;;  %v6021_v27 = vld [vmem:[#allocation4_spill] sm:$0xff] }
  0x77   : > { %3673 = vmatmul.mubr.f32.gmra.mxu1 %v6003_v7 }
  0x78   : > { %3617 = vmatmul.mubr.f32.gmra.mxu0 %v4257_v30  ;;  %3675 = vmatprep.mubr.f32.mxu1 %v6004_v44  ;;  %v6022_v30 = vld [vmem:[#allocation5_spill] sm:$0xff] }
  0x79   : > { %3619 = vmatprep.mubr.f32.mxu0 %v4267_v49  ;;  %v6023_v49 = vld [vmem:[#allocation6_spill] sm:$0xff] }
  0x7b   : > { %3676 = vmatmul.mubr.f32.gmra.mxu1 %v6005_v48 }
  0x7c   : > { %3620 = vmatmul.mubr.f32.gmra.mxu0 %v4288_v19  ;;  %3678 = vmatprep.mubr.f32.mxu1 %v6006_v53  ;;  %v6016_v19 = vand.u32 4294901760, %v4429_v35 }
  0x7d   : > { %3622 = vmatprep.mubr.f32.mxu0 %v4302_v56  ;;  %v6011_v56 = vand.u32 4294901760, %v4366_v17 }
  0x7f   : > { %3679 = vmatmul.mubr.f32.gmra.mxu1 %v6007_v54 }
  0x80   : > { %3623 = vmatmul.mubr.f32.gmra.mxu0 %v4325_v23  ;;  %3681 = vmatprep.mubr.f32.mxu1 %v6008_v2  ;;  %v6025_v23 = vld [vmem:[#allocation8_spill] sm:$0xff] }
  0x81   : > { %3625 = vmatprep.mubr.f32.mxu0 %v4333_v26  ;;  %v6018_v26 = vand.u32 4294901760, %v4464_v62 }
  0x83   : > { %3682 = vmatmul.mubr.f32.gmra.mxu1 %v6009_v6 }
  0x84   : > { %3626 = vmatmul.mubr.f32.gmra.mxu0 %v4352_v36  ;;  %3684 = vmatprep.mubr.f32.mxu1 %v6010_v41  ;;  %v6014_v36 = vand.u32 4294901760, %v4400_v11 }
  0x85   : > { %3628 = vmatprep.mubr.f32.mxu0 %v4360_v16  ;;  %v6015_v16 = vand.u32 4294901760, %v4424_v52 }
  0x87   : > { %3685 = vmatmul.mubr.f32.gmra.mxu1 %v6011_v56 }
  0x88   : > { %3629 = vmatmul.mubr.f32.gmra.mxu0 %v4366_v17  ;;  %3687 = vmatprep.mubr.f32.mxu1 %v6012_v60  ;;  %v6027_v17 = vld [vmem:[#allocation10_spill] sm:$0xff] }
  0x89   : > { %3631 = vmatprep.mubr.f32.mxu0 %v4369_v25  ;;  %v6028_v25 = vld [vmem:[#allocation11_spill] sm:$0xff] }
  0x8b   : > { %3688 = vmatmul.mubr.f32.gmra.mxu1 %v6013_v1 }
  0x8c   : > { %3632 = vmatmul.mubr.f32.gmra.mxu0 %v4392_v63  ;;  %3690 = vmatprep.mubr.f32.mxu1 %v6014_v36  ;;  %v6030_v63 = vld [vmem:[#allocation13_spill] sm:$0xff] }
  0x8d   : > { %3634 = vmatprep.mubr.f32.mxu0 %v4400_v11  ;;  %v6029_v11 = vld [vmem:[#allocation12_spill] sm:$0xff] }
  0x8f   : > { %3691 = vmatmul.mubr.f32.gmra.mxu1 %v6015_v16 }
  0x90   : > { %3635 = vmatmul.mubr.f32.gmra.mxu0 %v4424_v52  ;;  %3693 = vmatprep.mubr.f32.mxu1 %v6016_v19  ;;  %v6020_v52 = vld [vmem:[#allocation3_spill] sm:$0xff] }
  0x91   : > { %3637 = vmatprep.mubr.f32.mxu0 %v4429_v35  ;;  %v6019_v35 = vld [vmem:[#allocation2_spill] sm:$0xff] }
  0x93   : > { %3694 = vmatmul.mubr.f32.gmra.mxu1 %v6017_v20 }
  0x94   : > { %3638 = vmatmul.mubr.f32.gmra.mxu0 %v4446_v45  ;;  %3696 = vmatprep.mubr.f32.mxu1 %v698_v55  ;;  %v6032_v45 = vld [vmem:[#allocation15_spill] sm:$0xff]  ;;  %v6035_v55 = vld [vmem:[#allocation18_spill] sm:$0xff] }
  0x95   : > { %3640 = vmatprep.mubr.f32.mxu0 %v4452_v58  ;;  %v6034_v58 = vld [vmem:[#allocation17_spill] sm:$0xff] }
  0x97   : > { %3697 = vmatmul.mubr.f32.gmra.mxu1 %v6018_v26 }
  0x98   : > { %3641 = vmatmul.mubr.f32.gmra.mxu0 %v4464_v62  ;;  %3699 = vmatprep.mubr.f32.mxu1 %v718_v59  ;;  %v6033_v62 = vld [vmem:[#allocation16_spill] sm:$0xff]  ;;  %v6036_v59 = vld [vmem:[#allocation19_spill] sm:$0xff] }
  0x99   : > { %3643 = vmatprep.mubr.f32.mxu0 %v4473_v33  ;;  %v6026_v33 = vld [vmem:[#allocation9_spill] sm:$0xff] }
  0x9b   : > { %3700 = vmatmul.mubr.f32.gmra.mxu1 %v728_v28  ;;  %v6037_v28 = vld [vmem:[#allocation20_spill] sm:$0xff] }
  0x9c   : > { %3644 = vmatmul.mubr.f32.gmra.mxu0 %v4482_v46  ;;  %3766 = vmatprep.mubr.f32.mxu1 %v4111_v32  ;;  %v6031_v46 = vld [vmem:[#allocation14_spill] sm:$0xff] }
  0x9d   : > { %3710 = vmatprep.mubr.f32.mxu0 %v4111_v32  ;;  %v6024_v32 = vld [vmem:[#allocation7_spill] sm:$0xff] }
  0x9f   : > { %3767 = vmatmul.mubr.f32.vlgmr.msra.gmra.mxu1 %v6019_v35 }
  0xa0   : > { %3711 = vmatmul.mubr.f32.vlgmr.msra.gmra.mxu0 %v6019_v35  ;;  %3769 = vmatprep.mubr.f32.mxu1 %v6020_v52 }
  0xa1   : > { %3713 = vmatprep.mubr.f32.mxu0 %v6020_v52 }
  0xa3   : > { %3770 = vmatmul.mubr.f32.gmra.mxu1 %v6021_v27 }
  0xa4   : > { %3714 = vmatmul.mubr.f32.gmra.mxu0 %v6021_v27  ;;  %3772 = vmatprep.mubr.f32.mxu1 %v6022_v30 }
  0xa5   : > { %3716 = vmatprep.mubr.f32.mxu0 %v6022_v30 }
  0xa7   : > { %3773 = vmatmul.mubr.f32.gmra.mxu1 %v6023_v49 }
  0xa8   : > { %3717 = vmatmul.mubr.f32.gmra.mxu0 %v6023_v49  ;;  %3775 = vmatprep.mubr.f32.mxu1 %v6024_v32 }
  0xa9   : > { %3719 = vmatprep.mubr.f32.mxu0 %v6024_v32 }
  0xab   : > { %3776 = vmatmul.mubr.f32.gmra.mxu1 %v6025_v23 }
  0xac   : > { %3720 = vmatmul.mubr.f32.gmra.mxu0 %v6025_v23  ;;  %3778 = vmatprep.mubr.f32.mxu1 %v6026_v33 }
  0xad   : > { %3722 = vmatprep.mubr.f32.mxu0 %v6026_v33 }
  0xaf   : > { %3779 = vmatmul.mubr.f32.gmra.mxu1 %v6027_v17 }
  0xb0   : > { %3723 = vmatmul.mubr.f32.gmra.mxu0 %v6027_v17  ;;  %3781 = vmatprep.mubr.f32.mxu1 %v6028_v25 }
  0xb1   : > { %3725 = vmatprep.mubr.f32.mxu0 %v6028_v25 }
  0xb3   : > { %3782 = vmatmul.mubr.f32.gmra.mxu1 %v6029_v11 }
  0xb4   : > { %3726 = vmatmul.mubr.f32.gmra.mxu0 %v6029_v11  ;;  %3784 = vmatprep.mubr.f32.mxu1 %v6030_v63 }
  0xb5   : > { %3728 = vmatprep.mubr.f32.mxu0 %v6030_v63 }
  0xb7   : > { %3785 = vmatmul.mubr.f32.gmra.mxu1 %v6031_v46 }
  0xb8   : > { %3729 = vmatmul.mubr.f32.gmra.mxu0 %v6031_v46  ;;  %3787 = vmatprep.mubr.f32.mxu1 %v6032_v45 }
  0xb9   : > { %3731 = vmatprep.mubr.f32.mxu0 %v6032_v45 }
  0xbb   : > { %3788 = vmatmul.mubr.f32.gmra.mxu1 %v6033_v62 }
  0xbc   : > { %3732 = vmatmul.mubr.f32.gmra.mxu0 %v6033_v62  ;;  %3790 = vmatprep.mubr.f32.mxu1 %v6034_v58 }
  0xbd   : > { %3734 = vmatprep.mubr.f32.mxu0 %v6034_v58 }
  0xbf   : > { %3791 = vmatmul.mubr.f32.gmra.mxu1 %v6035_v55 }
  0xc0   : > { %3735 = vmatmul.mubr.f32.gmra.mxu0 %v6035_v55  ;;  %3793 = vmatprep.mubr.f32.mxu1 %v6036_v59 }
  0xc1   : > { %3737 = vmatprep.mubr.f32.mxu0 %v6036_v59 }
  0xc3   : > { %3794 = vmatmul.mubr.f32.gmra.mxu1 %v4327_v31 }
  0xc4   : > { %3738 = vmatmul.mubr.f32.gmra.mxu0 %v4327_v31  ;;  %3796 = vmatprep.mubr.f32.mxu1 %v6037_v28  ;;  %v246_v31 = vlaneseq }
  0xc5   : > { %3740 = vmatprep.mubr.f32.mxu0 %v6037_v28 }
  0xc7   : > { %3797 = vmatmul.mubr.f32.gmra.mxu1 %v4342_v61 }
  0xc8   : > { %3741 = vmatmul.mubr.f32.gmra.mxu0 %v4342_v61  ;;  %3799 = vmatprep.mubr.f32.mxu1 %v6038_v9  ;;  %v4673_v61 = vshrl.u32 %v246_v31, 7 }
  0xc9   : > { %3743 = vmatprep.mubr.f32.mxu0 %v6038_v9 }
  0xca   : > { %6039 = vst [vmem:[#allocation2_spill] sm:$0xff] %v4673_v61 }
  0xcb   : > { %3800 = vmatmul.mubr.f32.gmra.mxu1 %v4371_v37 }
  0xcc   : > { %3744 = vmatmul.mubr.f32.gmra.mxu0 %v4371_v37  ;;  %3802 = vmatprep.mubr.f32.mxu1 %v4379_v24 }
  0xcd   : > { %3746 = vmatprep.mubr.f32.mxu0 %v4379_v24 }
  0xcf   : > { %3803 = vmatmul.mubr.f32.gmra.mxu1 %v4402_v42 }
  0xd0   : > { %3747 = vmatmul.mubr.f32.gmra.mxu0 %v4402_v42  ;;  %3805 = vmatprep.mubr.f32.mxu1 %v4407_v50  ;;  %v248_v42 = vsub.s32 0, %v4673_v61 }
  0xd1   : > { %3749 = vmatprep.mubr.f32.mxu0 %v4407_v50 }
  0xd3   : > { %3806 = vmatmul.mubr.f32.gmra.mxu1 %v4426_v40 }
  0xd4   : > { %3750 = vmatmul.mubr.f32.gmra.mxu0 %v4426_v40  ;;  %3808 = vmatprep.mubr.f32.mxu1 %v4431_v21  ;;  %v209_v40 = vld [vmem:[%s5896_s2] sm:$0xff] }
  0xd5   : > { %3752 = vmatprep.mubr.f32.mxu0 %v4431_v21  ;;  %v4685_v37 = vrot.slane %v209_v40, %v248_v42 }
  0xd7   : > { %3809 = vmatmul.mubr.f32.gmra.mxu1 %v4448_v47 }
  0xd8   : > { %3753 = vmatmul.mubr.f32.gmra.mxu0 %v4448_v47  ;;  %3811 = vmatprep.mubr.f32.mxu1 %v4454_v57 }
  0xd9   : > { %3755 = vmatprep.mubr.f32.mxu0 %v4454_v57 }
  0xdb   : > { %3812 = vmatmul.mubr.f32.gmra.mxu1 %v4466_v22 }
  0xdc   : > { %3756 = vmatmul.mubr.f32.gmra.mxu0 %v4466_v22 }
  0xdf   : > { %v3544_v24 = vpop.f32.mrf.mxu1 }
  0xe0   : > { %v3488_v50 = vpop.f32.mrf.mxu0 }
  0xe1   : > { %v433_v21 = vadd.f32 %v3488_v50, %v4685_v37  ;;  %v823_v47 = vpop.f32.mrf.mxu1 }
  0xe2   : > { %v422_v34 = vpop.f32.mrf.mxu0 }
  0xe3   : > { %v4688_v18 = vadd.f32 %v3544_v24, %v433_v21  ;;  %v423_v57 = vadd.f32 %v422_v34, %v4685_v37  ;;  %v3547_v38 = vpop.f32.mrf.mxu1 }
  0xe4   : > { %v3491_v8 = vpop.f32.mrf.mxu0 }
  0xe5   : > { %v4691_v51 = vadd.f32 %v823_v47, %v423_v57  ;;  %v453_v29 = vadd.f32 %v3491_v8, %v4685_v37  ;;  %v835_v10 = vpop.f32.mrf.mxu1 }
  0xe6   : > { %v442_v22 = vpop.f32.mrf.mxu0 }
  0xe7   : > { %v4694_v0 = vadd.f32 %v3547_v38, %v453_v29  ;;  %v443_v39 = vadd.f32 %v442_v22, %v4685_v37  ;;  %v3550_v3 = vpop.f32.mrf.mxu1 }
  0xe8   : > { %v3494_v12 = vpop.f32.mrf.mxu0 }
  0xe9   : > { %v4697_v4 = vadd.f32 %v835_v10, %v443_v39  ;;  %v473_v13 = vadd.f32 %v3494_v12, %v4685_v37  ;;  %v847_v5 = vpop.f32.mrf.mxu1 }
  0xea   : > { %v462_v14 = vpop.f32.mrf.mxu0 }
  0xeb   : > { %v4700_v15 = vadd.f32 %v3550_v3, %v473_v13  ;;  %v463_v43 = vadd.f32 %v462_v14, %v4685_v37  ;;  %v3553_v7 = vpop.f32.mrf.mxu1 }
  0xec   : > { %v3497_v44 = vpop.f32.mrf.mxu0 }
  0xed   : > { %v4703_v48 = vadd.f32 %v847_v5, %v463_v43  ;;  %v493_v53 = vadd.f32 %v3497_v44, %v4685_v37  ;;  %v859_v54 = vpop.f32.mrf.mxu1 }
  0xee   : > { %v482_v2 = vpop.f32.mrf.mxu0 }
  0xef   : > { %v4706_v6 = vadd.f32 %v3553_v7, %v493_v53  ;;  %v483_v41 = vadd.f32 %v482_v2, %v4685_v37  ;;  %v3556_v56 = vpop.f32.mrf.mxu1 }
  0xf0   : > { %v3500_v60 = vpop.f32.mrf.mxu0 }
  0xf1   : > { %v4709_v1 = vadd.f32 %v859_v54, %v483_v41  ;;  %v513_v36 = vadd.f32 %v3500_v60, %v4685_v37  ;;  %v871_v16 = vpop.f32.mrf.mxu1 }
  0xf2   : > { %v502_v19 = vpop.f32.mrf.mxu0 }
  0xf3   : > { %v4712_v20 = vadd.f32 %v3556_v56, %v513_v36  ;;  %v503_v26 = vadd.f32 %v502_v19, %v4685_v37  ;;  %v3559_v35 = vpop.f32.mrf.mxu1 }
  0xf4   : > { %v3503_v52 = vpop.f32.mrf.mxu0 }
  0xf5   : > { %v4715_v27 = vadd.f32 %v871_v16, %v503_v26  ;;  %v533_v30 = vadd.f32 %v3503_v52, %v4685_v37  ;;  %v883_v49 = vpop.f32.mrf.mxu1 }
  0xf6   : > { %v522_v32 = vpop.f32.mrf.mxu0 }
  0xf7   : > { %v4718_v23 = vadd.f32 %v3559_v35, %v533_v30  ;;  %v523_v33 = vadd.f32 %v522_v32, %v4685_v37  ;;  %v3562_v17 = vpop.f32.mrf.mxu1 }
  0xf8   : > { %v3506_v25 = vpop.f32.mrf.mxu0 }
  0xf9   : > { %v4721_v11 = vadd.f32 %v883_v49, %v523_v33  ;;  %v553_v63 = vadd.f32 %v3506_v25, %v4685_v37  ;;  %v895_v46 = vpop.f32.mrf.mxu1 }
  0xfa   : > { %v542_v45 = vpop.f32.mrf.mxu0 }
  0xfb   : > { %v4724_v62 = vadd.f32 %v3562_v17, %v553_v63  ;;  %v543_v58 = vadd.f32 %v542_v45, %v4685_v37  ;;  %v3565_v55 = vpop.f32.mrf.mxu1 }
  0xfc   : > { %v3509_v59 = vpop.f32.mrf.mxu0 }
  0xfd   : > { %v4727_v28 = vadd.f32 %v895_v46, %v543_v58  ;;  %v573_v9 = vadd.f32 %v3509_v59, %v4685_v37  ;;  %v907_v31 = vpop.f32.mrf.mxu1 }
  0xfe   : > { %v562_v42 = vpop.f32.mrf.mxu0 }
  0xff   : > { %v4730_v40 = vadd.f32 %v3565_v55, %v573_v9  ;;  %v563_v24 = vadd.f32 %v562_v42, %v4685_v37  ;;  %v3568_v50 = vpop.f32.mrf.mxu1 }
 0x100   : > { %v3512_v21 = vpop.f32.mrf.mxu0 }
 0x101   : > { %v4733_v47 = vadd.f32 %v907_v31, %v563_v24  ;;  %v593_v34 = vadd.f32 %v3512_v21, %v4685_v37  ;;  %v919_v57 = vpop.f32.mrf.mxu1 }
 0x102   : > { %v582_v38 = vpop.f32.mrf.mxu0 }
 0x103   : > { %v4736_v8 = vadd.f32 %v3568_v50, %v593_v34  ;;  %v583_v29 = vadd.f32 %v582_v38, %v4685_v37  ;;  %v3571_v10 = vpop.f32.mrf.mxu1 }
 0x104   : > { %v3515_v22 = vpop.f32.mrf.mxu0 }
 0x105   : > { %v4739_v39 = vadd.f32 %v919_v57, %v583_v29  ;;  %v613_v3 = vadd.f32 %v3515_v22, %v4685_v37  ;;  %v931_v12 = vpop.f32.mrf.mxu1 }
 0x106   : > { %v602_v13 = vpop.f32.mrf.mxu0 }
 0x107   : > { %v4742_v5 = vadd.f32 %v3571_v10, %v613_v3  ;;  %v603_v14 = vadd.f32 %v602_v13, %v4685_v37  ;;  %v3574_v43 = vpop.f32.mrf.mxu1 }
 0x108   : > { %v3518_v7 = vpop.f32.mrf.mxu0 }
 0x109   : > { %v4745_v44 = vadd.f32 %v931_v12, %v603_v14  ;;  %v633_v53 = vadd.f32 %v3518_v7, %v4685_v37  ;;  %v943_v54 = vpop.f32.mrf.mxu1 }
 0x10a   : > { %v622_v2 = vpop.f32.mrf.mxu0 }
 0x10b   : > { %v4748_v41 = vadd.f32 %v3574_v43, %v633_v53  ;;  %v623_v56 = vadd.f32 %v622_v2, %v4685_v37  ;;  %v3577_v60 = vpop.f32.mrf.mxu1 }
 0x10c   : > { %v3521_v36 = vpop.f32.mrf.mxu0 }
 0x10d   : > { %v4751_v16 = vadd.f32 %v943_v54, %v623_v56  ;;  %v653_v19 = vadd.f32 %v3521_v36, %v4685_v37  ;;  %v955_v26 = vpop.f32.mrf.mxu1 }
 0x10e   : > { %v642_v35 = vpop.f32.mrf.mxu0 }
 0x10f   : > { %v4754_v52 = vadd.f32 %v3577_v60, %v653_v19  ;;  %v643_v30 = vadd.f32 %v642_v35, %v4685_v37  ;;  %v3580_v49 = vpop.f32.mrf.mxu1 }
 0x110   : > { %v3524_v32 = vpop.f32.mrf.mxu0 }
 0x111   : > { %v4757_v33 = vadd.f32 %v955_v26, %v643_v30  ;;  %v673_v17 = vadd.f32 %v3524_v32, %v4685_v37  ;;  %v967_v25 = vpop.f32.mrf.mxu1 }
 0x112   : > { %v662_v63 = vpop.f32.mrf.mxu0 }
 0x113   : > { %6040 = vst [vmem:[#allocation3_spill] sm:$0xff] %v4757_v33  ;;  %v4760_v46 = vadd.f32 %v3580_v49, %v673_v17  ;;  %v663_v45 = vadd.f32 %v662_v63, %v4685_v37  ;;  %v3583_v58 = vpop.f32.mrf.mxu1 }
 0x114   : > { %v3527_v55 = vpop.f32.mrf.mxu0 }
 0x115   : > { %v4763_v59 = vadd.f32 %v967_v25, %v663_v45  ;;  %v693_v9 = vadd.f32 %v3527_v55, %v4685_v37  ;;  %v979_v31 = vpop.f32.mrf.mxu1 }
 0x116   : > { %v682_v42 = vpop.f32.mrf.mxu0 }
 0x117   : > { %6041 = vst [vmem:[#allocation4_spill] sm:$0xff] %v4763_v59  ;;  %v4766_v24 = vadd.f32 %v3583_v58, %v693_v9  ;;  %v683_v50 = vadd.f32 %v682_v42, %v4685_v37  ;;  %v3586_v21 = vpop.f32.mrf.mxu1 }
 0x118   : > { %v3530_v34 = vpop.f32.mrf.mxu0 }
 0x119   : > { %v4769_v57 = vadd.f32 %v979_v31, %v683_v50  ;;  %v713_v38 = vadd.f32 %v3530_v34, %v4685_v37  ;;  %v991_v29 = vpop.f32.mrf.mxu1 }
 0x11a   : > { %v702_v10 = vpop.f32.mrf.mxu0 }
 0x11b   : > { %6042 = vst [vmem:[#allocation5_spill] sm:$0xff] %v4769_v57  ;;  %v4772_v22 = vadd.f32 %v3586_v21, %v713_v38  ;;  %v703_v3 = vadd.f32 %v702_v10, %v4685_v37  ;;  %v3589_v12 = vpop.f32.mrf.mxu1 }
 0x11c   : > { %v3533_v13 = vpop.f32.mrf.mxu0 }
 0x11d   : > { %v4775_v14 = vadd.f32 %v991_v29, %v703_v3  ;;  %v733_v43 = vadd.f32 %v3533_v13, %v4685_v37  ;;  %v1003_v7 = vpop.f32.mrf.mxu1 }
 0x11e   : > { %v722_v53 = vpop.f32.mrf.mxu0 }
 0x11f   : > { %6043 = vst [vmem:[#allocation6_spill] sm:$0xff] %v4775_v14  ;;  %v4778_v54 = vadd.f32 %v3589_v12, %v733_v43  ;;  %v723_v2 = vadd.f32 %v722_v53, %v4685_v37  ;;  %v4781_v56 = vpop.f32.mrf.mxu1 }
 0x120   : > { %v4783_v60 = vpop.f32.mrf.mxu0 }
 0x121   : > { %v4785_v36 = vadd.f32 %v1003_v7, %v723_v2  ;;  %v4787_v19 = vpop.f32.mrf.mxu1 }
 0x122   : > { %v4789_v26 = vpop.f32.mrf.mxu0 }
 0x123   : > { %6044 = vst [vmem:[#allocation7_spill] sm:$0xff] %v4785_v36  ;;  %v4791_v35 = vpop.f32.mrf.mxu1 }
 0x124   : > { %v4793_v30 = vpop.f32.mrf.mxu0 }
 0x125   : > { %v4795_v49 = vpop.f32.mrf.mxu1 }
 0x126   : > { %v4797_v32 = vpop.f32.mrf.mxu0 }
 0x127   : > { %v3662_v17 = vpop.f32.mrf.mxu1 }
 0x128   : > { %v3606_v37 = vpop.f32.mrf.mxu0 }
 0x129   : > { %v1125_v25 = vadd.f32 %v3606_v37, %v4700_v15  ;;  %v4800_v63 = vpop.f32.mrf.mxu1 }
 0x12a   : > { %v4802_v45 = vpop.f32.mrf.mxu0 }
 0x12b   : > { %v4804_v58 = vadd.f32 %v3662_v17, %v1125_v25  ;;  %v3665_v55 = vpop.f32.mrf.mxu1 }
 0x12c   : > { %v3609_v9 = vpop.f32.mrf.mxu0 }
 0x12d   : > { %v1139_v31 = vadd.f32 %v3609_v9, %v4706_v6  ;;  %v4807_v42 = vpop.f32.mrf.mxu1 }
 0x12e   : > { %v4809_v50 = vpop.f32.mrf.mxu0 }
 0x12f   : > { %v4811_v21 = vadd.f32 %v3665_v55, %v1139_v31  ;;  %v3668_v34 = vpop.f32.mrf.mxu1 }
 0x130   : > { %v3612_v38 = vpop.f32.mrf.mxu0 }
 0x131   : > { %v1153_v15 = vadd.f32 %v3612_v38, %v4712_v20  ;;  %v4814_v29 = vpop.f32.mrf.mxu1 }
 0x132   : > { %v4816_v10 = vpop.f32.mrf.mxu0 }
 0x133   : > { %v4818_v3 = vadd.f32 %v3668_v34, %v1153_v15  ;;  %v3671_v12 = vpop.f32.mrf.mxu1 }
 0x134   : > { %v3615_v13 = vpop.f32.mrf.mxu0 }
 0x135   : > { %v1167_v6 = vadd.f32 %v3615_v13, %v4718_v23  ;;  %v4821_v43 = vpop.f32.mrf.mxu1 }
 0x136   : > { %v4823_v7 = vpop.f32.mrf.mxu0 }
 0x137   : > { %v4825_v53 = vadd.f32 %v3671_v12, %v1167_v6  ;;  %v3674_v2 = vpop.f32.mrf.mxu1 }
 0x138   : > { %v3618_v17 = vpop.f32.mrf.mxu0 }
 0x139   : > { %v1181_v20 = vadd.f32 %v3618_v17, %v4724_v62  ;;  %v4828_v37 = vpop.f32.mrf.mxu1 }
 0x13a   : > { %v4830_v25 = vpop.f32.mrf.mxu0 }
 0x13b   : > { %v4832_v55 = vadd.f32 %v3674_v2, %v1181_v20  ;;  %v3677_v9 = vpop.f32.mrf.mxu1 }
 0x13c   : > { %v3621_v31 = vpop.f32.mrf.mxu0 }
 0x13d   : > { %v1195_v23 = vadd.f32 %v3621_v31, %v4730_v40  ;;  %v4835_v34 = vpop.f32.mrf.mxu1 }
 0x13e   : > { %v4837_v38 = vpop.f32.mrf.mxu0 }
 0x13f   : > { %v4839_v15 = vadd.f32 %v3677_v9, %v1195_v23  ;;  %v3680_v12 = vpop.f32.mrf.mxu1 }
 0x140   : > { %v3624_v13 = vpop.f32.mrf.mxu0 }
 0x141   : > { %v1209_v62 = vadd.f32 %v3624_v13, %v4736_v8  ;;  %v4842_v6 = vpop.f32.mrf.mxu1 }
 0x142   : > { %v4844_v17 = vpop.f32.mrf.mxu0 }
 0x143   : > { %v4846_v2 = vadd.f32 %v3680_v12, %v1209_v62  ;;  %v3683_v20 = vpop.f32.mrf.mxu1 }
 0x144   : > { %v3627_v61 = vpop.f32.mrf.mxu0 }
 0x145   : > { %v1223_v40 = vadd.f32 %v3627_v61, %v4742_v5  ;;  %v4849_v31 = vpop.f32.mrf.mxu1 }
 0x146   : > { %v4851_v36 = vpop.f32.mrf.mxu0 }
 0x147   : > { %v4853_v9 = vadd.f32 %v3683_v20, %v1223_v40  ;;  %v3686_v23 = vpop.f32.mrf.mxu1 }
 0x148   : > { %v3630_v14 = vpop.f32.mrf.mxu0 }
 0x149   : > { %6045 = vst [vmem:[#allocation8_spill] sm:$0xff] %v4853_v9  ;;  %v1237_v8 = vadd.f32 %v3630_v14, %v4748_v41  ;;  %v4856_v13 = vpop.f32.mrf.mxu1 }
 0x14a   : > { %6046 = vst [vmem:[#allocation9_spill] sm:$0xff] %v4856_v13  ;;  %v4858_v57 = vpop.f32.mrf.mxu0 }
 0x14b   : > { %v4860_v12 = vadd.f32 %v3686_v23, %v1237_v8  ;;  %v3689_v62 = vpop.f32.mrf.mxu1 }
 0x14c   : > { %v3633_v59 = vpop.f32.mrf.mxu0 }
 0x14d   : > { %6047 = vst [vmem:[#allocation10_spill] sm:$0xff] %v4860_v12  ;;  %v1251_v61 = vadd.f32 %v3633_v59, %v4754_v52  ;;  %v4863_v5 = vpop.f32.mrf.mxu1 }
 0x14e   : > { %6048 = vst [vmem:[#allocation11_spill] sm:$0xff] %v4863_v5  ;;  %v4865_v33 = vpop.f32.mrf.mxu0 }
 0x14f   : > { %v4867_v20 = vadd.f32 %v3689_v62, %v1251_v61  ;;  %v3692_v40 = vpop.f32.mrf.mxu1 }
 0x150   : > { %v3636_v9 = vpop.f32.mrf.mxu0 }
 0x151   : > { %6049 = vst [vmem:[#allocation12_spill] sm:$0xff] %v4867_v20  ;;  %v1265_v41 = vadd.f32 %v3636_v9, %v4760_v46  ;;  %v4870_v14 = vpop.f32.mrf.mxu1 }
 0x152   : > { %6050 = vst [vmem:[#allocation13_spill] sm:$0xff] %v4870_v14  ;;  %v4872_v13 = vpop.f32.mrf.mxu0 }
 0x153   : > { %v4874_v23 = vadd.f32 %v3692_v40, %v1265_v41  ;;  %v3695_v8 = vpop.f32.mrf.mxu1  ;;  %v1097_v40 = vadd.f32 %v4783_v60, %v4688_v18 }
 0x154   : > { %v3639_v12 = vpop.f32.mrf.mxu0 }
 0x155   : > { %v1279_v52 = vadd.f32 %v3639_v12, %v4766_v24  ;;  %v4877_v59 = vpop.f32.mrf.mxu1 }
 0x156   : > { %6051 = vst [vmem:[#allocation14_spill] sm:$0xff] %v4877_v59  ;;  %v4879_v5 = vpop.f32.mrf.mxu0  ;;  %v1090_v59 = vadd.f32 %v4789_v26, %v4691_v51  ;;  %v1104_v51 = vadd.f32 %v4797_v32, %v4697_v4 }
 0x157   : > { %v4881_v62 = vadd.f32 %v3695_v8, %v1279_v52  ;;  %v3698_v61 = vpop.f32.mrf.mxu1 }
 0x158   : > { %v3642_v20 = vpop.f32.mrf.mxu0 }
 0x159   : > { %6052 = vst [vmem:[#allocation15_spill] sm:$0xff] %v4881_v62  ;;  %v1293_v46 = vadd.f32 %v3642_v20, %v4772_v22  ;;  %v4884_v9 = vpop.f32.mrf.mxu1  ;;  %v1392_v22 = vadd.f32 %v4781_v56, %v1097_v40  ;;  %v1111_v20 = vadd.f32 %v4793_v30, %v4694_v0  ;;  %v1118_v0 = vadd.f32 %v4802_v45, %v4703_v48 }
 0x15a   : > { %6053 = vst [vmem:[#allocation16_spill] sm:$0xff] %v4884_v9  ;;  %v4886_v14 = vpop.f32.mrf.mxu0  ;;  %v1132_v48 = vadd.f32 %v4809_v50, %v4709_v1  ;;  %v1146_v1 = vadd.f32 %v4816_v10, %v4715_v27  ;;  %v1160_v10 = vadd.f32 %v4823_v7, %v4721_v11  ;;  %v1174_v7 = vadd.f32 %v4830_v25, %v4727_v28 }
 0x15b   : > { %v4890_v41 = vadd.f32 %v3698_v61, %v1293_v46  ;;  %v3701_v24 = vpop.f32.mrf.mxu1  ;;  %v1384_v61 = vadd.f32 %v4787_v19, %v1090_v59  ;;  %v1188_v25 = vadd.f32 %v4837_v38, %v4733_v47  ;;  %v1202_v38 = vadd.f32 %v4844_v17, %v4739_v39 }
 0x15c   : > { %v3645_v12 = vpop.f32.mrf.mxu0  ;;  %v1448_v27 = vadd.f32 %v4814_v29, %v1146_v1  ;;  %v1464_v11 = vadd.f32 %v4821_v43, %v1160_v10  ;;  %v1480_v28 = vadd.f32 %v4828_v37, %v1174_v7  ;;  %v1216_v17 = vadd.f32 %v4851_v36, %v4745_v44 }
 0x15d   : > { %v1307_v8 = vadd.f32 %v3645_v12, %v4778_v54  ;;  %v4895_v52 = vpop.f32.mrf.mxu1  ;;  %v1408_v12 = vadd.f32 %v4791_v35, %v1111_v20  ;;  %v1496_v47 = vadd.f32 %v4835_v34, %v1188_v25  ;;  %v1512_v39 = vadd.f32 %v4842_v6, %v1202_v38 }
 0x15e   : > { %6054 = vst [vmem:[#allocation17_spill] sm:$0xff] %v4895_v52  ;;  %v4897_v62 = vpop.f32.mrf.mxu0  ;;  %v1528_v44 = vadd.f32 %v4849_v31, %v1216_v17  ;;  %v1230_v36 = vadd.f32 %v4858_v57, %v4751_v16  ;;  %v6056_v16 = vld [vmem:[#allocation9_spill] sm:$0xff] }
 0x15f   : > { %v4902_v9 = vadd.f32 %v3701_v24, %v1307_v8  ;;  %v3768_v18 = vpop.f32.mrf.mxu1  ;;  %v1400_v24 = vadd.f32 %v4795_v49, %v1104_v51 }
 0x160   : > { %v3712_v60 = vpop.f32.mrf.mxu0  ;;  %v1544_v57 = vadd.f32 %v6056_v16, %v1230_v36 }
 0x161   : > { %v1721_v26 = vadd.f32 %v3712_v60, %v1392_v22  ;;  %v1975_v54 = vpop.f32.mrf.mxu1 }
 0x162   : > { %v1714_v46 = vpop.f32.mrf.mxu0 }
 0x163   : > { %v4908_v52 = vadd.f32 %v3768_v18, %v1721_v26  ;;  %v1715_v56 = vadd.f32 %v1714_v46, %v1384_v61  ;;  %v3771_v40 = vpop.f32.mrf.mxu1  ;;  %v1416_v18 = vadd.f32 %v4800_v63, %v1118_v0 }
 0x164   : > { %v3715_v30 = vpop.f32.mrf.mxu0 }
 0x165   : > { %v4913_v8 = vadd.f32 %v1975_v54, %v1715_v56  ;;  %v1733_v19 = vadd.f32 %v3715_v30, %v1408_v12  ;;  %v1987_v59 = vpop.f32.mrf.mxu1  ;;  %v2168_v4 = vsel %vm250_vm0, %v4908_v52, 0.0  ;;  %v1432_v12 = vadd.f32 %v4807_v42, %v1132_v48 }
 0x166   : > { %2169 = vadd.xlane.f32.xlu0 %v2168_v4  ;;  %v1726_v32 = vpop.f32.mrf.mxu0 }
 0x167   : > { %v4917_v35 = vadd.f32 %v3771_v40, %v1733_v19  ;;  %v1727_v22 = vadd.f32 %v1726_v32, %v1400_v24  ;;  %v3774_v20 = vpop.f32.mrf.mxu1  ;;  %v2165_v61 = vsel %vm250_vm0, %v4913_v8, 0.0 }
 0x168   : > { %v3718_v45 = vpop.f32.mrf.mxu0 }
 0x169   : > { %v1745_v49 = vadd.f32 %v3718_v45, %v4804_v58  ;;  %v2174_v60 = vsel %vm250_vm0, %v4917_v35, 0.0  ;;  %v1999_v51 = vpop.f32.mrf.mxu1  ;;  %v4927_v26 = vadd.f32 %v1987_v59, %v1727_v22 }
 0x16a   : > { %2175 = vadd.xlane.f32.xlu1 %v2174_v60  ;;  %v1738_v54 = vpop.f32.mrf.mxu0  ;;  %2166 = vadd.xlane.f32.xlu0 %v2165_v61 }
 0x16b   : > { %v1739_v46 = vadd.f32 %v1738_v54, %v1416_v18  ;;  %v3777_v63 = vpop.f32.mrf.mxu1  ;;  %v4932_v50 = vadd.f32 %v3774_v20, %v1745_v49  ;;  %v2171_v0 = vsel %vm250_vm0, %v4927_v26, 0.0 }
 0x16c   : > { %v3721_v58 = vpop.f32.mrf.mxu0 }
 0x16d   : > { %v1757_v56 = vadd.f32 %v3721_v58, %v4811_v21  ;;  %v4935_v40 = vadd.f32 %v1999_v51, %v1739_v46  ;;  %v2011_v30 = vpop.f32.mrf.mxu1  ;;  %v2180_v20 = vsel %vm250_vm0, %v4932_v50, 0.0 }
 0x16e   : > { %v1750_v24 = vpop.f32.mrf.mxu0  ;;  %2172 = vadd.xlane.f32.xlu1 %v2171_v0 }
 0x16f   : > { %v1751_v19 = vadd.f32 %v1750_v24, %v1432_v12  ;;  %v2177_v42 = vsel %vm250_vm0, %v4935_v40, 0.0  ;;  %v3780_v59 = vpop.f32.mrf.mxu1  ;;  %v4944_v21 = vadd.f32 %v3777_v63, %v1757_v56 }
 0x170   : > { %v3724_v4 = vpop.f32.mrf.mxu0  ;;  %2178 = vadd.xlane.f32.xlu0 %v2177_v42 }
 0x171   : > { %v1769_v32 = vadd.f32 %v3724_v4, %v4818_v3  ;;  %v4947_v22 = vadd.f32 %v2011_v30, %v1751_v19  ;;  %v2023_v18 = vpop.f32.mrf.mxu1  ;;  %v2186_v54 = vsel %vm250_vm0, %v4944_v21, 0.0 }
 0x172   : > { %v1762_v48 = vpop.f32.mrf.mxu0  ;;  %2181 = vadd.xlane.f32.xlu1 %v2180_v20 }
 0x173   : > { %v1763_v45 = vadd.f32 %v1762_v48, %v1448_v27  ;;  %v2183_v29 = vsel %vm250_vm0, %v4947_v22, 0.0  ;;  %v3783_v49 = vpop.f32.mrf.mxu1  ;;  %v4956_v3 = vadd.f32 %v3780_v59, %v1769_v32 }
 0x174   : > { %v3727_v60 = vpop.f32.mrf.mxu0  ;;  %2184 = vadd.xlane.f32.xlu0 %v2183_v29 }
 0x175   : > { %v1781_v61 = vadd.f32 %v3727_v60, %v4825_v53  ;;  %v4959_v51 = vadd.f32 %v2023_v18, %v1763_v45  ;;  %v2035_v46 = vpop.f32.mrf.mxu1  ;;  %v2192_v30 = vsel %vm250_vm0, %v4956_v3, 0.0 }
 0x176   : > { %v1774_v63 = vpop.f32.mrf.mxu0  ;;  %2187 = vadd.xlane.f32.xlu1 %v2186_v54 }
 0x177   : > { %v1775_v12 = vadd.f32 %v1774_v63, %v1464_v11  ;;  %v2189_v43 = vsel %vm250_vm0, %v4959_v51, 0.0  ;;  %v3786_v1 = vpop.f32.mrf.mxu1  ;;  %v4968_v53 = vadd.f32 %v3783_v49, %v1781_v61 }
 0x178   : > { %v3730_v58 = vpop.f32.mrf.mxu0  ;;  %2190 = vadd.xlane.f32.xlu0 %v2189_v43 }
 0x179   : > { %v1793_v56 = vadd.f32 %v3730_v58, %v4832_v55  ;;  %v4971_v0 = vadd.f32 %v2035_v46, %v1775_v12  ;;  %v2047_v24 = vpop.f32.mrf.mxu1  ;;  %v2198_v32 = vsel %vm250_vm0, %v4968_v53, 0.0  ;;  %v6055_v12 = vld [vmem:[#allocation8_spill] sm:$0xff] }
 0x17a   : > { %v1786_v19 = vpop.f32.mrf.mxu0  ;;  %2193 = vadd.xlane.f32.xlu1 %v2192_v30 }
 0x17b   : > { %v1787_v42 = vadd.f32 %v1786_v19, %v1480_v28  ;;  %v2195_v37 = vsel %vm250_vm0, %v4971_v0, 0.0  ;;  %v3789_v59 = vpop.f32.mrf.mxu1  ;;  %v4980_v55 = vadd.f32 %v3786_v1, %v1793_v56 }
 0x17c   : > { %v3733_v27 = vpop.f32.mrf.mxu0  ;;  %2196 = vadd.xlane.f32.xlu0 %v2195_v37 }
 0x17d   : > { %v1805_v10 = vadd.f32 %v3733_v27, %v4839_v15  ;;  %v4983_v4 = vadd.f32 %v2047_v24, %v1787_v42  ;;  %v2059_v20 = vpop.f32.mrf.mxu1  ;;  %v2204_v7 = vsel %vm250_vm0, %v4980_v55, 0.0  ;;  %v6057_v24 = vld [vmem:[#allocation3_spill] sm:$0xff] }
 0x17e   : > { %v1798_v18 = vpop.f32.mrf.mxu0  ;;  %2199 = vadd.xlane.f32.xlu1 %v2198_v32  ;;  %v1244_v19 = vadd.f32 %v4865_v33, %v6057_v24  ;;  %v6059_v33 = vld [vmem:[#allocation11_spill] sm:$0xff] }
 0x17f   : > { %v1799_v48 = vadd.f32 %v1798_v18, %v1496_v47  ;;  %v2201_v34 = vsel %vm250_vm0, %v4983_v4, 0.0  ;;  %v3792_v45 = vpop.f32.mrf.mxu1  ;;  %v4992_v15 = vadd.f32 %v3789_v59, %v1805_v10  ;;  %v6058_v59 = vld [vmem:[#allocation10_spill] sm:$0xff] }
 0x180   : > { %v3736_v29 = vpop.f32.mrf.mxu0  ;;  %2202 = vadd.xlane.f32.xlu0 %v2201_v34  ;;  %v1560_v34 = vadd.f32 %v6059_v33, %v1244_v19 }
 0x181   : > { %v1817_v49 = vadd.f32 %v3736_v29, %v4846_v2  ;;  %v4995_v11 = vadd.f32 %v2059_v20, %v1799_v48  ;;  %v2071_v60 = vpop.f32.mrf.mxu1  ;;  %v2210_v28 = vsel %vm250_vm0, %v4992_v15, 0.0 }
 0x182   : > { %v1810_v61 = vpop.f32.mrf.mxu0  ;;  %2205 = vadd.xlane.f32.xlu1 %v2204_v7 }
 0x183   : > { %v1811_v54 = vadd.f32 %v1810_v61, %v1512_v39  ;;  %v2207_v6 = vsel %vm250_vm0, %v4995_v11, 0.0  ;;  %v3795_v46 = vpop.f32.mrf.mxu1  ;;  %v5004_v2 = vadd.f32 %v3792_v45, %v1817_v49  ;;  %v6060_v45 = vld [vmem:[#allocation4_spill] sm:$0xff] }
 0x184   : > { %v3739_v63 = vpop.f32.mrf.mxu0  ;;  %2208 = vadd.xlane.f32.xlu0 %v2207_v6  ;;  %v1258_v39 = vadd.f32 %v4872_v13, %v6060_v45  ;;  %v6061_v49 = vld [vmem:[#allocation12_spill] sm:$0xff]  ;;  %v6062_v13 = vld [vmem:[#allocation13_spill] sm:$0xff] }
 0x185   : > { %v1829_v43 = vadd.f32 %v3739_v63, %v6055_v12  ;;  %v5007_v1 = vadd.f32 %v2071_v60, %v1811_v54  ;;  %v2083_v25 = vpop.f32.mrf.mxu1  ;;  %v2216_v27 = vsel %vm250_vm0, %v5004_v2, 0.0  ;;  %v6063_v12 = vld [vmem:[#allocation5_spill] sm:$0xff] }
 0x186   : > { %v1822_v58 = vpop.f32.mrf.mxu0  ;;  %2211 = vadd.xlane.f32.xlu1 %v2210_v28  ;;  %v1576_v63 = vadd.f32 %v6062_v13, %v1258_v39 }
 0x187   : > { %v1823_v56 = vadd.f32 %v1822_v58, %v1528_v44  ;;  %v2213_v31 = vsel %vm250_vm0, %v5007_v1, 0.0  ;;  %v3798_v30 = vpop.f32.mrf.mxu1  ;;  %v5016_v37 = vadd.f32 %v3795_v46, %v1829_v43  ;;  %v1272_v43 = vadd.f32 %v4879_v5, %v6063_v12  ;;  %v6064_v5 = vld [vmem:[#allocation14_spill] sm:$0xff] }
 0x188   : > { %v3742_v42 = vpop.f32.mrf.mxu0  ;;  %2214 = vadd.xlane.f32.xlu0 %v2213_v31 }
 0x189   : > { %v1841_v47 = vadd.f32 %v3742_v42, %v6058_v59  ;;  %v5019_v38 = vadd.f32 %v2083_v25, %v1823_v56  ;;  %v2095_v10 = vpop.f32.mrf.mxu1  ;;  %v2222_v61 = vsel %vm250_vm0, %v5016_v37, 0.0  ;;  %v1592_v42 = vadd.f32 %v6064_v5, %v1272_v43  ;;  %v6065_v59 = vld [vmem:[#allocation6_spill] sm:$0xff] }
 0x18a   : > { %v1834_v32 = vpop.f32.mrf.mxu0  ;;  %2217 = vadd.xlane.f32.xlu1 %v2216_v27 }
 0x18b   : > { %v1835_v20 = vadd.f32 %v1834_v32, %v1544_v57  ;;  %v2219_v18 = vsel %vm250_vm0, %v5019_v38, 0.0  ;;  %v3801_v48 = vpop.f32.mrf.mxu1  ;;  %v5028_v29 = vadd.f32 %v3798_v30, %v1841_v47  ;;  %v1286_v47 = vadd.f32 %v4886_v14, %v6065_v59  ;;  %v6067_v14 = vld [vmem:[#allocation16_spill] sm:$0xff] }
 0x18c   : > { %v3745_v17 = vpop.f32.mrf.mxu0  ;;  %2220 = vadd.xlane.f32.xlu0 %v2219_v18 }
 0x18d   : > { %v1853_v7 = vadd.f32 %v3745_v17, %v6061_v49  ;;  %v5031_v60 = vadd.f32 %v2095_v10, %v1835_v20  ;;  %v2107_v54 = vpop.f32.mrf.mxu1  ;;  %v2228_v31 = vsel %vm250_vm0, %v5028_v29, 0.0  ;;  %v6066_v10 = vld [vmem:[#allocation15_spill] sm:$0xff]  ;;  %v1608_v17 = vadd.f32 %v6067_v14, %v1286_v47 }
 0x18e   : > { %v1846_v6 = vpop.f32.mrf.mxu0  ;;  %2223 = vadd.xlane.f32.xlu1 %v2222_v61  ;;  %v6068_v49 = vld [vmem:[#allocation7_spill] sm:$0xff] }
 0x18f   : > { %v1847_v46 = vadd.f32 %v1846_v6, %v1560_v34  ;;  %v2225_v44 = vsel %vm250_vm0, %v5031_v60, 0.0  ;;  %v3804_v36 = vpop.f32.mrf.mxu1  ;;  %v5040_v25 = vadd.f32 %v3801_v48, %v1853_v7  ;;  %v1300_v7 = vadd.f32 %v4897_v62, %v6068_v49  ;;  %v6069_v62 = vld [vmem:[#allocation17_spill] sm:$0xff] }
 0x190   : > { %v3748_v28 = vpop.f32.mrf.mxu0  ;;  %2226 = vadd.xlane.f32.xlu0 %v2225_v44 }
 0x191   : > { %v1865_v58 = vadd.f32 %v3748_v28, %v4874_v23  ;;  %v5043_v56 = vadd.f32 %v2107_v54, %v1847_v46  ;;  %v2119_v30 = vpop.f32.mrf.mxu1  ;;  %v2234_v18 = vsel %vm250_vm0, %v5040_v25, 0.0  ;;  %v1624_v28 = vadd.f32 %v6069_v62, %v1300_v7 }
 0x192   : > { %v1858_v16 = vpop.f32.mrf.mxu0  ;;  %2229 = vadd.xlane.f32.xlu1 %v2228_v31 }
 0x193   : > { %v1859_v57 = vadd.f32 %v1858_v16, %v1576_v63  ;;  %v2231_v24 = vsel %vm250_vm0, %v5043_v56, 0.0  ;;  %v3807_v19 = vpop.f32.mrf.mxu1  ;;  %v5052_v23 = vadd.f32 %v3804_v36, %v1865_v58 }
 0x194   : > { %v3751_v27 = vpop.f32.mrf.mxu0  ;;  %2232 = vadd.xlane.f32.xlu0 %v2231_v24 }
 0x195   : > { %v1877_v32 = vadd.f32 %v3751_v27, %v6066_v10  ;;  %v5055_v20 = vadd.f32 %v2119_v30, %v1859_v57  ;;  %v2131_v48 = vpop.f32.mrf.mxu1  ;;  %v2240_v44 = vsel %vm250_vm0, %v5052_v23, 0.0 }
 0x196   : > { %v1870_v33 = vpop.f32.mrf.mxu0  ;;  %2235 = vadd.xlane.f32.xlu1 %v2234_v18 }
 0x197   : > { %v1871_v34 = vadd.f32 %v1870_v33, %v1592_v42  ;;  %v2237_v45 = vsel %vm250_vm0, %v5055_v20, 0.0  ;;  %v3810_v39 = vpop.f32.mrf.mxu1  ;;  %v5064_v54 = vadd.f32 %v3807_v19, %v1877_v32 }
 0x198   : > { %v3754_v61 = vpop.f32.mrf.mxu0  ;;  %2238 = vadd.xlane.f32.xlu0 %v2237_v45 }
 0x199   : > { %v1889_v6 = vadd.f32 %v3754_v61, %v4890_v41  ;;  %v5067_v46 = vadd.f32 %v2131_v48, %v1871_v34  ;;  %v2143_v36 = vpop.f32.mrf.mxu1  ;;  %v2246_v16 = vsel %vm250_vm0, %v5064_v54, 0.0 }
 0x19a   : > { %v1882_v13 = vpop.f32.mrf.mxu0  ;;  %2241 = vadd.xlane.f32.xlu1 %v2240_v44 }
 0x19b   : > { %v1883_v63 = vadd.f32 %v1882_v13, %v1608_v17  ;;  %v2243_v12 = vsel %vm250_vm0, %v5067_v46, 0.0  ;;  %v3813_v43 = vpop.f32.mrf.mxu1  ;;  %v5074_v31 = vadd.f32 %v3810_v39, %v1889_v6 }
 0x19c   : > { %v3757_v58 = vpop.f32.mrf.mxu0  ;;  %2244 = vadd.xlane.f32.xlu0 %v2243_v12 }
 0x19d   : > { %v1901_v41 = vadd.f32 %v3757_v58, %v4902_v9  ;;  %v5077_v30 = vadd.f32 %v2143_v36, %v1883_v63  ;;  %v2155_v24 = vpop.f32.mrf.mxu1  ;;  %v2252_v9 = vsel %vm250_vm0, %v5074_v31, 0.0 }
 0x19e   : > { %v1894_v57 = vpop.f32.mrf.mxu0  ;;  %2247 = vadd.xlane.f32.xlu1 %v2246_v16 }
 0x19f   : > { %v1895_v19 = vadd.f32 %v1894_v57, %v1624_v28  ;;  %v2249_v5 = vsel %vm250_vm0, %v5077_v30, 0.0  ;;  %v5083_v42 = vadd.f32 %v3813_v43, %v1901_v41 }
 0x1a0   : > { %2250 = vadd.xlane.f32.xlu0 %v2249_v5 }
 0x1a1   : > { %v5085_v59 = vadd.f32 %v2155_v24, %v1895_v19  ;;  %v2258_v27 = vsel %vm250_vm0, %v5083_v42, 0.0 }
 0x1a2   : > { %2253 = vadd.xlane.f32.xlu1 %v2252_v9 }
 0x1a3   : > { %v2255_v47 = vsel %vm250_vm0, %v5085_v59, 0.0 }
 0x1a4   : > { %2256 = vadd.xlane.f32.xlu0 %v2255_v47 }
 0x1a6   : > { %2259 = vadd.xlane.f32.xlu1 %v2258_v27 }
 0x1ef   : > { %v2170_v10 = vpop.xlane.xlu0 %2169 }
 0x1f0   : > { %v2263_v32 = vmul.f32 0.03125, %v2170_v10 }
 0x1f2   : > { %v5094_v18 = vsub.f32 %v4908_v52, %v2263_v32 }
 0x1f3   : > { %v2176_v48 = vpop.xlane.xlu1 %2175  ;;  %v2167_v33 = vpop.xlane.xlu0 %2166 }
 0x1f4   : > { %v2265_v34 = vmul.f32 0.03125, %v2176_v48  ;;  %v2262_v45 = vmul.f32 0.03125, %v2167_v33  ;;  %v2327_v39 = vmul.f32 %v5094_v18, %v5094_v18 }
 0x1f6   : > { %v5099_v14 = vsub.f32 %v4917_v35, %v2265_v34  ;;  %v5102_v17 = vsub.f32 %v4913_v8, %v2262_v45  ;;  %v2361_v49 = vsel %vm250_vm0, %v2327_v39, 0.0 }
 0x1f7   : > { %2362 = vadd.xlane.f32.xlu1 %v2361_v49  ;;  %v2173_v7 = vpop.xlane.xlu1 %2172 }
 0x1f8   : > { %v2264_v61 = vmul.f32 0.03125, %v2173_v7  ;;  %v2329_v52 = vmul.f32 %v5099_v14, %v5099_v14  ;;  %v2326_v6 = vmul.f32 %v5102_v17, %v5102_v17 }
 0x1f9   : > { %v2179_v44 = vpop.xlane.xlu0 %2178 }
 0x1fa   : > { %v5110_v36 = vsub.f32 %v4927_v26, %v2264_v61  ;;  %v2266_v35 = vmul.f32 0.03125, %v2179_v44  ;;  %v2367_v13 = vsel %vm250_vm0, %v2329_v52, 0.0  ;;  %v2358_v8 = vsel %vm250_vm0, %v2326_v6, 0.0 }
 0x1fb   : > { %2368 = vadd.xlane.f32.xlu1 %v2367_v13  ;;  %v2182_v63 = vpop.xlane.xlu1 %2181  ;;  %2359 = vadd.xlane.f32.xlu0 %v2358_v8 }
 0x1fc   : > { %v5115_v12 = vsub.f32 %v4935_v40, %v2266_v35  ;;  %v2267_v43 = vmul.f32 0.03125, %v2182_v63  ;;  %v2328_v62 = vmul.f32 %v5110_v36, %v5110_v36 }
 0x1fd   : > { %v2185_v28 = vpop.xlane.xlu0 %2184 }
 0x1fe   : > { %v5120_v58 = vsub.f32 %v4932_v50, %v2267_v43  ;;  %v2268_v26 = vmul.f32 0.03125, %v2185_v28  ;;  %v2364_v41 = vsel %vm250_vm0, %v2328_v62, 0.0  ;;  %v2330_v16 = vmul.f32 %v5115_v12, %v5115_v12 }
 0x1ff   : > { %v2188_v57 = vpop.xlane.xlu1 %2187  ;;  %2365 = vadd.xlane.f32.xlu0 %v2364_v41 }
 0x200   : > { %v5126_v24 = vsub.f32 %v4947_v22, %v2268_v26  ;;  %v2269_v40 = vmul.f32 0.03125, %v2188_v57  ;;  %v2331_v19 = vmul.f32 %v5120_v58, %v5120_v58  ;;  %v2370_v9 = vsel %vm250_vm0, %v2330_v16, 0.0 }
 0x201   : > { %v2191_v5 = vpop.xlane.xlu0 %2190 }
 0x202   : > { %v5132_v50 = vsub.f32 %v4944_v21, %v2269_v40  ;;  %v2270_v47 = vmul.f32 0.03125, %v2191_v5  ;;  %v2373_v27 = vsel %vm250_vm0, %v2331_v19, 0.0  ;;  %v2332_v10 = vmul.f32 %v5126_v24, %v5126_v24 }
 0x203   : > { %2374 = vadd.xlane.f32.xlu1 %v2373_v27  ;;  %v2194_v32 = vpop.xlane.xlu1 %2193  ;;  %2371 = vadd.xlane.f32.xlu0 %v2370_v9 }
 0x204   : > { %v5138_v22 = vsub.f32 %v4959_v51, %v2270_v47  ;;  %v2271_v48 = vmul.f32 0.03125, %v2194_v32  ;;  %v2333_v33 = vmul.f32 %v5132_v50, %v5132_v50  ;;  %v2376_v21 = vsel %vm250_vm0, %v2332_v10, 0.0 }
 0x205   : > { %v2197_v34 = vpop.xlane.xlu0 %2196 }
 0x206   : > { %v5144_v45 = vsub.f32 %v4956_v3, %v2271_v48  ;;  %v2272_v39 = vmul.f32 0.03125, %v2197_v34  ;;  %v2379_v49 = vsel %vm250_vm0, %v2333_v33, 0.0  ;;  %v2334_v7 = vmul.f32 %v5138_v22, %v5138_v22 }
 0x207   : > { %2380 = vadd.xlane.f32.xlu1 %v2379_v49  ;;  %v2200_v61 = vpop.xlane.xlu1 %2199  ;;  %2377 = vadd.xlane.f32.xlu0 %v2376_v21 }
 0x208   : > { %v5150_v51 = vsub.f32 %v4971_v0, %v2272_v39  ;;  %v2273_v52 = vmul.f32 0.03125, %v2200_v61  ;;  %v2335_v6 = vmul.f32 %v5144_v45, %v5144_v45  ;;  %v2382_v3 = vsel %vm250_vm0, %v2334_v7, 0.0 }
 0x209   : > { %v2203_v44 = vpop.xlane.xlu0 %2202 }
 0x20a   : > { %v5156_v35 = vsub.f32 %v4968_v53, %v2273_v52  ;;  %v2274_v13 = vmul.f32 0.03125, %v2203_v44  ;;  %v2385_v8 = vsel %vm250_vm0, %v2335_v6, 0.0  ;;  %v2336_v63 = vmul.f32 %v5150_v51, %v5150_v51 }
 0x20b   : > { %2386 = vadd.xlane.f32.xlu1 %v2385_v8  ;;  %v2206_v43 = vpop.xlane.xlu1 %2205  ;;  %2383 = vadd.xlane.f32.xlu0 %v2382_v3 }
 0x20c   : > { %v5162_v0 = vsub.f32 %v4983_v4, %v2274_v13  ;;  %v2275_v62 = vmul.f32 0.03125, %v2206_v43  ;;  %v2337_v28 = vmul.f32 %v5156_v35, %v5156_v35  ;;  %v2388_v53 = vsel %vm250_vm0, %v2336_v63, 0.0 }
 0x20d   : > { %v2209_v26 = vpop.xlane.xlu0 %2208 }
 0x20e   : > { %v5168_v41 = vsub.f32 %v4980_v55, %v2275_v62  ;;  %v2276_v16 = vmul.f32 0.03125, %v2209_v26  ;;  %v2391_v57 = vsel %vm250_vm0, %v2337_v28, 0.0  ;;  %v2338_v40 = vmul.f32 %v5162_v0, %v5162_v0 }
 0x20f   : > { %2392 = vadd.xlane.f32.xlu1 %v2391_v57  ;;  %v2212_v19 = vpop.xlane.xlu1 %2211  ;;  %2389 = vadd.xlane.f32.xlu0 %v2388_v53 }
 0x210   : > { %v5174_v4 = vsub.f32 %v4995_v11, %v2276_v16  ;;  %v2277_v5 = vmul.f32 0.03125, %v2212_v19  ;;  %v2339_v9 = vmul.f32 %v5168_v41, %v5168_v41  ;;  %v2394_v55 = vsel %vm250_vm0, %v2338_v40, 0.0 }
 0x211   : > { %v2215_v47 = vpop.xlane.xlu0 %2214 }
 0x212   : > { %v5180_v27 = vsub.f32 %v4992_v15, %v2277_v5  ;;  %v2278_v10 = vmul.f32 0.03125, %v2215_v47  ;;  %v2397_v32 = vsel %vm250_vm0, %v2339_v9, 0.0  ;;  %v2340_v48 = vmul.f32 %v5174_v4, %v5174_v4 }
 0x213   : > { %2398 = vadd.xlane.f32.xlu1 %v2397_v32  ;;  %v2218_v33 = vpop.xlane.xlu1 %2217  ;;  %2395 = vadd.xlane.f32.xlu0 %v2394_v55 }
 0x214   : > { %v5186_v11 = vsub.f32 %v5007_v1, %v2278_v10  ;;  %v2279_v34 = vmul.f32 0.03125, %v2218_v33  ;;  %v2341_v21 = vmul.f32 %v5180_v27, %v5180_v27  ;;  %v2400_v15 = vsel %vm250_vm0, %v2340_v48, 0.0 }
 0x215   : > { %v2221_v39 = vpop.xlane.xlu0 %2220 }
 0x216   : > { %v5192_v49 = vsub.f32 %v5004_v2, %v2279_v34  ;;  %v2280_v7 = vmul.f32 0.03125, %v2221_v39  ;;  %v2403_v61 = vsel %vm250_vm0, %v2341_v21, 0.0  ;;  %v2342_v52 = vmul.f32 %v5186_v11, %v5186_v11 }
 0x217   : > { %2404 = vadd.xlane.f32.xlu1 %v2403_v61  ;;  %v2224_v6 = vpop.xlane.xlu1 %2223  ;;  %2401 = vadd.xlane.f32.xlu0 %v2400_v15 }
 0x218   : > { %v5198_v1 = vsub.f32 %v5019_v38, %v2280_v7  ;;  %v2281_v44 = vmul.f32 0.03125, %v2224_v6  ;;  %v2343_v3 = vmul.f32 %v5192_v49, %v5192_v49  ;;  %v2406_v2 = vsel %vm250_vm0, %v2342_v52, 0.0 }
 0x219   : > { %v2227_v13 = vpop.xlane.xlu0 %2226 }
 0x21a   : > { %v5204_v8 = vsub.f32 %v5016_v37, %v2281_v44  ;;  %v2282_v63 = vmul.f32 0.03125, %v2227_v13  ;;  %v2409_v43 = vsel %vm250_vm0, %v2343_v3, 0.0  ;;  %v2344_v62 = vmul.f32 %v5198_v1, %v5198_v1 }
 0x21b   : > { %2410 = vadd.xlane.f32.xlu1 %v2409_v43  ;;  %v2230_v28 = vpop.xlane.xlu1 %2229  ;;  %2407 = vadd.xlane.f32.xlu0 %v2406_v2 }
 0x21c   : > { %v5210_v38 = vsub.f32 %v5031_v60, %v2282_v63  ;;  %v2283_v26 = vmul.f32 0.03125, %v2230_v28  ;;  %v2345_v53 = vmul.f32 %v5204_v8, %v5204_v8  ;;  %v2412_v37 = vsel %vm250_vm0, %v2344_v62, 0.0 }
 0x21d   : > { %v2233_v16 = vpop.xlane.xlu0 %2232 }
 0x21e   : > { %v5216_v57 = vsub.f32 %v5028_v29, %v2283_v26  ;;  %v2284_v40 = vmul.f32 0.03125, %v2233_v16  ;;  %v2415_v19 = vsel %vm250_vm0, %v2345_v53, 0.0  ;;  %v2346_v5 = vmul.f32 %v5210_v38, %v5210_v38 }
 0x21f   : > { %2416 = vadd.xlane.f32.xlu1 %v2415_v19  ;;  %v2236_v9 = vpop.xlane.xlu1 %2235  ;;  %2413 = vadd.xlane.f32.xlu0 %v2412_v37 }
 0x220   : > { %v5222_v60 = vsub.f32 %v5043_v56, %v2284_v40  ;;  %v2285_v47 = vmul.f32 0.03125, %v2236_v9  ;;  %v2347_v55 = vmul.f32 %v5216_v57, %v5216_v57  ;;  %v2418_v29 = vsel %vm250_vm0, %v2346_v5, 0.0 }
 0x221   : > { %v2239_v10 = vpop.xlane.xlu0 %2238 }
 0x222   : > { %v5228_v32 = vsub.f32 %v5040_v25, %v2285_v47  ;;  %v2286_v48 = vmul.f32 0.03125, %v2239_v10  ;;  %v2421_v33 = vsel %vm250_vm0, %v2347_v55, 0.0  ;;  %v2348_v34 = vmul.f32 %v5222_v60, %v5222_v60 }
 0x223   : > { %2422 = vadd.xlane.f32.xlu1 %v2421_v33  ;;  %v2242_v21 = vpop.xlane.xlu1 %2241  ;;  %2419 = vadd.xlane.f32.xlu0 %v2418_v29 }
 0x224   : > { %v5234_v56 = vsub.f32 %v5055_v20, %v2286_v48  ;;  %v2287_v39 = vmul.f32 0.03125, %v2242_v21  ;;  %v2349_v15 = vmul.f32 %v5228_v32, %v5228_v32  ;;  %v2424_v25 = vsel %vm250_vm0, %v2348_v34, 0.0 }
 0x225   : > { %v2245_v7 = vpop.xlane.xlu0 %2244 }
 0x226   : > { %v5240_v61 = vsub.f32 %v5052_v23, %v2287_v39  ;;  %v2288_v52 = vmul.f32 0.03125, %v2245_v7  ;;  %v2427_v6 = vsel %vm250_vm0, %v2349_v15, 0.0  ;;  %v2350_v44 = vmul.f32 %v5234_v56, %v5234_v56 }
 0x227   : > { %2428 = vadd.xlane.f32.xlu1 %v2427_v6  ;;  %v2248_v3 = vpop.xlane.xlu1 %2247  ;;  %2425 = vadd.xlane.f32.xlu0 %v2424_v25 }
 0x228   : > { %v5246_v20 = vsub.f32 %v5067_v46, %v2288_v52  ;;  %v2289_v13 = vmul.f32 0.03125, %v2248_v3  ;;  %v2351_v2 = vmul.f32 %v5240_v61, %v5240_v61  ;;  %v2430_v23 = vsel %vm250_vm0, %v2350_v44, 0.0 }
 0x229   : > { %v2251_v63 = vpop.xlane.xlu0 %2250 }
 0x22a   : > { %v5252_v43 = vsub.f32 %v5064_v54, %v2289_v13  ;;  %v2290_v62 = vmul.f32 0.03125, %v2251_v63  ;;  %v2433_v28 = vsel %vm250_vm0, %v2351_v2, 0.0  ;;  %v2352_v26 = vmul.f32 %v5246_v20, %v5246_v20 }
 0x22b   : > { %2434 = vadd.xlane.f32.xlu1 %v2433_v28  ;;  %v2254_v53 = vpop.xlane.xlu1 %2253  ;;  %2431 = vadd.xlane.f32.xlu0 %v2430_v23 }
 0x22c   : > { %v5258_v46 = vsub.f32 %v5077_v30, %v2290_v62  ;;  %v2291_v16 = vmul.f32 0.03125, %v2254_v53  ;;  %v2353_v37 = vmul.f32 %v5252_v43, %v5252_v43  ;;  %v2436_v54 = vsel %vm250_vm0, %v2352_v26, 0.0 }
 0x22d   : > { %v2257_v40 = vpop.xlane.xlu0 %2256 }
 0x22e   : > { %v5264_v19 = vsub.f32 %v5074_v31, %v2291_v16  ;;  %v2292_v5 = vmul.f32 0.03125, %v2257_v40  ;;  %v2439_v9 = vsel %vm250_vm0, %v2353_v37, 0.0  ;;  %v2354_v47 = vmul.f32 %v5258_v46, %v5258_v46  ;;  %v6070_v16 = vld [vmem:[#allocation2_spill] sm:$0xff] }
 0x22f   : > { %2440 = vadd.xlane.f32.xlu1 %v2439_v9  ;;  %v2260_v55 = vpop.xlane.xlu1 %2259  ;;  %2437 = vadd.xlane.f32.xlu0 %v2436_v54  ;;  %v2584_v37 = vsub.s32 1, %v6070_v16 }
 0x230   : > { %v5270_v30 = vsub.f32 %v5085_v59, %v2292_v5  ;;  %v2293_v10 = vmul.f32 0.03125, %v2260_v55  ;;  %v2355_v29 = vmul.f32 %v5264_v19, %v5264_v19  ;;  %v2442_v33 = vsel %vm250_vm0, %v2354_v47, 0.0 }
 0x231   : > { %v2620_v5 = vsub.s32 2, %v6070_v16 }
 0x232   : > { %v5275_v48 = vsub.f32 %v5083_v42, %v2293_v10  ;;  %v2445_v31 = vsel %vm250_vm0, %v2355_v29, 0.0  ;;  %v2356_v34 = vmul.f32 %v5270_v30, %v5270_v30  ;;  %v3966_v29 = vld [vmem:[%s5896_s2] sm:$0xff] }
 0x233   : > { %2446 = vadd.xlane.f32.xlu1 %v2445_v31  ;;  %2443 = vadd.xlane.f32.xlu0 %v2442_v33  ;;  %v5290_v31 = vrot.slane %v3966_v29, %v2584_v37 }
 0x234   : > { %v2357_v59 = vmul.f32 %v5275_v48, %v5275_v48  ;;  %v2448_v39 = vsel %vm250_vm0, %v2356_v34, 0.0 }
 0x236   : > { %v2451_v21 = vsel %vm250_vm0, %v2357_v59, 0.0 }
 0x237   : > { %2452 = vadd.xlane.f32.xlu1 %v2451_v21  ;;  %2449 = vadd.xlane.f32.xlu0 %v2448_v39  ;;  %v5293_v39 = vrot.slane %v3966_v29, %v2620_v5 }
 0x280   : > { %v2363_v42 = vpop.xlane.xlu1 %2362 }
 0x281   : > { %v2455_v15 = vmul.f32 0.03125, %v2363_v42 }
 0x283   : > { %v2487_v7 = vadd.f32 1e-05, %v2455_v15 }
 0x284   : > { %v2369_v25 = vpop.xlane.xlu1 %2368  ;;  %v2360_v52 = vpop.xlane.xlu0 %2359 }
 0x285   : > { %3838 = vrsqrt.f32 %v2487_v7  ;;  %v2457_v6 = vmul.f32 0.03125, %v2369_v25  ;;  %v2454_v44 = vmul.f32 0.03125, %v2360_v52 }
 0x287   : > { %v2489_v3 = vadd.f32 1e-05, %v2457_v6  ;;  %v2486_v13 = vadd.f32 1e-05, %v2454_v44 }
 0x288   : > { %v2366_v2 = vpop.xlane.xlu0 %2365 }
 0x289   : > { %3840 = vrsqrt.f32 %v2489_v3  ;;  %v2456_v63 = vmul.f32 0.03125, %v2366_v2 }
 0x28a   : > { %3842 = vrsqrt.f32 %v2486_v13 }
 0x28b   : > { %v2488_v23 = vadd.f32 1e-05, %v2456_v63 }
 0x28c   : > { %v2375_v62 = vpop.xlane.xlu1 %2374  ;;  %v2372_v28 = vpop.xlane.xlu0 %2371 }
 0x28d   : > { %3844 = vrsqrt.f32 %v2488_v23  ;;  %v2459_v26 = vmul.f32 0.03125, %v2375_v62  ;;  %v2458_v53 = vmul.f32 0.03125, %v2372_v28 }
 0x28f   : > { %v2491_v40 = vadd.f32 1e-05, %v2459_v26  ;;  %v2490_v54 = vadd.f32 1e-05, %v2458_v53 }
 0x290   : > { %v2381_v9 = vpop.xlane.xlu1 %2380  ;;  %v2378_v47 = vpop.xlane.xlu0 %2377 }
 0x291   : > { %3846 = vrsqrt.f32 %v2491_v40  ;;  %v2461_v55 = vmul.f32 0.03125, %v2381_v9  ;;  %v2460_v10 = vmul.f32 0.03125, %v2378_v47 }
 0x292   : > { %v3839_v33 = vpop.eup %3838  ;;  %3848 = vrsqrt.f32 %v2490_v54 }
 0x293   : > { %v2493_v34 = vadd.f32 1e-05, %v2461_v55  ;;  %v2492_v59 = vadd.f32 1e-05, %v2460_v10  ;;  %v2551_v21 = vmul.f32 %v3839_v33, %v5094_v18 }
 0x294   : > { %v2387_v42 = vpop.xlane.xlu1 %2386  ;;  %v2384_v15 = vpop.xlane.xlu0 %2383 }
 0x295   : > { %3850 = vrsqrt.f32 %v2493_v34  ;;  %v2463_v7 = vmul.f32 0.03125, %v2387_v42  ;;  %v2462_v25 = vmul.f32 0.03125, %v2384_v15  ;;  %v2587_v52 = vmul.f32 %v5290_v31, %v2551_v21 }
 0x296   : > { %v3841_v6 = vpop.eup %3840  ;;  %3852 = vrsqrt.f32 %v2492_v59 }
 0x297   : > { %v3843_v44 = vpop.eup %3842  ;;  %v2495_v3 = vadd.f32 1e-05, %v2463_v7  ;;  %v2494_v13 = vadd.f32 1e-05, %v2462_v25  ;;  %v5297_v2 = vadd.f32 %v5293_v39, %v2587_v52  ;;  %v2553_v63 = vmul.f32 %v3841_v6, %v5099_v14 }
 0x298   : > { %v2393_v18 = vpop.xlane.xlu1 %2392  ;;  %v2390_v23 = vpop.xlane.xlu0 %2389  ;;  %v2550_v62 = vmul.f32 %v3843_v44, %v5102_v17 }
 0x299   : > { %3854 = vrsqrt.f32 %v2495_v3  ;;  %v2465_v28 = vmul.f32 0.03125, %v2393_v18  ;;  %v2464_v26 = vmul.f32 0.03125, %v2390_v23  ;;  %v2657_v53 = vsel %vm250_vm0, %v5297_v2, 0.0 }
 0x29a   : > { %v3845_v37 = vpop.eup %3844  ;;  %3856 = vrsqrt.f32 %v2494_v13  ;;  %2658 = vadd.xlane.f32.xlu1 %v2657_v53  ;;  %v2589_v40 = vmul.f32 %v5290_v31, %v2553_v63  ;;  %v2586_v54 = vmul.f32 %v5290_v31, %v2550_v62 }
 0x29b   : > { %v2497_v5 = vadd.f32 1e-05, %v2465_v28  ;;  %v2496_v9 = vadd.f32 1e-05, %v2464_v26  ;;  %v2552_v14 = vmul.f32 %v3845_v37, %v5110_v36 }
 0x29c   : > { %v2399_v47 = vpop.xlane.xlu1 %2398  ;;  %v2396_v55 = vpop.xlane.xlu0 %2395  ;;  %v5307_v17 = vadd.f32 %v5293_v39, %v2589_v40  ;;  %v5310_v10 = vadd.f32 %v5293_v39, %v2586_v54 }
 0x29d   : > { %3858 = vrsqrt.f32 %v2497_v5  ;;  %v2467_v29 = vmul.f32 0.03125, %v2399_v47  ;;  %v2466_v33 = vmul.f32 0.03125, %v2396_v55  ;;  %v2588_v34 = vmul.f32 %v5290_v31, %v2552_v14 }
 0x29e   : > { %v3847_v59 = vpop.eup %3846  ;;  %3860 = vrsqrt.f32 %v2496_v9  ;;  %v2663_v21 = vsel %vm250_vm0, %v5307_v17, 0.0  ;;  %v2654_v36 = vsel %vm250_vm0, %v5310_v10, 0.0 }
 0x29f   : > { %v3849_v42 = vpop.eup %3848  ;;  %v2499_v15 = vadd.f32 1e-05, %v2467_v29  ;;  %v2498_v7 = vadd.f32 1e-05, %v2466_v33  ;;  %2664 = vadd.xlane.f32.xlu1 %v2663_v21  ;;  %2655 = vadd.xlane.f32.xlu0 %v2654_v36  ;;  %v5318_v25 = vadd.f32 %v5293_v39, %v2588_v34  ;;  %v2555_v52 = vmul.f32 %v3847_v59, %v5120_v58 }
 0x2a0   : > { %v2405_v6 = vpop.xlane.xlu1 %2404  ;;  %v2402_v44 = vpop.xlane.xlu0 %2401  ;;  %v2554_v3 = vmul.f32 %v3849_v42, %v5115_v12 }
 0x2a1   : > { %3862 = vrsqrt.f32 %v2499_v15  ;;  %v2469_v13 = vmul.f32 0.03125, %v2405_v6  ;;  %v2468_v63 = vmul.f32 0.03125, %v2402_v44  ;;  %v2660_v18 = vsel %vm250_vm0, %v5318_v25, 0.0 }
 0x2a2   : > { %v3851_v23 = vpop.eup %3850  ;;  %3864 = vrsqrt.f32 %v2498_v7  ;;  %v2591_v62 = vmul.f32 %v5290_v31, %v2555_v52  ;;  %v2590_v28 = vmul.f32 %v5290_v31, %v2554_v3 }
 0x2a3   : > { %v3853_v26 = vpop.eup %3852  ;;  %v2501_v53 = vadd.f32 1e-05, %v2469_v13  ;;  %v2500_v37 = vadd.f32 1e-05, %v2468_v63  ;;  %2661 = vadd.xlane.f32.xlu0 %v2660_v18  ;;  %v2557_v58 = vmul.f32 %v3851_v23, %v5132_v50 }
 0x2a4   : > { %v2411_v40 = vpop.xlane.xlu1 %2410  ;;  %v2408_v12 = vpop.xlane.xlu0 %2407  ;;  %v5328_v54 = vadd.f32 %v5293_v39, %v2591_v62  ;;  %v5331_v5 = vadd.f32 %v5293_v39, %v2590_v28  ;;  %v2556_v9 = vmul.f32 %v3853_v26, %v5126_v24 }
 0x2a5   : > { %3866 = vrsqrt.f32 %v2501_v53  ;;  %v2471_v14 = vmul.f32 0.03125, %v2411_v40  ;;  %v2470_v47 = vmul.f32 0.03125, %v2408_v12  ;;  %v2593_v55 = vmul.f32 %v5290_v31, %v2557_v58 }
 0x2a6   : > { %v3855_v29 = vpop.eup %3854  ;;  %3868 = vrsqrt.f32 %v2500_v37  ;;  %v2669_v50 = vsel %vm250_vm0, %v5328_v54, 0.0  ;;  %v2666_v33 = vsel %vm250_vm0, %v5331_v5, 0.0  ;;  %v2592_v34 = vmul.f32 %v5290_v31, %v2556_v9 }
 0x2a7   : > { %v3857_v59 = vpop.eup %3856  ;;  %v2503_v21 = vadd.f32 1e-05, %v2471_v14  ;;  %v2502_v36 = vadd.f32 1e-05, %v2470_v47  ;;  %2670 = vadd.xlane.f32.xlu1 %v2669_v50  ;;  %2667 = vadd.xlane.f32.xlu0 %v2666_v33  ;;  %v5341_v24 = vadd.f32 %v5293_v39, %v2593_v55  ;;  %v2559_v42 = vmul.f32 %v3855_v29, %v5144_v45 }
 0x2a8   : > { %v2417_v15 = vpop.xlane.xlu1 %2416  ;;  %v2414_v7 = vpop.xlane.xlu0 %2413  ;;  %v5345_v52 = vadd.f32 %v5293_v39, %v2592_v34  ;;  %v2558_v6 = vmul.f32 %v3857_v59, %v5138_v22 }
 0x2a9   : > { %3870 = vrsqrt.f32 %v2503_v21  ;;  %v2473_v44 = vmul.f32 0.03125, %v2417_v15  ;;  %v2472_v3 = vmul.f32 0.03125, %v2414_v7  ;;  %v2675_v13 = vsel %vm250_vm0, %v5341_v24, 0.0 }
 0x2aa   : > { %v3859_v63 = vpop.eup %3858  ;;  %3872 = vrsqrt.f32 %v2502_v36  ;;  %v2672_v18 = vsel %vm250_vm0, %v5345_v52, 0.0  ;;  %v2595_v45 = vmul.f32 %v5290_v31, %v2559_v42  ;;  %v2594_v23 = vmul.f32 %v5290_v31, %v2558_v6 }
 0x2ab   : > { %v3861_v62 = vpop.eup %3860  ;;  %v2505_v28 = vadd.f32 1e-05, %v2473_v44  ;;  %v2504_v26 = vadd.f32 1e-05, %v2472_v3  ;;  %2676 = vadd.xlane.f32.xlu1 %v2675_v13  ;;  %2673 = vadd.xlane.f32.xlu0 %v2672_v18  ;;  %v2561_v22 = vmul.f32 %v3859_v63, %v5156_v35 }
 0x2ac   : > { %v2423_v53 = vpop.xlane.xlu1 %2422  ;;  %v2420_v37 = vpop.xlane.xlu0 %2419  ;;  %v5356_v58 = vadd.f32 %v5293_v39, %v2595_v45  ;;  %v5359_v40 = vadd.f32 %v5293_v39, %v2594_v23  ;;  %v2560_v12 = vmul.f32 %v3861_v62, %v5150_v51 }
 0x2ad   : > { %3874 = vrsqrt.f32 %v2505_v28  ;;  %v2475_v9 = vmul.f32 0.03125, %v2423_v53  ;;  %v2474_v14 = vmul.f32 0.03125, %v2420_v37  ;;  %v2597_v47 = vmul.f32 %v5290_v31, %v2561_v22 }
 0x2ae   : > { %v3863_v55 = vpop.eup %3862  ;;  %3876 = vrsqrt.f32 %v2504_v26  ;;  %v2681_v35 = vsel %vm250_vm0, %v5356_v58, 0.0  ;;  %v2678_v29 = vsel %vm250_vm0, %v5359_v40, 0.0  ;;  %v2596_v50 = vmul.f32 %v5290_v31, %v2560_v12 }
 0x2af   : > { %v3865_v33 = vpop.eup %3864  ;;  %v2507_v34 = vadd.f32 1e-05, %v2475_v9  ;;  %v2506_v59 = vadd.f32 1e-05, %v2474_v14  ;;  %2682 = vadd.xlane.f32.xlu1 %v2681_v35  ;;  %2679 = vadd.xlane.f32.xlu0 %v2678_v29  ;;  %v5369_v51 = vadd.f32 %v5293_v39, %v2597_v47  ;;  %v2563_v21 = vmul.f32 %v3863_v55, %v5168_v41 }
 0x2b0   : > { %v2429_v36 = vpop.xlane.xlu1 %2428  ;;  %v2426_v42 = vpop.xlane.xlu0 %2425  ;;  %v5373_v15 = vadd.f32 %v5293_v39, %v2596_v50  ;;  %v2562_v7 = vmul.f32 %v3865_v33, %v5162_v0 }
 0x2b1   : > { %3878 = vrsqrt.f32 %v2507_v34  ;;  %v2477_v6 = vmul.f32 0.03125, %v2429_v36  ;;  %v2476_v44 = vmul.f32 0.03125, %v2426_v42  ;;  %v2687_v3 = vsel %vm250_vm0, %v5369_v51, 0.0 }
 0x2b2   : > { %v3867_v13 = vpop.eup %3866  ;;  %3880 = vrsqrt.f32 %v2506_v59  ;;  %v2684_v63 = vsel %vm250_vm0, %v5373_v15, 0.0  ;;  %v2599_v41 = vmul.f32 %v5290_v31, %v2563_v21  ;;  %v2598_v18 = vmul.f32 %v5290_v31, %v2562_v7 }
 0x2b3   : > { %v3869_v45 = vpop.eup %3868  ;;  %v2509_v23 = vadd.f32 1e-05, %v2477_v6  ;;  %v2508_v62 = vadd.f32 1e-05, %v2476_v44  ;;  %2688 = vadd.xlane.f32.xlu1 %v2687_v3  ;;  %2685 = vadd.xlane.f32.xlu0 %v2684_v63  ;;  %v2565_v0 = vmul.f32 %v3867_v13, %v5180_v27 }
 0x2b4   : > { %v2435_v28 = vpop.xlane.xlu1 %2434  ;;  %v2432_v26 = vpop.xlane.xlu0 %2431  ;;  %v5384_v22 = vadd.f32 %v5293_v39, %v2599_v41  ;;  %v5387_v53 = vadd.f32 %v5293_v39, %v2598_v18  ;;  %v2564_v37 = vmul.f32 %v3869_v45, %v5174_v4 }
 0x2b5   : > { %3882 = vrsqrt.f32 %v2509_v23  ;;  %v2479_v12 = vmul.f32 0.03125, %v2435_v28  ;;  %v2478_v9 = vmul.f32 0.03125, %v2432_v26  ;;  %v2601_v14 = vmul.f32 %v5290_v31, %v2565_v0 }
 0x2b6   : > { %v3871_v47 = vpop.eup %3870  ;;  %3884 = vrsqrt.f32 %v2508_v62  ;;  %v2693_v27 = vsel %vm250_vm0, %v5384_v22, 0.0  ;;  %v2690_v55 = vsel %vm250_vm0, %v5387_v53, 0.0  ;;  %v2600_v35 = vmul.f32 %v5290_v31, %v2564_v37 }
 0x2b7   : > { %v3873_v29 = vpop.eup %3872  ;;  %v2511_v50 = vadd.f32 1e-05, %v2479_v12  ;;  %v2510_v33 = vadd.f32 1e-05, %v2478_v9  ;;  %2694 = vadd.xlane.f32.xlu1 %v2693_v27  ;;  %2691 = vadd.xlane.f32.xlu0 %v2690_v55  ;;  %v5397_v4 = vadd.f32 %v5293_v39, %v2601_v14  ;;  %v2567_v34 = vmul.f32 %v3871_v47, %v5192_v49 }
 0x2b8   : > { %v2441_v59 = vpop.xlane.xlu1 %2440  ;;  %v2438_v21 = vpop.xlane.xlu0 %2437  ;;  %v5401_v36 = vadd.f32 %v5293_v39, %v2600_v35  ;;  %v2566_v42 = vmul.f32 %v3873_v29, %v5186_v11 }
 0x2b9   : > { %3886 = vrsqrt.f32 %v2511_v50  ;;  %v2481_v7 = vmul.f32 0.03125, %v2441_v59  ;;  %v2480_v6 = vmul.f32 0.03125, %v2438_v21  ;;  %v2699_v44 = vsel %vm250_vm0, %v5397_v4, 0.0 }
 0x2ba   : > { %v3875_v3 = vpop.eup %3874  ;;  %3888 = vrsqrt.f32 %v2510_v33  ;;  %v2696_v13 = vsel %vm250_vm0, %v5401_v36, 0.0  ;;  %v2603_v49 = vmul.f32 %v5290_v31, %v2567_v34  ;;  %v2602_v63 = vmul.f32 %v5290_v31, %v2566_v42 }
 0x2bb   : > { %v3877_v41 = vpop.eup %3876  ;;  %v2513_v18 = vadd.f32 1e-05, %v2481_v7  ;;  %v2512_v45 = vadd.f32 1e-05, %v2480_v6  ;;  %2700 = vadd.xlane.f32.xlu1 %v2699_v44  ;;  %2697 = vadd.xlane.f32.xlu0 %v2696_v13  ;;  %v2569_v11 = vmul.f32 %v3875_v3, %v5204_v8 }
 0x2bc   : > { %v2447_v23 = vpop.xlane.xlu1 %2446  ;;  %v2444_v62 = vpop.xlane.xlu0 %2443  ;;  %v5412_v0 = vadd.f32 %v5293_v39, %v2603_v49  ;;  %v5415_v28 = vadd.f32 %v5293_v39, %v2602_v63  ;;  %v2568_v26 = vmul.f32 %v3877_v41, %v5198_v1 }
 0x2bd   : > { %3890 = vrsqrt.f32 %v2513_v18  ;;  %v2483_v37 = vmul.f32 0.03125, %v2447_v23  ;;  %v2482_v12 = vmul.f32 0.03125, %v2444_v62  ;;  %v2605_v9 = vmul.f32 %v5290_v31, %v2569_v11 }
 0x2be   : > { %v3879_v14 = vpop.eup %3878  ;;  %3892 = vrsqrt.f32 %v2512_v45  ;;  %v2705_v8 = vsel %vm250_vm0, %v5412_v0, 0.0  ;;  %v2702_v47 = vsel %vm250_vm0, %v5415_v28, 0.0  ;;  %v2604_v27 = vmul.f32 %v5290_v31, %v2568_v26 }
 0x2bf   : > { %v3881_v55 = vpop.eup %3880  ;;  %v2515_v35 = vadd.f32 1e-05, %v2483_v37  ;;  %v2514_v29 = vadd.f32 1e-05, %v2482_v12  ;;  %2706 = vadd.xlane.f32.xlu1 %v2705_v8  ;;  %2703 = vadd.xlane.f32.xlu0 %v2702_v47  ;;  %v5425_v1 = vadd.f32 %v5293_v39, %v2605_v9  ;;  %v2571_v50 = vmul.f32 %v3879_v14, %v5216_v57 }
 0x2c0   : > { %v2453_v33 = vpop.xlane.xlu1 %2452  ;;  %v2450_v34 = vpop.xlane.xlu0 %2449  ;;  %v5429_v59 = vadd.f32 %v5293_v39, %v2604_v27  ;;  %v2570_v21 = vmul.f32 %v3881_v55, %v5210_v38 }
 0x2c1   : > { %3894 = vrsqrt.f32 %v2515_v35  ;;  %v2485_v42 = vmul.f32 0.03125, %v2453_v33  ;;  %v2484_v7 = vmul.f32 0.03125, %v2450_v34  ;;  %v2711_v6 = vsel %vm250_vm0, %v5425_v1, 0.0 }
 0x2c2   : > { %v3883_v44 = vpop.eup %3882  ;;  %3896 = vrsqrt.f32 %v2514_v29  ;;  %v2708_v3 = vsel %vm250_vm0, %v5429_v59, 0.0  ;;  %v2607_v57 = vmul.f32 %v5290_v31, %v2571_v50  ;;  %v2606_v13 = vmul.f32 %v5290_v31, %v2570_v21 }
 0x2c3   : > { %v3885_v49 = vpop.eup %3884  ;;  %v2517_v63 = vadd.f32 1e-05, %v2485_v42  ;;  %v2516_v41 = vadd.f32 1e-05, %v2484_v7  ;;  %2712 = vadd.xlane.f32.xlu1 %v2711_v6  ;;  %2709 = vadd.xlane.f32.xlu0 %v2708_v3  ;;  %v2573_v38 = vmul.f32 %v3883_v44, %v5228_v32 }
 0x2c4   : > { %v5440_v18 = vadd.f32 %v5293_v39, %v2607_v57  ;;  %v5443_v45 = vadd.f32 %v5293_v39, %v2606_v13  ;;  %v2572_v11 = vmul.f32 %v3885_v49, %v5222_v60 }
 0x2c5   : > { %3898 = vrsqrt.f32 %v2517_v63  ;;  %v2609_v23 = vmul.f32 %v5290_v31, %v2573_v38 }
 0x2c6   : > { %v3887_v62 = vpop.eup %3886  ;;  %3900 = vrsqrt.f32 %v2516_v41  ;;  %v2717_v26 = vsel %vm250_vm0, %v5440_v18, 0.0  ;;  %v2714_v37 = vsel %vm250_vm0, %v5443_v45, 0.0  ;;  %v2608_v32 = vmul.f32 %v5290_v31, %v2572_v11 }
 0x2c7   : > { %v3889_v12 = vpop.eup %3888  ;;  %2718 = vadd.xlane.f32.xlu1 %v2717_v26  ;;  %2715 = vadd.xlane.f32.xlu0 %v2714_v37  ;;  %v5453_v9 = vadd.f32 %v5293_v39, %v2609_v23  ;;  %v2575_v60 = vmul.f32 %v3887_v62, %v5240_v61 }
 0x2c8   : > { %v5457_v14 = vadd.f32 %v5293_v39, %v2608_v32  ;;  %v2574_v8 = vmul.f32 %v3889_v12, %v5234_v56 }
 0x2c9   : > { %v2723_v47 = vsel %vm250_vm0, %v5453_v9, 0.0  ;;  %v2611_v27 = vmul.f32 %v5290_v31, %v2575_v60 }
 0x2ca   : > { %v3891_v55 = vpop.eup %3890  ;;  %v2720_v35 = vsel %vm250_vm0, %v5457_v14, 0.0  ;;  %v2610_v29 = vmul.f32 %v5290_v31, %v2574_v8 }
 0x2cb   : > { %v3893_v50 = vpop.eup %3892  ;;  %2724 = vadd.xlane.f32.xlu1 %v2723_v47  ;;  %2721 = vadd.xlane.f32.xlu0 %v2720_v35  ;;  %v5467_v61 = vadd.f32 %v5293_v39, %v2611_v27  ;;  %v2577_v33 = vmul.f32 %v3891_v55, %v5252_v43 }
 0x2cc   : > { %v5471_v56 = vadd.f32 %v5293_v39, %v2610_v29  ;;  %v2576_v34 = vmul.f32 %v3893_v50, %v5246_v20 }
 0x2cd   : > { %v2729_v21 = vsel %vm250_vm0, %v5467_v61, 0.0  ;;  %v2613_v42 = vmul.f32 %v5290_v31, %v2577_v33 }
 0x2ce   : > { %v3895_v7 = vpop.eup %3894  ;;  %v2726_v6 = vsel %vm250_vm0, %v5471_v56, 0.0  ;;  %v2612_v44 = vmul.f32 %v5290_v31, %v2576_v34 }
 0x2cf   : > { %v3897_v3 = vpop.eup %3896  ;;  %2730 = vadd.xlane.f32.xlu1 %v2729_v21  ;;  %2727 = vadd.xlane.f32.xlu0 %v2726_v6  ;;  %v5481_v43 = vadd.f32 %v5293_v39, %v2613_v42  ;;  %v2579_v57 = vmul.f32 %v3895_v7, %v5264_v19 }
 0x2d0   : > { %v5485_v20 = vadd.f32 %v5293_v39, %v2612_v44  ;;  %v2578_v13 = vmul.f32 %v3897_v3, %v5258_v46 }
 0x2d1   : > { %v2735_v49 = vsel %vm250_vm0, %v5481_v43, 0.0  ;;  %v2615_v63 = vmul.f32 %v5290_v31, %v2579_v57 }
 0x2d2   : > { %v3899_v41 = vpop.eup %3898  ;;  %v2732_v38 = vsel %vm250_vm0, %v5485_v20, 0.0  ;;  %v2614_v11 = vmul.f32 %v5290_v31, %v2578_v13 }
 0x2d3   : > { %v3901_v23 = vpop.eup %3900  ;;  %2736 = vadd.xlane.f32.xlu1 %v2735_v49  ;;  %2733 = vadd.xlane.f32.xlu0 %v2732_v38  ;;  %v5495_v19 = vadd.f32 %v5293_v39, %v2615_v63  ;;  %v2581_v62 = vmul.f32 %v3899_v41, %v5275_v48 }
 0x2d4   : > { %v5499_v46 = vadd.f32 %v5293_v39, %v2614_v11  ;;  %v2580_v26 = vmul.f32 %v3901_v23, %v5270_v30 }
 0x2d5   : > { %v2741_v37 = vsel %vm250_vm0, %v5495_v19, 0.0  ;;  %v2617_v32 = vmul.f32 %v5290_v31, %v2581_v62 }
 0x2d6   : > { %v2738_v12 = vsel %vm250_vm0, %v5499_v46, 0.0  ;;  %v2616_v60 = vmul.f32 %v5290_v31, %v2580_v26 }
 0x2d7   : > { %2742 = vadd.xlane.f32.xlu1 %v2741_v37  ;;  %2739 = vadd.xlane.f32.xlu0 %v2738_v12  ;;  %v5509_v8 = vadd.f32 %v5293_v39, %v2617_v32 }
 0x2d8   : > { %v5512_v48 = vadd.f32 %v5293_v39, %v2616_v60 }
 0x2d9   : > { %v2747_v30 = vsel %vm250_vm0, %v5509_v8, 0.0 }
 0x2da   : > { %v2744_v47 = vsel %vm250_vm0, %v5512_v48, 0.0 }
 0x2db   : > { %2748 = vadd.xlane.f32.xlu1 %v2747_v30  ;;  %2745 = vadd.xlane.f32.xlu0 %v2744_v47 }
 0x323   : > { %v2659_v27 = vpop.xlane.xlu1 %2658 }
 0x324   : > { %v2751_v55 = vmul.f32 0.03125, %v2659_v27 }
 0x326   : > { %v5519_v31 = vsub.f32 %v5297_v2, %v2751_v55 }
 0x328   : > { %v2665_v35 = vpop.xlane.xlu1 %2664  ;;  %v2656_v29 = vpop.xlane.xlu0 %2655  ;;  %v2815_v50 = vmul.f32 %v5519_v31, %v5519_v31 }
 0x329   : > { %v2753_v39 = vmul.f32 0.03125, %v2665_v35  ;;  %v2750_v33 = vmul.f32 0.03125, %v2656_v29 }
 0x32a   : > { %v2849_v34 = vsel %vm250_vm0, %v2815_v50, 0.0 }
 0x32b   : > { %v5525_v21 = vsub.f32 %v5307_v17, %v2753_v39  ;;  %v5528_v42 = vsub.f32 %v5310_v10, %v2750_v33  ;;  %2850 = vadd.xlane.f32.xlu1 %v2849_v34 }
 0x32c   : > { %v2662_v7 = vpop.xlane.xlu0 %2661 }
 0x32d   : > { %v2752_v6 = vmul.f32 0.03125, %v2662_v7  ;;  %v2817_v2 = vmul.f32 %v5525_v21, %v5525_v21  ;;  %v2814_v44 = vmul.f32 %v5528_v42, %v5528_v42 }
 0x32f   : > { %v5535_v3 = vsub.f32 %v5318_v25, %v2752_v6  ;;  %v2855_v57 = vsel %vm250_vm0, %v2817_v2, 0.0  ;;  %v2846_v17 = vsel %vm250_vm0, %v2814_v44, 0.0 }
 0x330   : > { %2856 = vadd.xlane.f32.xlu1 %v2855_v57  ;;  %v2671_v13 = vpop.xlane.xlu1 %2670  ;;  %2847 = vadd.xlane.f32.xlu0 %v2846_v17  ;;  %v2668_v10 = vpop.xlane.xlu0 %2667 }
 0x331   : > { %v2755_v49 = vmul.f32 0.03125, %v2671_v13  ;;  %v2754_v63 = vmul.f32 0.03125, %v2668_v10  ;;  %v2816_v41 = vmul.f32 %v5535_v3, %v5535_v3 }
 0x333   : > { %v5542_v38 = vsub.f32 %v5328_v54, %v2755_v49  ;;  %v5545_v11 = vsub.f32 %v5331_v5, %v2754_v63  ;;  %v2852_v25 = vsel %vm250_vm0, %v2816_v41, 0.0 }
 0x334   : > { %v2677_v23 = vpop.xlane.xlu1 %2676  ;;  %2853 = vadd.xlane.f32.xlu0 %v2852_v25  ;;  %v2674_v62 = vpop.xlane.xlu0 %2673 }
 0x335   : > { %v2757_v26 = vmul.f32 0.03125, %v2677_v23  ;;  %v2756_v37 = vmul.f32 0.03125, %v2674_v62  ;;  %v2819_v32 = vmul.f32 %v5542_v38, %v5542_v38  ;;  %v2818_v12 = vmul.f32 %v5545_v11, %v5545_v11 }
 0x337   : > { %v5553_v60 = vsub.f32 %v5341_v24, %v2757_v26  ;;  %v5556_v54 = vsub.f32 %v5345_v52, %v2756_v37  ;;  %v2861_v5 = vsel %vm250_vm0, %v2819_v32, 0.0  ;;  %v2858_v30 = vsel %vm250_vm0, %v2818_v12, 0.0 }
 0x338   : > { %2862 = vadd.xlane.f32.xlu1 %v2861_v5  ;;  %v2683_v47 = vpop.xlane.xlu1 %2682  ;;  %2859 = vadd.xlane.f32.xlu0 %v2858_v30  ;;  %v2680_v27 = vpop.xlane.xlu0 %2679 }
 0x339   : > { %v2759_v55 = vmul.f32 0.03125, %v2683_v47  ;;  %v2758_v35 = vmul.f32 0.03125, %v2680_v27  ;;  %v2821_v29 = vmul.f32 %v5553_v60, %v5553_v60  ;;  %v2820_v24 = vmul.f32 %v5556_v54, %v5556_v54 }
 0x33b   : > { %v5565_v50 = vsub.f32 %v5356_v58, %v2759_v55  ;;  %v5568_v52 = vsub.f32 %v5359_v40, %v2758_v35  ;;  %v2867_v39 = vsel %vm250_vm0, %v2821_v29, 0.0  ;;  %v2864_v33 = vsel %vm250_vm0, %v2820_v24, 0.0 }
 0x33c   : > { %2868 = vadd.xlane.f32.xlu1 %v2867_v39  ;;  %v2689_v34 = vpop.xlane.xlu1 %2688  ;;  %2865 = vadd.xlane.f32.xlu0 %v2864_v33  ;;  %v2686_v7 = vpop.xlane.xlu0 %2685 }
 0x33d   : > { %v2761_v6 = vmul.f32 0.03125, %v2689_v34  ;;  %v2760_v2 = vmul.f32 0.03125, %v2686_v7  ;;  %v2823_v44 = vmul.f32 %v5565_v50, %v5565_v50  ;;  %v2822_v58 = vmul.f32 %v5568_v52, %v5568_v52 }
 0x33f   : > { %v5577_v57 = vsub.f32 %v5369_v51, %v2761_v6  ;;  %v5580_v40 = vsub.f32 %v5373_v15, %v2760_v2  ;;  %v2873_v17 = vsel %vm250_vm0, %v2823_v44, 0.0  ;;  %v2870_v13 = vsel %vm250_vm0, %v2822_v58, 0.0 }
 0x340   : > { %2874 = vadd.xlane.f32.xlu1 %v2873_v17  ;;  %v2695_v10 = vpop.xlane.xlu1 %2694  ;;  %2871 = vadd.xlane.f32.xlu0 %v2870_v13  ;;  %v2692_v49 = vpop.xlane.xlu0 %2691 }
 0x341   : > { %v2763_v63 = vmul.f32 0.03125, %v2695_v10  ;;  %v2762_v41 = vmul.f32 0.03125, %v2692_v49  ;;  %v2825_v25 = vmul.f32 %v5577_v57, %v5577_v57  ;;  %v2824_v51 = vmul.f32 %v5580_v40, %v5580_v40 }
 0x343   : > { %v5589_v23 = vsub.f32 %v5384_v22, %v2763_v63  ;;  %v5592_v15 = vsub.f32 %v5387_v53, %v2762_v41  ;;  %v2879_v62 = vsel %vm250_vm0, %v2825_v25, 0.0  ;;  %v2876_v26 = vsel %vm250_vm0, %v2824_v51, 0.0 }
 0x344   : > { %2880 = vadd.xlane.f32.xlu1 %v2879_v62  ;;  %v2701_v37 = vpop.xlane.xlu1 %2700  ;;  %2877 = vadd.xlane.f32.xlu0 %v2876_v26  ;;  %v2698_v32 = vpop.xlane.xlu0 %2697 }
 0x345   : > { %v2765_v12 = vmul.f32 0.03125, %v2701_v37  ;;  %v2764_v5 = vmul.f32 0.03125, %v2698_v32  ;;  %v2827_v30 = vmul.f32 %v5589_v23, %v5589_v23  ;;  %v2826_v22 = vmul.f32 %v5592_v15, %v5592_v15 }
 0x347   : > { %v5601_v47 = vsub.f32 %v5397_v4, %v2765_v12  ;;  %v5604_v53 = vsub.f32 %v5401_v36, %v2764_v5  ;;  %v2885_v27 = vsel %vm250_vm0, %v2827_v30, 0.0  ;;  %v2882_v55 = vsel %vm250_vm0, %v2826_v22, 0.0 }
 0x348   : > { %2886 = vadd.xlane.f32.xlu1 %v2885_v27  ;;  %v2707_v35 = vpop.xlane.xlu1 %2706  ;;  %2883 = vadd.xlane.f32.xlu0 %v2882_v55  ;;  %v2704_v29 = vpop.xlane.xlu0 %2703 }
 0x349   : > { %v2767_v24 = vmul.f32 0.03125, %v2707_v35  ;;  %v2766_v39 = vmul.f32 0.03125, %v2704_v29  ;;  %v2829_v33 = vmul.f32 %v5601_v47, %v5601_v47  ;;  %v2828_v4 = vmul.f32 %v5604_v53, %v5604_v53 }
 0x34b   : > { %v5613_v34 = vsub.f32 %v5412_v0, %v2767_v24  ;;  %v5616_v36 = vsub.f32 %v5415_v28, %v2766_v39  ;;  %v2891_v7 = vsel %vm250_vm0, %v2829_v33, 0.0  ;;  %v2888_v6 = vsel %vm250_vm0, %v2828_v4, 0.0 }
 0x34c   : > { %2892 = vadd.xlane.f32.xlu1 %v2891_v7  ;;  %v2713_v2 = vpop.xlane.xlu1 %2712  ;;  %2889 = vadd.xlane.f32.xlu0 %v2888_v6  ;;  %v2710_v44 = vpop.xlane.xlu0 %2709 }
 0x34d   : > { %v2769_v58 = vmul.f32 0.03125, %v2713_v2  ;;  %v2768_v17 = vmul.f32 0.03125, %v2710_v44  ;;  %v2831_v13 = vmul.f32 %v5613_v34, %v5613_v34  ;;  %v2830_v0 = vmul.f32 %v5616_v36, %v5616_v36 }
 0x34f   : > { %v5625_v10 = vsub.f32 %v5425_v1, %v2769_v58  ;;  %v5628_v28 = vsub.f32 %v5429_v59, %v2768_v17  ;;  %v2897_v49 = vsel %vm250_vm0, %v2831_v13, 0.0  ;;  %v2894_v63 = vsel %vm250_vm0, %v2830_v0, 0.0 }
 0x350   : > { %2898 = vadd.xlane.f32.xlu1 %v2897_v49  ;;  %v2719_v41 = vpop.xlane.xlu1 %2718  ;;  %2895 = vadd.xlane.f32.xlu0 %v2894_v63  ;;  %v2716_v25 = vpop.xlane.xlu0 %2715 }
 0x351   : > { %v2771_v51 = vmul.f32 0.03125, %v2719_v41  ;;  %v2770_v62 = vmul.f32 0.03125, %v2716_v25  ;;  %v2833_v26 = vmul.f32 %v5625_v10, %v5625_v10  ;;  %v2832_v1 = vmul.f32 %v5628_v28, %v5628_v28 }
 0x353   : > { %v5637_v37 = vsub.f32 %v5440_v18, %v2771_v51  ;;  %v5640_v59 = vsub.f32 %v5443_v45, %v2770_v62  ;;  %v2903_v32 = vsel %vm250_vm0, %v2833_v26, 0.0  ;;  %v2900_v12 = vsel %vm250_vm0, %v2832_v1, 0.0 }
 0x354   : > { %2904 = vadd.xlane.f32.xlu1 %v2903_v32  ;;  %v2725_v5 = vpop.xlane.xlu1 %2724  ;;  %2901 = vadd.xlane.f32.xlu0 %v2900_v12  ;;  %v2722_v30 = vpop.xlane.xlu0 %2721 }
 0x355   : > { %v2773_v22 = vmul.f32 0.03125, %v2725_v5  ;;  %v2772_v27 = vmul.f32 0.03125, %v2722_v30  ;;  %v2835_v55 = vmul.f32 %v5637_v37, %v5637_v37  ;;  %v2834_v18 = vmul.f32 %v5640_v59, %v5640_v59 }
 0x357   : > { %v5649_v35 = vsub.f32 %v5453_v9, %v2773_v22  ;;  %v5652_v45 = vsub.f32 %v5457_v14, %v2772_v27  ;;  %v2909_v29 = vsel %vm250_vm0, %v2835_v55, 0.0  ;;  %v2906_v24 = vsel %vm250_vm0, %v2834_v18, 0.0 }
 0x358   : > { %2910 = vadd.xlane.f32.xlu1 %v2909_v29  ;;  %v2731_v39 = vpop.xlane.xlu1 %2730  ;;  %2907 = vadd.xlane.f32.xlu0 %v2906_v24  ;;  %v2728_v33 = vpop.xlane.xlu0 %2727 }
 0x359   : > { %v2775_v4 = vmul.f32 0.03125, %v2731_v39  ;;  %v2774_v7 = vmul.f32 0.03125, %v2728_v33  ;;  %v2837_v6 = vmul.f32 %v5649_v35, %v5649_v35  ;;  %v2836_v9 = vmul.f32 %v5652_v45, %v5652_v45 }
 0x35b   : > { %v5661_v2 = vsub.f32 %v5467_v61, %v2775_v4  ;;  %v5664_v14 = vsub.f32 %v5471_v56, %v2774_v7  ;;  %v2915_v44 = vsel %vm250_vm0, %v2837_v6, 0.0  ;;  %v2912_v58 = vsel %vm250_vm0, %v2836_v9, 0.0 }
 0x35c   : > { %2916 = vadd.xlane.f32.xlu1 %v2915_v44  ;;  %v2737_v17 = vpop.xlane.xlu1 %2736  ;;  %2913 = vadd.xlane.f32.xlu0 %v2912_v58  ;;  %v2734_v13 = vpop.xlane.xlu0 %2733 }
 0x35d   : > { %v2777_v0 = vmul.f32 0.03125, %v2737_v17  ;;  %v2776_v49 = vmul.f32 0.03125, %v2734_v13  ;;  %v2839_v63 = vmul.f32 %v5661_v2, %v5661_v2  ;;  %v2838_v61 = vmul.f32 %v5664_v14, %v5664_v14 }
 0x35f   : > { %v5673_v41 = vsub.f32 %v5481_v43, %v2777_v0  ;;  %v5676_v56 = vsub.f32 %v5485_v20, %v2776_v49  ;;  %v2921_v25 = vsel %vm250_vm0, %v2839_v63, 0.0  ;;  %v2918_v51 = vsel %vm250_vm0, %v2838_v61, 0.0 }
 0x360   : > { %2922 = vadd.xlane.f32.xlu1 %v2921_v25  ;;  %v2743_v62 = vpop.xlane.xlu1 %2742  ;;  %2919 = vadd.xlane.f32.xlu0 %v2918_v51  ;;  %v2740_v26 = vpop.xlane.xlu0 %2739 }
 0x361   : > { %v2779_v1 = vmul.f32 0.03125, %v2743_v62  ;;  %v2778_v32 = vmul.f32 0.03125, %v2740_v26  ;;  %v2841_v12 = vmul.f32 %v5673_v41, %v5673_v41  ;;  %v2840_v43 = vmul.f32 %v5676_v56, %v5676_v56 }
 0x362   : > { %v3072_v26 = vsub.s32 3, %v6070_v16 }
 0x363   : > { %v5685_v5 = vsub.f32 %v5495_v19, %v2779_v1  ;;  %v5688_v20 = vsub.f32 %v5499_v46, %v2778_v32  ;;  %v2927_v30 = vsel %vm250_vm0, %v2841_v12, 0.0  ;;  %v2924_v22 = vsel %vm250_vm0, %v2840_v43, 0.0 }
 0x364   : > { %2928 = vadd.xlane.f32.xlu1 %v2927_v30  ;;  %v2749_v27 = vpop.xlane.xlu1 %2748  ;;  %2925 = vadd.xlane.f32.xlu0 %v2924_v22  ;;  %v2746_v55 = vpop.xlane.xlu0 %2745  ;;  %v3108_v30 = vsub.s32 4, %v6070_v16 }
 0x365   : > { %v2781_v18 = vmul.f32 0.03125, %v2749_v27  ;;  %v2780_v29 = vmul.f32 0.03125, %v2746_v55  ;;  %v2843_v24 = vmul.f32 %v5685_v5, %v5685_v5  ;;  %v2842_v19 = vmul.f32 %v5688_v20, %v5688_v20  ;;  %v3967_v55 = vld [vmem:[%s5896_s2] sm:$0xff] }
 0x367   : > { %v5697_v46 = vsub.f32 %v5509_v8, %v2781_v18  ;;  %v5700_v39 = vsub.f32 %v5512_v48, %v2780_v29  ;;  %v2933_v33 = vsel %vm250_vm0, %v2843_v24, 0.0  ;;  %v2930_v4 = vsel %vm250_vm0, %v2842_v19, 0.0 }
 0x368   : > { %2934 = vadd.xlane.f32.xlu1 %v2933_v33  ;;  %2931 = vadd.xlane.f32.xlu0 %v2930_v4  ;;  %v5716_v18 = vrot.slane %v3967_v55, %v3072_v26 }
 0x369   : > { %v2845_v7 = vmul.f32 %v5697_v46, %v5697_v46  ;;  %v2844_v6 = vmul.f32 %v5700_v39, %v5700_v39 }
 0x36b   : > { %v2939_v9 = vsel %vm250_vm0, %v2845_v7, 0.0  ;;  %v2936_v8 = vsel %vm250_vm0, %v2844_v6, 0.0  ;;  %v5718_v7 = vrot.slane %v3967_v55, %v3108_v30 }
 0x36c   : > { %2940 = vadd.xlane.f32.xlu1 %v2939_v9  ;;  %2937 = vadd.xlane.f32.xlu0 %v2936_v8 }
 0x3b4   : > { %v2851_v48 = vpop.xlane.xlu1 %2850 }
 0x3b5   : > { %v2943_v44 = vmul.f32 0.03125, %v2851_v48 }
 0x3b7   : > { %v2975_v58 = vadd.f32 1e-05, %v2943_v44 }
 0x3b9   : > { %3902 = vrsqrt.f32 %v2975_v58  ;;  %v2857_v17 = vpop.xlane.xlu1 %2856  ;;  %v2848_v13 = vpop.xlane.xlu0 %2847 }
 0x3ba   : > { %v2945_v0 = vmul.f32 0.03125, %v2857_v17  ;;  %v2942_v49 = vmul.f32 0.03125, %v2848_v13 }
 0x3bc   : > { %v2977_v63 = vadd.f32 1e-05, %v2945_v0  ;;  %v2974_v61 = vadd.f32 1e-05, %v2942_v49 }
 0x3bd   : > { %v2854_v25 = vpop.xlane.xlu0 %2853 }
 0x3be   : > { %3904 = vrsqrt.f32 %v2977_v63  ;;  %v2944_v51 = vmul.f32 0.03125, %v2854_v25 }
 0x3bf   : > { %3906 = vrsqrt.f32 %v2974_v61 }
 0x3c0   : > { %v2976_v62 = vadd.f32 1e-05, %v2944_v51 }
 0x3c1   : > { %v2863_v1 = vpop.xlane.xlu1 %2862  ;;  %v2860_v32 = vpop.xlane.xlu0 %2859 }
 0x3c2   : > { %3908 = vrsqrt.f32 %v2976_v62  ;;  %v2947_v12 = vmul.f32 0.03125, %v2863_v1  ;;  %v2946_v43 = vmul.f32 0.03125, %v2860_v32 }
 0x3c4   : > { %v2979_v22 = vadd.f32 1e-05, %v2947_v12  ;;  %v2978_v27 = vadd.f32 1e-05, %v2946_v43 }
 0x3c5   : > { %v2869_v29 = vpop.xlane.xlu1 %2868  ;;  %v2866_v24 = vpop.xlane.xlu0 %2865 }
 0x3c6   : > { %v3903_v19 = vpop.eup %3902  ;;  %3910 = vrsqrt.f32 %v2979_v22  ;;  %v2949_v33 = vmul.f32 0.03125, %v2869_v29  ;;  %v2948_v4 = vmul.f32 0.03125, %v2866_v24 }
 0x3c7   : > { %v3039_v6 = vmul.f32 %v3903_v19, %v5519_v31  ;;  %3912 = vrsqrt.f32 %v2978_v27 }
 0x3c8   : > { %v2981_v16 = vadd.f32 1e-05, %v2949_v33  ;;  %v2980_v9 = vadd.f32 1e-05, %v2948_v4 }
 0x3c9   : > { %v3075_v8 = vmul.f32 %v5716_v18, %v3039_v6  ;;  %v2875_v48 = vpop.xlane.xlu1 %2874  ;;  %v2872_v44 = vpop.xlane.xlu0 %2871 }
 0x3ca   : > { %3914 = vrsqrt.f32 %v2981_v16  ;;  %v2951_v58 = vmul.f32 0.03125, %v2875_v48  ;;  %v2950_v17 = vmul.f32 0.03125, %v2872_v44 }
 0x3cb   : > { %v3905_v13 = vpop.eup %3904  ;;  %v3111_v0 = vadd.f32 %v5718_v7, %v3075_v8  ;;  %3916 = vrsqrt.f32 %v2980_v9 }
 0x3cc   : > { %v3907_v31 = vpop.eup %3906  ;;  %v3041_v49 = vmul.f32 %v3905_v13, %v5525_v21  ;;  %v2983_v63 = vadd.f32 1e-05, %v2951_v58  ;;  %v2982_v61 = vadd.f32 1e-05, %v2950_v17 }
 0x3cd   : > { %3143 = vst.msk [vmem:[%s5725_s18 + $0x8] sm:$0xff] %vm250_vm0, %v3111_v0  ;;  %v3038_v25 = vmul.f32 %v3907_v31, %v5528_v42  ;;  %v2881_v51 = vpop.xlane.xlu1 %2880  ;;  %v2878_v62 = vpop.xlane.xlu0 %2877 }
 0x3ce   : > { %v3077_v26 = vmul.f32 %v5716_v18, %v3041_v49  ;;  %3918 = vrsqrt.f32 %v2983_v63  ;;  %v2953_v1 = vmul.f32 0.03125, %v2881_v51  ;;  %v2952_v32 = vmul.f32 0.03125, %v2878_v62 }
 0x3cf   : > { %v3909_v12 = vpop.eup %3908  ;;  %v3074_v43 = vmul.f32 %v5716_v18, %v3038_v25  ;;  %3920 = vrsqrt.f32 %v2982_v61 }
 0x3d0   : > { %v3113_v21 = vadd.f32 %v5718_v7, %v3077_v26  ;;  %v3040_v30 = vmul.f32 %v3909_v12, %v5535_v3  ;;  %v2985_v22 = vadd.f32 1e-05, %v2953_v1  ;;  %v2984_v27 = vadd.f32 1e-05, %v2952_v32 }
 0x3d1   : > { %v3110_v42 = vadd.f32 %v5718_v7, %v3074_v43  ;;  %v2887_v55 = vpop.xlane.xlu1 %2886  ;;  %v2884_v29 = vpop.xlane.xlu0 %2883 }
 0x3d2   : > { %3145 = vst.msk [vmem:[%s5725_s18 + $0x18] sm:$0xff] %vm250_vm0, %v3113_v21  ;;  %v3076_v24 = vmul.f32 %v5716_v18, %v3040_v30  ;;  %3922 = vrsqrt.f32 %v2985_v22  ;;  %v2955_v19 = vmul.f32 0.03125, %v2887_v55  ;;  %v2954_v33 = vmul.f32 0.03125, %v2884_v29 }
 0x3d3   : > { %v3911_v4 = vpop.eup %3910  ;;  %3142 = vst.msk [vmem:[%s5725_s18] sm:$0xff] %vm250_vm0, %v3110_v42  ;;  %3924 = vrsqrt.f32 %v2984_v27 }
 0x3d4   : > { %v3913_v6 = vpop.eup %3912  ;;  %v3112_v3 = vadd.f32 %v5718_v7, %v3076_v24  ;;  %v3043_v16 = vmul.f32 %v3911_v4, %v5542_v38  ;;  %v2987_v9 = vadd.f32 1e-05, %v2955_v19  ;;  %v2986_v8 = vadd.f32 1e-05, %v2954_v33 }
 0x3d5   : > { %v3042_v48 = vmul.f32 %v3913_v6, %v5545_v11  ;;  %v2893_v44 = vpop.xlane.xlu1 %2892  ;;  %v2890_v58 = vpop.xlane.xlu0 %2889 }
 0x3d6   : > { %3144 = vst.msk [vmem:[%s5725_s18 + $0x10] sm:$0xff] %vm250_vm0, %v3112_v3  ;;  %v3079_v17 = vmul.f32 %v5716_v18, %v3043_v16  ;;  %3926 = vrsqrt.f32 %v2987_v9  ;;  %v2957_v13 = vmul.f32 0.03125, %v2893_v44  ;;  %v2956_v0 = vmul.f32 0.03125, %v2890_v58 }
 0x3d7   : > { %v3915_v31 = vpop.eup %3914  ;;  %v3078_v49 = vmul.f32 %v5716_v18, %v3042_v48  ;;  %3928 = vrsqrt.f32 %v2986_v8 }
 0x3d8   : > { %v3917_v38 = vpop.eup %3916  ;;  %v3115_v63 = vadd.f32 %v5718_v7, %v3079_v17  ;;  %v3045_v11 = vmul.f32 %v3915_v31, %v5553_v60  ;;  %v2989_v61 = vadd.f32 1e-05, %v2957_v13  ;;  %v2988_v25 = vadd.f32 1e-05, %v2956_v0 }
 0x3d9   : > { %v3114_v51 = vadd.f32 %v5718_v7, %v3078_v49  ;;  %v3044_v62 = vmul.f32 %v3917_v38, %v5556_v54  ;;  %v2899_v26 = vpop.xlane.xlu1 %2898  ;;  %v2896_v1 = vpop.xlane.xlu0 %2895 }
 0x3da   : > { %3147 = vst.msk [vmem:[%s5725_s18 + $0x28] sm:$0xff] %vm250_vm0, %v3115_v63  ;;  %v3081_v32 = vmul.f32 %v5716_v18, %v3045_v11  ;;  %3930 = vrsqrt.f32 %v2989_v61  ;;  %v2959_v12 = vmul.f32 0.03125, %v2899_v26  ;;  %v2958_v43 = vmul.f32 0.03125, %v2896_v1 }
 0x3db   : > { %v3919_v21 = vpop.eup %3918  ;;  %3146 = vst.msk [vmem:[%s5725_s18 + $0x20] sm:$0xff] %vm250_vm0, %v3114_v51  ;;  %v3080_v60 = vmul.f32 %v5716_v18, %v3044_v62  ;;  %3932 = vrsqrt.f32 %v2988_v25 }
 0x3dc   : > { %v3921_v30 = vpop.eup %3920  ;;  %v3117_v54 = vadd.f32 %v5718_v7, %v3081_v32  ;;  %v3047_v22 = vmul.f32 %v3919_v21, %v5565_v50  ;;  %v2991_v27 = vadd.f32 1e-05, %v2959_v12  ;;  %v2990_v42 = vadd.f32 1e-05, %v2958_v43 }
 0x3dd   : > { %v3116_v55 = vadd.f32 %v5718_v7, %v3080_v60  ;;  %v3046_v29 = vmul.f32 %v3921_v30, %v5568_v52  ;;  %v2905_v24 = vpop.xlane.xlu1 %2904  ;;  %v2902_v19 = vpop.xlane.xlu0 %2901 }
 0x3de   : > { %3149 = vst.msk [vmem:[%s5725_s18 + $0x38] sm:$0xff] %vm250_vm0, %v3117_v54  ;;  %v3083_v33 = vmul.f32 %v5716_v18, %v3047_v22  ;;  %3934 = vrsqrt.f32 %v2991_v27  ;;  %v2961_v4 = vmul.f32 0.03125, %v2905_v24  ;;  %v2960_v6 = vmul.f32 0.03125, %v2902_v19 }
 0x3df   : > { %v3923_v3 = vpop.eup %3922  ;;  %3148 = vst.msk [vmem:[%s5725_s18 + $0x30] sm:$0xff] %vm250_vm0, %v3116_v55  ;;  %v3082_v50 = vmul.f32 %v5716_v18, %v3046_v29  ;;  %3936 = vrsqrt.f32 %v2990_v42 }
 0x3e0   : > { %v3925_v16 = vpop.eup %3924  ;;  %v3119_v52 = vadd.f32 %v5718_v7, %v3083_v33  ;;  %v3049_v9 = vmul.f32 %v3923_v3, %v5577_v57  ;;  %v2993_v8 = vadd.f32 1e-05, %v2961_v4  ;;  %v2992_v48 = vadd.f32 1e-05, %v2960_v6 }
 0x3e1   : > { %v3118_v44 = vadd.f32 %v5718_v7, %v3082_v50  ;;  %v3048_v58 = vmul.f32 %v3925_v16, %v5580_v40  ;;  %v2911_v17 = vpop.xlane.xlu1 %2910  ;;  %v2908_v13 = vpop.xlane.xlu0 %2907 }
 0x3e2   : > { %3151 = vst.msk [vmem:[%s5725_s18 + $0x48] sm:$0xff] %vm250_vm0, %v3119_v52  ;;  %v3085_v0 = vmul.f32 %v5716_v18, %v3049_v9  ;;  %3938 = vrsqrt.f32 %v2993_v8  ;;  %v2963_v31 = vmul.f32 0.03125, %v2911_v17  ;;  %v2962_v49 = vmul.f32 0.03125, %v2908_v13 }
 0x3e3   : > { %v3927_v38 = vpop.eup %3926  ;;  %3150 = vst.msk [vmem:[%s5725_s18 + $0x40] sm:$0xff] %vm250_vm0, %v3118_v44  ;;  %v3084_v57 = vmul.f32 %v5716_v18, %v3048_v58  ;;  %3940 = vrsqrt.f32 %v2992_v48 }
 0x3e4   : > { %v3929_v63 = vpop.eup %3928  ;;  %v3121_v40 = vadd.f32 %v5718_v7, %v3085_v0  ;;  %v3051_v11 = vmul.f32 %v3927_v38, %v5589_v23  ;;  %v2995_v61 = vadd.f32 1e-05, %v2963_v31  ;;  %v2994_v25 = vadd.f32 1e-05, %v2962_v49 }
 0x3e5   : > { %v3120_v51 = vadd.f32 %v5718_v7, %v3084_v57  ;;  %v3050_v62 = vmul.f32 %v3929_v63, %v5592_v15  ;;  %v2917_v26 = vpop.xlane.xlu1 %2916  ;;  %v2914_v1 = vpop.xlane.xlu0 %2913 }
 0x3e6   : > { %3153 = vst.msk [vmem:[%s5725_s18 + $0x58] sm:$0xff] %vm250_vm0, %v3121_v40  ;;  %v3087_v32 = vmul.f32 %v5716_v18, %v3051_v11  ;;  %3942 = vrsqrt.f32 %v2995_v61  ;;  %v2965_v12 = vmul.f32 0.03125, %v2917_v26  ;;  %v2964_v43 = vmul.f32 0.03125, %v2914_v1 }
 0x3e7   : > { %v3931_v21 = vpop.eup %3930  ;;  %3152 = vst.msk [vmem:[%s5725_s18 + $0x50] sm:$0xff] %vm250_vm0, %v3120_v51  ;;  %v3086_v23 = vmul.f32 %v5716_v18, %v3050_v62  ;;  %3944 = vrsqrt.f32 %v2994_v25 }
 0x3e8   : > { %v3933_v60 = vpop.eup %3932  ;;  %v3123_v15 = vadd.f32 %v5718_v7, %v3087_v32  ;;  %v3053_v30 = vmul.f32 %v3931_v21, %v5601_v47  ;;  %v2997_v54 = vadd.f32 1e-05, %v2965_v12  ;;  %v2996_v22 = vadd.f32 1e-05, %v2964_v43 }
 0x3e9   : > { %v3122_v27 = vadd.f32 %v5718_v7, %v3086_v23  ;;  %v3052_v42 = vmul.f32 %v3933_v60, %v5604_v53  ;;  %v2923_v55 = vpop.xlane.xlu1 %2922  ;;  %v2920_v29 = vpop.xlane.xlu0 %2919 }
 0x3ea   : > { %3155 = vst.msk [vmem:[%s5725_s18 + $0x68] sm:$0xff] %vm250_vm0, %v3123_v15  ;;  %v3089_v24 = vmul.f32 %v5716_v18, %v3053_v30  ;;  %3946 = vrsqrt.f32 %v2997_v54  ;;  %v2967_v19 = vmul.f32 0.03125, %v2923_v55  ;;  %v2966_v33 = vmul.f32 0.03125, %v2920_v29 }
 0x3eb   : > { %v3935_v4 = vpop.eup %3934  ;;  %3154 = vst.msk [vmem:[%s5725_s18 + $0x60] sm:$0xff] %vm250_vm0, %v3122_v27  ;;  %v3088_v47 = vmul.f32 %v5716_v18, %v3052_v42  ;;  %3948 = vrsqrt.f32 %v2996_v22 }
 0x3ec   : > { %v3937_v6 = vpop.eup %3936  ;;  %v3125_v53 = vadd.f32 %v5718_v7, %v3089_v24  ;;  %v3055_v3 = vmul.f32 %v3935_v4, %v5613_v34  ;;  %v2999_v50 = vadd.f32 1e-05, %v2967_v19  ;;  %v2998_v16 = vadd.f32 1e-05, %v2966_v33 }
 0x3ed   : > { %v3124_v52 = vadd.f32 %v5718_v7, %v3088_v47  ;;  %v3054_v9 = vmul.f32 %v3937_v6, %v5616_v36  ;;  %v2929_v8 = vpop.xlane.xlu1 %2928  ;;  %v2926_v48 = vpop.xlane.xlu0 %2925 }
 0x3ee   : > { %3157 = vst.msk [vmem:[%s5725_s18 + $0x78] sm:$0xff] %vm250_vm0, %v3125_v53  ;;  %v3091_v44 = vmul.f32 %v5716_v18, %v3055_v3  ;;  %3950 = vrsqrt.f32 %v2999_v50  ;;  %v2969_v58 = vmul.f32 0.03125, %v2929_v8  ;;  %v2968_v17 = vmul.f32 0.03125, %v2926_v48 }
 0x3ef   : > { %v3939_v13 = vpop.eup %3938  ;;  %3156 = vst.msk [vmem:[%s5725_s18 + $0x70] sm:$0xff] %vm250_vm0, %v3124_v52  ;;  %v3090_v34 = vmul.f32 %v5716_v18, %v3054_v9  ;;  %3952 = vrsqrt.f32 %v2998_v16 }
 0x3f0   : > { %v3941_v0 = vpop.eup %3940  ;;  %v3127_v36 = vadd.f32 %v5718_v7, %v3091_v44  ;;  %v3057_v31 = vmul.f32 %v3939_v13, %v5625_v10  ;;  %v3001_v49 = vadd.f32 1e-05, %v2969_v58  ;;  %v3000_v38 = vadd.f32 1e-05, %v2968_v17 }
 0x3f1   : > { %v3126_v57 = vadd.f32 %v5718_v7, %v3090_v34  ;;  %v3056_v63 = vmul.f32 %v3941_v0, %v5628_v28  ;;  %v2935_v40 = vpop.xlane.xlu1 %2934  ;;  %v2932_v11 = vpop.xlane.xlu0 %2931 }
 0x3f2   : > { %3159 = vst.msk [vmem:[%s5725_s18 + $0x88] sm:$0xff] %vm250_vm0, %v3127_v36  ;;  %v3093_v61 = vmul.f32 %v5716_v18, %v3057_v31  ;;  %3954 = vrsqrt.f32 %v3001_v49  ;;  %v2971_v25 = vmul.f32 0.03125, %v2935_v40  ;;  %v2970_v51 = vmul.f32 0.03125, %v2932_v11 }
 0x3f3   : > { %v3943_v62 = vpop.eup %3942  ;;  %3158 = vst.msk [vmem:[%s5725_s18 + $0x80] sm:$0xff] %vm250_vm0, %v3126_v57  ;;  %v3092_v10 = vmul.f32 %v5716_v18, %v3056_v63  ;;  %3956 = vrsqrt.f32 %v3000_v38 }
 0x3f4   : > { %v3945_v26 = vpop.eup %3944  ;;  %v3129_v28 = vadd.f32 %v5718_v7, %v3093_v61  ;;  %v3059_v1 = vmul.f32 %v3943_v62, %v5637_v37  ;;  %v3003_v32 = vadd.f32 1e-05, %v2971_v25  ;;  %v3002_v12 = vadd.f32 1e-05, %v2970_v51 }
 0x3f5   : > { %v3128_v43 = vadd.f32 %v5718_v7, %v3092_v10  ;;  %v3058_v21 = vmul.f32 %v3945_v26, %v5640_v59  ;;  %v2941_v23 = vpop.xlane.xlu1 %2940  ;;  %v2938_v60 = vpop.xlane.xlu0 %2937 }
 0x3f6   : > { %3161 = vst.msk [vmem:[%s5725_s18 + $0x98] sm:$0xff] %vm250_vm0, %v3129_v28  ;;  %v3095_v15 = vmul.f32 %v5716_v18, %v3059_v1  ;;  %3958 = vrsqrt.f32 %v3003_v32  ;;  %v2973_v30 = vmul.f32 0.03125, %v2941_v23  ;;  %v2972_v54 = vmul.f32 0.03125, %v2938_v60 }
 0x3f7   : > { %v3947_v22 = vpop.eup %3946  ;;  %3160 = vst.msk [vmem:[%s5725_s18 + $0x90] sm:$0xff] %vm250_vm0, %v3128_v43  ;;  %v3094_v37 = vmul.f32 %v5716_v18, %v3058_v21  ;;  %3960 = vrsqrt.f32 %v3002_v12 }
 0x3f8   : > { %v3949_v27 = vpop.eup %3948  ;;  %v3131_v59 = vadd.f32 %v5718_v7, %v3095_v15  ;;  %v3061_v42 = vmul.f32 %v3947_v22, %v5649_v35  ;;  %v3005_v55 = vadd.f32 1e-05, %v2973_v30  ;;  %v3004_v29 = vadd.f32 1e-05, %v2972_v54 }
 0x3f9   : > { %v3130_v24 = vadd.f32 %v5718_v7, %v3094_v37  ;;  %v3060_v19 = vmul.f32 %v3949_v27, %v5652_v45 }
 0x3fa   : > { %3163 = vst.msk [vmem:[%s5725_s18 + $0xa8] sm:$0xff] %vm250_vm0, %v3131_v59  ;;  %v3097_v33 = vmul.f32 %v5716_v18, %v3061_v42  ;;  %3962 = vrsqrt.f32 %v3005_v55 }
 0x3fb   : > { %v3951_v4 = vpop.eup %3950  ;;  %3162 = vst.msk [vmem:[%s5725_s18 + $0xa0] sm:$0xff] %vm250_vm0, %v3130_v24  ;;  %v3096_v47 = vmul.f32 %v5716_v18, %v3060_v19  ;;  %3964 = vrsqrt.f32 %v3004_v29 }
 0x3fc   : > { %v3953_v35 = vpop.eup %3952  ;;  %v3133_v6 = vadd.f32 %v5718_v7, %v3097_v33  ;;  %v3063_v53 = vmul.f32 %v3951_v4, %v5661_v2 }
 0x3fd   : > { %v3132_v45 = vadd.f32 %v5718_v7, %v3096_v47  ;;  %v3062_v3 = vmul.f32 %v3953_v35, %v5664_v14 }
 0x3fe   : > { %3165 = vst.msk [vmem:[%s5725_s18 + $0xb8] sm:$0xff] %vm250_vm0, %v3133_v6  ;;  %v3099_v50 = vmul.f32 %v5716_v18, %v3063_v53 }
 0x3ff   : > { %v3955_v16 = vpop.eup %3954  ;;  %3164 = vst.msk [vmem:[%s5725_s18 + $0xb0] sm:$0xff] %vm250_vm0, %v3132_v45  ;;  %v3098_v52 = vmul.f32 %v5716_v18, %v3062_v3 }
 0x400   : > { %v3957_v9 = vpop.eup %3956  ;;  %v3135_v8 = vadd.f32 %v5718_v7, %v3099_v50  ;;  %v3065_v2 = vmul.f32 %v3955_v16, %v5673_v41 }
 0x401   : > { %v3134_v48 = vadd.f32 %v5718_v7, %v3098_v52  ;;  %v3064_v14 = vmul.f32 %v3957_v9, %v5676_v56 }
 0x402   : > { %3167 = vst.msk [vmem:[%s5725_s18 + $0xc8] sm:$0xff] %vm250_vm0, %v3135_v8  ;;  %v3101_v44 = vmul.f32 %v5716_v18, %v3065_v2 }
 0x403   : > { %v3959_v58 = vpop.eup %3958  ;;  %3166 = vst.msk [vmem:[%s5725_s18 + $0xc0] sm:$0xff] %vm250_vm0, %v3134_v48  ;;  %v3100_v17 = vmul.f32 %v5716_v18, %v3064_v14 }
 0x404   : > { %v3961_v13 = vpop.eup %3960  ;;  %v3137_v34 = vadd.f32 %v5718_v7, %v3101_v44  ;;  %v3067_v41 = vmul.f32 %v3959_v58, %v5685_v5 }
 0x405   : > { %v3136_v0 = vadd.f32 %v5718_v7, %v3100_v17  ;;  %v3066_v56 = vmul.f32 %v3961_v13, %v5688_v20 }
 0x406   : > { %3169 = vst.msk [vmem:[%s5725_s18 + $0xd8] sm:$0xff] %vm250_vm0, %v3137_v34  ;;  %v3103_v36 = vmul.f32 %v5716_v18, %v3067_v41 }
 0x407   : > { %v3963_v31 = vpop.eup %3962  ;;  %3168 = vst.msk [vmem:[%s5725_s18 + $0xd0] sm:$0xff] %vm250_vm0, %v3136_v0  ;;  %v3102_v49 = vmul.f32 %v5716_v18, %v3066_v56 }
 0x408   : > { %v3965_v38 = vpop.eup %3964  ;;  %v3139_v57 = vadd.f32 %v5718_v7, %v3103_v36  ;;  %v3069_v5 = vmul.f32 %v3963_v31, %v5697_v46 }
 0x409   : > { %v3138_v63 = vadd.f32 %v5718_v7, %v3102_v49  ;;  %v3068_v20 = vmul.f32 %v3965_v38, %v5700_v39 }
 0x40a   : > { %3171 = vst.msk [vmem:[%s5725_s18 + $0xe8] sm:$0xff] %vm250_vm0, %v3139_v57  ;;  %v3105_v40 = vmul.f32 %v5716_v18, %v3069_v5 }
 0x40b   : > { %3170 = vst.msk [vmem:[%s5725_s18 + $0xe0] sm:$0xff] %vm250_vm0, %v3138_v63  ;;  %v3104_v11 = vmul.f32 %v5716_v18, %v3068_v20 }
 0x40c   : > { %v3141_v61 = vadd.f32 %v5718_v7, %v3105_v40 }
 0x40d   : > { %v3140_v25 = vadd.f32 %v5718_v7, %v3104_v11 }
 0x40e   : > { %3173 = vst.msk [vmem:[%s5725_s18 + $0xf8] sm:$0xff] %vm250_vm0, %v3141_v61 }
 0x40f   : > { %3172 = vst.msk [vmem:[%s5725_s18 + $0xf0] sm:$0xff] %vm250_vm0, %v3140_v25 }
 0x410 PF: > { %s14_s17 = sadd.s32 1, %s3990_s17   ;;  %s6071_s15 = smov %s3986_s16 }
 0x411   : > { %p11_p6 = scmp.ge.s32.totalorder %s14_s17, 4   ;;  %s6072_s16 = smov %s6074_s3 }
 0x413   :  { %13 = sbr.rel (!%p11_p6) target bundleno = 2 (0x2), region = 62 }

</bundles_post_ra>
